<compile_context>
chip_gen: v7x
topology: tpu7x:2x2x1
jax: 0.10.0
libtpu: 0.0.40
codegen_flags: <defaults>
</compile_context>

<pallas_src>
import math
import numpy as np
import jax
import jax.numpy as jnp
from jax.experimental import pallas as pl
from jax.experimental.pallas import tpu as pltpu

# ---------------------------------------------------------------------------
# Idealized peptide geometry (bond lengths [A], bond angles [rad]).
# Each step is (d, cos(theta), sin(theta)) — plain Python floats, inlined.
# ---------------------------------------------------------------------------
_TH_N_CA = math.radians(121.7)   # step N  -> CA  (driven by phi)
_TH_CA_C = math.radians(111.2)   # step CA -> C   (driven by psi)
_TH_C_N = math.radians(116.2)    # step C  -> N'  (driven by omega)

_STEP_N_CA = (1.460, math.cos(_TH_N_CA), math.sin(_TH_N_CA))
_STEP_CA_C = (1.525, math.cos(_TH_CA_C), math.sin(_TH_CA_C))
_STEP_C_N = (1.330, math.cos(_TH_C_N), math.sin(_TH_C_N))

_LANE = 128   # lanes per batch tile


# ---------------------------------------------------------------------------
# Pallas kernel: one grid step per (SP x 128) batch tile; sequential rigid
# transform chain over residues, fully vectorized over the batch tile.
# ---------------------------------------------------------------------------
def _angles2coords_kernel(ang_ref, nres_ref, out_ref, cos_s, sin_s):
    L, _, SP, BT = ang_ref.shape

    # All transcendentals up front (single EUP pass, off the dependent chain).
    ang = ang_ref[...]                              # (L, 3, SP, BT) f32
    cos_s[...] = jnp.cos(ang)
    sin_s[...] = jnp.sin(ang)

    nres = nres_ref[...]                            # (SP, BT) int32

    zero = jnp.zeros((SP, BT), jnp.float32)
    one = jnp.ones((SP, BT), jnp.float32)
    # Cumulative rigid transform, batch packed on (sublane, lane):
    #   rows 0..8 = 3x3 rotation (row-major), rows 9..11 = translation.
    state0 = (one, zero, zero,
              zero, one, zero,
              zero, zero, one,
              zero, zero, zero)

    def compose(state, cp, sp_, step):
        """M_new = M @ T(d, theta, dihedral); only the 12 live entries.

        New rotation columns are R @ v with v0=(-ct, st*cp, st*sp),
        v1=(-st, -ct*cp, -ct*sp), v2=(0, -sp, cp) — exactly orthonormal.
        """
        d, ct, st = step                            # Python float constants
        r00, r01, r02, r10, r11, r12, r20, r21, r22, tx, ty, tz = state
        a = st * cp                                  # full-vreg VPU products
        b = st * sp_
        c = ct * cp
        e = ct * sp_
        # new rotation column 0
        n00 = a * r01 + b * r02 - ct * r00
        n10 = a * r11 + b * r12 - ct * r10
        n20 = a * r21 + b * r22 - ct * r20
        # new rotation column 1
        n01 = -(st * r00 + c * r01 + e * r02)
        n11 = -(st * r10 + c * r11 + e * r12)
        n21 = -(st * r20 + c * r21 + e * r22)
        # new rotation column 2
        n02 = cp * r02 - sp_ * r01
        n12 = cp * r12 - sp_ * r11
        n22 = cp * r22 - sp_ * r21
        # translation: new atom position = t + d * (new column 0)
        ntx = tx + d * n00
        nty = ty + d * n10
        ntz = tz + d * n20
        return (n00, n01, n02, n10, n11, n12, n20, n21, n22, ntx, nty, ntz)

    def body(r, state):
        cs = cos_s[r]                               # (3, SP, BT)
        sn = sin_s[r]
        live = r < nres                             # (SP, BT) bool, 1 compare

        n_x, n_y, n_z = state[9], state[10], state[11]                 # N_r
        state = compose(state, cs[0], sn[0], _STEP_N_CA)               # phi
        ca_x, ca_y, ca_z = state[9], state[10], state[11]              # CA_r
        state = compose(state, cs[1], sn[1], _STEP_CA_C)               # psi
        c_x, c_y, c_z = state[9], state[10], state[11]                 # C_r
        state = compose(state, cs[2], sn[2], _STEP_C_N)                # omega

        # Nine direct lane-dense row stores; pad-residue mask fused in.
        rows = (n_x, n_y, n_z, ca_x, ca_y, ca_z, c_x, c_y, c_z)
        for k, val in enumerate(rows):
            out_ref[r, k] = jnp.where(live, val, zero)
        return state

    jax.lax.fori_loop(0, L, body, state0, unroll=min(L, 8))


def _choose_packing(batch_size):
    """Sublane-pack factor SP = min(8, ceil(B/128)); nb lane tiles on the grid."""
    lane_groups = -(-batch_size // _LANE)
    sp = max(1, min(8, lane_groups))
    nb = -(-lane_groups // sp)
    return sp, nb


def _pallas_backbone_coords(ang_lsb, nres_sb, nb):
    """ang_lsb: (L, 3, SP, nb*128) f32, nres_sb: (SP, nb*128) int32
       -> (L, 9, SP, nb*128) f32."""
    L, three, sp, bl = ang_lsb.shape
    assert three == 3 and bl == nb * _LANE
    BT = _LANE

    # Per-tile VMEM footprint: double-buffered in/out blocks + cos/sin scratch.
    sp8 = max(sp, 8)
    est = 4 * BT * sp8 * L * (2 * 3 + 2 * 9 + 2 * 3) + (1 << 20)
    vmem_limit = int(min(100 * 1024 * 1024, max(16 * 1024 * 1024, 2 * est)))

    grid_spec = pltpu.PrefetchScalarGridSpec(
        num_scalar_prefetch=0,
        grid=(nb,),
        in_specs=[
            # Tiled (last two) dims are always (SP, 128): sublane/lane dense.
            pl.BlockSpec((L, 3, sp, BT), lambda i: (0, 0, 0, i)),
            pl.BlockSpec((sp, BT), lambda i: (0, i)),
        ],
        out_specs=pl.BlockSpec((L, 9, sp, BT), lambda i: (0, 0, 0, i)),
        scratch_shapes=[
            pltpu.VMEM((L, 3, sp, BT), jnp.float32),   # cos
            pltpu.VMEM((L, 3, sp, BT), jnp.float32),   # sin
        ],
    )
    return pl.pallas_call(
        _angles2coords_kernel,
        out_shape=jax.ShapeDtypeStruct((L, 9, sp, bl), jnp.float32),
        grid_spec=grid_spec,
        compiler_params=pltpu.CompilerParams(
            dimension_semantics=("parallel",),
            vmem_limit_bytes=vmem_limit),
    )(ang_lsb, nres_sb)


# ---------------------------------------------------------------------------
# Glue reproducing the torch module's outputs (names / num_atoms are host-side
# string tables in the original C++ too — not a compute hot path).
# ---------------------------------------------------------------------------
_AA3 = {'A': 'ALA', 'R': 'ARG', 'N': 'ASN', 'D': 'ASP', 'C': 'CYS', 'E': 'GLU',
        'Q': 'GLN', 'G': 'GLY', 'H': 'HIS', 'I': 'ILE', 'L': 'LEU', 'K': 'LYS',
        'M': 'MET', 'F': 'PHE', 'P': 'PRO', 'S': 'SER', 'T': 'THR', 'W': 'TRP',
        'Y': 'TYR', 'V': 'VAL'}
_BACKBONE = ("N", "CA", "C")


def _name_tensors(sequences, max_num_atoms):
    B = len(sequences)
    resnames = np.zeros((B, max_num_atoms, 4), dtype=np.uint8)
    atomnames = np.zeros((B, max_num_atoms, 4), dtype=np.uint8)
    for b, seq in enumerate(sequences):
        for r, aa in enumerate(seq):
            code = _AA3.get(aa, 'UNK').encode('ascii')
            for k, an in enumerate(_BACKBONE):
                idx = 3 * r + k
                resnames[b, idx, :len(code)] = np.frombuffer(code, dtype=np.uint8)
                ab = an.encode('ascii')
                atomnames[b, idx, :len(ab)] = np.frombuffer(ab, dtype=np.uint8)
    return jnp.asarray(resnames), jnp.asarray(atomnames)


def angles2coords(input_angles, sequences):
    """Forward pass mirroring Angles2Coords.forward.

    input_angles: f32 [B, 8, L] with L == max(len(seq)); rows 0..2 = phi, psi, omega.
    Returns (coords [B, 3*max_num_atoms] f32,
             resnames [B, max_num_atoms, 4] uint8,
             atomnames [B, max_num_atoms, 4] uint8,
             num_atoms [B] int32).
    """
    input_angles = jnp.asarray(input_angles, dtype=jnp.float32)
    B, A, L = input_angles.shape
    assert A >= 3 and L >= 1 and B >= 1

    nres_np = np.asarray([len(s) for s in sequences], dtype=np.int32)
    nres = jnp.asarray(nres_np)
    num_atoms = 3 * nres                                   # backbone atoms per seq
    max_res = int(nres_np.max())
    max_num_atoms = 3 * max_res                            # == torch.max(num_atoms)

    sp, nb = _choose_packing(B)
    Bp = sp * nb * _LANE

    # Only phi/psi/omega rows are used; zero pad residues so garbage pad angles
    # can never poison the cumulative transform chain.
    ang3 = input_angles[:, 0:3, :]                                      # (B, 3, L)
    valid = (jnp.arange(L, dtype=jnp.int32)[None, None, :]
             < nres[:, None, None])
    ang3 = jnp.where(valid, ang3, 0.0)

    # Batch packed onto (sublane, lane) = (sp, nb*128).  The single transpose
    # pair below is the layout plumbing required by the (B, 3*natoms) contract;
    # the kernel itself stays lane-batched end to end.
    ang_lsb = jnp.transpose(ang3, (2, 1, 0))                            # (L, 3, B)
    ang_lsb = jnp.pad(ang_lsb, ((0, 0), (0, 0), (0, Bp - B)))
    ang_lsb = ang_lsb.reshape(L, 3, sp, nb * _LANE)
    nres_sb = jnp.pad(nres, (0, Bp - B)).reshape(sp, nb * _LANE)

    coords_l9sb = _pallas_backbone_coords(ang_lsb, nres_sb, nb)         # (L,9,sp,nb*128)

    coords = coords_l9sb.reshape(L, 9, Bp)[:, :, :B]
    coords = jnp.transpose(coords, (2, 0, 1))                           # (B, L, 9)
    coords = coords[:, :max_res, :].reshape(B, 3 * max_num_atoms)       # x0,y0,z0,...

    resnames, atomnames = _name_tensors(sequences, max_num_atoms)
    return coords, resnames, atomnames, num_atoms


if __name__ == "__main__":
    key = jax.random.PRNGKey(0)
    sequences = ["GAVLIKDE", "AAAAGG"]          # batch=2, max_seq_len=8
    B, A, L = 2, 8, max(len(s) for s in sequences)
    angles = jax.random.uniform(key, (B, A, L), dtype=jnp.float32,
                                minval=-math.pi, maxval=math.pi)

    coords, resnames, atomnames, num_atoms = angles2coords(angles, sequences)
    coords = jax.block_until_ready(coords)

    assert coords.shape == (B, 3 * 3 * L)
    assert resnames.shape == (B, 3 * L, 4) and resnames.dtype == jnp.uint8
    assert atomnames.shape == (B, 3 * L, 4) and atomnames.dtype == jnp.uint8
    assert num_atoms.shape == (B,) and num_atoms.dtype == jnp.int32
    assert bool(jnp.all(jnp.isfinite(coords)))

    # Sanity: first N-CA bond length of sequence 0 must equal 1.460 A.
    c0 = np.asarray(coords[0]).reshape(-1, 3)
    d_n_ca = float(np.linalg.norm(c0[1] - c0[0]))
    assert abs(d_n_ca - 1.460) < 1e-3, d_n_ca
    # Padded tail of the shorter sequence must be zero (mask fused in kernel).
    tail = np.asarray(coords[1]).reshape(-1, 3)[3 * len(sequences[1]):]
    assert float(np.abs(tail).max()) == 0.0

    print("KERNEL_OK")
</pallas_src>

<mosaic_0001>
module attributes {stable_mosaic.version = 11 : i64} {
  func.func @_angles2coords_kernel(%arg0: i32, %arg1: memref<8x3x1x128xf32, #tpu.memory_space<vmem>>, %arg2: memref<1x128xi32, #tpu.memory_space<vmem>>, %arg3: memref<8x9x1x128xf32, #tpu.memory_space<vmem>>, %arg4: memref<8x3x1x128xf32, #tpu.memory_space<vmem>>, %arg5: memref<8x3x1x128xf32, #tpu.memory_space<vmem>>) attributes {dimension_semantics = [#tpu.dimension_semantics<parallel>], iteration_bounds = array<i64: 1>, scalar_prefetch = 0 : i64, scratch_operands = 2 : i64, tpu.core_type = #tpu.core_type<tc>, window_params = [{transform_indices = @transform_0, window_bounds = array<i64: 8, 3, 1, 128>}, {transform_indices = @transform_1, window_bounds = array<i64: 1, 128>}, {transform_indices = @transform_2, window_bounds = array<i64: 8, 9, 1, 128>}]} {
    %c0 = arith.constant 0 : index
    %c0_0 = arith.constant 0 : index
    %c0_1 = arith.constant 0 : index
    %c0_2 = arith.constant 0 : index
    %0 = vector.load %arg1[%c0, %c0_0, %c0_1, %c0_2] : memref<8x3x1x128xf32, #tpu.memory_space<vmem>>, vector<8x3x1x128xf32>
    %1 = math.cos %0 : vector<8x3x1x128xf32>
    %c0_3 = arith.constant 0 : index
    %c0_4 = arith.constant 0 : index
    %c0_5 = arith.constant 0 : index
    %c0_6 = arith.constant 0 : index
    %2 = vector.load %arg4[%c0_3, %c0_4, %c0_5, %c0_6] : memref<8x3x1x128xf32, #tpu.memory_space<vmem>>, vector<8x3x1x128xf32>
    tpu.vector_store %arg4[%c0_3, %c0_4, %c0_5, %c0_6], %1 {strides = array<i32>} : memref<8x3x1x128xf32, #tpu.memory_space<vmem>>, vector<8x3x1x128xf32>,
    %3 = math.sin %0 : vector<8x3x1x128xf32>
    %c0_7 = arith.constant 0 : index
    %c0_8 = arith.constant 0 : index
    %c0_9 = arith.constant 0 : index
    %c0_10 = arith.constant 0 : index
    %4 = vector.load %arg5[%c0_7, %c0_8, %c0_9, %c0_10] : memref<8x3x1x128xf32, #tpu.memory_space<vmem>>, vector<8x3x1x128xf32>
    tpu.vector_store %arg5[%c0_7, %c0_8, %c0_9, %c0_10], %3 {strides = array<i32>} : memref<8x3x1x128xf32, #tpu.memory_space<vmem>>, vector<8x3x1x128xf32>,
    %c0_11 = arith.constant 0 : index
    %c0_12 = arith.constant 0 : index
    %5 = vector.load %arg2[%c0_11, %c0_12] : memref<1x128xi32, #tpu.memory_space<vmem>>, vector<1x128xi32>
    %cst = arith.constant 0.000000e+00 : f32
    %6 = vector.broadcast %cst : f32 to vector<1x128xf32>
    %cst_13 = arith.constant 1.000000e+00 : f32
    %7 = vector.broadcast %cst_13 : f32 to vector<1x128xf32>
    %c0_i32 = arith.constant 0 : i32
    %8 = arith.index_cast %c0_i32 : i32 to index
    %c0_14 = arith.constant 0 : index
    %c0_15 = arith.constant 0 : index
    %c0_16 = arith.constant 0 : index
    %9 = vector.load %arg4[%8, %c0_14, %c0_15, %c0_16] : memref<8x3x1x128xf32, #tpu.memory_space<vmem>>, vector<1x3x1x128xf32>
    %10 = vector.shape_cast %9 : vector<1x3x1x128xf32> to vector<3x1x128xf32>
    %11 = arith.index_cast %c0_i32 : i32 to index
    %c0_17 = arith.constant 0 : index
    %c0_18 = arith.constant 0 : index
    %c0_19 = arith.constant 0 : index
    %12 = vector.load %arg5[%11, %c0_17, %c0_18, %c0_19] : memref<8x3x1x128xf32, #tpu.memory_space<vmem>>, vector<1x3x1x128xf32>
    %13 = vector.shape_cast %12 : vector<1x3x1x128xf32> to vector<3x1x128xf32>
    %14 = vector.broadcast %c0_i32 : i32 to vector<1x128xi32>
    %15 = arith.cmpi slt, %14, %5 : vector<1x128xi32>
    %16 = vector.extract_strided_slice %10 {offsets = [0, 0, 0], sizes = [1, 1, 128], strides = [1, 1, 1]} : vector<3x1x128xf32> to vector<1x1x128xf32>
    %17 = vector.shape_cast %16 : vector<1x1x128xf32> to vector<1x128xf32>
    %18 = vector.extract_strided_slice %13 {offsets = [0, 0, 0], sizes = [1, 1, 128], strides = [1, 1, 1]} : vector<3x1x128xf32> to vector<1x1x128xf32>
    %19 = vector.shape_cast %18 : vector<1x1x128xf32> to vector<1x128xf32>
    %cst_20 = arith.constant 0.850811123 : f32
    %20 = vector.broadcast %cst_20 : f32 to vector<1x128xf32>
    %21 = arith.mulf %20, %17 : vector<1x128xf32>
    %cst_21 = arith.constant 0.850811123 : f32
    %22 = vector.broadcast %cst_21 : f32 to vector<1x128xf32>
    %23 = arith.mulf %22, %19 : vector<1x128xf32>
    %cst_22 = arith.constant -0.525471628 : f32
    %24 = vector.broadcast %cst_22 : f32 to vector<1x128xf32>
    %25 = arith.mulf %24, %17 : vector<1x128xf32>
    %cst_23 = arith.constant -0.525471628 : f32
    %26 = vector.broadcast %cst_23 : f32 to vector<1x128xf32>
    %27 = arith.mulf %26, %19 : vector<1x128xf32>
    %28 = arith.mulf %21, %6 : vector<1x128xf32>
    %29 = arith.mulf %23, %6 : vector<1x128xf32>
    %30 = arith.addf %28, %29 : vector<1x128xf32>
    %cst_24 = arith.constant -0.525471628 : f32
    %31 = vector.broadcast %cst_24 : f32 to vector<1x128xf32>
    %32 = arith.mulf %31, %7 : vector<1x128xf32>
    %33 = arith.subf %30, %32 : vector<1x128xf32>
    %34 = arith.mulf %21, %7 : vector<1x128xf32>
    %35 = arith.mulf %23, %6 : vector<1x128xf32>
    %36 = arith.addf %34, %35 : vector<1x128xf32>
    %cst_25 = arith.constant -0.525471628 : f32
    %37 = vector.broadcast %cst_25 : f32 to vector<1x128xf32>
    %38 = arith.mulf %37, %6 : vector<1x128xf32>
    %39 = arith.subf %36, %38 : vector<1x128xf32>
    %40 = arith.mulf %21, %6 : vector<1x128xf32>
    %41 = arith.mulf %23, %7 : vector<1x128xf32>
    %42 = arith.addf %40, %41 : vector<1x128xf32>
    %cst_26 = arith.constant -0.525471628 : f32
    %43 = vector.broadcast %cst_26 : f32 to vector<1x128xf32>
    %44 = arith.mulf %43, %6 : vector<1x128xf32>
    %45 = arith.subf %42, %44 : vector<1x128xf32>
    %cst_27 = arith.constant 0.850811123 : f32
    %46 = vector.broadcast %cst_27 : f32 to vector<1x128xf32>
    %47 = arith.mulf %46, %7 : vector<1x128xf32>
    %48 = arith.mulf %25, %6 : vector<1x128xf32>
    %49 = arith.addf %47, %48 : vector<1x128xf32>
    %50 = arith.mulf %27, %6 : vector<1x128xf32>
    %51 = arith.addf %49, %50 : vector<1x128xf32>
    %cst_28 = arith.constant 0.000000e+00 : f32
    %52 = vector.broadcast %cst_28 : f32 to vector<1x128xf32>
    %53 = arith.subf %52, %51 : vector<1x128xf32>
    %cst_29 = arith.constant 0.850811123 : f32
    %54 = vector.broadcast %cst_29 : f32 to vector<1x128xf32>
    %55 = arith.mulf %54, %6 : vector<1x128xf32>
    %56 = arith.mulf %25, %7 : vector<1x128xf32>
    %57 = arith.addf %55, %56 : vector<1x128xf32>
    %58 = arith.mulf %27, %6 : vector<1x128xf32>
    %59 = arith.addf %57, %58 : vector<1x128xf32>
    %cst_30 = arith.constant 0.000000e+00 : f32
    %60 = vector.broadcast %cst_30 : f32 to vector<1x128xf32>
    %61 = arith.subf %60, %59 : vector<1x128xf32>
    %cst_31 = arith.constant 0.850811123 : f32
    %62 = vector.broadcast %cst_31 : f32 to vector<1x128xf32>
    %63 = arith.mulf %62, %6 : vector<1x128xf32>
    %64 = arith.mulf %25, %6 : vector<1x128xf32>
    %65 = arith.addf %63, %64 : vector<1x128xf32>
    %66 = arith.mulf %27, %7 : vector<1x128xf32>
    %67 = arith.addf %65, %66 : vector<1x128xf32>
    %cst_32 = arith.constant 0.000000e+00 : f32
    %68 = vector.broadcast %cst_32 : f32 to vector<1x128xf32>
    %69 = arith.subf %68, %67 : vector<1x128xf32>
    %70 = arith.mulf %17, %6 : vector<1x128xf32>
    %71 = arith.mulf %19, %6 : vector<1x128xf32>
    %72 = arith.subf %70, %71 : vector<1x128xf32>
    %73 = arith.mulf %17, %6 : vector<1x128xf32>
    %74 = arith.mulf %19, %7 : vector<1x128xf32>
    %75 = arith.subf %73, %74 : vector<1x128xf32>
    %76 = arith.mulf %17, %7 : vector<1x128xf32>
    %77 = arith.mulf %19, %6 : vector<1x128xf32>
    %78 = arith.subf %76, %77 : vector<1x128xf32>
    %cst_33 = arith.constant 1.460000e+00 : f32
    %79 = vector.broadcast %cst_33 : f32 to vector<1x128xf32>
    %80 = arith.mulf %79, %33 : vector<1x128xf32>
    %81 = arith.addf %6, %80 : vector<1x128xf32>
    %cst_34 = arith.constant 1.460000e+00 : f32
    %82 = vector.broadcast %cst_34 : f32 to vector<1x128xf32>
    %83 = arith.mulf %82, %39 : vector<1x128xf32>
    %84 = arith.addf %6, %83 : vector<1x128xf32>
    %cst_35 = arith.constant 1.460000e+00 : f32
    %85 = vector.broadcast %cst_35 : f32 to vector<1x128xf32>
    %86 = arith.mulf %85, %45 : vector<1x128xf32>
    %87 = arith.addf %6, %86 : vector<1x128xf32>
    %88 = vector.extract_strided_slice %10 {offsets = [1, 0, 0], sizes = [1, 1, 128], strides = [1, 1, 1]} : vector<3x1x128xf32> to vector<1x1x128xf32>
    %89 = vector.shape_cast %88 : vector<1x1x128xf32> to vector<1x128xf32>
    %90 = vector.extract_strided_slice %13 {offsets = [1, 0, 0], sizes = [1, 1, 128], strides = [1, 1, 1]} : vector<3x1x128xf32> to vector<1x1x128xf32>
    %91 = vector.shape_cast %90 : vector<1x1x128xf32> to vector<1x128xf32>
    %cst_36 = arith.constant 0.932323813 : f32
    %92 = vector.broadcast %cst_36 : f32 to vector<1x128xf32>
    %93 = arith.mulf %92, %89 : vector<1x128xf32>
    %cst_37 = arith.constant 0.932323813 : f32
    %94 = vector.broadcast %cst_37 : f32 to vector<1x128xf32>
    %95 = arith.mulf %94, %91 : vector<1x128xf32>
    %cst_38 = arith.constant -0.361624569 : f32
    %96 = vector.broadcast %cst_38 : f32 to vector<1x128xf32>
    %97 = arith.mulf %96, %89 : vector<1x128xf32>
    %cst_39 = arith.constant -0.361624569 : f32
    %98 = vector.broadcast %cst_39 : f32 to vector<1x128xf32>
    %99 = arith.mulf %98, %91 : vector<1x128xf32>
    %100 = arith.mulf %93, %53 : vector<1x128xf32>
    %101 = arith.mulf %95, %72 : vector<1x128xf32>
    %102 = arith.addf %100, %101 : vector<1x128xf32>
    %cst_40 = arith.constant -0.361624569 : f32
    %103 = vector.broadcast %cst_40 : f32 to vector<1x128xf32>
    %104 = arith.mulf %103, %33 : vector<1x128xf32>
    %105 = arith.subf %102, %104 : vector<1x128xf32>
    %106 = arith.mulf %93, %61 : vector<1x128xf32>
    %107 = arith.mulf %95, %75 : vector<1x128xf32>
    %108 = arith.addf %106, %107 : vector<1x128xf32>
    %cst_41 = arith.constant -0.361624569 : f32
    %109 = vector.broadcast %cst_41 : f32 to vector<1x128xf32>
    %110 = arith.mulf %109, %39 : vector<1x128xf32>
    %111 = arith.subf %108, %110 : vector<1x128xf32>
    %112 = arith.mulf %93, %69 : vector<1x128xf32>
    %113 = arith.mulf %95, %78 : vector<1x128xf32>
    %114 = arith.addf %112, %113 : vector<1x128xf32>
    %cst_42 = arith.constant -0.361624569 : f32
    %115 = vector.broadcast %cst_42 : f32 to vector<1x128xf32>
    %116 = arith.mulf %115, %45 : vector<1x128xf32>
    %117 = arith.subf %114, %116 : vector<1x128xf32>
    %cst_43 = arith.constant 0.932323813 : f32
    %118 = vector.broadcast %cst_43 : f32 to vector<1x128xf32>
    %119 = arith.mulf %118, %33 : vector<1x128xf32>
    %120 = arith.mulf %97, %53 : vector<1x128xf32>
    %121 = arith.addf %119, %120 : vector<1x128xf32>
    %122 = arith.mulf %99, %72 : vector<1x128xf32>
    %123 = arith.addf %121, %122 : vector<1x128xf32>
    %cst_44 = arith.constant 0.000000e+00 : f32
    %124 = vector.broadcast %cst_44 : f32 to vector<1x128xf32>
    %125 = arith.subf %124, %123 : vector<1x128xf32>
    %cst_45 = arith.constant 0.932323813 : f32
    %126 = vector.broadcast %cst_45 : f32 to vector<1x128xf32>
    %127 = arith.mulf %126, %39 : vector<1x128xf32>
    %128 = arith.mulf %97, %61 : vector<1x128xf32>
    %129 = arith.addf %127, %128 : vector<1x128xf32>
    %130 = arith.mulf %99, %75 : vector<1x128xf32>
    %131 = arith.addf %129, %130 : vector<1x128xf32>
    %cst_46 = arith.constant 0.000000e+00 : f32
    %132 = vector.broadcast %cst_46 : f32 to vector<1x128xf32>
    %133 = arith.subf %132, %131 : vector<1x128xf32>
    %cst_47 = arith.constant 0.932323813 : f32
    %134 = vector.broadcast %cst_47 : f32 to vector<1x128xf32>
    %135 = arith.mulf %134, %45 : vector<1x128xf32>
    %136 = arith.mulf %97, %69 : vector<1x128xf32>
    %137 = arith.addf %135, %136 : vector<1x128xf32>
    %138 = arith.mulf %99, %78 : vector<1x128xf32>
    %139 = arith.addf %137, %138 : vector<1x128xf32>
    %cst_48 = arith.constant 0.000000e+00 : f32
    %140 = vector.broadcast %cst_48 : f32 to vector<1x128xf32>
    %141 = arith.subf %140, %139 : vector<1x128xf32>
    %142 = arith.mulf %89, %72 : vector<1x128xf32>
    %143 = arith.mulf %91, %53 : vector<1x128xf32>
    %144 = arith.subf %142, %143 : vector<1x128xf32>
    %145 = arith.mulf %89, %75 : vector<1x128xf32>
    %146 = arith.mulf %91, %61 : vector<1x128xf32>
    %147 = arith.subf %145, %146 : vector<1x128xf32>
    %148 = arith.mulf %89, %78 : vector<1x128xf32>
    %149 = arith.mulf %91, %69 : vector<1x128xf32>
    %150 = arith.subf %148, %149 : vector<1x128xf32>
    %cst_49 = arith.constant 1.525000e+00 : f32
    %151 = vector.broadcast %cst_49 : f32 to vector<1x128xf32>
    %152 = arith.mulf %151, %105 : vector<1x128xf32>
    %153 = arith.addf %81, %152 : vector<1x128xf32>
    %cst_50 = arith.constant 1.525000e+00 : f32
    %154 = vector.broadcast %cst_50 : f32 to vector<1x128xf32>
    %155 = arith.mulf %154, %111 : vector<1x128xf32>
    %156 = arith.addf %84, %155 : vector<1x128xf32>
    %cst_51 = arith.constant 1.525000e+00 : f32
    %157 = vector.broadcast %cst_51 : f32 to vector<1x128xf32>
    %158 = arith.mulf %157, %117 : vector<1x128xf32>
    %159 = arith.addf %87, %158 : vector<1x128xf32>
    %160 = vector.extract_strided_slice %10 {offsets = [2, 0, 0], sizes = [1, 1, 128], strides = [1, 1, 1]} : vector<3x1x128xf32> to vector<1x1x128xf32>
    %161 = vector.shape_cast %160 : vector<1x1x128xf32> to vector<1x128xf32>
    %162 = vector.extract_strided_slice %13 {offsets = [2, 0, 0], sizes = [1, 1, 128], strides = [1, 1, 1]} : vector<3x1x128xf32> to vector<1x1x128xf32>
    %163 = vector.shape_cast %162 : vector<1x1x128xf32> to vector<1x128xf32>
    %cst_52 = arith.constant 0.897258341 : f32
    %164 = vector.broadcast %cst_52 : f32 to vector<1x128xf32>
    %165 = arith.mulf %164, %161 : vector<1x128xf32>
    %cst_53 = arith.constant 0.897258341 : f32
    %166 = vector.broadcast %cst_53 : f32 to vector<1x128xf32>
    %167 = arith.mulf %166, %163 : vector<1x128xf32>
    %cst_54 = arith.constant -0.441505849 : f32
    %168 = vector.broadcast %cst_54 : f32 to vector<1x128xf32>
    %169 = arith.mulf %168, %161 : vector<1x128xf32>
    %cst_55 = arith.constant -0.441505849 : f32
    %170 = vector.broadcast %cst_55 : f32 to vector<1x128xf32>
    %171 = arith.mulf %170, %163 : vector<1x128xf32>
    %172 = arith.mulf %165, %125 : vector<1x128xf32>
    %173 = arith.mulf %167, %144 : vector<1x128xf32>
    %174 = arith.addf %172, %173 : vector<1x128xf32>
    %cst_56 = arith.constant -0.441505849 : f32
    %175 = vector.broadcast %cst_56 : f32 to vector<1x128xf32>
    %176 = arith.mulf %175, %105 : vector<1x128xf32>
    %177 = arith.subf %174, %176 : vector<1x128xf32>
    %178 = arith.mulf %165, %133 : vector<1x128xf32>
    %179 = arith.mulf %167, %147 : vector<1x128xf32>
    %180 = arith.addf %178, %179 : vector<1x128xf32>
    %cst_57 = arith.constant -0.441505849 : f32
    %181 = vector.broadcast %cst_57 : f32 to vector<1x128xf32>
    %182 = arith.mulf %181, %111 : vector<1x128xf32>
    %183 = arith.subf %180, %182 : vector<1x128xf32>
    %184 = arith.mulf %165, %141 : vector<1x128xf32>
    %185 = arith.mulf %167, %150 : vector<1x128xf32>
    %186 = arith.addf %184, %185 : vector<1x128xf32>
    %cst_58 = arith.constant -0.441505849 : f32
    %187 = vector.broadcast %cst_58 : f32 to vector<1x128xf32>
    %188 = arith.mulf %187, %117 : vector<1x128xf32>
    %189 = arith.subf %186, %188 : vector<1x128xf32>
    %cst_59 = arith.constant 0.897258341 : f32
    %190 = vector.broadcast %cst_59 : f32 to vector<1x128xf32>
    %191 = arith.mulf %190, %105 : vector<1x128xf32>
    %192 = arith.mulf %169, %125 : vector<1x128xf32>
    %193 = arith.addf %191, %192 : vector<1x128xf32>
    %194 = arith.mulf %171, %144 : vector<1x128xf32>
    %195 = arith.addf %193, %194 : vector<1x128xf32>
    %cst_60 = arith.constant 0.000000e+00 : f32
    %196 = vector.broadcast %cst_60 : f32 to vector<1x128xf32>
    %197 = arith.subf %196, %195 : vector<1x128xf32>
    %cst_61 = arith.constant 0.897258341 : f32
    %198 = vector.broadcast %cst_61 : f32 to vector<1x128xf32>
    %199 = arith.mulf %198, %111 : vector<1x128xf32>
    %200 = arith.mulf %169, %133 : vector<1x128xf32>
    %201 = arith.addf %199, %200 : vector<1x128xf32>
    %202 = arith.mulf %171, %147 : vector<1x128xf32>
    %203 = arith.addf %201, %202 : vector<1x128xf32>
    %cst_62 = arith.constant 0.000000e+00 : f32
    %204 = vector.broadcast %cst_62 : f32 to vector<1x128xf32>
    %205 = arith.subf %204, %203 : vector<1x128xf32>
    %cst_63 = arith.constant 0.897258341 : f32
    %206 = vector.broadcast %cst_63 : f32 to vector<1x128xf32>
    %207 = arith.mulf %206, %117 : vector<1x128xf32>
    %208 = arith.mulf %169, %141 : vector<1x128xf32>
    %209 = arith.addf %207, %208 : vector<1x128xf32>
    %210 = arith.mulf %171, %150 : vector<1x128xf32>
    %211 = arith.addf %209, %210 : vector<1x128xf32>
    %cst_64 = arith.constant 0.000000e+00 : f32
    %212 = vector.broadcast %cst_64 : f32 to vector<1x128xf32>
    %213 = arith.subf %212, %211 : vector<1x128xf32>
    %214 = arith.mulf %161, %144 : vector<1x128xf32>
    %215 = arith.mulf %163, %125 : vector<1x128xf32>
    %216 = arith.subf %214, %215 : vector<1x128xf32>
    %217 = arith.mulf %161, %147 : vector<1x128xf32>
    %218 = arith.mulf %163, %133 : vector<1x128xf32>
    %219 = arith.subf %217, %218 : vector<1x128xf32>
    %220 = arith.mulf %161, %150 : vector<1x128xf32>
    %221 = arith.mulf %163, %141 : vector<1x128xf32>
    %222 = arith.subf %220, %221 : vector<1x128xf32>
    %cst_65 = arith.constant 1.330000e+00 : f32
    %223 = vector.broadcast %cst_65 : f32 to vector<1x128xf32>
    %224 = arith.mulf %223, %177 : vector<1x128xf32>
    %225 = arith.addf %153, %224 : vector<1x128xf32>
    %cst_66 = arith.constant 1.330000e+00 : f32
    %226 = vector.broadcast %cst_66 : f32 to vector<1x128xf32>
    %227 = arith.mulf %226, %183 : vector<1x128xf32>
    %228 = arith.addf %156, %227 : vector<1x128xf32>
    %cst_67 = arith.constant 1.330000e+00 : f32
    %229 = vector.broadcast %cst_67 : f32 to vector<1x128xf32>
    %230 = arith.mulf %229, %189 : vector<1x128xf32>
    %231 = arith.addf %159, %230 : vector<1x128xf32>
    %232 = arith.select %15, %6, %6 : vector<1x128xi1>, vector<1x128xf32>
    %233 = arith.index_cast %c0_i32 : i32 to index
    %c0_68 = arith.constant 0 : index
    %c0_69 = arith.constant 0 : index
    %c0_70 = arith.constant 0 : index
    %234 = vector.load %arg3[%233, %c0_68, %c0_69, %c0_70] : memref<8x9x1x128xf32, #tpu.memory_space<vmem>>, vector<1x1x1x128xf32>
    %235 = vector.shape_cast %234 : vector<1x1x1x128xf32> to vector<1x128xf32>
    %236 = vector.shape_cast %232 : vector<1x128xf32> to vector<1x1x1x128xf32>
    tpu.vector_store %arg3[%233, %c0_68, %c0_69, %c0_70], %236 {strides = array<i32>} : memref<8x9x1x128xf32, #tpu.memory_space<vmem>>, vector<1x1x1x128xf32>,
    %237 = arith.select %15, %6, %6 : vector<1x128xi1>, vector<1x128xf32>
    %238 = arith.index_cast %c0_i32 : i32 to index
    %c1 = arith.constant 1 : index
    %c0_71 = arith.constant 0 : index
    %c0_72 = arith.constant 0 : index
    %239 = vector.load %arg3[%238, %c1, %c0_71, %c0_72] : memref<8x9x1x128xf32, #tpu.memory_space<vmem>>, vector<1x1x1x128xf32>
    %240 = vector.shape_cast %239 : vector<1x1x1x128xf32> to vector<1x128xf32>
    %241 = vector.shape_cast %237 : vector<1x128xf32> to vector<1x1x1x128xf32>
    tpu.vector_store %arg3[%238, %c1, %c0_71, %c0_72], %241 {strides = array<i32>} : memref<8x9x1x128xf32, #tpu.memory_space<vmem>>, vector<1x1x1x128xf32>,
    %242 = arith.select %15, %6, %6 : vector<1x128xi1>, vector<1x128xf32>
    %243 = arith.index_cast %c0_i32 : i32 to index
    %c2 = arith.constant 2 : index
    %c0_73 = arith.constant 0 : index
    %c0_74 = arith.constant 0 : index
    %244 = vector.load %arg3[%243, %c2, %c0_73, %c0_74] : memref<8x9x1x128xf32, #tpu.memory_space<vmem>>, vector<1x1x1x128xf32>
    %245 = vector.shape_cast %244 : vector<1x1x1x128xf32> to vector<1x128xf32>
    %246 = vector.shape_cast %242 : vector<1x128xf32> to vector<1x1x1x128xf32>
    tpu.vector_store %arg3[%243, %c2, %c0_73, %c0_74], %246 {strides = array<i32>} : memref<8x9x1x128xf32, #tpu.memory_space<vmem>>, vector<1x1x1x128xf32>,
    %247 = arith.select %15, %81, %6 : vector<1x128xi1>, vector<1x128xf32>
    %248 = arith.index_cast %c0_i32 : i32 to index
    %c3 = arith.constant 3 : index
    %c0_75 = arith.constant 0 : index
    %c0_76 = arith.constant 0 : index
    %249 = vector.load %arg3[%248, %c3, %c0_75, %c0_76] : memref<8x9x1x128xf32, #tpu.memory_space<vmem>>, vector<1x1x1x128xf32>
    %250 = vector.shape_cast %249 : vector<1x1x1x128xf32> to vector<1x128xf32>
    %251 = vector.shape_cast %247 : vector<1x128xf32> to vector<1x1x1x128xf32>
    tpu.vector_store %arg3[%248, %c3, %c0_75, %c0_76], %251 {strides = array<i32>} : memref<8x9x1x128xf32, #tpu.memory_space<vmem>>, vector<1x1x1x128xf32>,
    %252 = arith.select %15, %84, %6 : vector<1x128xi1>, vector<1x128xf32>
    %253 = arith.index_cast %c0_i32 : i32 to index
    %c4 = arith.constant 4 : index
    %c0_77 = arith.constant 0 : index
    %c0_78 = arith.constant 0 : index
    %254 = vector.load %arg3[%253, %c4, %c0_77, %c0_78] : memref<8x9x1x128xf32, #tpu.memory_space<vmem>>, vector<1x1x1x128xf32>
    %255 = vector.shape_cast %254 : vector<1x1x1x128xf32> to vector<1x128xf32>
    %256 = vector.shape_cast %252 : vector<1x128xf32> to vector<1x1x1x128xf32>
    tpu.vector_store %arg3[%253, %c4, %c0_77, %c0_78], %256 {strides = array<i32>} : memref<8x9x1x128xf32, #tpu.memory_space<vmem>>, vector<1x1x1x128xf32>,
    %257 = arith.select %15, %87, %6 : vector<1x128xi1>, vector<1x128xf32>
    %258 = arith.index_cast %c0_i32 : i32 to index
    %c5 = arith.constant 5 : index
    %c0_79 = arith.constant 0 : index
    %c0_80 = arith.constant 0 : index
    %259 = vector.load %arg3[%258, %c5, %c0_79, %c0_80] : memref<8x9x1x128xf32, #tpu.memory_space<vmem>>, vector<1x1x1x128xf32>
    %260 = vector.shape_cast %259 : vector<1x1x1x128xf32> to vector<1x128xf32>
    %261 = vector.shape_cast %257 : vector<1x128xf32> to vector<1x1x1x128xf32>
    tpu.vector_store %arg3[%258, %c5, %c0_79, %c0_80], %261 {strides = array<i32>} : memref<8x9x1x128xf32, #tpu.memory_space<vmem>>, vector<1x1x1x128xf32>,
    %262 = arith.select %15, %153, %6 : vector<1x128xi1>, vector<1x128xf32>
    %263 = arith.index_cast %c0_i32 : i32 to index
    %c6 = arith.constant 6 : index
    %c0_81 = arith.constant 0 : index
    %c0_82 = arith.constant 0 : index
    %264 = vector.load %arg3[%263, %c6, %c0_81, %c0_82] : memref<8x9x1x128xf32, #tpu.memory_space<vmem>>, vector<1x1x1x128xf32>
    %265 = vector.shape_cast %264 : vector<1x1x1x128xf32> to vector<1x128xf32>
    %266 = vector.shape_cast %262 : vector<1x128xf32> to vector<1x1x1x128xf32>
    tpu.vector_store %arg3[%263, %c6, %c0_81, %c0_82], %266 {strides = array<i32>} : memref<8x9x1x128xf32, #tpu.memory_space<vmem>>, vector<1x1x1x128xf32>,
    %267 = arith.select %15, %156, %6 : vector<1x128xi1>, vector<1x128xf32>
    %268 = arith.index_cast %c0_i32 : i32 to index
    %c7 = arith.constant 7 : index
    %c0_83 = arith.constant 0 : index
    %c0_84 = arith.constant 0 : index
    %269 = vector.load %arg3[%268, %c7, %c0_83, %c0_84] : memref<8x9x1x128xf32, #tpu.memory_space<vmem>>, vector<1x1x1x128xf32>
    %270 = vector.shape_cast %269 : vector<1x1x1x128xf32> to vector<1x128xf32>
    %271 = vector.shape_cast %267 : vector<1x128xf32> to vector<1x1x1x128xf32>
    tpu.vector_store %arg3[%268, %c7, %c0_83, %c0_84], %271 {strides = array<i32>} : memref<8x9x1x128xf32, #tpu.memory_space<vmem>>, vector<1x1x1x128xf32>,
    %272 = arith.select %15, %159, %6 : vector<1x128xi1>, vector<1x128xf32>
    %273 = arith.index_cast %c0_i32 : i32 to index
    %c8 = arith.constant 8 : index
    %c0_85 = arith.constant 0 : index
    %c0_86 = arith.constant 0 : index
    %274 = vector.load %arg3[%273, %c8, %c0_85, %c0_86] : memref<8x9x1x128xf32, #tpu.memory_space<vmem>>, vector<1x1x1x128xf32>
    %275 = vector.shape_cast %274 : vector<1x1x1x128xf32> to vector<1x128xf32>
    %276 = vector.shape_cast %272 : vector<1x128xf32> to vector<1x1x1x128xf32>
    tpu.vector_store %arg3[%273, %c8, %c0_85, %c0_86], %276 {strides = array<i32>} : memref<8x9x1x128xf32, #tpu.memory_space<vmem>>, vector<1x1x1x128xf32>,
    %c1_i32 = arith.constant 1 : i32
    %277 = arith.index_cast %c1_i32 : i32 to index
    %c0_87 = arith.constant 0 : index
    %c0_88 = arith.constant 0 : index
    %c0_89 = arith.constant 0 : index
    %278 = vector.load %arg4[%277, %c0_87, %c0_88, %c0_89] : memref<8x3x1x128xf32, #tpu.memory_space<vmem>>, vector<1x3x1x128xf32>
    %279 = vector.shape_cast %278 : vector<1x3x1x128xf32> to vector<3x1x128xf32>
    %280 = arith.index_cast %c1_i32 : i32 to index
    %c0_90 = arith.constant 0 : index
    %c0_91 = arith.constant 0 : index
    %c0_92 = arith.constant 0 : index
    %281 = vector.load %arg5[%280, %c0_90, %c0_91, %c0_92] : memref<8x3x1x128xf32, #tpu.memory_space<vmem>>, vector<1x3x1x128xf32>
    %282 = vector.shape_cast %281 : vector<1x3x1x128xf32> to vector<3x1x128xf32>
    %283 = vector.broadcast %c1_i32 : i32 to vector<1x128xi32>
    %284 = arith.cmpi slt, %283, %5 : vector<1x128xi32>
    %285 = vector.extract_strided_slice %279 {offsets = [0, 0, 0], sizes = [1, 1, 128], strides = [1, 1, 1]} : vector<3x1x128xf32> to vector<1x1x128xf32>
    %286 = vector.shape_cast %285 : vector<1x1x128xf32> to vector<1x128xf32>
    %287 = vector.extract_strided_slice %282 {offsets = [0, 0, 0], sizes = [1, 1, 128], strides = [1, 1, 1]} : vector<3x1x128xf32> to vector<1x1x128xf32>
    %288 = vector.shape_cast %287 : vector<1x1x128xf32> to vector<1x128xf32>
    %cst_93 = arith.constant 0.850811123 : f32
    %289 = vector.broadcast %cst_93 : f32 to vector<1x128xf32>
    %290 = arith.mulf %289, %286 : vector<1x128xf32>
    %cst_94 = arith.constant 0.850811123 : f32
    %291 = vector.broadcast %cst_94 : f32 to vector<1x128xf32>
    %292 = arith.mulf %291, %288 : vector<1x128xf32>
    %cst_95 = arith.constant -0.525471628 : f32
    %293 = vector.broadcast %cst_95 : f32 to vector<1x128xf32>
    %294 = arith.mulf %293, %286 : vector<1x128xf32>
    %cst_96 = arith.constant -0.525471628 : f32
    %295 = vector.broadcast %cst_96 : f32 to vector<1x128xf32>
    %296 = arith.mulf %295, %288 : vector<1x128xf32>
    %297 = arith.mulf %290, %197 : vector<1x128xf32>
    %298 = arith.mulf %292, %216 : vector<1x128xf32>
    %299 = arith.addf %297, %298 : vector<1x128xf32>
    %cst_97 = arith.constant -0.525471628 : f32
    %300 = vector.broadcast %cst_97 : f32 to vector<1x128xf32>
    %301 = arith.mulf %300, %177 : vector<1x128xf32>
    %302 = arith.subf %299, %301 : vector<1x128xf32>
    %303 = arith.mulf %290, %205 : vector<1x128xf32>
    %304 = arith.mulf %292, %219 : vector<1x128xf32>
    %305 = arith.addf %303, %304 : vector<1x128xf32>
    %cst_98 = arith.constant -0.525471628 : f32
    %306 = vector.broadcast %cst_98 : f32 to vector<1x128xf32>
    %307 = arith.mulf %306, %183 : vector<1x128xf32>
    %308 = arith.subf %305, %307 : vector<1x128xf32>
    %309 = arith.mulf %290, %213 : vector<1x128xf32>
    %310 = arith.mulf %292, %222 : vector<1x128xf32>
    %311 = arith.addf %309, %310 : vector<1x128xf32>
    %cst_99 = arith.constant -0.525471628 : f32
    %312 = vector.broadcast %cst_99 : f32 to vector<1x128xf32>
    %313 = arith.mulf %312, %189 : vector<1x128xf32>
    %314 = arith.subf %311, %313 : vector<1x128xf32>
    %cst_100 = arith.constant 0.850811123 : f32
    %315 = vector.broadcast %cst_100 : f32 to vector<1x128xf32>
    %316 = arith.mulf %315, %177 : vector<1x128xf32>
    %317 = arith.mulf %294, %197 : vector<1x128xf32>
    %318 = arith.addf %316, %317 : vector<1x128xf32>
    %319 = arith.mulf %296, %216 : vector<1x128xf32>
    %320 = arith.addf %318, %319 : vector<1x128xf32>
    %cst_101 = arith.constant 0.000000e+00 : f32
    %321 = vector.broadcast %cst_101 : f32 to vector<1x128xf32>
    %322 = arith.subf %321, %320 : vector<1x128xf32>
    %cst_102 = arith.constant 0.850811123 : f32
    %323 = vector.broadcast %cst_102 : f32 to vector<1x128xf32>
    %324 = arith.mulf %323, %183 : vector<1x128xf32>
    %325 = arith.mulf %294, %205 : vector<1x128xf32>
    %326 = arith.addf %324, %325 : vector<1x128xf32>
    %327 = arith.mulf %296, %219 : vector<1x128xf32>
    %328 = arith.addf %326, %327 : vector<1x128xf32>
    %cst_103 = arith.constant 0.000000e+00 : f32
    %329 = vector.broadcast %cst_103 : f32 to vector<1x128xf32>
    %330 = arith.subf %329, %328 : vector<1x128xf32>
    %cst_104 = arith.constant 0.850811123 : f32
    %331 = vector.broadcast %cst_104 : f32 to vector<1x128xf32>
    %332 = arith.mulf %331, %189 : vector<1x128xf32>
    %333 = arith.mulf %294, %213 : vector<1x128xf32>
    %334 = arith.addf %332, %333 : vector<1x128xf32>
    %335 = arith.mulf %296, %222 : vector<1x128xf32>
    %336 = arith.addf %334, %335 : vector<1x128xf32>
    %cst_105 = arith.constant 0.000000e+00 : f32
    %337 = vector.broadcast %cst_105 : f32 to vector<1x128xf32>
    %338 = arith.subf %337, %336 : vector<1x128xf32>
    %339 = arith.mulf %286, %216 : vector<1x128xf32>
    %340 = arith.mulf %288, %197 : vector<1x128xf32>
    %341 = arith.subf %339, %340 : vector<1x128xf32>
    %342 = arith.mulf %286, %219 : vector<1x128xf32>
    %343 = arith.mulf %288, %205 : vector<1x128xf32>
    %344 = arith.subf %342, %343 : vector<1x128xf32>
    %345 = arith.mulf %286, %222 : vector<1x128xf32>
    %346 = arith.mulf %288, %213 : vector<1x128xf32>
    %347 = arith.subf %345, %346 : vector<1x128xf32>
    %cst_106 = arith.constant 1.460000e+00 : f32
    %348 = vector.broadcast %cst_106 : f32 to vector<1x128xf32>
    %349 = arith.mulf %348, %302 : vector<1x128xf32>
    %350 = arith.addf %225, %349 : vector<1x128xf32>
    %cst_107 = arith.constant 1.460000e+00 : f32
    %351 = vector.broadcast %cst_107 : f32 to vector<1x128xf32>
    %352 = arith.mulf %351, %308 : vector<1x128xf32>
    %353 = arith.addf %228, %352 : vector<1x128xf32>
    %cst_108 = arith.constant 1.460000e+00 : f32
    %354 = vector.broadcast %cst_108 : f32 to vector<1x128xf32>
    %355 = arith.mulf %354, %314 : vector<1x128xf32>
    %356 = arith.addf %231, %355 : vector<1x128xf32>
    %357 = vector.extract_strided_slice %279 {offsets = [1, 0, 0], sizes = [1, 1, 128], strides = [1, 1, 1]} : vector<3x1x128xf32> to vector<1x1x128xf32>
    %358 = vector.shape_cast %357 : vector<1x1x128xf32> to vector<1x128xf32>
    %359 = vector.extract_strided_slice %282 {offsets = [1, 0, 0], sizes = [1, 1, 128], strides = [1, 1, 1]} : vector<3x1x128xf32> to vector<1x1x128xf32>
    %360 = vector.shape_cast %359 : vector<1x1x128xf32> to vector<1x128xf32>
    %cst_109 = arith.constant 0.932323813 : f32
    %361 = vector.broadcast %cst_109 : f32 to vector<1x128xf32>
    %362 = arith.mulf %361, %358 : vector<1x128xf32>
    %cst_110 = arith.constant 0.932323813 : f32
    %363 = vector.broadcast %cst_110 : f32 to vector<1x128xf32>
    %364 = arith.mulf %363, %360 : vector<1x128xf32>
    %cst_111 = arith.constant -0.361624569 : f32
    %365 = vector.broadcast %cst_111 : f32 to vector<1x128xf32>
    %366 = arith.mulf %365, %358 : vector<1x128xf32>
    %cst_112 = arith.constant -0.361624569 : f32
    %367 = vector.broadcast %cst_112 : f32 to vector<1x128xf32>
    %368 = arith.mulf %367, %360 : vector<1x128xf32>
    %369 = arith.mulf %362, %322 : vector<1x128xf32>
    %370 = arith.mulf %364, %341 : vector<1x128xf32>
    %371 = arith.addf %369, %370 : vector<1x128xf32>
    %cst_113 = arith.constant -0.361624569 : f32
    %372 = vector.broadcast %cst_113 : f32 to vector<1x128xf32>
    %373 = arith.mulf %372, %302 : vector<1x128xf32>
    %374 = arith.subf %371, %373 : vector<1x128xf32>
    %375 = arith.mulf %362, %330 : vector<1x128xf32>
    %376 = arith.mulf %364, %344 : vector<1x128xf32>
    %377 = arith.addf %375, %376 : vector<1x128xf32>
    %cst_114 = arith.constant -0.361624569 : f32
    %378 = vector.broadcast %cst_114 : f32 to vector<1x128xf32>
    %379 = arith.mulf %378, %308 : vector<1x128xf32>
    %380 = arith.subf %377, %379 : vector<1x128xf32>
    %381 = arith.mulf %362, %338 : vector<1x128xf32>
    %382 = arith.mulf %364, %347 : vector<1x128xf32>
    %383 = arith.addf %381, %382 : vector<1x128xf32>
    %cst_115 = arith.constant -0.361624569 : f32
    %384 = vector.broadcast %cst_115 : f32 to vector<1x128xf32>
    %385 = arith.mulf %384, %314 : vector<1x128xf32>
    %386 = arith.subf %383, %385 : vector<1x128xf32>
    %cst_116 = arith.constant 0.932323813 : f32
    %387 = vector.broadcast %cst_116 : f32 to vector<1x128xf32>
    %388 = arith.mulf %387, %302 : vector<1x128xf32>
    %389 = arith.mulf %366, %322 : vector<1x128xf32>
    %390 = arith.addf %388, %389 : vector<1x128xf32>
    %391 = arith.mulf %368, %341 : vector<1x128xf32>
    %392 = arith.addf %390, %391 : vector<1x128xf32>
    %cst_117 = arith.constant 0.000000e+00 : f32
    %393 = vector.broadcast %cst_117 : f32 to vector<1x128xf32>
    %394 = arith.subf %393, %392 : vector<1x128xf32>
    %cst_118 = arith.constant 0.932323813 : f32
    %395 = vector.broadcast %cst_118 : f32 to vector<1x128xf32>
    %396 = arith.mulf %395, %308 : vector<1x128xf32>
    %397 = arith.mulf %366, %330 : vector<1x128xf32>
    %398 = arith.addf %396, %397 : vector<1x128xf32>
    %399 = arith.mulf %368, %344 : vector<1x128xf32>
    %400 = arith.addf %398, %399 : vector<1x128xf32>
    %cst_119 = arith.constant 0.000000e+00 : f32
    %401 = vector.broadcast %cst_119 : f32 to vector<1x128xf32>
    %402 = arith.subf %401, %400 : vector<1x128xf32>
    %cst_120 = arith.constant 0.932323813 : f32
    %403 = vector.broadcast %cst_120 : f32 to vector<1x128xf32>
    %404 = arith.mulf %403, %314 : vector<1x128xf32>
    %405 = arith.mulf %366, %338 : vector<1x128xf32>
    %406 = arith.addf %404, %405 : vector<1x128xf32>
    %407 = arith.mulf %368, %347 : vector<1x128xf32>
    %408 = arith.addf %406, %407 : vector<1x128xf32>
    %cst_121 = arith.constant 0.000000e+00 : f32
    %409 = vector.broadcast %cst_121 : f32 to vector<1x128xf32>
    %410 = arith.subf %409, %408 : vector<1x128xf32>
    %411 = arith.mulf %358, %341 : vector<1x128xf32>
    %412 = arith.mulf %360, %322 : vector<1x128xf32>
    %413 = arith.subf %411, %412 : vector<1x128xf32>
    %414 = arith.mulf %358, %344 : vector<1x128xf32>
    %415 = arith.mulf %360, %330 : vector<1x128xf32>
    %416 = arith.subf %414, %415 : vector<1x128xf32>
    %417 = arith.mulf %358, %347 : vector<1x128xf32>
    %418 = arith.mulf %360, %338 : vector<1x128xf32>
    %419 = arith.subf %417, %418 : vector<1x128xf32>
    %cst_122 = arith.constant 1.525000e+00 : f32
    %420 = vector.broadcast %cst_122 : f32 to vector<1x128xf32>
    %421 = arith.mulf %420, %374 : vector<1x128xf32>
    %422 = arith.addf %350, %421 : vector<1x128xf32>
    %cst_123 = arith.constant 1.525000e+00 : f32
    %423 = vector.broadcast %cst_123 : f32 to vector<1x128xf32>
    %424 = arith.mulf %423, %380 : vector<1x128xf32>
    %425 = arith.addf %353, %424 : vector<1x128xf32>
    %cst_124 = arith.constant 1.525000e+00 : f32
    %426 = vector.broadcast %cst_124 : f32 to vector<1x128xf32>
    %427 = arith.mulf %426, %386 : vector<1x128xf32>
    %428 = arith.addf %356, %427 : vector<1x128xf32>
    %429 = vector.extract_strided_slice %279 {offsets = [2, 0, 0], sizes = [1, 1, 128], strides = [1, 1, 1]} : vector<3x1x128xf32> to vector<1x1x128xf32>
    %430 = vector.shape_cast %429 : vector<1x1x128xf32> to vector<1x128xf32>
    %431 = vector.extract_strided_slice %282 {offsets = [2, 0, 0], sizes = [1, 1, 128], strides = [1, 1, 1]} : vector<3x1x128xf32> to vector<1x1x128xf32>
    %432 = vector.shape_cast %431 : vector<1x1x128xf32> to vector<1x128xf32>
    %cst_125 = arith.constant 0.897258341 : f32
    %433 = vector.broadcast %cst_125 : f32 to vector<1x128xf32>
    %434 = arith.mulf %433, %430 : vector<1x128xf32>
    %cst_126 = arith.constant 0.897258341 : f32
    %435 = vector.broadcast %cst_126 : f32 to vector<1x128xf32>
    %436 = arith.mulf %435, %432 : vector<1x128xf32>
    %cst_127 = arith.constant -0.441505849 : f32
    %437 = vector.broadcast %cst_127 : f32 to vector<1x128xf32>
    %438 = arith.mulf %437, %430 : vector<1x128xf32>
    %cst_128 = arith.constant -0.441505849 : f32
    %439 = vector.broadcast %cst_128 : f32 to vector<1x128xf32>
    %440 = arith.mulf %439, %432 : vector<1x128xf32>
    %441 = arith.mulf %434, %394 : vector<1x128xf32>
    %442 = arith.mulf %436, %413 : vector<1x128xf32>
    %443 = arith.addf %441, %442 : vector<1x128xf32>
    %cst_129 = arith.constant -0.441505849 : f32
    %444 = vector.broadcast %cst_129 : f32 to vector<1x128xf32>
    %445 = arith.mulf %444, %374 : vector<1x128xf32>
    %446 = arith.subf %443, %445 : vector<1x128xf32>
    %447 = arith.mulf %434, %402 : vector<1x128xf32>
    %448 = arith.mulf %436, %416 : vector<1x128xf32>
    %449 = arith.addf %447, %448 : vector<1x128xf32>
    %cst_130 = arith.constant -0.441505849 : f32
    %450 = vector.broadcast %cst_130 : f32 to vector<1x128xf32>
    %451 = arith.mulf %450, %380 : vector<1x128xf32>
    %452 = arith.subf %449, %451 : vector<1x128xf32>
    %453 = arith.mulf %434, %410 : vector<1x128xf32>
    %454 = arith.mulf %436, %419 : vector<1x128xf32>
    %455 = arith.addf %453, %454 : vector<1x128xf32>
    %cst_131 = arith.constant -0.441505849 : f32
    %456 = vector.broadcast %cst_131 : f32 to vector<1x128xf32>
    %457 = arith.mulf %456, %386 : vector<1x128xf32>
    %458 = arith.subf %455, %457 : vector<1x128xf32>
    %cst_132 = arith.constant 0.897258341 : f32
    %459 = vector.broadcast %cst_132 : f32 to vector<1x128xf32>
    %460 = arith.mulf %459, %374 : vector<1x128xf32>
    %461 = arith.mulf %438, %394 : vector<1x128xf32>
    %462 = arith.addf %460, %461 : vector<1x128xf32>
    %463 = arith.mulf %440, %413 : vector<1x128xf32>
    %464 = arith.addf %462, %463 : vector<1x128xf32>
    %cst_133 = arith.constant 0.000000e+00 : f32
    %465 = vector.broadcast %cst_133 : f32 to vector<1x128xf32>
    %466 = arith.subf %465, %464 : vector<1x128xf32>
    %cst_134 = arith.constant 0.897258341 : f32
    %467 = vector.broadcast %cst_134 : f32 to vector<1x128xf32>
    %468 = arith.mulf %467, %380 : vector<1x128xf32>
    %469 = arith.mulf %438, %402 : vector<1x128xf32>
    %470 = arith.addf %468, %469 : vector<1x128xf32>
    %471 = arith.mulf %440, %416 : vector<1x128xf32>
    %472 = arith.addf %470, %471 : vector<1x128xf32>
    %cst_135 = arith.constant 0.000000e+00 : f32
    %473 = vector.broadcast %cst_135 : f32 to vector<1x128xf32>
    %474 = arith.subf %473, %472 : vector<1x128xf32>
    %cst_136 = arith.constant 0.897258341 : f32
    %475 = vector.broadcast %cst_136 : f32 to vector<1x128xf32>
    %476 = arith.mulf %475, %386 : vector<1x128xf32>
    %477 = arith.mulf %438, %410 : vector<1x128xf32>
    %478 = arith.addf %476, %477 : vector<1x128xf32>
    %479 = arith.mulf %440, %419 : vector<1x128xf32>
    %480 = arith.addf %478, %479 : vector<1x128xf32>
    %cst_137 = arith.constant 0.000000e+00 : f32
    %481 = vector.broadcast %cst_137 : f32 to vector<1x128xf32>
    %482 = arith.subf %481, %480 : vector<1x128xf32>
    %483 = arith.mulf %430, %413 : vector<1x128xf32>
    %484 = arith.mulf %432, %394 : vector<1x128xf32>
    %485 = arith.subf %483, %484 : vector<1x128xf32>
    %486 = arith.mulf %430, %416 : vector<1x128xf32>
    %487 = arith.mulf %432, %402 : vector<1x128xf32>
    %488 = arith.subf %486, %487 : vector<1x128xf32>
    %489 = arith.mulf %430, %419 : vector<1x128xf32>
    %490 = arith.mulf %432, %410 : vector<1x128xf32>
    %491 = arith.subf %489, %490 : vector<1x128xf32>
    %cst_138 = arith.constant 1.330000e+00 : f32
    %492 = vector.broadcast %cst_138 : f32 to vector<1x128xf32>
    %493 = arith.mulf %492, %446 : vector<1x128xf32>
    %494 = arith.addf %422, %493 : vector<1x128xf32>
    %cst_139 = arith.constant 1.330000e+00 : f32
    %495 = vector.broadcast %cst_139 : f32 to vector<1x128xf32>
    %496 = arith.mulf %495, %452 : vector<1x128xf32>
    %497 = arith.addf %425, %496 : vector<1x128xf32>
    %cst_140 = arith.constant 1.330000e+00 : f32
    %498 = vector.broadcast %cst_140 : f32 to vector<1x128xf32>
    %499 = arith.mulf %498, %458 : vector<1x128xf32>
    %500 = arith.addf %428, %499 : vector<1x128xf32>
    %501 = arith.select %284, %225, %6 : vector<1x128xi1>, vector<1x128xf32>
    %502 = arith.index_cast %c1_i32 : i32 to index
    %c0_141 = arith.constant 0 : index
    %c0_142 = arith.constant 0 : index
    %c0_143 = arith.constant 0 : index
    %503 = vector.load %arg3[%502, %c0_141, %c0_142, %c0_143] : memref<8x9x1x128xf32, #tpu.memory_space<vmem>>, vector<1x1x1x128xf32>
    %504 = vector.shape_cast %503 : vector<1x1x1x128xf32> to vector<1x128xf32>
    %505 = vector.shape_cast %501 : vector<1x128xf32> to vector<1x1x1x128xf32>
    tpu.vector_store %arg3[%502, %c0_141, %c0_142, %c0_143], %505 {strides = array<i32>} : memref<8x9x1x128xf32, #tpu.memory_space<vmem>>, vector<1x1x1x128xf32>,
    %506 = arith.select %284, %228, %6 : vector<1x128xi1>, vector<1x128xf32>
    %507 = arith.index_cast %c1_i32 : i32 to index
    %c1_144 = arith.constant 1 : index
    %c0_145 = arith.constant 0 : index
    %c0_146 = arith.constant 0 : index
    %508 = vector.load %arg3[%507, %c1_144, %c0_145, %c0_146] : memref<8x9x1x128xf32, #tpu.memory_space<vmem>>, vector<1x1x1x128xf32>
    %509 = vector.shape_cast %508 : vector<1x1x1x128xf32> to vector<1x128xf32>
    %510 = vector.shape_cast %506 : vector<1x128xf32> to vector<1x1x1x128xf32>
    tpu.vector_store %arg3[%507, %c1_144, %c0_145, %c0_146], %510 {strides = array<i32>} : memref<8x9x1x128xf32, #tpu.memory_space<vmem>>, vector<1x1x1x128xf32>,
    %511 = arith.select %284, %231, %6 : vector<1x128xi1>, vector<1x128xf32>
    %512 = arith.index_cast %c1_i32 : i32 to index
    %c2_147 = arith.constant 2 : index
    %c0_148 = arith.constant 0 : index
    %c0_149 = arith.constant 0 : index
    %513 = vector.load %arg3[%512, %c2_147, %c0_148, %c0_149] : memref<8x9x1x128xf32, #tpu.memory_space<vmem>>, vector<1x1x1x128xf32>
    %514 = vector.shape_cast %513 : vector<1x1x1x128xf32> to vector<1x128xf32>
    %515 = vector.shape_cast %511 : vector<1x128xf32> to vector<1x1x1x128xf32>
    tpu.vector_store %arg3[%512, %c2_147, %c0_148, %c0_149], %515 {strides = array<i32>} : memref<8x9x1x128xf32, #tpu.memory_space<vmem>>, vector<1x1x1x128xf32>,
    %516 = arith.select %284, %350, %6 : vector<1x128xi1>, vector<1x128xf32>
    %517 = arith.index_cast %c1_i32 : i32 to index
    %c3_150 = arith.constant 3 : index
    %c0_151 = arith.constant 0 : index
    %c0_152 = arith.constant 0 : index
    %518 = vector.load %arg3[%517, %c3_150, %c0_151, %c0_152] : memref<8x9x1x128xf32, #tpu.memory_space<vmem>>, vector<1x1x1x128xf32>
    %519 = vector.shape_cast %518 : vector<1x1x1x128xf32> to vector<1x128xf32>
    %520 = vector.shape_cast %516 : vector<1x128xf32> to vector<1x1x1x128xf32>
    tpu.vector_store %arg3[%517, %c3_150, %c0_151, %c0_152], %520 {strides = array<i32>} : memref<8x9x1x128xf32, #tpu.memory_space<vmem>>, vector<1x1x1x128xf32>,
    %521 = arith.select %284, %353, %6 : vector<1x128xi1>, vector<1x128xf32>
    %522 = arith.index_cast %c1_i32 : i32 to index
    %c4_153 = arith.constant 4 : index
    %c0_154 = arith.constant 0 : index
    %c0_155 = arith.constant 0 : index
    %523 = vector.load %arg3[%522, %c4_153, %c0_154, %c0_155] : memref<8x9x1x128xf32, #tpu.memory_space<vmem>>, vector<1x1x1x128xf32>
    %524 = vector.shape_cast %523 : vector<1x1x1x128xf32> to vector<1x128xf32>
    %525 = vector.shape_cast %521 : vector<1x128xf32> to vector<1x1x1x128xf32>
    tpu.vector_store %arg3[%522, %c4_153, %c0_154, %c0_155], %525 {strides = array<i32>} : memref<8x9x1x128xf32, #tpu.memory_space<vmem>>, vector<1x1x1x128xf32>,
    %526 = arith.select %284, %356, %6 : vector<1x128xi1>, vector<1x128xf32>
    %527 = arith.index_cast %c1_i32 : i32 to index
    %c5_156 = arith.constant 5 : index
    %c0_157 = arith.constant 0 : index
    %c0_158 = arith.constant 0 : index
    %528 = vector.load %arg3[%527, %c5_156, %c0_157, %c0_158] : memref<8x9x1x128xf32, #tpu.memory_space<vmem>>, vector<1x1x1x128xf32>
    %529 = vector.shape_cast %528 : vector<1x1x1x128xf32> to vector<1x128xf32>
    %530 = vector.shape_cast %526 : vector<1x128xf32> to vector<1x1x1x128xf32>
    tpu.vector_store %arg3[%527, %c5_156, %c0_157, %c0_158], %530 {strides = array<i32>} : memref<8x9x1x128xf32, #tpu.memory_space<vmem>>, vector<1x1x1x128xf32>,
    %531 = arith.select %284, %422, %6 : vector<1x128xi1>, vector<1x128xf32>
    %532 = arith.index_cast %c1_i32 : i32 to index
    %c6_159 = arith.constant 6 : index
    %c0_160 = arith.constant 0 : index
    %c0_161 = arith.constant 0 : index
    %533 = vector.load %arg3[%532, %c6_159, %c0_160, %c0_161] : memref<8x9x1x128xf32, #tpu.memory_space<vmem>>, vector<1x1x1x128xf32>
    %534 = vector.shape_cast %533 : vector<1x1x1x128xf32> to vector<1x128xf32>
    %535 = vector.shape_cast %531 : vector<1x128xf32> to vector<1x1x1x128xf32>
    tpu.vector_store %arg3[%532, %c6_159, %c0_160, %c0_161], %535 {strides = array<i32>} : memref<8x9x1x128xf32, #tpu.memory_space<vmem>>, vector<1x1x1x128xf32>,
    %536 = arith.select %284, %425, %6 : vector<1x128xi1>, vector<1x128xf32>
    %537 = arith.index_cast %c1_i32 : i32 to index
    %c7_162 = arith.constant 7 : index
    %c0_163 = arith.constant 0 : index
    %c0_164 = arith.constant 0 : index
    %538 = vector.load %arg3[%537, %c7_162, %c0_163, %c0_164] : memref<8x9x1x128xf32, #tpu.memory_space<vmem>>, vector<1x1x1x128xf32>
    %539 = vector.shape_cast %538 : vector<1x1x1x128xf32> to vector<1x128xf32>
    %540 = vector.shape_cast %536 : vector<1x128xf32> to vector<1x1x1x128xf32>
    tpu.vector_store %arg3[%537, %c7_162, %c0_163, %c0_164], %540 {strides = array<i32>} : memref<8x9x1x128xf32, #tpu.memory_space<vmem>>, vector<1x1x1x128xf32>,
    %541 = arith.select %284, %428, %6 : vector<1x128xi1>, vector<1x128xf32>
    %542 = arith.index_cast %c1_i32 : i32 to index
    %c8_165 = arith.constant 8 : index
    %c0_166 = arith.constant 0 : index
    %c0_167 = arith.constant 0 : index
    %543 = vector.load %arg3[%542, %c8_165, %c0_166, %c0_167] : memref<8x9x1x128xf32, #tpu.memory_space<vmem>>, vector<1x1x1x128xf32>
    %544 = vector.shape_cast %543 : vector<1x1x1x128xf32> to vector<1x128xf32>
    %545 = vector.shape_cast %541 : vector<1x128xf32> to vector<1x1x1x128xf32>
    tpu.vector_store %arg3[%542, %c8_165, %c0_166, %c0_167], %545 {strides = array<i32>} : memref<8x9x1x128xf32, #tpu.memory_space<vmem>>, vector<1x1x1x128xf32>,
    %c2_i32 = arith.constant 2 : i32
    %546 = arith.index_cast %c2_i32 : i32 to index
    %c0_168 = arith.constant 0 : index
    %c0_169 = arith.constant 0 : index
    %c0_170 = arith.constant 0 : index
    %547 = vector.load %arg4[%546, %c0_168, %c0_169, %c0_170] : memref<8x3x1x128xf32, #tpu.memory_space<vmem>>, vector<1x3x1x128xf32>
    %548 = vector.shape_cast %547 : vector<1x3x1x128xf32> to vector<3x1x128xf32>
    %549 = arith.index_cast %c2_i32 : i32 to index
    %c0_171 = arith.constant 0 : index
    %c0_172 = arith.constant 0 : index
    %c0_173 = arith.constant 0 : index
    %550 = vector.load %arg5[%549, %c0_171, %c0_172, %c0_173] : memref<8x3x1x128xf32, #tpu.memory_space<vmem>>, vector<1x3x1x128xf32>
    %551 = vector.shape_cast %550 : vector<1x3x1x128xf32> to vector<3x1x128xf32>
    %552 = vector.broadcast %c2_i32 : i32 to vector<1x128xi32>
    %553 = arith.cmpi slt, %552, %5 : vector<1x128xi32>
    %554 = vector.extract_strided_slice %548 {offsets = [0, 0, 0], sizes = [1, 1, 128], strides = [1, 1, 1]} : vector<3x1x128xf32> to vector<1x1x128xf32>
    %555 = vector.shape_cast %554 : vector<1x1x128xf32> to vector<1x128xf32>
    %556 = vector.extract_strided_slice %551 {offsets = [0, 0, 0], sizes = [1, 1, 128], strides = [1, 1, 1]} : vector<3x1x128xf32> to vector<1x1x128xf32>
    %557 = vector.shape_cast %556 : vector<1x1x128xf32> to vector<1x128xf32>
    %cst_174 = arith.constant 0.850811123 : f32
    %558 = vector.broadcast %cst_174 : f32 to vector<1x128xf32>
    %559 = arith.mulf %558, %555 : vector<1x128xf32>
    %cst_175 = arith.constant 0.850811123 : f32
    %560 = vector.broadcast %cst_175 : f32 to vector<1x128xf32>
    %561 = arith.mulf %560, %557 : vector<1x128xf32>
    %cst_176 = arith.constant -0.525471628 : f32
    %562 = vector.broadcast %cst_176 : f32 to vector<1x128xf32>
    %563 = arith.mulf %562, %555 : vector<1x128xf32>
    %cst_177 = arith.constant -0.525471628 : f32
    %564 = vector.broadcast %cst_177 : f32 to vector<1x128xf32>
    %565 = arith.mulf %564, %557 : vector<1x128xf32>
    %566 = arith.mulf %559, %466 : vector<1x128xf32>
    %567 = arith.mulf %561, %485 : vector<1x128xf32>
    %568 = arith.addf %566, %567 : vector<1x128xf32>
    %cst_178 = arith.constant -0.525471628 : f32
    %569 = vector.broadcast %cst_178 : f32 to vector<1x128xf32>
    %570 = arith.mulf %569, %446 : vector<1x128xf32>
    %571 = arith.subf %568, %570 : vector<1x128xf32>
    %572 = arith.mulf %559, %474 : vector<1x128xf32>
    %573 = arith.mulf %561, %488 : vector<1x128xf32>
    %574 = arith.addf %572, %573 : vector<1x128xf32>
    %cst_179 = arith.constant -0.525471628 : f32
    %575 = vector.broadcast %cst_179 : f32 to vector<1x128xf32>
    %576 = arith.mulf %575, %452 : vector<1x128xf32>
    %577 = arith.subf %574, %576 : vector<1x128xf32>
    %578 = arith.mulf %559, %482 : vector<1x128xf32>
    %579 = arith.mulf %561, %491 : vector<1x128xf32>
    %580 = arith.addf %578, %579 : vector<1x128xf32>
    %cst_180 = arith.constant -0.525471628 : f32
    %581 = vector.broadcast %cst_180 : f32 to vector<1x128xf32>
    %582 = arith.mulf %581, %458 : vector<1x128xf32>
    %583 = arith.subf %580, %582 : vector<1x128xf32>
    %cst_181 = arith.constant 0.850811123 : f32
    %584 = vector.broadcast %cst_181 : f32 to vector<1x128xf32>
    %585 = arith.mulf %584, %446 : vector<1x128xf32>
    %586 = arith.mulf %563, %466 : vector<1x128xf32>
    %587 = arith.addf %585, %586 : vector<1x128xf32>
    %588 = arith.mulf %565, %485 : vector<1x128xf32>
    %589 = arith.addf %587, %588 : vector<1x128xf32>
    %cst_182 = arith.constant 0.000000e+00 : f32
    %590 = vector.broadcast %cst_182 : f32 to vector<1x128xf32>
    %591 = arith.subf %590, %589 : vector<1x128xf32>
    %cst_183 = arith.constant 0.850811123 : f32
    %592 = vector.broadcast %cst_183 : f32 to vector<1x128xf32>
    %593 = arith.mulf %592, %452 : vector<1x128xf32>
    %594 = arith.mulf %563, %474 : vector<1x128xf32>
    %595 = arith.addf %593, %594 : vector<1x128xf32>
    %596 = arith.mulf %565, %488 : vector<1x128xf32>
    %597 = arith.addf %595, %596 : vector<1x128xf32>
    %cst_184 = arith.constant 0.000000e+00 : f32
    %598 = vector.broadcast %cst_184 : f32 to vector<1x128xf32>
    %599 = arith.subf %598, %597 : vector<1x128xf32>
    %cst_185 = arith.constant 0.850811123 : f32
    %600 = vector.broadcast %cst_185 : f32 to vector<1x128xf32>
    %601 = arith.mulf %600, %458 : vector<1x128xf32>
    %602 = arith.mulf %563, %482 : vector<1x128xf32>
    %603 = arith.addf %601, %602 : vector<1x128xf32>
    %604 = arith.mulf %565, %491 : vector<1x128xf32>
    %605 = arith.addf %603, %604 : vector<1x128xf32>
    %cst_186 = arith.constant 0.000000e+00 : f32
    %606 = vector.broadcast %cst_186 : f32 to vector<1x128xf32>
    %607 = arith.subf %606, %605 : vector<1x128xf32>
    %608 = arith.mulf %555, %485 : vector<1x128xf32>
    %609 = arith.mulf %557, %466 : vector<1x128xf32>
    %610 = arith.subf %608, %609 : vector<1x128xf32>
    %611 = arith.mulf %555, %488 : vector<1x128xf32>
    %612 = arith.mulf %557, %474 : vector<1x128xf32>
    %613 = arith.subf %611, %612 : vector<1x128xf32>
    %614 = arith.mulf %555, %491 : vector<1x128xf32>
    %615 = arith.mulf %557, %482 : vector<1x128xf32>
    %616 = arith.subf %614, %615 : vector<1x128xf32>
    %cst_187 = arith.constant 1.460000e+00 : f32
    %617 = vector.broadcast %cst_187 : f32 to vector<1x128xf32>
    %618 = arith.mulf %617, %571 : vector<1x128xf32>
    %619 = arith.addf %494, %618 : vector<1x128xf32>
    %cst_188 = arith.constant 1.460000e+00 : f32
    %620 = vector.broadcast %cst_188 : f32 to vector<1x128xf32>
    %621 = arith.mulf %620, %577 : vector<1x128xf32>
    %622 = arith.addf %497, %621 : vector<1x128xf32>
    %cst_189 = arith.constant 1.460000e+00 : f32
    %623 = vector.broadcast %cst_189 : f32 to vector<1x128xf32>
    %624 = arith.mulf %623, %583 : vector<1x128xf32>
    %625 = arith.addf %500, %624 : vector<1x128xf32>
    %626 = vector.extract_strided_slice %548 {offsets = [1, 0, 0], sizes = [1, 1, 128], strides = [1, 1, 1]} : vector<3x1x128xf32> to vector<1x1x128xf32>
    %627 = vector.shape_cast %626 : vector<1x1x128xf32> to vector<1x128xf32>
    %628 = vector.extract_strided_slice %551 {offsets = [1, 0, 0], sizes = [1, 1, 128], strides = [1, 1, 1]} : vector<3x1x128xf32> to vector<1x1x128xf32>
    %629 = vector.shape_cast %628 : vector<1x1x128xf32> to vector<1x128xf32>
    %cst_190 = arith.constant 0.932323813 : f32
    %630 = vector.broadcast %cst_190 : f32 to vector<1x128xf32>
    %631 = arith.mulf %630, %627 : vector<1x128xf32>
    %cst_191 = arith.constant 0.932323813 : f32
    %632 = vector.broadcast %cst_191 : f32 to vector<1x128xf32>
    %633 = arith.mulf %632, %629 : vector<1x128xf32>
    %cst_192 = arith.constant -0.361624569 : f32
    %634 = vector.broadcast %cst_192 : f32 to vector<1x128xf32>
    %635 = arith.mulf %634, %627 : vector<1x128xf32>
    %cst_193 = arith.constant -0.361624569 : f32
    %636 = vector.broadcast %cst_193 : f32 to vector<1x128xf32>
    %637 = arith.mulf %636, %629 : vector<1x128xf32>
    %638 = arith.mulf %631, %591 : vector<1x128xf32>
    %639 = arith.mulf %633, %610 : vector<1x128xf32>
    %640 = arith.addf %638, %639 : vector<1x128xf32>
    %cst_194 = arith.constant -0.361624569 : f32
    %641 = vector.broadcast %cst_194 : f32 to vector<1x128xf32>
    %642 = arith.mulf %641, %571 : vector<1x128xf32>
    %643 = arith.subf %640, %642 : vector<1x128xf32>
    %644 = arith.mulf %631, %599 : vector<1x128xf32>
    %645 = arith.mulf %633, %613 : vector<1x128xf32>
    %646 = arith.addf %644, %645 : vector<1x128xf32>
    %cst_195 = arith.constant -0.361624569 : f32
    %647 = vector.broadcast %cst_195 : f32 to vector<1x128xf32>
    %648 = arith.mulf %647, %577 : vector<1x128xf32>
    %649 = arith.subf %646, %648 : vector<1x128xf32>
    %650 = arith.mulf %631, %607 : vector<1x128xf32>
    %651 = arith.mulf %633, %616 : vector<1x128xf32>
    %652 = arith.addf %650, %651 : vector<1x128xf32>
    %cst_196 = arith.constant -0.361624569 : f32
    %653 = vector.broadcast %cst_196 : f32 to vector<1x128xf32>
    %654 = arith.mulf %653, %583 : vector<1x128xf32>
    %655 = arith.subf %652, %654 : vector<1x128xf32>
    %cst_197 = arith.constant 0.932323813 : f32
    %656 = vector.broadcast %cst_197 : f32 to vector<1x128xf32>
    %657 = arith.mulf %656, %571 : vector<1x128xf32>
    %658 = arith.mulf %635, %591 : vector<1x128xf32>
    %659 = arith.addf %657, %658 : vector<1x128xf32>
    %660 = arith.mulf %637, %610 : vector<1x128xf32>
    %661 = arith.addf %659, %660 : vector<1x128xf32>
    %cst_198 = arith.constant 0.000000e+00 : f32
    %662 = vector.broadcast %cst_198 : f32 to vector<1x128xf32>
    %663 = arith.subf %662, %661 : vector<1x128xf32>
    %cst_199 = arith.constant 0.932323813 : f32
    %664 = vector.broadcast %cst_199 : f32 to vector<1x128xf32>
    %665 = arith.mulf %664, %577 : vector<1x128xf32>
    %666 = arith.mulf %635, %599 : vector<1x128xf32>
    %667 = arith.addf %665, %666 : vector<1x128xf32>
    %668 = arith.mulf %637, %613 : vector<1x128xf32>
    %669 = arith.addf %667, %668 : vector<1x128xf32>
    %cst_200 = arith.constant 0.000000e+00 : f32
    %670 = vector.broadcast %cst_200 : f32 to vector<1x128xf32>
    %671 = arith.subf %670, %669 : vector<1x128xf32>
    %cst_201 = arith.constant 0.932323813 : f32
    %672 = vector.broadcast %cst_201 : f32 to vector<1x128xf32>
    %673 = arith.mulf %672, %583 : vector<1x128xf32>
    %674 = arith.mulf %635, %607 : vector<1x128xf32>
    %675 = arith.addf %673, %674 : vector<1x128xf32>
    %676 = arith.mulf %637, %616 : vector<1x128xf32>
    %677 = arith.addf %675, %676 : vector<1x128xf32>
    %cst_202 = arith.constant 0.000000e+00 : f32
    %678 = vector.broadcast %cst_202 : f32 to vector<1x128xf32>
    %679 = arith.subf %678, %677 : vector<1x128xf32>
    %680 = arith.mulf %627, %610 : vector<1x128xf32>
    %681 = arith.mulf %629, %591 : vector<1x128xf32>
    %682 = arith.subf %680, %681 : vector<1x128xf32>
    %683 = arith.mulf %627, %613 : vector<1x128xf32>
    %684 = arith.mulf %629, %599 : vector<1x128xf32>
    %685 = arith.subf %683, %684 : vector<1x128xf32>
    %686 = arith.mulf %627, %616 : vector<1x128xf32>
    %687 = arith.mulf %629, %607 : vector<1x128xf32>
    %688 = arith.subf %686, %687 : vector<1x128xf32>
    %cst_203 = arith.constant 1.525000e+00 : f32
    %689 = vector.broadcast %cst_203 : f32 to vector<1x128xf32>
    %690 = arith.mulf %689, %643 : vector<1x128xf32>
    %691 = arith.addf %619, %690 : vector<1x128xf32>
    %cst_204 = arith.constant 1.525000e+00 : f32
    %692 = vector.broadcast %cst_204 : f32 to vector<1x128xf32>
    %693 = arith.mulf %692, %649 : vector<1x128xf32>
    %694 = arith.addf %622, %693 : vector<1x128xf32>
    %cst_205 = arith.constant 1.525000e+00 : f32
    %695 = vector.broadcast %cst_205 : f32 to vector<1x128xf32>
    %696 = arith.mulf %695, %655 : vector<1x128xf32>
    %697 = arith.addf %625, %696 : vector<1x128xf32>
    %698 = vector.extract_strided_slice %548 {offsets = [2, 0, 0], sizes = [1, 1, 128], strides = [1, 1, 1]} : vector<3x1x128xf32> to vector<1x1x128xf32>
    %699 = vector.shape_cast %698 : vector<1x1x128xf32> to vector<1x128xf32>
    %700 = vector.extract_strided_slice %551 {offsets = [2, 0, 0], sizes = [1, 1, 128], strides = [1, 1, 1]} : vector<3x1x128xf32> to vector<1x1x128xf32>
    %701 = vector.shape_cast %700 : vector<1x1x128xf32> to vector<1x128xf32>
    %cst_206 = arith.constant 0.897258341 : f32
    %702 = vector.broadcast %cst_206 : f32 to vector<1x128xf32>
    %703 = arith.mulf %702, %699 : vector<1x128xf32>
    %cst_207 = arith.constant 0.897258341 : f32
    %704 = vector.broadcast %cst_207 : f32 to vector<1x128xf32>
    %705 = arith.mulf %704, %701 : vector<1x128xf32>
    %cst_208 = arith.constant -0.441505849 : f32
    %706 = vector.broadcast %cst_208 : f32 to vector<1x128xf32>
    %707 = arith.mulf %706, %699 : vector<1x128xf32>
    %cst_209 = arith.constant -0.441505849 : f32
    %708 = vector.broadcast %cst_209 : f32 to vector<1x128xf32>
    %709 = arith.mulf %708, %701 : vector<1x128xf32>
    %710 = arith.mulf %703, %663 : vector<1x128xf32>
    %711 = arith.mulf %705, %682 : vector<1x128xf32>
    %712 = arith.addf %710, %711 : vector<1x128xf32>
    %cst_210 = arith.constant -0.441505849 : f32
    %713 = vector.broadcast %cst_210 : f32 to vector<1x128xf32>
    %714 = arith.mulf %713, %643 : vector<1x128xf32>
    %715 = arith.subf %712, %714 : vector<1x128xf32>
    %716 = arith.mulf %703, %671 : vector<1x128xf32>
    %717 = arith.mulf %705, %685 : vector<1x128xf32>
    %718 = arith.addf %716, %717 : vector<1x128xf32>
    %cst_211 = arith.constant -0.441505849 : f32
    %719 = vector.broadcast %cst_211 : f32 to vector<1x128xf32>
    %720 = arith.mulf %719, %649 : vector<1x128xf32>
    %721 = arith.subf %718, %720 : vector<1x128xf32>
    %722 = arith.mulf %703, %679 : vector<1x128xf32>
    %723 = arith.mulf %705, %688 : vector<1x128xf32>
    %724 = arith.addf %722, %723 : vector<1x128xf32>
    %cst_212 = arith.constant -0.441505849 : f32
    %725 = vector.broadcast %cst_212 : f32 to vector<1x128xf32>
    %726 = arith.mulf %725, %655 : vector<1x128xf32>
    %727 = arith.subf %724, %726 : vector<1x128xf32>
    %cst_213 = arith.constant 0.897258341 : f32
    %728 = vector.broadcast %cst_213 : f32 to vector<1x128xf32>
    %729 = arith.mulf %728, %643 : vector<1x128xf32>
    %730 = arith.mulf %707, %663 : vector<1x128xf32>
    %731 = arith.addf %729, %730 : vector<1x128xf32>
    %732 = arith.mulf %709, %682 : vector<1x128xf32>
    %733 = arith.addf %731, %732 : vector<1x128xf32>
    %cst_214 = arith.constant 0.000000e+00 : f32
    %734 = vector.broadcast %cst_214 : f32 to vector<1x128xf32>
    %735 = arith.subf %734, %733 : vector<1x128xf32>
    %cst_215 = arith.constant 0.897258341 : f32
    %736 = vector.broadcast %cst_215 : f32 to vector<1x128xf32>
    %737 = arith.mulf %736, %649 : vector<1x128xf32>
    %738 = arith.mulf %707, %671 : vector<1x128xf32>
    %739 = arith.addf %737, %738 : vector<1x128xf32>
    %740 = arith.mulf %709, %685 : vector<1x128xf32>
    %741 = arith.addf %739, %740 : vector<1x128xf32>
    %cst_216 = arith.constant 0.000000e+00 : f32
    %742 = vector.broadcast %cst_216 : f32 to vector<1x128xf32>
    %743 = arith.subf %742, %741 : vector<1x128xf32>
    %cst_217 = arith.constant 0.897258341 : f32
    %744 = vector.broadcast %cst_217 : f32 to vector<1x128xf32>
    %745 = arith.mulf %744, %655 : vector<1x128xf32>
    %746 = arith.mulf %707, %679 : vector<1x128xf32>
    %747 = arith.addf %745, %746 : vector<1x128xf32>
    %748 = arith.mulf %709, %688 : vector<1x128xf32>
    %749 = arith.addf %747, %748 : vector<1x128xf32>
    %cst_218 = arith.constant 0.000000e+00 : f32
    %750 = vector.broadcast %cst_218 : f32 to vector<1x128xf32>
    %751 = arith.subf %750, %749 : vector<1x128xf32>
    %752 = arith.mulf %699, %682 : vector<1x128xf32>
    %753 = arith.mulf %701, %663 : vector<1x128xf32>
    %754 = arith.subf %752, %753 : vector<1x128xf32>
    %755 = arith.mulf %699, %685 : vector<1x128xf32>
    %756 = arith.mulf %701, %671 : vector<1x128xf32>
    %757 = arith.subf %755, %756 : vector<1x128xf32>
    %758 = arith.mulf %699, %688 : vector<1x128xf32>
    %759 = arith.mulf %701, %679 : vector<1x128xf32>
    %760 = arith.subf %758, %759 : vector<1x128xf32>
    %cst_219 = arith.constant 1.330000e+00 : f32
    %761 = vector.broadcast %cst_219 : f32 to vector<1x128xf32>
    %762 = arith.mulf %761, %715 : vector<1x128xf32>
    %763 = arith.addf %691, %762 : vector<1x128xf32>
    %cst_220 = arith.constant 1.330000e+00 : f32
    %764 = vector.broadcast %cst_220 : f32 to vector<1x128xf32>
    %765 = arith.mulf %764, %721 : vector<1x128xf32>
    %766 = arith.addf %694, %765 : vector<1x128xf32>
    %cst_221 = arith.constant 1.330000e+00 : f32
    %767 = vector.broadcast %cst_221 : f32 to vector<1x128xf32>
    %768 = arith.mulf %767, %727 : vector<1x128xf32>
    %769 = arith.addf %697, %768 : vector<1x128xf32>
    %770 = arith.select %553, %494, %6 : vector<1x128xi1>, vector<1x128xf32>
    %771 = arith.index_cast %c2_i32 : i32 to index
    %c0_222 = arith.constant 0 : index
    %c0_223 = arith.constant 0 : index
    %c0_224 = arith.constant 0 : index
    %772 = vector.load %arg3[%771, %c0_222, %c0_223, %c0_224] : memref<8x9x1x128xf32, #tpu.memory_space<vmem>>, vector<1x1x1x128xf32>
    %773 = vector.shape_cast %772 : vector<1x1x1x128xf32> to vector<1x128xf32>
    %774 = vector.shape_cast %770 : vector<1x128xf32> to vector<1x1x1x128xf32>
    tpu.vector_store %arg3[%771, %c0_222, %c0_223, %c0_224], %774 {strides = array<i32>} : memref<8x9x1x128xf32, #tpu.memory_space<vmem>>, vector<1x1x1x128xf32>,
    %775 = arith.select %553, %497, %6 : vector<1x128xi1>, vector<1x128xf32>
    %776 = arith.index_cast %c2_i32 : i32 to index
    %c1_225 = arith.constant 1 : index
    %c0_226 = arith.constant 0 : index
    %c0_227 = arith.constant 0 : index
    %777 = vector.load %arg3[%776, %c1_225, %c0_226, %c0_227] : memref<8x9x1x128xf32, #tpu.memory_space<vmem>>, vector<1x1x1x128xf32>
    %778 = vector.shape_cast %777 : vector<1x1x1x128xf32> to vector<1x128xf32>
    %779 = vector.shape_cast %775 : vector<1x128xf32> to vector<1x1x1x128xf32>
    tpu.vector_store %arg3[%776, %c1_225, %c0_226, %c0_227], %779 {strides = array<i32>} : memref<8x9x1x128xf32, #tpu.memory_space<vmem>>, vector<1x1x1x128xf32>,
    %780 = arith.select %553, %500, %6 : vector<1x128xi1>, vector<1x128xf32>
    %781 = arith.index_cast %c2_i32 : i32 to index
    %c2_228 = arith.constant 2 : index
    %c0_229 = arith.constant 0 : index
    %c0_230 = arith.constant 0 : index
    %782 = vector.load %arg3[%781, %c2_228, %c0_229, %c0_230] : memref<8x9x1x128xf32, #tpu.memory_space<vmem>>, vector<1x1x1x128xf32>
    %783 = vector.shape_cast %782 : vector<1x1x1x128xf32> to vector<1x128xf32>
    %784 = vector.shape_cast %780 : vector<1x128xf32> to vector<1x1x1x128xf32>
    tpu.vector_store %arg3[%781, %c2_228, %c0_229, %c0_230], %784 {strides = array<i32>} : memref<8x9x1x128xf32, #tpu.memory_space<vmem>>, vector<1x1x1x128xf32>,
    %785 = arith.select %553, %619, %6 : vector<1x128xi1>, vector<1x128xf32>
    %786 = arith.index_cast %c2_i32 : i32 to index
    %c3_231 = arith.constant 3 : index
    %c0_232 = arith.constant 0 : index
    %c0_233 = arith.constant 0 : index
    %787 = vector.load %arg3[%786, %c3_231, %c0_232, %c0_233] : memref<8x9x1x128xf32, #tpu.memory_space<vmem>>, vector<1x1x1x128xf32>
    %788 = vector.shape_cast %787 : vector<1x1x1x128xf32> to vector<1x128xf32>
    %789 = vector.shape_cast %785 : vector<1x128xf32> to vector<1x1x1x128xf32>
    tpu.vector_store %arg3[%786, %c3_231, %c0_232, %c0_233], %789 {strides = array<i32>} : memref<8x9x1x128xf32, #tpu.memory_space<vmem>>, vector<1x1x1x128xf32>,
    %790 = arith.select %553, %622, %6 : vector<1x128xi1>, vector<1x128xf32>
    %791 = arith.index_cast %c2_i32 : i32 to index
    %c4_234 = arith.constant 4 : index
    %c0_235 = arith.constant 0 : index
    %c0_236 = arith.constant 0 : index
    %792 = vector.load %arg3[%791, %c4_234, %c0_235, %c0_236] : memref<8x9x1x128xf32, #tpu.memory_space<vmem>>, vector<1x1x1x128xf32>
    %793 = vector.shape_cast %792 : vector<1x1x1x128xf32> to vector<1x128xf32>
    %794 = vector.shape_cast %790 : vector<1x128xf32> to vector<1x1x1x128xf32>
    tpu.vector_store %arg3[%791, %c4_234, %c0_235, %c0_236], %794 {strides = array<i32>} : memref<8x9x1x128xf32, #tpu.memory_space<vmem>>, vector<1x1x1x128xf32>,
    %795 = arith.select %553, %625, %6 : vector<1x128xi1>, vector<1x128xf32>
    %796 = arith.index_cast %c2_i32 : i32 to index
    %c5_237 = arith.constant 5 : index
    %c0_238 = arith.constant 0 : index
    %c0_239 = arith.constant 0 : index
    %797 = vector.load %arg3[%796, %c5_237, %c0_238, %c0_239] : memref<8x9x1x128xf32, #tpu.memory_space<vmem>>, vector<1x1x1x128xf32>
    %798 = vector.shape_cast %797 : vector<1x1x1x128xf32> to vector<1x128xf32>
    %799 = vector.shape_cast %795 : vector<1x128xf32> to vector<1x1x1x128xf32>
    tpu.vector_store %arg3[%796, %c5_237, %c0_238, %c0_239], %799 {strides = array<i32>} : memref<8x9x1x128xf32, #tpu.memory_space<vmem>>, vector<1x1x1x128xf32>,
    %800 = arith.select %553, %691, %6 : vector<1x128xi1>, vector<1x128xf32>
    %801 = arith.index_cast %c2_i32 : i32 to index
    %c6_240 = arith.constant 6 : index
    %c0_241 = arith.constant 0 : index
    %c0_242 = arith.constant 0 : index
    %802 = vector.load %arg3[%801, %c6_240, %c0_241, %c0_242] : memref<8x9x1x128xf32, #tpu.memory_space<vmem>>, vector<1x1x1x128xf32>
    %803 = vector.shape_cast %802 : vector<1x1x1x128xf32> to vector<1x128xf32>
    %804 = vector.shape_cast %800 : vector<1x128xf32> to vector<1x1x1x128xf32>
    tpu.vector_store %arg3[%801, %c6_240, %c0_241, %c0_242], %804 {strides = array<i32>} : memref<8x9x1x128xf32, #tpu.memory_space<vmem>>, vector<1x1x1x128xf32>,
    %805 = arith.select %553, %694, %6 : vector<1x128xi1>, vector<1x128xf32>
    %806 = arith.index_cast %c2_i32 : i32 to index
    %c7_243 = arith.constant 7 : index
    %c0_244 = arith.constant 0 : index
    %c0_245 = arith.constant 0 : index
    %807 = vector.load %arg3[%806, %c7_243, %c0_244, %c0_245] : memref<8x9x1x128xf32, #tpu.memory_space<vmem>>, vector<1x1x1x128xf32>
    %808 = vector.shape_cast %807 : vector<1x1x1x128xf32> to vector<1x128xf32>
    %809 = vector.shape_cast %805 : vector<1x128xf32> to vector<1x1x1x128xf32>
    tpu.vector_store %arg3[%806, %c7_243, %c0_244, %c0_245], %809 {strides = array<i32>} : memref<8x9x1x128xf32, #tpu.memory_space<vmem>>, vector<1x1x1x128xf32>,
    %810 = arith.select %553, %697, %6 : vector<1x128xi1>, vector<1x128xf32>
    %811 = arith.index_cast %c2_i32 : i32 to index
    %c8_246 = arith.constant 8 : index
    %c0_247 = arith.constant 0 : index
    %c0_248 = arith.constant 0 : index
    %812 = vector.load %arg3[%811, %c8_246, %c0_247, %c0_248] : memref<8x9x1x128xf32, #tpu.memory_space<vmem>>, vector<1x1x1x128xf32>
    %813 = vector.shape_cast %812 : vector<1x1x1x128xf32> to vector<1x128xf32>
    %814 = vector.shape_cast %810 : vector<1x128xf32> to vector<1x1x1x128xf32>
    tpu.vector_store %arg3[%811, %c8_246, %c0_247, %c0_248], %814 {strides = array<i32>} : memref<8x9x1x128xf32, #tpu.memory_space<vmem>>, vector<1x1x1x128xf32>,
    %c3_i32 = arith.constant 3 : i32
    %815 = arith.index_cast %c3_i32 : i32 to index
    %c0_249 = arith.constant 0 : index
    %c0_250 = arith.constant 0 : index
    %c0_251 = arith.constant 0 : index
    %816 = vector.load %arg4[%815, %c0_249, %c0_250, %c0_251] : memref<8x3x1x128xf32, #tpu.memory_space<vmem>>, vector<1x3x1x128xf32>
    %817 = vector.shape_cast %816 : vector<1x3x1x128xf32> to vector<3x1x128xf32>
    %818 = arith.index_cast %c3_i32 : i32 to index
    %c0_252 = arith.constant 0 : index
    %c0_253 = arith.constant 0 : index
    %c0_254 = arith.constant 0 : index
    %819 = vector.load %arg5[%818, %c0_252, %c0_253, %c0_254] : memref<8x3x1x128xf32, #tpu.memory_space<vmem>>, vector<1x3x1x128xf32>
    %820 = vector.shape_cast %819 : vector<1x3x1x128xf32> to vector<3x1x128xf32>
    %821 = vector.broadcast %c3_i32 : i32 to vector<1x128xi32>
    %822 = arith.cmpi slt, %821, %5 : vector<1x128xi32>
    %823 = vector.extract_strided_slice %817 {offsets = [0, 0, 0], sizes = [1, 1, 128], strides = [1, 1, 1]} : vector<3x1x128xf32> to vector<1x1x128xf32>
    %824 = vector.shape_cast %823 : vector<1x1x128xf32> to vector<1x128xf32>
    %825 = vector.extract_strided_slice %820 {offsets = [0, 0, 0], sizes = [1, 1, 128], strides = [1, 1, 1]} : vector<3x1x128xf32> to vector<1x1x128xf32>
    %826 = vector.shape_cast %825 : vector<1x1x128xf32> to vector<1x128xf32>
    %cst_255 = arith.constant 0.850811123 : f32
    %827 = vector.broadcast %cst_255 : f32 to vector<1x128xf32>
    %828 = arith.mulf %827, %824 : vector<1x128xf32>
    %cst_256 = arith.constant 0.850811123 : f32
    %829 = vector.broadcast %cst_256 : f32 to vector<1x128xf32>
    %830 = arith.mulf %829, %826 : vector<1x128xf32>
    %cst_257 = arith.constant -0.525471628 : f32
    %831 = vector.broadcast %cst_257 : f32 to vector<1x128xf32>
    %832 = arith.mulf %831, %824 : vector<1x128xf32>
    %cst_258 = arith.constant -0.525471628 : f32
    %833 = vector.broadcast %cst_258 : f32 to vector<1x128xf32>
    %834 = arith.mulf %833, %826 : vector<1x128xf32>
    %835 = arith.mulf %828, %735 : vector<1x128xf32>
    %836 = arith.mulf %830, %754 : vector<1x128xf32>
    %837 = arith.addf %835, %836 : vector<1x128xf32>
    %cst_259 = arith.constant -0.525471628 : f32
    %838 = vector.broadcast %cst_259 : f32 to vector<1x128xf32>
    %839 = arith.mulf %838, %715 : vector<1x128xf32>
    %840 = arith.subf %837, %839 : vector<1x128xf32>
    %841 = arith.mulf %828, %743 : vector<1x128xf32>
    %842 = arith.mulf %830, %757 : vector<1x128xf32>
    %843 = arith.addf %841, %842 : vector<1x128xf32>
    %cst_260 = arith.constant -0.525471628 : f32
    %844 = vector.broadcast %cst_260 : f32 to vector<1x128xf32>
    %845 = arith.mulf %844, %721 : vector<1x128xf32>
    %846 = arith.subf %843, %845 : vector<1x128xf32>
    %847 = arith.mulf %828, %751 : vector<1x128xf32>
    %848 = arith.mulf %830, %760 : vector<1x128xf32>
    %849 = arith.addf %847, %848 : vector<1x128xf32>
    %cst_261 = arith.constant -0.525471628 : f32
    %850 = vector.broadcast %cst_261 : f32 to vector<1x128xf32>
    %851 = arith.mulf %850, %727 : vector<1x128xf32>
    %852 = arith.subf %849, %851 : vector<1x128xf32>
    %cst_262 = arith.constant 0.850811123 : f32
    %853 = vector.broadcast %cst_262 : f32 to vector<1x128xf32>
    %854 = arith.mulf %853, %715 : vector<1x128xf32>
    %855 = arith.mulf %832, %735 : vector<1x128xf32>
    %856 = arith.addf %854, %855 : vector<1x128xf32>
    %857 = arith.mulf %834, %754 : vector<1x128xf32>
    %858 = arith.addf %856, %857 : vector<1x128xf32>
    %cst_263 = arith.constant 0.000000e+00 : f32
    %859 = vector.broadcast %cst_263 : f32 to vector<1x128xf32>
    %860 = arith.subf %859, %858 : vector<1x128xf32>
    %cst_264 = arith.constant 0.850811123 : f32
    %861 = vector.broadcast %cst_264 : f32 to vector<1x128xf32>
    %862 = arith.mulf %861, %721 : vector<1x128xf32>
    %863 = arith.mulf %832, %743 : vector<1x128xf32>
    %864 = arith.addf %862, %863 : vector<1x128xf32>
    %865 = arith.mulf %834, %757 : vector<1x128xf32>
    %866 = arith.addf %864, %865 : vector<1x128xf32>
    %cst_265 = arith.constant 0.000000e+00 : f32
    %867 = vector.broadcast %cst_265 : f32 to vector<1x128xf32>
    %868 = arith.subf %867, %866 : vector<1x128xf32>
    %cst_266 = arith.constant 0.850811123 : f32
    %869 = vector.broadcast %cst_266 : f32 to vector<1x128xf32>
    %870 = arith.mulf %869, %727 : vector<1x128xf32>
    %871 = arith.mulf %832, %751 : vector<1x128xf32>
    %872 = arith.addf %870, %871 : vector<1x128xf32>
    %873 = arith.mulf %834, %760 : vector<1x128xf32>
    %874 = arith.addf %872, %873 : vector<1x128xf32>
    %cst_267 = arith.constant 0.000000e+00 : f32
    %875 = vector.broadcast %cst_267 : f32 to vector<1x128xf32>
    %876 = arith.subf %875, %874 : vector<1x128xf32>
    %877 = arith.mulf %824, %754 : vector<1x128xf32>
    %878 = arith.mulf %826, %735 : vector<1x128xf32>
    %879 = arith.subf %877, %878 : vector<1x128xf32>
    %880 = arith.mulf %824, %757 : vector<1x128xf32>
    %881 = arith.mulf %826, %743 : vector<1x128xf32>
    %882 = arith.subf %880, %881 : vector<1x128xf32>
    %883 = arith.mulf %824, %760 : vector<1x128xf32>
    %884 = arith.mulf %826, %751 : vector<1x128xf32>
    %885 = arith.subf %883, %884 : vector<1x128xf32>
    %cst_268 = arith.constant 1.460000e+00 : f32
    %886 = vector.broadcast %cst_268 : f32 to vector<1x128xf32>
    %887 = arith.mulf %886, %840 : vector<1x128xf32>
    %888 = arith.addf %763, %887 : vector<1x128xf32>
    %cst_269 = arith.constant 1.460000e+00 : f32
    %889 = vector.broadcast %cst_269 : f32 to vector<1x128xf32>
    %890 = arith.mulf %889, %846 : vector<1x128xf32>
    %891 = arith.addf %766, %890 : vector<1x128xf32>
    %cst_270 = arith.constant 1.460000e+00 : f32
    %892 = vector.broadcast %cst_270 : f32 to vector<1x128xf32>
    %893 = arith.mulf %892, %852 : vector<1x128xf32>
    %894 = arith.addf %769, %893 : vector<1x128xf32>
    %895 = vector.extract_strided_slice %817 {offsets = [1, 0, 0], sizes = [1, 1, 128], strides = [1, 1, 1]} : vector<3x1x128xf32> to vector<1x1x128xf32>
    %896 = vector.shape_cast %895 : vector<1x1x128xf32> to vector<1x128xf32>
    %897 = vector.extract_strided_slice %820 {offsets = [1, 0, 0], sizes = [1, 1, 128], strides = [1, 1, 1]} : vector<3x1x128xf32> to vector<1x1x128xf32>
    %898 = vector.shape_cast %897 : vector<1x1x128xf32> to vector<1x128xf32>
    %cst_271 = arith.constant 0.932323813 : f32
    %899 = vector.broadcast %cst_271 : f32 to vector<1x128xf32>
    %900 = arith.mulf %899, %896 : vector<1x128xf32>
    %cst_272 = arith.constant 0.932323813 : f32
    %901 = vector.broadcast %cst_272 : f32 to vector<1x128xf32>
    %902 = arith.mulf %901, %898 : vector<1x128xf32>
    %cst_273 = arith.constant -0.361624569 : f32
    %903 = vector.broadcast %cst_273 : f32 to vector<1x128xf32>
    %904 = arith.mulf %903, %896 : vector<1x128xf32>
    %cst_274 = arith.constant -0.361624569 : f32
    %905 = vector.broadcast %cst_274 : f32 to vector<1x128xf32>
    %906 = arith.mulf %905, %898 : vector<1x128xf32>
    %907 = arith.mulf %900, %860 : vector<1x128xf32>
    %908 = arith.mulf %902, %879 : vector<1x128xf32>
    %909 = arith.addf %907, %908 : vector<1x128xf32>
    %cst_275 = arith.constant -0.361624569 : f32
    %910 = vector.broadcast %cst_275 : f32 to vector<1x128xf32>
    %911 = arith.mulf %910, %840 : vector<1x128xf32>
    %912 = arith.subf %909, %911 : vector<1x128xf32>
    %913 = arith.mulf %900, %868 : vector<1x128xf32>
    %914 = arith.mulf %902, %882 : vector<1x128xf32>
    %915 = arith.addf %913, %914 : vector<1x128xf32>
    %cst_276 = arith.constant -0.361624569 : f32
    %916 = vector.broadcast %cst_276 : f32 to vector<1x128xf32>
    %917 = arith.mulf %916, %846 : vector<1x128xf32>
    %918 = arith.subf %915, %917 : vector<1x128xf32>
    %919 = arith.mulf %900, %876 : vector<1x128xf32>
    %920 = arith.mulf %902, %885 : vector<1x128xf32>
    %921 = arith.addf %919, %920 : vector<1x128xf32>
    %cst_277 = arith.constant -0.361624569 : f32
    %922 = vector.broadcast %cst_277 : f32 to vector<1x128xf32>
    %923 = arith.mulf %922, %852 : vector<1x128xf32>
    %924 = arith.subf %921, %923 : vector<1x128xf32>
    %cst_278 = arith.constant 0.932323813 : f32
    %925 = vector.broadcast %cst_278 : f32 to vector<1x128xf32>
    %926 = arith.mulf %925, %840 : vector<1x128xf32>
    %927 = arith.mulf %904, %860 : vector<1x128xf32>
    %928 = arith.addf %926, %927 : vector<1x128xf32>
    %929 = arith.mulf %906, %879 : vector<1x128xf32>
    %930 = arith.addf %928, %929 : vector<1x128xf32>
    %cst_279 = arith.constant 0.000000e+00 : f32
    %931 = vector.broadcast %cst_279 : f32 to vector<1x128xf32>
    %932 = arith.subf %931, %930 : vector<1x128xf32>
    %cst_280 = arith.constant 0.932323813 : f32
    %933 = vector.broadcast %cst_280 : f32 to vector<1x128xf32>
    %934 = arith.mulf %933, %846 : vector<1x128xf32>
    %935 = arith.mulf %904, %868 : vector<1x128xf32>
    %936 = arith.addf %934, %935 : vector<1x128xf32>
    %937 = arith.mulf %906, %882 : vector<1x128xf32>
    %938 = arith.addf %936, %937 : vector<1x128xf32>
    %cst_281 = arith.constant 0.000000e+00 : f32
    %939 = vector.broadcast %cst_281 : f32 to vector<1x128xf32>
    %940 = arith.subf %939, %938 : vector<1x128xf32>
    %cst_282 = arith.constant 0.932323813 : f32
    %941 = vector.broadcast %cst_282 : f32 to vector<1x128xf32>
    %942 = arith.mulf %941, %852 : vector<1x128xf32>
    %943 = arith.mulf %904, %876 : vector<1x128xf32>
    %944 = arith.addf %942, %943 : vector<1x128xf32>
    %945 = arith.mulf %906, %885 : vector<1x128xf32>
    %946 = arith.addf %944, %945 : vector<1x128xf32>
    %cst_283 = arith.constant 0.000000e+00 : f32
    %947 = vector.broadcast %cst_283 : f32 to vector<1x128xf32>
    %948 = arith.subf %947, %946 : vector<1x128xf32>
    %949 = arith.mulf %896, %879 : vector<1x128xf32>
    %950 = arith.mulf %898, %860 : vector<1x128xf32>
    %951 = arith.subf %949, %950 : vector<1x128xf32>
    %952 = arith.mulf %896, %882 : vector<1x128xf32>
    %953 = arith.mulf %898, %868 : vector<1x128xf32>
    %954 = arith.subf %952, %953 : vector<1x128xf32>
    %955 = arith.mulf %896, %885 : vector<1x128xf32>
    %956 = arith.mulf %898, %876 : vector<1x128xf32>
    %957 = arith.subf %955, %956 : vector<1x128xf32>
    %cst_284 = arith.constant 1.525000e+00 : f32
    %958 = vector.broadcast %cst_284 : f32 to vector<1x128xf32>
    %959 = arith.mulf %958, %912 : vector<1x128xf32>
    %960 = arith.addf %888, %959 : vector<1x128xf32>
    %cst_285 = arith.constant 1.525000e+00 : f32
    %961 = vector.broadcast %cst_285 : f32 to vector<1x128xf32>
    %962 = arith.mulf %961, %918 : vector<1x128xf32>
    %963 = arith.addf %891, %962 : vector<1x128xf32>
    %cst_286 = arith.constant 1.525000e+00 : f32
    %964 = vector.broadcast %cst_286 : f32 to vector<1x128xf32>
    %965 = arith.mulf %964, %924 : vector<1x128xf32>
    %966 = arith.addf %894, %965 : vector<1x128xf32>
    %967 = vector.extract_strided_slice %817 {offsets = [2, 0, 0], sizes = [1, 1, 128], strides = [1, 1, 1]} : vector<3x1x128xf32> to vector<1x1x128xf32>
    %968 = vector.shape_cast %967 : vector<1x1x128xf32> to vector<1x128xf32>
    %969 = vector.extract_strided_slice %820 {offsets = [2, 0, 0], sizes = [1, 1, 128], strides = [1, 1, 1]} : vector<3x1x128xf32> to vector<1x1x128xf32>
    %970 = vector.shape_cast %969 : vector<1x1x128xf32> to vector<1x128xf32>
    %cst_287 = arith.constant 0.897258341 : f32
    %971 = vector.broadcast %cst_287 : f32 to vector<1x128xf32>
    %972 = arith.mulf %971, %968 : vector<1x128xf32>
    %cst_288 = arith.constant 0.897258341 : f32
    %973 = vector.broadcast %cst_288 : f32 to vector<1x128xf32>
    %974 = arith.mulf %973, %970 : vector<1x128xf32>
    %cst_289 = arith.constant -0.441505849 : f32
    %975 = vector.broadcast %cst_289 : f32 to vector<1x128xf32>
    %976 = arith.mulf %975, %968 : vector<1x128xf32>
    %cst_290 = arith.constant -0.441505849 : f32
    %977 = vector.broadcast %cst_290 : f32 to vector<1x128xf32>
    %978 = arith.mulf %977, %970 : vector<1x128xf32>
    %979 = arith.mulf %972, %932 : vector<1x128xf32>
    %980 = arith.mulf %974, %951 : vector<1x128xf32>
    %981 = arith.addf %979, %980 : vector<1x128xf32>
    %cst_291 = arith.constant -0.441505849 : f32
    %982 = vector.broadcast %cst_291 : f32 to vector<1x128xf32>
    %983 = arith.mulf %982, %912 : vector<1x128xf32>
    %984 = arith.subf %981, %983 : vector<1x128xf32>
    %985 = arith.mulf %972, %940 : vector<1x128xf32>
    %986 = arith.mulf %974, %954 : vector<1x128xf32>
    %987 = arith.addf %985, %986 : vector<1x128xf32>
    %cst_292 = arith.constant -0.441505849 : f32
    %988 = vector.broadcast %cst_292 : f32 to vector<1x128xf32>
    %989 = arith.mulf %988, %918 : vector<1x128xf32>
    %990 = arith.subf %987, %989 : vector<1x128xf32>
    %991 = arith.mulf %972, %948 : vector<1x128xf32>
    %992 = arith.mulf %974, %957 : vector<1x128xf32>
    %993 = arith.addf %991, %992 : vector<1x128xf32>
    %cst_293 = arith.constant -0.441505849 : f32
    %994 = vector.broadcast %cst_293 : f32 to vector<1x128xf32>
    %995 = arith.mulf %994, %924 : vector<1x128xf32>
    %996 = arith.subf %993, %995 : vector<1x128xf32>
    %cst_294 = arith.constant 0.897258341 : f32
    %997 = vector.broadcast %cst_294 : f32 to vector<1x128xf32>
    %998 = arith.mulf %997, %912 : vector<1x128xf32>
    %999 = arith.mulf %976, %932 : vector<1x128xf32>
    %1000 = arith.addf %998, %999 : vector<1x128xf32>
    %1001 = arith.mulf %978, %951 : vector<1x128xf32>
    %1002 = arith.addf %1000, %1001 : vector<1x128xf32>
    %cst_295 = arith.constant 0.000000e+00 : f32
    %1003 = vector.broadcast %cst_295 : f32 to vector<1x128xf32>
    %1004 = arith.subf %1003, %1002 : vector<1x128xf32>
    %cst_296 = arith.constant 0.897258341 : f32
    %1005 = vector.broadcast %cst_296 : f32 to vector<1x128xf32>
    %1006 = arith.mulf %1005, %918 : vector<1x128xf32>
    %1007 = arith.mulf %976, %940 : vector<1x128xf32>
    %1008 = arith.addf %1006, %1007 : vector<1x128xf32>
    %1009 = arith.mulf %978, %954 : vector<1x128xf32>
    %1010 = arith.addf %1008, %1009 : vector<1x128xf32>
    %cst_297 = arith.constant 0.000000e+00 : f32
    %1011 = vector.broadcast %cst_297 : f32 to vector<1x128xf32>
    %1012 = arith.subf %1011, %1010 : vector<1x128xf32>
    %cst_298 = arith.constant 0.897258341 : f32
    %1013 = vector.broadcast %cst_298 : f32 to vector<1x128xf32>
    %1014 = arith.mulf %1013, %924 : vector<1x128xf32>
    %1015 = arith.mulf %976, %948 : vector<1x128xf32>
    %1016 = arith.addf %1014, %1015 : vector<1x128xf32>
    %1017 = arith.mulf %978, %957 : vector<1x128xf32>
    %1018 = arith.addf %1016, %1017 : vector<1x128xf32>
    %cst_299 = arith.constant 0.000000e+00 : f32
    %1019 = vector.broadcast %cst_299 : f32 to vector<1x128xf32>
    %1020 = arith.subf %1019, %1018 : vector<1x128xf32>
    %1021 = arith.mulf %968, %951 : vector<1x128xf32>
    %1022 = arith.mulf %970, %932 : vector<1x128xf32>
    %1023 = arith.subf %1021, %1022 : vector<1x128xf32>
    %1024 = arith.mulf %968, %954 : vector<1x128xf32>
    %1025 = arith.mulf %970, %940 : vector<1x128xf32>
    %1026 = arith.subf %1024, %1025 : vector<1x128xf32>
    %1027 = arith.mulf %968, %957 : vector<1x128xf32>
    %1028 = arith.mulf %970, %948 : vector<1x128xf32>
    %1029 = arith.subf %1027, %1028 : vector<1x128xf32>
    %cst_300 = arith.constant 1.330000e+00 : f32
    %1030 = vector.broadcast %cst_300 : f32 to vector<1x128xf32>
    %1031 = arith.mulf %1030, %984 : vector<1x128xf32>
    %1032 = arith.addf %960, %1031 : vector<1x128xf32>
    %cst_301 = arith.constant 1.330000e+00 : f32
    %1033 = vector.broadcast %cst_301 : f32 to vector<1x128xf32>
    %1034 = arith.mulf %1033, %990 : vector<1x128xf32>
    %1035 = arith.addf %963, %1034 : vector<1x128xf32>
    %cst_302 = arith.constant 1.330000e+00 : f32
    %1036 = vector.broadcast %cst_302 : f32 to vector<1x128xf32>
    %1037 = arith.mulf %1036, %996 : vector<1x128xf32>
    %1038 = arith.addf %966, %1037 : vector<1x128xf32>
    %1039 = arith.select %822, %763, %6 : vector<1x128xi1>, vector<1x128xf32>
    %1040 = arith.index_cast %c3_i32 : i32 to index
    %c0_303 = arith.constant 0 : index
    %c0_304 = arith.constant 0 : index
    %c0_305 = arith.constant 0 : index
    %1041 = vector.load %arg3[%1040, %c0_303, %c0_304, %c0_305] : memref<8x9x1x128xf32, #tpu.memory_space<vmem>>, vector<1x1x1x128xf32>
    %1042 = vector.shape_cast %1041 : vector<1x1x1x128xf32> to vector<1x128xf32>
    %1043 = vector.shape_cast %1039 : vector<1x128xf32> to vector<1x1x1x128xf32>
    tpu.vector_store %arg3[%1040, %c0_303, %c0_304, %c0_305], %1043 {strides = array<i32>} : memref<8x9x1x128xf32, #tpu.memory_space<vmem>>, vector<1x1x1x128xf32>,
    %1044 = arith.select %822, %766, %6 : vector<1x128xi1>, vector<1x128xf32>
    %1045 = arith.index_cast %c3_i32 : i32 to index
    %c1_306 = arith.constant 1 : index
    %c0_307 = arith.constant 0 : index
    %c0_308 = arith.constant 0 : index
    %1046 = vector.load %arg3[%1045, %c1_306, %c0_307, %c0_308] : memref<8x9x1x128xf32, #tpu.memory_space<vmem>>, vector<1x1x1x128xf32>
    %1047 = vector.shape_cast %1046 : vector<1x1x1x128xf32> to vector<1x128xf32>
    %1048 = vector.shape_cast %1044 : vector<1x128xf32> to vector<1x1x1x128xf32>
    tpu.vector_store %arg3[%1045, %c1_306, %c0_307, %c0_308], %1048 {strides = array<i32>} : memref<8x9x1x128xf32, #tpu.memory_space<vmem>>, vector<1x1x1x128xf32>,
    %1049 = arith.select %822, %769, %6 : vector<1x128xi1>, vector<1x128xf32>
    %1050 = arith.index_cast %c3_i32 : i32 to index
    %c2_309 = arith.constant 2 : index
    %c0_310 = arith.constant 0 : index
    %c0_311 = arith.constant 0 : index
    %1051 = vector.load %arg3[%1050, %c2_309, %c0_310, %c0_311] : memref<8x9x1x128xf32, #tpu.memory_space<vmem>>, vector<1x1x1x128xf32>
    %1052 = vector.shape_cast %1051 : vector<1x1x1x128xf32> to vector<1x128xf32>
    %1053 = vector.shape_cast %1049 : vector<1x128xf32> to vector<1x1x1x128xf32>
    tpu.vector_store %arg3[%1050, %c2_309, %c0_310, %c0_311], %1053 {strides = array<i32>} : memref<8x9x1x128xf32, #tpu.memory_space<vmem>>, vector<1x1x1x128xf32>,
    %1054 = arith.select %822, %888, %6 : vector<1x128xi1>, vector<1x128xf32>
    %1055 = arith.index_cast %c3_i32 : i32 to index
    %c3_312 = arith.constant 3 : index
    %c0_313 = arith.constant 0 : index
    %c0_314 = arith.constant 0 : index
    %1056 = vector.load %arg3[%1055, %c3_312, %c0_313, %c0_314] : memref<8x9x1x128xf32, #tpu.memory_space<vmem>>, vector<1x1x1x128xf32>
    %1057 = vector.shape_cast %1056 : vector<1x1x1x128xf32> to vector<1x128xf32>
    %1058 = vector.shape_cast %1054 : vector<1x128xf32> to vector<1x1x1x128xf32>
    tpu.vector_store %arg3[%1055, %c3_312, %c0_313, %c0_314], %1058 {strides = array<i32>} : memref<8x9x1x128xf32, #tpu.memory_space<vmem>>, vector<1x1x1x128xf32>,
    %1059 = arith.select %822, %891, %6 : vector<1x128xi1>, vector<1x128xf32>
    %1060 = arith.index_cast %c3_i32 : i32 to index
    %c4_315 = arith.constant 4 : index
    %c0_316 = arith.constant 0 : index
    %c0_317 = arith.constant 0 : index
    %1061 = vector.load %arg3[%1060, %c4_315, %c0_316, %c0_317] : memref<8x9x1x128xf32, #tpu.memory_space<vmem>>, vector<1x1x1x128xf32>
    %1062 = vector.shape_cast %1061 : vector<1x1x1x128xf32> to vector<1x128xf32>
    %1063 = vector.shape_cast %1059 : vector<1x128xf32> to vector<1x1x1x128xf32>
    tpu.vector_store %arg3[%1060, %c4_315, %c0_316, %c0_317], %1063 {strides = array<i32>} : memref<8x9x1x128xf32, #tpu.memory_space<vmem>>, vector<1x1x1x128xf32>,
    %1064 = arith.select %822, %894, %6 : vector<1x128xi1>, vector<1x128xf32>
    %1065 = arith.index_cast %c3_i32 : i32 to index
    %c5_318 = arith.constant 5 : index
    %c0_319 = arith.constant 0 : index
    %c0_320 = arith.constant 0 : index
    %1066 = vector.load %arg3[%1065, %c5_318, %c0_319, %c0_320] : memref<8x9x1x128xf32, #tpu.memory_space<vmem>>, vector<1x1x1x128xf32>
    %1067 = vector.shape_cast %1066 : vector<1x1x1x128xf32> to vector<1x128xf32>
    %1068 = vector.shape_cast %1064 : vector<1x128xf32> to vector<1x1x1x128xf32>
    tpu.vector_store %arg3[%1065, %c5_318, %c0_319, %c0_320], %1068 {strides = array<i32>} : memref<8x9x1x128xf32, #tpu.memory_space<vmem>>, vector<1x1x1x128xf32>,
    %1069 = arith.select %822, %960, %6 : vector<1x128xi1>, vector<1x128xf32>
    %1070 = arith.index_cast %c3_i32 : i32 to index
    %c6_321 = arith.constant 6 : index
    %c0_322 = arith.constant 0 : index
    %c0_323 = arith.constant 0 : index
    %1071 = vector.load %arg3[%1070, %c6_321, %c0_322, %c0_323] : memref<8x9x1x128xf32, #tpu.memory_space<vmem>>, vector<1x1x1x128xf32>
    %1072 = vector.shape_cast %1071 : vector<1x1x1x128xf32> to vector<1x128xf32>
    %1073 = vector.shape_cast %1069 : vector<1x128xf32> to vector<1x1x1x128xf32>
    tpu.vector_store %arg3[%1070, %c6_321, %c0_322, %c0_323], %1073 {strides = array<i32>} : memref<8x9x1x128xf32, #tpu.memory_space<vmem>>, vector<1x1x1x128xf32>,
    %1074 = arith.select %822, %963, %6 : vector<1x128xi1>, vector<1x128xf32>
    %1075 = arith.index_cast %c3_i32 : i32 to index
    %c7_324 = arith.constant 7 : index
    %c0_325 = arith.constant 0 : index
    %c0_326 = arith.constant 0 : index
    %1076 = vector.load %arg3[%1075, %c7_324, %c0_325, %c0_326] : memref<8x9x1x128xf32, #tpu.memory_space<vmem>>, vector<1x1x1x128xf32>
    %1077 = vector.shape_cast %1076 : vector<1x1x1x128xf32> to vector<1x128xf32>
    %1078 = vector.shape_cast %1074 : vector<1x128xf32> to vector<1x1x1x128xf32>
    tpu.vector_store %arg3[%1075, %c7_324, %c0_325, %c0_326], %1078 {strides = array<i32>} : memref<8x9x1x128xf32, #tpu.memory_space<vmem>>, vector<1x1x1x128xf32>,
    %1079 = arith.select %822, %966, %6 : vector<1x128xi1>, vector<1x128xf32>
    %1080 = arith.index_cast %c3_i32 : i32 to index
    %c8_327 = arith.constant 8 : index
    %c0_328 = arith.constant 0 : index
    %c0_329 = arith.constant 0 : index
    %1081 = vector.load %arg3[%1080, %c8_327, %c0_328, %c0_329] : memref<8x9x1x128xf32, #tpu.memory_space<vmem>>, vector<1x1x1x128xf32>
    %1082 = vector.shape_cast %1081 : vector<1x1x1x128xf32> to vector<1x128xf32>
    %1083 = vector.shape_cast %1079 : vector<1x128xf32> to vector<1x1x1x128xf32>
    tpu.vector_store %arg3[%1080, %c8_327, %c0_328, %c0_329], %1083 {strides = array<i32>} : memref<8x9x1x128xf32, #tpu.memory_space<vmem>>, vector<1x1x1x128xf32>,
    %c4_i32 = arith.constant 4 : i32
    %1084 = arith.index_cast %c4_i32 : i32 to index
    %c0_330 = arith.constant 0 : index
    %c0_331 = arith.constant 0 : index
    %c0_332 = arith.constant 0 : index
    %1085 = vector.load %arg4[%1084, %c0_330, %c0_331, %c0_332] : memref<8x3x1x128xf32, #tpu.memory_space<vmem>>, vector<1x3x1x128xf32>
    %1086 = vector.shape_cast %1085 : vector<1x3x1x128xf32> to vector<3x1x128xf32>
    %1087 = arith.index_cast %c4_i32 : i32 to index
    %c0_333 = arith.constant 0 : index
    %c0_334 = arith.constant 0 : index
    %c0_335 = arith.constant 0 : index
    %1088 = vector.load %arg5[%1087, %c0_333, %c0_334, %c0_335] : memref<8x3x1x128xf32, #tpu.memory_space<vmem>>, vector<1x3x1x128xf32>
    %1089 = vector.shape_cast %1088 : vector<1x3x1x128xf32> to vector<3x1x128xf32>
    %1090 = vector.broadcast %c4_i32 : i32 to vector<1x128xi32>
    %1091 = arith.cmpi slt, %1090, %5 : vector<1x128xi32>
    %1092 = vector.extract_strided_slice %1086 {offsets = [0, 0, 0], sizes = [1, 1, 128], strides = [1, 1, 1]} : vector<3x1x128xf32> to vector<1x1x128xf32>
    %1093 = vector.shape_cast %1092 : vector<1x1x128xf32> to vector<1x128xf32>
    %1094 = vector.extract_strided_slice %1089 {offsets = [0, 0, 0], sizes = [1, 1, 128], strides = [1, 1, 1]} : vector<3x1x128xf32> to vector<1x1x128xf32>
    %1095 = vector.shape_cast %1094 : vector<1x1x128xf32> to vector<1x128xf32>
    %cst_336 = arith.constant 0.850811123 : f32
    %1096 = vector.broadcast %cst_336 : f32 to vector<1x128xf32>
    %1097 = arith.mulf %1096, %1093 : vector<1x128xf32>
    %cst_337 = arith.constant 0.850811123 : f32
    %1098 = vector.broadcast %cst_337 : f32 to vector<1x128xf32>
    %1099 = arith.mulf %1098, %1095 : vector<1x128xf32>
    %cst_338 = arith.constant -0.525471628 : f32
    %1100 = vector.broadcast %cst_338 : f32 to vector<1x128xf32>
    %1101 = arith.mulf %1100, %1093 : vector<1x128xf32>
    %cst_339 = arith.constant -0.525471628 : f32
    %1102 = vector.broadcast %cst_339 : f32 to vector<1x128xf32>
    %1103 = arith.mulf %1102, %1095 : vector<1x128xf32>
    %1104 = arith.mulf %1097, %1004 : vector<1x128xf32>
    %1105 = arith.mulf %1099, %1023 : vector<1x128xf32>
    %1106 = arith.addf %1104, %1105 : vector<1x128xf32>
    %cst_340 = arith.constant -0.525471628 : f32
    %1107 = vector.broadcast %cst_340 : f32 to vector<1x128xf32>
    %1108 = arith.mulf %1107, %984 : vector<1x128xf32>
    %1109 = arith.subf %1106, %1108 : vector<1x128xf32>
    %1110 = arith.mulf %1097, %1012 : vector<1x128xf32>
    %1111 = arith.mulf %1099, %1026 : vector<1x128xf32>
    %1112 = arith.addf %1110, %1111 : vector<1x128xf32>
    %cst_341 = arith.constant -0.525471628 : f32
    %1113 = vector.broadcast %cst_341 : f32 to vector<1x128xf32>
    %1114 = arith.mulf %1113, %990 : vector<1x128xf32>
    %1115 = arith.subf %1112, %1114 : vector<1x128xf32>
    %1116 = arith.mulf %1097, %1020 : vector<1x128xf32>
    %1117 = arith.mulf %1099, %1029 : vector<1x128xf32>
    %1118 = arith.addf %1116, %1117 : vector<1x128xf32>
    %cst_342 = arith.constant -0.525471628 : f32
    %1119 = vector.broadcast %cst_342 : f32 to vector<1x128xf32>
    %1120 = arith.mulf %1119, %996 : vector<1x128xf32>
    %1121 = arith.subf %1118, %1120 : vector<1x128xf32>
    %cst_343 = arith.constant 0.850811123 : f32
    %1122 = vector.broadcast %cst_343 : f32 to vector<1x128xf32>
    %1123 = arith.mulf %1122, %984 : vector<1x128xf32>
    %1124 = arith.mulf %1101, %1004 : vector<1x128xf32>
    %1125 = arith.addf %1123, %1124 : vector<1x128xf32>
    %1126 = arith.mulf %1103, %1023 : vector<1x128xf32>
    %1127 = arith.addf %1125, %1126 : vector<1x128xf32>
    %cst_344 = arith.constant 0.000000e+00 : f32
    %1128 = vector.broadcast %cst_344 : f32 to vector<1x128xf32>
    %1129 = arith.subf %1128, %1127 : vector<1x128xf32>
    %cst_345 = arith.constant 0.850811123 : f32
    %1130 = vector.broadcast %cst_345 : f32 to vector<1x128xf32>
    %1131 = arith.mulf %1130, %990 : vector<1x128xf32>
    %1132 = arith.mulf %1101, %1012 : vector<1x128xf32>
    %1133 = arith.addf %1131, %1132 : vector<1x128xf32>
    %1134 = arith.mulf %1103, %1026 : vector<1x128xf32>
    %1135 = arith.addf %1133, %1134 : vector<1x128xf32>
    %cst_346 = arith.constant 0.000000e+00 : f32
    %1136 = vector.broadcast %cst_346 : f32 to vector<1x128xf32>
    %1137 = arith.subf %1136, %1135 : vector<1x128xf32>
    %cst_347 = arith.constant 0.850811123 : f32
    %1138 = vector.broadcast %cst_347 : f32 to vector<1x128xf32>
    %1139 = arith.mulf %1138, %996 : vector<1x128xf32>
    %1140 = arith.mulf %1101, %1020 : vector<1x128xf32>
    %1141 = arith.addf %1139, %1140 : vector<1x128xf32>
    %1142 = arith.mulf %1103, %1029 : vector<1x128xf32>
    %1143 = arith.addf %1141, %1142 : vector<1x128xf32>
    %cst_348 = arith.constant 0.000000e+00 : f32
    %1144 = vector.broadcast %cst_348 : f32 to vector<1x128xf32>
    %1145 = arith.subf %1144, %1143 : vector<1x128xf32>
    %1146 = arith.mulf %1093, %1023 : vector<1x128xf32>
    %1147 = arith.mulf %1095, %1004 : vector<1x128xf32>
    %1148 = arith.subf %1146, %1147 : vector<1x128xf32>
    %1149 = arith.mulf %1093, %1026 : vector<1x128xf32>
    %1150 = arith.mulf %1095, %1012 : vector<1x128xf32>
    %1151 = arith.subf %1149, %1150 : vector<1x128xf32>
    %1152 = arith.mulf %1093, %1029 : vector<1x128xf32>
    %1153 = arith.mulf %1095, %1020 : vector<1x128xf32>
    %1154 = arith.subf %1152, %1153 : vector<1x128xf32>
    %cst_349 = arith.constant 1.460000e+00 : f32
    %1155 = vector.broadcast %cst_349 : f32 to vector<1x128xf32>
    %1156 = arith.mulf %1155, %1109 : vector<1x128xf32>
    %1157 = arith.addf %1032, %1156 : vector<1x128xf32>
    %cst_350 = arith.constant 1.460000e+00 : f32
    %1158 = vector.broadcast %cst_350 : f32 to vector<1x128xf32>
    %1159 = arith.mulf %1158, %1115 : vector<1x128xf32>
    %1160 = arith.addf %1035, %1159 : vector<1x128xf32>
    %cst_351 = arith.constant 1.460000e+00 : f32
    %1161 = vector.broadcast %cst_351 : f32 to vector<1x128xf32>
    %1162 = arith.mulf %1161, %1121 : vector<1x128xf32>
    %1163 = arith.addf %1038, %1162 : vector<1x128xf32>
    %1164 = vector.extract_strided_slice %1086 {offsets = [1, 0, 0], sizes = [1, 1, 128], strides = [1, 1, 1]} : vector<3x1x128xf32> to vector<1x1x128xf32>
    %1165 = vector.shape_cast %1164 : vector<1x1x128xf32> to vector<1x128xf32>
    %1166 = vector.extract_strided_slice %1089 {offsets = [1, 0, 0], sizes = [1, 1, 128], strides = [1, 1, 1]} : vector<3x1x128xf32> to vector<1x1x128xf32>
    %1167 = vector.shape_cast %1166 : vector<1x1x128xf32> to vector<1x128xf32>
    %cst_352 = arith.constant 0.932323813 : f32
    %1168 = vector.broadcast %cst_352 : f32 to vector<1x128xf32>
    %1169 = arith.mulf %1168, %1165 : vector<1x128xf32>
    %cst_353 = arith.constant 0.932323813 : f32
    %1170 = vector.broadcast %cst_353 : f32 to vector<1x128xf32>
    %1171 = arith.mulf %1170, %1167 : vector<1x128xf32>
    %cst_354 = arith.constant -0.361624569 : f32
    %1172 = vector.broadcast %cst_354 : f32 to vector<1x128xf32>
    %1173 = arith.mulf %1172, %1165 : vector<1x128xf32>
    %cst_355 = arith.constant -0.361624569 : f32
    %1174 = vector.broadcast %cst_355 : f32 to vector<1x128xf32>
    %1175 = arith.mulf %1174, %1167 : vector<1x128xf32>
    %1176 = arith.mulf %1169, %1129 : vector<1x128xf32>
    %1177 = arith.mulf %1171, %1148 : vector<1x128xf32>
    %1178 = arith.addf %1176, %1177 : vector<1x128xf32>
    %cst_356 = arith.constant -0.361624569 : f32
    %1179 = vector.broadcast %cst_356 : f32 to vector<1x128xf32>
    %1180 = arith.mulf %1179, %1109 : vector<1x128xf32>
    %1181 = arith.subf %1178, %1180 : vector<1x128xf32>
    %1182 = arith.mulf %1169, %1137 : vector<1x128xf32>
    %1183 = arith.mulf %1171, %1151 : vector<1x128xf32>
    %1184 = arith.addf %1182, %1183 : vector<1x128xf32>
    %cst_357 = arith.constant -0.361624569 : f32
    %1185 = vector.broadcast %cst_357 : f32 to vector<1x128xf32>
    %1186 = arith.mulf %1185, %1115 : vector<1x128xf32>
    %1187 = arith.subf %1184, %1186 : vector<1x128xf32>
    %1188 = arith.mulf %1169, %1145 : vector<1x128xf32>
    %1189 = arith.mulf %1171, %1154 : vector<1x128xf32>
    %1190 = arith.addf %1188, %1189 : vector<1x128xf32>
    %cst_358 = arith.constant -0.361624569 : f32
    %1191 = vector.broadcast %cst_358 : f32 to vector<1x128xf32>
    %1192 = arith.mulf %1191, %1121 : vector<1x128xf32>
    %1193 = arith.subf %1190, %1192 : vector<1x128xf32>
    %cst_359 = arith.constant 0.932323813 : f32
    %1194 = vector.broadcast %cst_359 : f32 to vector<1x128xf32>
    %1195 = arith.mulf %1194, %1109 : vector<1x128xf32>
    %1196 = arith.mulf %1173, %1129 : vector<1x128xf32>
    %1197 = arith.addf %1195, %1196 : vector<1x128xf32>
    %1198 = arith.mulf %1175, %1148 : vector<1x128xf32>
    %1199 = arith.addf %1197, %1198 : vector<1x128xf32>
    %cst_360 = arith.constant 0.000000e+00 : f32
    %1200 = vector.broadcast %cst_360 : f32 to vector<1x128xf32>
    %1201 = arith.subf %1200, %1199 : vector<1x128xf32>
    %cst_361 = arith.constant 0.932323813 : f32
    %1202 = vector.broadcast %cst_361 : f32 to vector<1x128xf32>
    %1203 = arith.mulf %1202, %1115 : vector<1x128xf32>
    %1204 = arith.mulf %1173, %1137 : vector<1x128xf32>
    %1205 = arith.addf %1203, %1204 : vector<1x128xf32>
    %1206 = arith.mulf %1175, %1151 : vector<1x128xf32>
    %1207 = arith.addf %1205, %1206 : vector<1x128xf32>
    %cst_362 = arith.constant 0.000000e+00 : f32
    %1208 = vector.broadcast %cst_362 : f32 to vector<1x128xf32>
    %1209 = arith.subf %1208, %1207 : vector<1x128xf32>
    %cst_363 = arith.constant 0.932323813 : f32
    %1210 = vector.broadcast %cst_363 : f32 to vector<1x128xf32>
    %1211 = arith.mulf %1210, %1121 : vector<1x128xf32>
    %1212 = arith.mulf %1173, %1145 : vector<1x128xf32>
    %1213 = arith.addf %1211, %1212 : vector<1x128xf32>
    %1214 = arith.mulf %1175, %1154 : vector<1x128xf32>
    %1215 = arith.addf %1213, %1214 : vector<1x128xf32>
    %cst_364 = arith.constant 0.000000e+00 : f32
    %1216 = vector.broadcast %cst_364 : f32 to vector<1x128xf32>
    %1217 = arith.subf %1216, %1215 : vector<1x128xf32>
    %1218 = arith.mulf %1165, %1148 : vector<1x128xf32>
    %1219 = arith.mulf %1167, %1129 : vector<1x128xf32>
    %1220 = arith.subf %1218, %1219 : vector<1x128xf32>
    %1221 = arith.mulf %1165, %1151 : vector<1x128xf32>
    %1222 = arith.mulf %1167, %1137 : vector<1x128xf32>
    %1223 = arith.subf %1221, %1222 : vector<1x128xf32>
    %1224 = arith.mulf %1165, %1154 : vector<1x128xf32>
    %1225 = arith.mulf %1167, %1145 : vector<1x128xf32>
    %1226 = arith.subf %1224, %1225 : vector<1x128xf32>
    %cst_365 = arith.constant 1.525000e+00 : f32
    %1227 = vector.broadcast %cst_365 : f32 to vector<1x128xf32>
    %1228 = arith.mulf %1227, %1181 : vector<1x128xf32>
    %1229 = arith.addf %1157, %1228 : vector<1x128xf32>
    %cst_366 = arith.constant 1.525000e+00 : f32
    %1230 = vector.broadcast %cst_366 : f32 to vector<1x128xf32>
    %1231 = arith.mulf %1230, %1187 : vector<1x128xf32>
    %1232 = arith.addf %1160, %1231 : vector<1x128xf32>
    %cst_367 = arith.constant 1.525000e+00 : f32
    %1233 = vector.broadcast %cst_367 : f32 to vector<1x128xf32>
    %1234 = arith.mulf %1233, %1193 : vector<1x128xf32>
    %1235 = arith.addf %1163, %1234 : vector<1x128xf32>
    %1236 = vector.extract_strided_slice %1086 {offsets = [2, 0, 0], sizes = [1, 1, 128], strides = [1, 1, 1]} : vector<3x1x128xf32> to vector<1x1x128xf32>
    %1237 = vector.shape_cast %1236 : vector<1x1x128xf32> to vector<1x128xf32>
    %1238 = vector.extract_strided_slice %1089 {offsets = [2, 0, 0], sizes = [1, 1, 128], strides = [1, 1, 1]} : vector<3x1x128xf32> to vector<1x1x128xf32>
    %1239 = vector.shape_cast %1238 : vector<1x1x128xf32> to vector<1x128xf32>
    %cst_368 = arith.constant 0.897258341 : f32
    %1240 = vector.broadcast %cst_368 : f32 to vector<1x128xf32>
    %1241 = arith.mulf %1240, %1237 : vector<1x128xf32>
    %cst_369 = arith.constant 0.897258341 : f32
    %1242 = vector.broadcast %cst_369 : f32 to vector<1x128xf32>
    %1243 = arith.mulf %1242, %1239 : vector<1x128xf32>
    %cst_370 = arith.constant -0.441505849 : f32
    %1244 = vector.broadcast %cst_370 : f32 to vector<1x128xf32>
    %1245 = arith.mulf %1244, %1237 : vector<1x128xf32>
    %cst_371 = arith.constant -0.441505849 : f32
    %1246 = vector.broadcast %cst_371 : f32 to vector<1x128xf32>
    %1247 = arith.mulf %1246, %1239 : vector<1x128xf32>
    %1248 = arith.mulf %1241, %1201 : vector<1x128xf32>
    %1249 = arith.mulf %1243, %1220 : vector<1x128xf32>
    %1250 = arith.addf %1248, %1249 : vector<1x128xf32>
    %cst_372 = arith.constant -0.441505849 : f32
    %1251 = vector.broadcast %cst_372 : f32 to vector<1x128xf32>
    %1252 = arith.mulf %1251, %1181 : vector<1x128xf32>
    %1253 = arith.subf %1250, %1252 : vector<1x128xf32>
    %1254 = arith.mulf %1241, %1209 : vector<1x128xf32>
    %1255 = arith.mulf %1243, %1223 : vector<1x128xf32>
    %1256 = arith.addf %1254, %1255 : vector<1x128xf32>
    %cst_373 = arith.constant -0.441505849 : f32
    %1257 = vector.broadcast %cst_373 : f32 to vector<1x128xf32>
    %1258 = arith.mulf %1257, %1187 : vector<1x128xf32>
    %1259 = arith.subf %1256, %1258 : vector<1x128xf32>
    %1260 = arith.mulf %1241, %1217 : vector<1x128xf32>
    %1261 = arith.mulf %1243, %1226 : vector<1x128xf32>
    %1262 = arith.addf %1260, %1261 : vector<1x128xf32>
    %cst_374 = arith.constant -0.441505849 : f32
    %1263 = vector.broadcast %cst_374 : f32 to vector<1x128xf32>
    %1264 = arith.mulf %1263, %1193 : vector<1x128xf32>
    %1265 = arith.subf %1262, %1264 : vector<1x128xf32>
    %cst_375 = arith.constant 0.897258341 : f32
    %1266 = vector.broadcast %cst_375 : f32 to vector<1x128xf32>
    %1267 = arith.mulf %1266, %1181 : vector<1x128xf32>
    %1268 = arith.mulf %1245, %1201 : vector<1x128xf32>
    %1269 = arith.addf %1267, %1268 : vector<1x128xf32>
    %1270 = arith.mulf %1247, %1220 : vector<1x128xf32>
    %1271 = arith.addf %1269, %1270 : vector<1x128xf32>
    %cst_376 = arith.constant 0.000000e+00 : f32
    %1272 = vector.broadcast %cst_376 : f32 to vector<1x128xf32>
    %1273 = arith.subf %1272, %1271 : vector<1x128xf32>
    %cst_377 = arith.constant 0.897258341 : f32
    %1274 = vector.broadcast %cst_377 : f32 to vector<1x128xf32>
    %1275 = arith.mulf %1274, %1187 : vector<1x128xf32>
    %1276 = arith.mulf %1245, %1209 : vector<1x128xf32>
    %1277 = arith.addf %1275, %1276 : vector<1x128xf32>
    %1278 = arith.mulf %1247, %1223 : vector<1x128xf32>
    %1279 = arith.addf %1277, %1278 : vector<1x128xf32>
    %cst_378 = arith.constant 0.000000e+00 : f32
    %1280 = vector.broadcast %cst_378 : f32 to vector<1x128xf32>
    %1281 = arith.subf %1280, %1279 : vector<1x128xf32>
    %cst_379 = arith.constant 0.897258341 : f32
    %1282 = vector.broadcast %cst_379 : f32 to vector<1x128xf32>
    %1283 = arith.mulf %1282, %1193 : vector<1x128xf32>
    %1284 = arith.mulf %1245, %1217 : vector<1x128xf32>
    %1285 = arith.addf %1283, %1284 : vector<1x128xf32>
    %1286 = arith.mulf %1247, %1226 : vector<1x128xf32>
    %1287 = arith.addf %1285, %1286 : vector<1x128xf32>
    %cst_380 = arith.constant 0.000000e+00 : f32
    %1288 = vector.broadcast %cst_380 : f32 to vector<1x128xf32>
    %1289 = arith.subf %1288, %1287 : vector<1x128xf32>
    %1290 = arith.mulf %1237, %1220 : vector<1x128xf32>
    %1291 = arith.mulf %1239, %1201 : vector<1x128xf32>
    %1292 = arith.subf %1290, %1291 : vector<1x128xf32>
    %1293 = arith.mulf %1237, %1223 : vector<1x128xf32>
    %1294 = arith.mulf %1239, %1209 : vector<1x128xf32>
    %1295 = arith.subf %1293, %1294 : vector<1x128xf32>
    %1296 = arith.mulf %1237, %1226 : vector<1x128xf32>
    %1297 = arith.mulf %1239, %1217 : vector<1x128xf32>
    %1298 = arith.subf %1296, %1297 : vector<1x128xf32>
    %cst_381 = arith.constant 1.330000e+00 : f32
    %1299 = vector.broadcast %cst_381 : f32 to vector<1x128xf32>
    %1300 = arith.mulf %1299, %1253 : vector<1x128xf32>
    %1301 = arith.addf %1229, %1300 : vector<1x128xf32>
    %cst_382 = arith.constant 1.330000e+00 : f32
    %1302 = vector.broadcast %cst_382 : f32 to vector<1x128xf32>
    %1303 = arith.mulf %1302, %1259 : vector<1x128xf32>
    %1304 = arith.addf %1232, %1303 : vector<1x128xf32>
    %cst_383 = arith.constant 1.330000e+00 : f32
    %1305 = vector.broadcast %cst_383 : f32 to vector<1x128xf32>
    %1306 = arith.mulf %1305, %1265 : vector<1x128xf32>
    %1307 = arith.addf %1235, %1306 : vector<1x128xf32>
    %1308 = arith.select %1091, %1032, %6 : vector<1x128xi1>, vector<1x128xf32>
    %1309 = arith.index_cast %c4_i32 : i32 to index
    %c0_384 = arith.constant 0 : index
    %c0_385 = arith.constant 0 : index
    %c0_386 = arith.constant 0 : index
    %1310 = vector.load %arg3[%1309, %c0_384, %c0_385, %c0_386] : memref<8x9x1x128xf32, #tpu.memory_space<vmem>>, vector<1x1x1x128xf32>
    %1311 = vector.shape_cast %1310 : vector<1x1x1x128xf32> to vector<1x128xf32>
    %1312 = vector.shape_cast %1308 : vector<1x128xf32> to vector<1x1x1x128xf32>
    tpu.vector_store %arg3[%1309, %c0_384, %c0_385, %c0_386], %1312 {strides = array<i32>} : memref<8x9x1x128xf32, #tpu.memory_space<vmem>>, vector<1x1x1x128xf32>,
    %1313 = arith.select %1091, %1035, %6 : vector<1x128xi1>, vector<1x128xf32>
    %1314 = arith.index_cast %c4_i32 : i32 to index
    %c1_387 = arith.constant 1 : index
    %c0_388 = arith.constant 0 : index
    %c0_389 = arith.constant 0 : index
    %1315 = vector.load %arg3[%1314, %c1_387, %c0_388, %c0_389] : memref<8x9x1x128xf32, #tpu.memory_space<vmem>>, vector<1x1x1x128xf32>
    %1316 = vector.shape_cast %1315 : vector<1x1x1x128xf32> to vector<1x128xf32>
    %1317 = vector.shape_cast %1313 : vector<1x128xf32> to vector<1x1x1x128xf32>
    tpu.vector_store %arg3[%1314, %c1_387, %c0_388, %c0_389], %1317 {strides = array<i32>} : memref<8x9x1x128xf32, #tpu.memory_space<vmem>>, vector<1x1x1x128xf32>,
    %1318 = arith.select %1091, %1038, %6 : vector<1x128xi1>, vector<1x128xf32>
    %1319 = arith.index_cast %c4_i32 : i32 to index
    %c2_390 = arith.constant 2 : index
    %c0_391 = arith.constant 0 : index
    %c0_392 = arith.constant 0 : index
    %1320 = vector.load %arg3[%1319, %c2_390, %c0_391, %c0_392] : memref<8x9x1x128xf32, #tpu.memory_space<vmem>>, vector<1x1x1x128xf32>
    %1321 = vector.shape_cast %1320 : vector<1x1x1x128xf32> to vector<1x128xf32>
    %1322 = vector.shape_cast %1318 : vector<1x128xf32> to vector<1x1x1x128xf32>
    tpu.vector_store %arg3[%1319, %c2_390, %c0_391, %c0_392], %1322 {strides = array<i32>} : memref<8x9x1x128xf32, #tpu.memory_space<vmem>>, vector<1x1x1x128xf32>,
    %1323 = arith.select %1091, %1157, %6 : vector<1x128xi1>, vector<1x128xf32>
    %1324 = arith.index_cast %c4_i32 : i32 to index
    %c3_393 = arith.constant 3 : index
    %c0_394 = arith.constant 0 : index
    %c0_395 = arith.constant 0 : index
    %1325 = vector.load %arg3[%1324, %c3_393, %c0_394, %c0_395] : memref<8x9x1x128xf32, #tpu.memory_space<vmem>>, vector<1x1x1x128xf32>
    %1326 = vector.shape_cast %1325 : vector<1x1x1x128xf32> to vector<1x128xf32>
    %1327 = vector.shape_cast %1323 : vector<1x128xf32> to vector<1x1x1x128xf32>
    tpu.vector_store %arg3[%1324, %c3_393, %c0_394, %c0_395], %1327 {strides = array<i32>} : memref<8x9x1x128xf32, #tpu.memory_space<vmem>>, vector<1x1x1x128xf32>,
    %1328 = arith.select %1091, %1160, %6 : vector<1x128xi1>, vector<1x128xf32>
    %1329 = arith.index_cast %c4_i32 : i32 to index
    %c4_396 = arith.constant 4 : index
    %c0_397 = arith.constant 0 : index
    %c0_398 = arith.constant 0 : index
    %1330 = vector.load %arg3[%1329, %c4_396, %c0_397, %c0_398] : memref<8x9x1x128xf32, #tpu.memory_space<vmem>>, vector<1x1x1x128xf32>
    %1331 = vector.shape_cast %1330 : vector<1x1x1x128xf32> to vector<1x128xf32>
    %1332 = vector.shape_cast %1328 : vector<1x128xf32> to vector<1x1x1x128xf32>
    tpu.vector_store %arg3[%1329, %c4_396, %c0_397, %c0_398], %1332 {strides = array<i32>} : memref<8x9x1x128xf32, #tpu.memory_space<vmem>>, vector<1x1x1x128xf32>,
    %1333 = arith.select %1091, %1163, %6 : vector<1x128xi1>, vector<1x128xf32>
    %1334 = arith.index_cast %c4_i32 : i32 to index
    %c5_399 = arith.constant 5 : index
    %c0_400 = arith.constant 0 : index
    %c0_401 = arith.constant 0 : index
    %1335 = vector.load %arg3[%1334, %c5_399, %c0_400, %c0_401] : memref<8x9x1x128xf32, #tpu.memory_space<vmem>>, vector<1x1x1x128xf32>
    %1336 = vector.shape_cast %1335 : vector<1x1x1x128xf32> to vector<1x128xf32>
    %1337 = vector.shape_cast %1333 : vector<1x128xf32> to vector<1x1x1x128xf32>
    tpu.vector_store %arg3[%1334, %c5_399, %c0_400, %c0_401], %1337 {strides = array<i32>} : memref<8x9x1x128xf32, #tpu.memory_space<vmem>>, vector<1x1x1x128xf32>,
    %1338 = arith.select %1091, %1229, %6 : vector<1x128xi1>, vector<1x128xf32>
    %1339 = arith.index_cast %c4_i32 : i32 to index
    %c6_402 = arith.constant 6 : index
    %c0_403 = arith.constant 0 : index
    %c0_404 = arith.constant 0 : index
    %1340 = vector.load %arg3[%1339, %c6_402, %c0_403, %c0_404] : memref<8x9x1x128xf32, #tpu.memory_space<vmem>>, vector<1x1x1x128xf32>
    %1341 = vector.shape_cast %1340 : vector<1x1x1x128xf32> to vector<1x128xf32>
    %1342 = vector.shape_cast %1338 : vector<1x128xf32> to vector<1x1x1x128xf32>
    tpu.vector_store %arg3[%1339, %c6_402, %c0_403, %c0_404], %1342 {strides = array<i32>} : memref<8x9x1x128xf32, #tpu.memory_space<vmem>>, vector<1x1x1x128xf32>,
    %1343 = arith.select %1091, %1232, %6 : vector<1x128xi1>, vector<1x128xf32>
    %1344 = arith.index_cast %c4_i32 : i32 to index
    %c7_405 = arith.constant 7 : index
    %c0_406 = arith.constant 0 : index
    %c0_407 = arith.constant 0 : index
    %1345 = vector.load %arg3[%1344, %c7_405, %c0_406, %c0_407] : memref<8x9x1x128xf32, #tpu.memory_space<vmem>>, vector<1x1x1x128xf32>
    %1346 = vector.shape_cast %1345 : vector<1x1x1x128xf32> to vector<1x128xf32>
    %1347 = vector.shape_cast %1343 : vector<1x128xf32> to vector<1x1x1x128xf32>
    tpu.vector_store %arg3[%1344, %c7_405, %c0_406, %c0_407], %1347 {strides = array<i32>} : memref<8x9x1x128xf32, #tpu.memory_space<vmem>>, vector<1x1x1x128xf32>,
    %1348 = arith.select %1091, %1235, %6 : vector<1x128xi1>, vector<1x128xf32>
    %1349 = arith.index_cast %c4_i32 : i32 to index
    %c8_408 = arith.constant 8 : index
    %c0_409 = arith.constant 0 : index
    %c0_410 = arith.constant 0 : index
    %1350 = vector.load %arg3[%1349, %c8_408, %c0_409, %c0_410] : memref<8x9x1x128xf32, #tpu.memory_space<vmem>>, vector<1x1x1x128xf32>
    %1351 = vector.shape_cast %1350 : vector<1x1x1x128xf32> to vector<1x128xf32>
    %1352 = vector.shape_cast %1348 : vector<1x128xf32> to vector<1x1x1x128xf32>
    tpu.vector_store %arg3[%1349, %c8_408, %c0_409, %c0_410], %1352 {strides = array<i32>} : memref<8x9x1x128xf32, #tpu.memory_space<vmem>>, vector<1x1x1x128xf32>,
    %c5_i32 = arith.constant 5 : i32
    %1353 = arith.index_cast %c5_i32 : i32 to index
    %c0_411 = arith.constant 0 : index
    %c0_412 = arith.constant 0 : index
    %c0_413 = arith.constant 0 : index
    %1354 = vector.load %arg4[%1353, %c0_411, %c0_412, %c0_413] : memref<8x3x1x128xf32, #tpu.memory_space<vmem>>, vector<1x3x1x128xf32>
    %1355 = vector.shape_cast %1354 : vector<1x3x1x128xf32> to vector<3x1x128xf32>
    %1356 = arith.index_cast %c5_i32 : i32 to index
    %c0_414 = arith.constant 0 : index
    %c0_415 = arith.constant 0 : index
    %c0_416 = arith.constant 0 : index
    %1357 = vector.load %arg5[%1356, %c0_414, %c0_415, %c0_416] : memref<8x3x1x128xf32, #tpu.memory_space<vmem>>, vector<1x3x1x128xf32>
    %1358 = vector.shape_cast %1357 : vector<1x3x1x128xf32> to vector<3x1x128xf32>
    %1359 = vector.broadcast %c5_i32 : i32 to vector<1x128xi32>
    %1360 = arith.cmpi slt, %1359, %5 : vector<1x128xi32>
    %1361 = vector.extract_strided_slice %1355 {offsets = [0, 0, 0], sizes = [1, 1, 128], strides = [1, 1, 1]} : vector<3x1x128xf32> to vector<1x1x128xf32>
    %1362 = vector.shape_cast %1361 : vector<1x1x128xf32> to vector<1x128xf32>
    %1363 = vector.extract_strided_slice %1358 {offsets = [0, 0, 0], sizes = [1, 1, 128], strides = [1, 1, 1]} : vector<3x1x128xf32> to vector<1x1x128xf32>
    %1364 = vector.shape_cast %1363 : vector<1x1x128xf32> to vector<1x128xf32>
    %cst_417 = arith.constant 0.850811123 : f32
    %1365 = vector.broadcast %cst_417 : f32 to vector<1x128xf32>
    %1366 = arith.mulf %1365, %1362 : vector<1x128xf32>
    %cst_418 = arith.constant 0.850811123 : f32
    %1367 = vector.broadcast %cst_418 : f32 to vector<1x128xf32>
    %1368 = arith.mulf %1367, %1364 : vector<1x128xf32>
    %cst_419 = arith.constant -0.525471628 : f32
    %1369 = vector.broadcast %cst_419 : f32 to vector<1x128xf32>
    %1370 = arith.mulf %1369, %1362 : vector<1x128xf32>
    %cst_420 = arith.constant -0.525471628 : f32
    %1371 = vector.broadcast %cst_420 : f32 to vector<1x128xf32>
    %1372 = arith.mulf %1371, %1364 : vector<1x128xf32>
    %1373 = arith.mulf %1366, %1273 : vector<1x128xf32>
    %1374 = arith.mulf %1368, %1292 : vector<1x128xf32>
    %1375 = arith.addf %1373, %1374 : vector<1x128xf32>
    %cst_421 = arith.constant -0.525471628 : f32
    %1376 = vector.broadcast %cst_421 : f32 to vector<1x128xf32>
    %1377 = arith.mulf %1376, %1253 : vector<1x128xf32>
    %1378 = arith.subf %1375, %1377 : vector<1x128xf32>
    %1379 = arith.mulf %1366, %1281 : vector<1x128xf32>
    %1380 = arith.mulf %1368, %1295 : vector<1x128xf32>
    %1381 = arith.addf %1379, %1380 : vector<1x128xf32>
    %cst_422 = arith.constant -0.525471628 : f32
    %1382 = vector.broadcast %cst_422 : f32 to vector<1x128xf32>
    %1383 = arith.mulf %1382, %1259 : vector<1x128xf32>
    %1384 = arith.subf %1381, %1383 : vector<1x128xf32>
    %1385 = arith.mulf %1366, %1289 : vector<1x128xf32>
    %1386 = arith.mulf %1368, %1298 : vector<1x128xf32>
    %1387 = arith.addf %1385, %1386 : vector<1x128xf32>
    %cst_423 = arith.constant -0.525471628 : f32
    %1388 = vector.broadcast %cst_423 : f32 to vector<1x128xf32>
    %1389 = arith.mulf %1388, %1265 : vector<1x128xf32>
    %1390 = arith.subf %1387, %1389 : vector<1x128xf32>
    %cst_424 = arith.constant 0.850811123 : f32
    %1391 = vector.broadcast %cst_424 : f32 to vector<1x128xf32>
    %1392 = arith.mulf %1391, %1253 : vector<1x128xf32>
    %1393 = arith.mulf %1370, %1273 : vector<1x128xf32>
    %1394 = arith.addf %1392, %1393 : vector<1x128xf32>
    %1395 = arith.mulf %1372, %1292 : vector<1x128xf32>
    %1396 = arith.addf %1394, %1395 : vector<1x128xf32>
    %cst_425 = arith.constant 0.000000e+00 : f32
    %1397 = vector.broadcast %cst_425 : f32 to vector<1x128xf32>
    %1398 = arith.subf %1397, %1396 : vector<1x128xf32>
    %cst_426 = arith.constant 0.850811123 : f32
    %1399 = vector.broadcast %cst_426 : f32 to vector<1x128xf32>
    %1400 = arith.mulf %1399, %1259 : vector<1x128xf32>
    %1401 = arith.mulf %1370, %1281 : vector<1x128xf32>
    %1402 = arith.addf %1400, %1401 : vector<1x128xf32>
    %1403 = arith.mulf %1372, %1295 : vector<1x128xf32>
    %1404 = arith.addf %1402, %1403 : vector<1x128xf32>
    %cst_427 = arith.constant 0.000000e+00 : f32
    %1405 = vector.broadcast %cst_427 : f32 to vector<1x128xf32>
    %1406 = arith.subf %1405, %1404 : vector<1x128xf32>
    %cst_428 = arith.constant 0.850811123 : f32
    %1407 = vector.broadcast %cst_428 : f32 to vector<1x128xf32>
    %1408 = arith.mulf %1407, %1265 : vector<1x128xf32>
    %1409 = arith.mulf %1370, %1289 : vector<1x128xf32>
    %1410 = arith.addf %1408, %1409 : vector<1x128xf32>
    %1411 = arith.mulf %1372, %1298 : vector<1x128xf32>
    %1412 = arith.addf %1410, %1411 : vector<1x128xf32>
    %cst_429 = arith.constant 0.000000e+00 : f32
    %1413 = vector.broadcast %cst_429 : f32 to vector<1x128xf32>
    %1414 = arith.subf %1413, %1412 : vector<1x128xf32>
    %1415 = arith.mulf %1362, %1292 : vector<1x128xf32>
    %1416 = arith.mulf %1364, %1273 : vector<1x128xf32>
    %1417 = arith.subf %1415, %1416 : vector<1x128xf32>
    %1418 = arith.mulf %1362, %1295 : vector<1x128xf32>
    %1419 = arith.mulf %1364, %1281 : vector<1x128xf32>
    %1420 = arith.subf %1418, %1419 : vector<1x128xf32>
    %1421 = arith.mulf %1362, %1298 : vector<1x128xf32>
    %1422 = arith.mulf %1364, %1289 : vector<1x128xf32>
    %1423 = arith.subf %1421, %1422 : vector<1x128xf32>
    %cst_430 = arith.constant 1.460000e+00 : f32
    %1424 = vector.broadcast %cst_430 : f32 to vector<1x128xf32>
    %1425 = arith.mulf %1424, %1378 : vector<1x128xf32>
    %1426 = arith.addf %1301, %1425 : vector<1x128xf32>
    %cst_431 = arith.constant 1.460000e+00 : f32
    %1427 = vector.broadcast %cst_431 : f32 to vector<1x128xf32>
    %1428 = arith.mulf %1427, %1384 : vector<1x128xf32>
    %1429 = arith.addf %1304, %1428 : vector<1x128xf32>
    %cst_432 = arith.constant 1.460000e+00 : f32
    %1430 = vector.broadcast %cst_432 : f32 to vector<1x128xf32>
    %1431 = arith.mulf %1430, %1390 : vector<1x128xf32>
    %1432 = arith.addf %1307, %1431 : vector<1x128xf32>
    %1433 = vector.extract_strided_slice %1355 {offsets = [1, 0, 0], sizes = [1, 1, 128], strides = [1, 1, 1]} : vector<3x1x128xf32> to vector<1x1x128xf32>
    %1434 = vector.shape_cast %1433 : vector<1x1x128xf32> to vector<1x128xf32>
    %1435 = vector.extract_strided_slice %1358 {offsets = [1, 0, 0], sizes = [1, 1, 128], strides = [1, 1, 1]} : vector<3x1x128xf32> to vector<1x1x128xf32>
    %1436 = vector.shape_cast %1435 : vector<1x1x128xf32> to vector<1x128xf32>
    %cst_433 = arith.constant 0.932323813 : f32
    %1437 = vector.broadcast %cst_433 : f32 to vector<1x128xf32>
    %1438 = arith.mulf %1437, %1434 : vector<1x128xf32>
    %cst_434 = arith.constant 0.932323813 : f32
    %1439 = vector.broadcast %cst_434 : f32 to vector<1x128xf32>
    %1440 = arith.mulf %1439, %1436 : vector<1x128xf32>
    %cst_435 = arith.constant -0.361624569 : f32
    %1441 = vector.broadcast %cst_435 : f32 to vector<1x128xf32>
    %1442 = arith.mulf %1441, %1434 : vector<1x128xf32>
    %cst_436 = arith.constant -0.361624569 : f32
    %1443 = vector.broadcast %cst_436 : f32 to vector<1x128xf32>
    %1444 = arith.mulf %1443, %1436 : vector<1x128xf32>
    %1445 = arith.mulf %1438, %1398 : vector<1x128xf32>
    %1446 = arith.mulf %1440, %1417 : vector<1x128xf32>
    %1447 = arith.addf %1445, %1446 : vector<1x128xf32>
    %cst_437 = arith.constant -0.361624569 : f32
    %1448 = vector.broadcast %cst_437 : f32 to vector<1x128xf32>
    %1449 = arith.mulf %1448, %1378 : vector<1x128xf32>
    %1450 = arith.subf %1447, %1449 : vector<1x128xf32>
    %1451 = arith.mulf %1438, %1406 : vector<1x128xf32>
    %1452 = arith.mulf %1440, %1420 : vector<1x128xf32>
    %1453 = arith.addf %1451, %1452 : vector<1x128xf32>
    %cst_438 = arith.constant -0.361624569 : f32
    %1454 = vector.broadcast %cst_438 : f32 to vector<1x128xf32>
    %1455 = arith.mulf %1454, %1384 : vector<1x128xf32>
    %1456 = arith.subf %1453, %1455 : vector<1x128xf32>
    %1457 = arith.mulf %1438, %1414 : vector<1x128xf32>
    %1458 = arith.mulf %1440, %1423 : vector<1x128xf32>
    %1459 = arith.addf %1457, %1458 : vector<1x128xf32>
    %cst_439 = arith.constant -0.361624569 : f32
    %1460 = vector.broadcast %cst_439 : f32 to vector<1x128xf32>
    %1461 = arith.mulf %1460, %1390 : vector<1x128xf32>
    %1462 = arith.subf %1459, %1461 : vector<1x128xf32>
    %cst_440 = arith.constant 0.932323813 : f32
    %1463 = vector.broadcast %cst_440 : f32 to vector<1x128xf32>
    %1464 = arith.mulf %1463, %1378 : vector<1x128xf32>
    %1465 = arith.mulf %1442, %1398 : vector<1x128xf32>
    %1466 = arith.addf %1464, %1465 : vector<1x128xf32>
    %1467 = arith.mulf %1444, %1417 : vector<1x128xf32>
    %1468 = arith.addf %1466, %1467 : vector<1x128xf32>
    %cst_441 = arith.constant 0.000000e+00 : f32
    %1469 = vector.broadcast %cst_441 : f32 to vector<1x128xf32>
    %1470 = arith.subf %1469, %1468 : vector<1x128xf32>
    %cst_442 = arith.constant 0.932323813 : f32
    %1471 = vector.broadcast %cst_442 : f32 to vector<1x128xf32>
    %1472 = arith.mulf %1471, %1384 : vector<1x128xf32>
    %1473 = arith.mulf %1442, %1406 : vector<1x128xf32>
    %1474 = arith.addf %1472, %1473 : vector<1x128xf32>
    %1475 = arith.mulf %1444, %1420 : vector<1x128xf32>
    %1476 = arith.addf %1474, %1475 : vector<1x128xf32>
    %cst_443 = arith.constant 0.000000e+00 : f32
    %1477 = vector.broadcast %cst_443 : f32 to vector<1x128xf32>
    %1478 = arith.subf %1477, %1476 : vector<1x128xf32>
    %cst_444 = arith.constant 0.932323813 : f32
    %1479 = vector.broadcast %cst_444 : f32 to vector<1x128xf32>
    %1480 = arith.mulf %1479, %1390 : vector<1x128xf32>
    %1481 = arith.mulf %1442, %1414 : vector<1x128xf32>
    %1482 = arith.addf %1480, %1481 : vector<1x128xf32>
    %1483 = arith.mulf %1444, %1423 : vector<1x128xf32>
    %1484 = arith.addf %1482, %1483 : vector<1x128xf32>
    %cst_445 = arith.constant 0.000000e+00 : f32
    %1485 = vector.broadcast %cst_445 : f32 to vector<1x128xf32>
    %1486 = arith.subf %1485, %1484 : vector<1x128xf32>
    %1487 = arith.mulf %1434, %1417 : vector<1x128xf32>
    %1488 = arith.mulf %1436, %1398 : vector<1x128xf32>
    %1489 = arith.subf %1487, %1488 : vector<1x128xf32>
    %1490 = arith.mulf %1434, %1420 : vector<1x128xf32>
    %1491 = arith.mulf %1436, %1406 : vector<1x128xf32>
    %1492 = arith.subf %1490, %1491 : vector<1x128xf32>
    %1493 = arith.mulf %1434, %1423 : vector<1x128xf32>
    %1494 = arith.mulf %1436, %1414 : vector<1x128xf32>
    %1495 = arith.subf %1493, %1494 : vector<1x128xf32>
    %cst_446 = arith.constant 1.525000e+00 : f32
    %1496 = vector.broadcast %cst_446 : f32 to vector<1x128xf32>
    %1497 = arith.mulf %1496, %1450 : vector<1x128xf32>
    %1498 = arith.addf %1426, %1497 : vector<1x128xf32>
    %cst_447 = arith.constant 1.525000e+00 : f32
    %1499 = vector.broadcast %cst_447 : f32 to vector<1x128xf32>
    %1500 = arith.mulf %1499, %1456 : vector<1x128xf32>
    %1501 = arith.addf %1429, %1500 : vector<1x128xf32>
    %cst_448 = arith.constant 1.525000e+00 : f32
    %1502 = vector.broadcast %cst_448 : f32 to vector<1x128xf32>
    %1503 = arith.mulf %1502, %1462 : vector<1x128xf32>
    %1504 = arith.addf %1432, %1503 : vector<1x128xf32>
    %1505 = vector.extract_strided_slice %1355 {offsets = [2, 0, 0], sizes = [1, 1, 128], strides = [1, 1, 1]} : vector<3x1x128xf32> to vector<1x1x128xf32>
    %1506 = vector.shape_cast %1505 : vector<1x1x128xf32> to vector<1x128xf32>
    %1507 = vector.extract_strided_slice %1358 {offsets = [2, 0, 0], sizes = [1, 1, 128], strides = [1, 1, 1]} : vector<3x1x128xf32> to vector<1x1x128xf32>
    %1508 = vector.shape_cast %1507 : vector<1x1x128xf32> to vector<1x128xf32>
    %cst_449 = arith.constant 0.897258341 : f32
    %1509 = vector.broadcast %cst_449 : f32 to vector<1x128xf32>
    %1510 = arith.mulf %1509, %1506 : vector<1x128xf32>
    %cst_450 = arith.constant 0.897258341 : f32
    %1511 = vector.broadcast %cst_450 : f32 to vector<1x128xf32>
    %1512 = arith.mulf %1511, %1508 : vector<1x128xf32>
    %cst_451 = arith.constant -0.441505849 : f32
    %1513 = vector.broadcast %cst_451 : f32 to vector<1x128xf32>
    %1514 = arith.mulf %1513, %1506 : vector<1x128xf32>
    %cst_452 = arith.constant -0.441505849 : f32
    %1515 = vector.broadcast %cst_452 : f32 to vector<1x128xf32>
    %1516 = arith.mulf %1515, %1508 : vector<1x128xf32>
    %1517 = arith.mulf %1510, %1470 : vector<1x128xf32>
    %1518 = arith.mulf %1512, %1489 : vector<1x128xf32>
    %1519 = arith.addf %1517, %1518 : vector<1x128xf32>
    %cst_453 = arith.constant -0.441505849 : f32
    %1520 = vector.broadcast %cst_453 : f32 to vector<1x128xf32>
    %1521 = arith.mulf %1520, %1450 : vector<1x128xf32>
    %1522 = arith.subf %1519, %1521 : vector<1x128xf32>
    %1523 = arith.mulf %1510, %1478 : vector<1x128xf32>
    %1524 = arith.mulf %1512, %1492 : vector<1x128xf32>
    %1525 = arith.addf %1523, %1524 : vector<1x128xf32>
    %cst_454 = arith.constant -0.441505849 : f32
    %1526 = vector.broadcast %cst_454 : f32 to vector<1x128xf32>
    %1527 = arith.mulf %1526, %1456 : vector<1x128xf32>
    %1528 = arith.subf %1525, %1527 : vector<1x128xf32>
    %1529 = arith.mulf %1510, %1486 : vector<1x128xf32>
    %1530 = arith.mulf %1512, %1495 : vector<1x128xf32>
    %1531 = arith.addf %1529, %1530 : vector<1x128xf32>
    %cst_455 = arith.constant -0.441505849 : f32
    %1532 = vector.broadcast %cst_455 : f32 to vector<1x128xf32>
    %1533 = arith.mulf %1532, %1462 : vector<1x128xf32>
    %1534 = arith.subf %1531, %1533 : vector<1x128xf32>
    %cst_456 = arith.constant 0.897258341 : f32
    %1535 = vector.broadcast %cst_456 : f32 to vector<1x128xf32>
    %1536 = arith.mulf %1535, %1450 : vector<1x128xf32>
    %1537 = arith.mulf %1514, %1470 : vector<1x128xf32>
    %1538 = arith.addf %1536, %1537 : vector<1x128xf32>
    %1539 = arith.mulf %1516, %1489 : vector<1x128xf32>
    %1540 = arith.addf %1538, %1539 : vector<1x128xf32>
    %cst_457 = arith.constant 0.000000e+00 : f32
    %1541 = vector.broadcast %cst_457 : f32 to vector<1x128xf32>
    %1542 = arith.subf %1541, %1540 : vector<1x128xf32>
    %cst_458 = arith.constant 0.897258341 : f32
    %1543 = vector.broadcast %cst_458 : f32 to vector<1x128xf32>
    %1544 = arith.mulf %1543, %1456 : vector<1x128xf32>
    %1545 = arith.mulf %1514, %1478 : vector<1x128xf32>
    %1546 = arith.addf %1544, %1545 : vector<1x128xf32>
    %1547 = arith.mulf %1516, %1492 : vector<1x128xf32>
    %1548 = arith.addf %1546, %1547 : vector<1x128xf32>
    %cst_459 = arith.constant 0.000000e+00 : f32
    %1549 = vector.broadcast %cst_459 : f32 to vector<1x128xf32>
    %1550 = arith.subf %1549, %1548 : vector<1x128xf32>
    %cst_460 = arith.constant 0.897258341 : f32
    %1551 = vector.broadcast %cst_460 : f32 to vector<1x128xf32>
    %1552 = arith.mulf %1551, %1462 : vector<1x128xf32>
    %1553 = arith.mulf %1514, %1486 : vector<1x128xf32>
    %1554 = arith.addf %1552, %1553 : vector<1x128xf32>
    %1555 = arith.mulf %1516, %1495 : vector<1x128xf32>
    %1556 = arith.addf %1554, %1555 : vector<1x128xf32>
    %cst_461 = arith.constant 0.000000e+00 : f32
    %1557 = vector.broadcast %cst_461 : f32 to vector<1x128xf32>
    %1558 = arith.subf %1557, %1556 : vector<1x128xf32>
    %1559 = arith.mulf %1506, %1489 : vector<1x128xf32>
    %1560 = arith.mulf %1508, %1470 : vector<1x128xf32>
    %1561 = arith.subf %1559, %1560 : vector<1x128xf32>
    %1562 = arith.mulf %1506, %1492 : vector<1x128xf32>
    %1563 = arith.mulf %1508, %1478 : vector<1x128xf32>
    %1564 = arith.subf %1562, %1563 : vector<1x128xf32>
    %1565 = arith.mulf %1506, %1495 : vector<1x128xf32>
    %1566 = arith.mulf %1508, %1486 : vector<1x128xf32>
    %1567 = arith.subf %1565, %1566 : vector<1x128xf32>
    %cst_462 = arith.constant 1.330000e+00 : f32
    %1568 = vector.broadcast %cst_462 : f32 to vector<1x128xf32>
    %1569 = arith.mulf %1568, %1522 : vector<1x128xf32>
    %1570 = arith.addf %1498, %1569 : vector<1x128xf32>
    %cst_463 = arith.constant 1.330000e+00 : f32
    %1571 = vector.broadcast %cst_463 : f32 to vector<1x128xf32>
    %1572 = arith.mulf %1571, %1528 : vector<1x128xf32>
    %1573 = arith.addf %1501, %1572 : vector<1x128xf32>
    %cst_464 = arith.constant 1.330000e+00 : f32
    %1574 = vector.broadcast %cst_464 : f32 to vector<1x128xf32>
    %1575 = arith.mulf %1574, %1534 : vector<1x128xf32>
    %1576 = arith.addf %1504, %1575 : vector<1x128xf32>
    %1577 = arith.select %1360, %1301, %6 : vector<1x128xi1>, vector<1x128xf32>
    %1578 = arith.index_cast %c5_i32 : i32 to index
    %c0_465 = arith.constant 0 : index
    %c0_466 = arith.constant 0 : index
    %c0_467 = arith.constant 0 : index
    %1579 = vector.load %arg3[%1578, %c0_465, %c0_466, %c0_467] : memref<8x9x1x128xf32, #tpu.memory_space<vmem>>, vector<1x1x1x128xf32>
    %1580 = vector.shape_cast %1579 : vector<1x1x1x128xf32> to vector<1x128xf32>
    %1581 = vector.shape_cast %1577 : vector<1x128xf32> to vector<1x1x1x128xf32>
    tpu.vector_store %arg3[%1578, %c0_465, %c0_466, %c0_467], %1581 {strides = array<i32>} : memref<8x9x1x128xf32, #tpu.memory_space<vmem>>, vector<1x1x1x128xf32>,
    %1582 = arith.select %1360, %1304, %6 : vector<1x128xi1>, vector<1x128xf32>
    %1583 = arith.index_cast %c5_i32 : i32 to index
    %c1_468 = arith.constant 1 : index
    %c0_469 = arith.constant 0 : index
    %c0_470 = arith.constant 0 : index
    %1584 = vector.load %arg3[%1583, %c1_468, %c0_469, %c0_470] : memref<8x9x1x128xf32, #tpu.memory_space<vmem>>, vector<1x1x1x128xf32>
    %1585 = vector.shape_cast %1584 : vector<1x1x1x128xf32> to vector<1x128xf32>
    %1586 = vector.shape_cast %1582 : vector<1x128xf32> to vector<1x1x1x128xf32>
    tpu.vector_store %arg3[%1583, %c1_468, %c0_469, %c0_470], %1586 {strides = array<i32>} : memref<8x9x1x128xf32, #tpu.memory_space<vmem>>, vector<1x1x1x128xf32>,
    %1587 = arith.select %1360, %1307, %6 : vector<1x128xi1>, vector<1x128xf32>
    %1588 = arith.index_cast %c5_i32 : i32 to index
    %c2_471 = arith.constant 2 : index
    %c0_472 = arith.constant 0 : index
    %c0_473 = arith.constant 0 : index
    %1589 = vector.load %arg3[%1588, %c2_471, %c0_472, %c0_473] : memref<8x9x1x128xf32, #tpu.memory_space<vmem>>, vector<1x1x1x128xf32>
    %1590 = vector.shape_cast %1589 : vector<1x1x1x128xf32> to vector<1x128xf32>
    %1591 = vector.shape_cast %1587 : vector<1x128xf32> to vector<1x1x1x128xf32>
    tpu.vector_store %arg3[%1588, %c2_471, %c0_472, %c0_473], %1591 {strides = array<i32>} : memref<8x9x1x128xf32, #tpu.memory_space<vmem>>, vector<1x1x1x128xf32>,
    %1592 = arith.select %1360, %1426, %6 : vector<1x128xi1>, vector<1x128xf32>
    %1593 = arith.index_cast %c5_i32 : i32 to index
    %c3_474 = arith.constant 3 : index
    %c0_475 = arith.constant 0 : index
    %c0_476 = arith.constant 0 : index
    %1594 = vector.load %arg3[%1593, %c3_474, %c0_475, %c0_476] : memref<8x9x1x128xf32, #tpu.memory_space<vmem>>, vector<1x1x1x128xf32>
    %1595 = vector.shape_cast %1594 : vector<1x1x1x128xf32> to vector<1x128xf32>
    %1596 = vector.shape_cast %1592 : vector<1x128xf32> to vector<1x1x1x128xf32>
    tpu.vector_store %arg3[%1593, %c3_474, %c0_475, %c0_476], %1596 {strides = array<i32>} : memref<8x9x1x128xf32, #tpu.memory_space<vmem>>, vector<1x1x1x128xf32>,
    %1597 = arith.select %1360, %1429, %6 : vector<1x128xi1>, vector<1x128xf32>
    %1598 = arith.index_cast %c5_i32 : i32 to index
    %c4_477 = arith.constant 4 : index
    %c0_478 = arith.constant 0 : index
    %c0_479 = arith.constant 0 : index
    %1599 = vector.load %arg3[%1598, %c4_477, %c0_478, %c0_479] : memref<8x9x1x128xf32, #tpu.memory_space<vmem>>, vector<1x1x1x128xf32>
    %1600 = vector.shape_cast %1599 : vector<1x1x1x128xf32> to vector<1x128xf32>
    %1601 = vector.shape_cast %1597 : vector<1x128xf32> to vector<1x1x1x128xf32>
    tpu.vector_store %arg3[%1598, %c4_477, %c0_478, %c0_479], %1601 {strides = array<i32>} : memref<8x9x1x128xf32, #tpu.memory_space<vmem>>, vector<1x1x1x128xf32>,
    %1602 = arith.select %1360, %1432, %6 : vector<1x128xi1>, vector<1x128xf32>
    %1603 = arith.index_cast %c5_i32 : i32 to index
    %c5_480 = arith.constant 5 : index
    %c0_481 = arith.constant 0 : index
    %c0_482 = arith.constant 0 : index
    %1604 = vector.load %arg3[%1603, %c5_480, %c0_481, %c0_482] : memref<8x9x1x128xf32, #tpu.memory_space<vmem>>, vector<1x1x1x128xf32>
    %1605 = vector.shape_cast %1604 : vector<1x1x1x128xf32> to vector<1x128xf32>
    %1606 = vector.shape_cast %1602 : vector<1x128xf32> to vector<1x1x1x128xf32>
    tpu.vector_store %arg3[%1603, %c5_480, %c0_481, %c0_482], %1606 {strides = array<i32>} : memref<8x9x1x128xf32, #tpu.memory_space<vmem>>, vector<1x1x1x128xf32>,
    %1607 = arith.select %1360, %1498, %6 : vector<1x128xi1>, vector<1x128xf32>
    %1608 = arith.index_cast %c5_i32 : i32 to index
    %c6_483 = arith.constant 6 : index
    %c0_484 = arith.constant 0 : index
    %c0_485 = arith.constant 0 : index
    %1609 = vector.load %arg3[%1608, %c6_483, %c0_484, %c0_485] : memref<8x9x1x128xf32, #tpu.memory_space<vmem>>, vector<1x1x1x128xf32>
    %1610 = vector.shape_cast %1609 : vector<1x1x1x128xf32> to vector<1x128xf32>
    %1611 = vector.shape_cast %1607 : vector<1x128xf32> to vector<1x1x1x128xf32>
    tpu.vector_store %arg3[%1608, %c6_483, %c0_484, %c0_485], %1611 {strides = array<i32>} : memref<8x9x1x128xf32, #tpu.memory_space<vmem>>, vector<1x1x1x128xf32>,
    %1612 = arith.select %1360, %1501, %6 : vector<1x128xi1>, vector<1x128xf32>
    %1613 = arith.index_cast %c5_i32 : i32 to index
    %c7_486 = arith.constant 7 : index
    %c0_487 = arith.constant 0 : index
    %c0_488 = arith.constant 0 : index
    %1614 = vector.load %arg3[%1613, %c7_486, %c0_487, %c0_488] : memref<8x9x1x128xf32, #tpu.memory_space<vmem>>, vector<1x1x1x128xf32>
    %1615 = vector.shape_cast %1614 : vector<1x1x1x128xf32> to vector<1x128xf32>
    %1616 = vector.shape_cast %1612 : vector<1x128xf32> to vector<1x1x1x128xf32>
    tpu.vector_store %arg3[%1613, %c7_486, %c0_487, %c0_488], %1616 {strides = array<i32>} : memref<8x9x1x128xf32, #tpu.memory_space<vmem>>, vector<1x1x1x128xf32>,
    %1617 = arith.select %1360, %1504, %6 : vector<1x128xi1>, vector<1x128xf32>
    %1618 = arith.index_cast %c5_i32 : i32 to index
    %c8_489 = arith.constant 8 : index
    %c0_490 = arith.constant 0 : index
    %c0_491 = arith.constant 0 : index
    %1619 = vector.load %arg3[%1618, %c8_489, %c0_490, %c0_491] : memref<8x9x1x128xf32, #tpu.memory_space<vmem>>, vector<1x1x1x128xf32>
    %1620 = vector.shape_cast %1619 : vector<1x1x1x128xf32> to vector<1x128xf32>
    %1621 = vector.shape_cast %1617 : vector<1x128xf32> to vector<1x1x1x128xf32>
    tpu.vector_store %arg3[%1618, %c8_489, %c0_490, %c0_491], %1621 {strides = array<i32>} : memref<8x9x1x128xf32, #tpu.memory_space<vmem>>, vector<1x1x1x128xf32>,
    %c6_i32 = arith.constant 6 : i32
    %1622 = arith.index_cast %c6_i32 : i32 to index
    %c0_492 = arith.constant 0 : index
    %c0_493 = arith.constant 0 : index
    %c0_494 = arith.constant 0 : index
    %1623 = vector.load %arg4[%1622, %c0_492, %c0_493, %c0_494] : memref<8x3x1x128xf32, #tpu.memory_space<vmem>>, vector<1x3x1x128xf32>
    %1624 = vector.shape_cast %1623 : vector<1x3x1x128xf32> to vector<3x1x128xf32>
    %1625 = arith.index_cast %c6_i32 : i32 to index
    %c0_495 = arith.constant 0 : index
    %c0_496 = arith.constant 0 : index
    %c0_497 = arith.constant 0 : index
    %1626 = vector.load %arg5[%1625, %c0_495, %c0_496, %c0_497] : memref<8x3x1x128xf32, #tpu.memory_space<vmem>>, vector<1x3x1x128xf32>
    %1627 = vector.shape_cast %1626 : vector<1x3x1x128xf32> to vector<3x1x128xf32>
    %1628 = vector.broadcast %c6_i32 : i32 to vector<1x128xi32>
    %1629 = arith.cmpi slt, %1628, %5 : vector<1x128xi32>
    %1630 = vector.extract_strided_slice %1624 {offsets = [0, 0, 0], sizes = [1, 1, 128], strides = [1, 1, 1]} : vector<3x1x128xf32> to vector<1x1x128xf32>
    %1631 = vector.shape_cast %1630 : vector<1x1x128xf32> to vector<1x128xf32>
    %1632 = vector.extract_strided_slice %1627 {offsets = [0, 0, 0], sizes = [1, 1, 128], strides = [1, 1, 1]} : vector<3x1x128xf32> to vector<1x1x128xf32>
    %1633 = vector.shape_cast %1632 : vector<1x1x128xf32> to vector<1x128xf32>
    %cst_498 = arith.constant 0.850811123 : f32
    %1634 = vector.broadcast %cst_498 : f32 to vector<1x128xf32>
    %1635 = arith.mulf %1634, %1631 : vector<1x128xf32>
    %cst_499 = arith.constant 0.850811123 : f32
    %1636 = vector.broadcast %cst_499 : f32 to vector<1x128xf32>
    %1637 = arith.mulf %1636, %1633 : vector<1x128xf32>
    %cst_500 = arith.constant -0.525471628 : f32
    %1638 = vector.broadcast %cst_500 : f32 to vector<1x128xf32>
    %1639 = arith.mulf %1638, %1631 : vector<1x128xf32>
    %cst_501 = arith.constant -0.525471628 : f32
    %1640 = vector.broadcast %cst_501 : f32 to vector<1x128xf32>
    %1641 = arith.mulf %1640, %1633 : vector<1x128xf32>
    %1642 = arith.mulf %1635, %1542 : vector<1x128xf32>
    %1643 = arith.mulf %1637, %1561 : vector<1x128xf32>
    %1644 = arith.addf %1642, %1643 : vector<1x128xf32>
    %cst_502 = arith.constant -0.525471628 : f32
    %1645 = vector.broadcast %cst_502 : f32 to vector<1x128xf32>
    %1646 = arith.mulf %1645, %1522 : vector<1x128xf32>
    %1647 = arith.subf %1644, %1646 : vector<1x128xf32>
    %1648 = arith.mulf %1635, %1550 : vector<1x128xf32>
    %1649 = arith.mulf %1637, %1564 : vector<1x128xf32>
    %1650 = arith.addf %1648, %1649 : vector<1x128xf32>
    %cst_503 = arith.constant -0.525471628 : f32
    %1651 = vector.broadcast %cst_503 : f32 to vector<1x128xf32>
    %1652 = arith.mulf %1651, %1528 : vector<1x128xf32>
    %1653 = arith.subf %1650, %1652 : vector<1x128xf32>
    %1654 = arith.mulf %1635, %1558 : vector<1x128xf32>
    %1655 = arith.mulf %1637, %1567 : vector<1x128xf32>
    %1656 = arith.addf %1654, %1655 : vector<1x128xf32>
    %cst_504 = arith.constant -0.525471628 : f32
    %1657 = vector.broadcast %cst_504 : f32 to vector<1x128xf32>
    %1658 = arith.mulf %1657, %1534 : vector<1x128xf32>
    %1659 = arith.subf %1656, %1658 : vector<1x128xf32>
    %cst_505 = arith.constant 0.850811123 : f32
    %1660 = vector.broadcast %cst_505 : f32 to vector<1x128xf32>
    %1661 = arith.mulf %1660, %1522 : vector<1x128xf32>
    %1662 = arith.mulf %1639, %1542 : vector<1x128xf32>
    %1663 = arith.addf %1661, %1662 : vector<1x128xf32>
    %1664 = arith.mulf %1641, %1561 : vector<1x128xf32>
    %1665 = arith.addf %1663, %1664 : vector<1x128xf32>
    %cst_506 = arith.constant 0.000000e+00 : f32
    %1666 = vector.broadcast %cst_506 : f32 to vector<1x128xf32>
    %1667 = arith.subf %1666, %1665 : vector<1x128xf32>
    %cst_507 = arith.constant 0.850811123 : f32
    %1668 = vector.broadcast %cst_507 : f32 to vector<1x128xf32>
    %1669 = arith.mulf %1668, %1528 : vector<1x128xf32>
    %1670 = arith.mulf %1639, %1550 : vector<1x128xf32>
    %1671 = arith.addf %1669, %1670 : vector<1x128xf32>
    %1672 = arith.mulf %1641, %1564 : vector<1x128xf32>
    %1673 = arith.addf %1671, %1672 : vector<1x128xf32>
    %cst_508 = arith.constant 0.000000e+00 : f32
    %1674 = vector.broadcast %cst_508 : f32 to vector<1x128xf32>
    %1675 = arith.subf %1674, %1673 : vector<1x128xf32>
    %cst_509 = arith.constant 0.850811123 : f32
    %1676 = vector.broadcast %cst_509 : f32 to vector<1x128xf32>
    %1677 = arith.mulf %1676, %1534 : vector<1x128xf32>
    %1678 = arith.mulf %1639, %1558 : vector<1x128xf32>
    %1679 = arith.addf %1677, %1678 : vector<1x128xf32>
    %1680 = arith.mulf %1641, %1567 : vector<1x128xf32>
    %1681 = arith.addf %1679, %1680 : vector<1x128xf32>
    %cst_510 = arith.constant 0.000000e+00 : f32
    %1682 = vector.broadcast %cst_510 : f32 to vector<1x128xf32>
    %1683 = arith.subf %1682, %1681 : vector<1x128xf32>
    %1684 = arith.mulf %1631, %1561 : vector<1x128xf32>
    %1685 = arith.mulf %1633, %1542 : vector<1x128xf32>
    %1686 = arith.subf %1684, %1685 : vector<1x128xf32>
    %1687 = arith.mulf %1631, %1564 : vector<1x128xf32>
    %1688 = arith.mulf %1633, %1550 : vector<1x128xf32>
    %1689 = arith.subf %1687, %1688 : vector<1x128xf32>
    %1690 = arith.mulf %1631, %1567 : vector<1x128xf32>
    %1691 = arith.mulf %1633, %1558 : vector<1x128xf32>
    %1692 = arith.subf %1690, %1691 : vector<1x128xf32>
    %cst_511 = arith.constant 1.460000e+00 : f32
    %1693 = vector.broadcast %cst_511 : f32 to vector<1x128xf32>
    %1694 = arith.mulf %1693, %1647 : vector<1x128xf32>
    %1695 = arith.addf %1570, %1694 : vector<1x128xf32>
    %cst_512 = arith.constant 1.460000e+00 : f32
    %1696 = vector.broadcast %cst_512 : f32 to vector<1x128xf32>
    %1697 = arith.mulf %1696, %1653 : vector<1x128xf32>
    %1698 = arith.addf %1573, %1697 : vector<1x128xf32>
    %cst_513 = arith.constant 1.460000e+00 : f32
    %1699 = vector.broadcast %cst_513 : f32 to vector<1x128xf32>
    %1700 = arith.mulf %1699, %1659 : vector<1x128xf32>
    %1701 = arith.addf %1576, %1700 : vector<1x128xf32>
    %1702 = vector.extract_strided_slice %1624 {offsets = [1, 0, 0], sizes = [1, 1, 128], strides = [1, 1, 1]} : vector<3x1x128xf32> to vector<1x1x128xf32>
    %1703 = vector.shape_cast %1702 : vector<1x1x128xf32> to vector<1x128xf32>
    %1704 = vector.extract_strided_slice %1627 {offsets = [1, 0, 0], sizes = [1, 1, 128], strides = [1, 1, 1]} : vector<3x1x128xf32> to vector<1x1x128xf32>
    %1705 = vector.shape_cast %1704 : vector<1x1x128xf32> to vector<1x128xf32>
    %cst_514 = arith.constant 0.932323813 : f32
    %1706 = vector.broadcast %cst_514 : f32 to vector<1x128xf32>
    %1707 = arith.mulf %1706, %1703 : vector<1x128xf32>
    %cst_515 = arith.constant 0.932323813 : f32
    %1708 = vector.broadcast %cst_515 : f32 to vector<1x128xf32>
    %1709 = arith.mulf %1708, %1705 : vector<1x128xf32>
    %cst_516 = arith.constant -0.361624569 : f32
    %1710 = vector.broadcast %cst_516 : f32 to vector<1x128xf32>
    %1711 = arith.mulf %1710, %1703 : vector<1x128xf32>
    %cst_517 = arith.constant -0.361624569 : f32
    %1712 = vector.broadcast %cst_517 : f32 to vector<1x128xf32>
    %1713 = arith.mulf %1712, %1705 : vector<1x128xf32>
    %1714 = arith.mulf %1707, %1667 : vector<1x128xf32>
    %1715 = arith.mulf %1709, %1686 : vector<1x128xf32>
    %1716 = arith.addf %1714, %1715 : vector<1x128xf32>
    %cst_518 = arith.constant -0.361624569 : f32
    %1717 = vector.broadcast %cst_518 : f32 to vector<1x128xf32>
    %1718 = arith.mulf %1717, %1647 : vector<1x128xf32>
    %1719 = arith.subf %1716, %1718 : vector<1x128xf32>
    %1720 = arith.mulf %1707, %1675 : vector<1x128xf32>
    %1721 = arith.mulf %1709, %1689 : vector<1x128xf32>
    %1722 = arith.addf %1720, %1721 : vector<1x128xf32>
    %cst_519 = arith.constant -0.361624569 : f32
    %1723 = vector.broadcast %cst_519 : f32 to vector<1x128xf32>
    %1724 = arith.mulf %1723, %1653 : vector<1x128xf32>
    %1725 = arith.subf %1722, %1724 : vector<1x128xf32>
    %1726 = arith.mulf %1707, %1683 : vector<1x128xf32>
    %1727 = arith.mulf %1709, %1692 : vector<1x128xf32>
    %1728 = arith.addf %1726, %1727 : vector<1x128xf32>
    %cst_520 = arith.constant -0.361624569 : f32
    %1729 = vector.broadcast %cst_520 : f32 to vector<1x128xf32>
    %1730 = arith.mulf %1729, %1659 : vector<1x128xf32>
    %1731 = arith.subf %1728, %1730 : vector<1x128xf32>
    %cst_521 = arith.constant 0.932323813 : f32
    %1732 = vector.broadcast %cst_521 : f32 to vector<1x128xf32>
    %1733 = arith.mulf %1732, %1647 : vector<1x128xf32>
    %1734 = arith.mulf %1711, %1667 : vector<1x128xf32>
    %1735 = arith.addf %1733, %1734 : vector<1x128xf32>
    %1736 = arith.mulf %1713, %1686 : vector<1x128xf32>
    %1737 = arith.addf %1735, %1736 : vector<1x128xf32>
    %cst_522 = arith.constant 0.000000e+00 : f32
    %1738 = vector.broadcast %cst_522 : f32 to vector<1x128xf32>
    %1739 = arith.subf %1738, %1737 : vector<1x128xf32>
    %cst_523 = arith.constant 0.932323813 : f32
    %1740 = vector.broadcast %cst_523 : f32 to vector<1x128xf32>
    %1741 = arith.mulf %1740, %1653 : vector<1x128xf32>
    %1742 = arith.mulf %1711, %1675 : vector<1x128xf32>
    %1743 = arith.addf %1741, %1742 : vector<1x128xf32>
    %1744 = arith.mulf %1713, %1689 : vector<1x128xf32>
    %1745 = arith.addf %1743, %1744 : vector<1x128xf32>
    %cst_524 = arith.constant 0.000000e+00 : f32
    %1746 = vector.broadcast %cst_524 : f32 to vector<1x128xf32>
    %1747 = arith.subf %1746, %1745 : vector<1x128xf32>
    %cst_525 = arith.constant 0.932323813 : f32
    %1748 = vector.broadcast %cst_525 : f32 to vector<1x128xf32>
    %1749 = arith.mulf %1748, %1659 : vector<1x128xf32>
    %1750 = arith.mulf %1711, %1683 : vector<1x128xf32>
    %1751 = arith.addf %1749, %1750 : vector<1x128xf32>
    %1752 = arith.mulf %1713, %1692 : vector<1x128xf32>
    %1753 = arith.addf %1751, %1752 : vector<1x128xf32>
    %cst_526 = arith.constant 0.000000e+00 : f32
    %1754 = vector.broadcast %cst_526 : f32 to vector<1x128xf32>
    %1755 = arith.subf %1754, %1753 : vector<1x128xf32>
    %1756 = arith.mulf %1703, %1686 : vector<1x128xf32>
    %1757 = arith.mulf %1705, %1667 : vector<1x128xf32>
    %1758 = arith.subf %1756, %1757 : vector<1x128xf32>
    %1759 = arith.mulf %1703, %1689 : vector<1x128xf32>
    %1760 = arith.mulf %1705, %1675 : vector<1x128xf32>
    %1761 = arith.subf %1759, %1760 : vector<1x128xf32>
    %1762 = arith.mulf %1703, %1692 : vector<1x128xf32>
    %1763 = arith.mulf %1705, %1683 : vector<1x128xf32>
    %1764 = arith.subf %1762, %1763 : vector<1x128xf32>
    %cst_527 = arith.constant 1.525000e+00 : f32
    %1765 = vector.broadcast %cst_527 : f32 to vector<1x128xf32>
    %1766 = arith.mulf %1765, %1719 : vector<1x128xf32>
    %1767 = arith.addf %1695, %1766 : vector<1x128xf32>
    %cst_528 = arith.constant 1.525000e+00 : f32
    %1768 = vector.broadcast %cst_528 : f32 to vector<1x128xf32>
    %1769 = arith.mulf %1768, %1725 : vector<1x128xf32>
    %1770 = arith.addf %1698, %1769 : vector<1x128xf32>
    %cst_529 = arith.constant 1.525000e+00 : f32
    %1771 = vector.broadcast %cst_529 : f32 to vector<1x128xf32>
    %1772 = arith.mulf %1771, %1731 : vector<1x128xf32>
    %1773 = arith.addf %1701, %1772 : vector<1x128xf32>
    %1774 = vector.extract_strided_slice %1624 {offsets = [2, 0, 0], sizes = [1, 1, 128], strides = [1, 1, 1]} : vector<3x1x128xf32> to vector<1x1x128xf32>
    %1775 = vector.shape_cast %1774 : vector<1x1x128xf32> to vector<1x128xf32>
    %1776 = vector.extract_strided_slice %1627 {offsets = [2, 0, 0], sizes = [1, 1, 128], strides = [1, 1, 1]} : vector<3x1x128xf32> to vector<1x1x128xf32>
    %1777 = vector.shape_cast %1776 : vector<1x1x128xf32> to vector<1x128xf32>
    %cst_530 = arith.constant 0.897258341 : f32
    %1778 = vector.broadcast %cst_530 : f32 to vector<1x128xf32>
    %1779 = arith.mulf %1778, %1775 : vector<1x128xf32>
    %cst_531 = arith.constant 0.897258341 : f32
    %1780 = vector.broadcast %cst_531 : f32 to vector<1x128xf32>
    %1781 = arith.mulf %1780, %1777 : vector<1x128xf32>
    %cst_532 = arith.constant -0.441505849 : f32
    %1782 = vector.broadcast %cst_532 : f32 to vector<1x128xf32>
    %1783 = arith.mulf %1782, %1775 : vector<1x128xf32>
    %cst_533 = arith.constant -0.441505849 : f32
    %1784 = vector.broadcast %cst_533 : f32 to vector<1x128xf32>
    %1785 = arith.mulf %1784, %1777 : vector<1x128xf32>
    %1786 = arith.mulf %1779, %1739 : vector<1x128xf32>
    %1787 = arith.mulf %1781, %1758 : vector<1x128xf32>
    %1788 = arith.addf %1786, %1787 : vector<1x128xf32>
    %cst_534 = arith.constant -0.441505849 : f32
    %1789 = vector.broadcast %cst_534 : f32 to vector<1x128xf32>
    %1790 = arith.mulf %1789, %1719 : vector<1x128xf32>
    %1791 = arith.subf %1788, %1790 : vector<1x128xf32>
    %1792 = arith.mulf %1779, %1747 : vector<1x128xf32>
    %1793 = arith.mulf %1781, %1761 : vector<1x128xf32>
    %1794 = arith.addf %1792, %1793 : vector<1x128xf32>
    %cst_535 = arith.constant -0.441505849 : f32
    %1795 = vector.broadcast %cst_535 : f32 to vector<1x128xf32>
    %1796 = arith.mulf %1795, %1725 : vector<1x128xf32>
    %1797 = arith.subf %1794, %1796 : vector<1x128xf32>
    %1798 = arith.mulf %1779, %1755 : vector<1x128xf32>
    %1799 = arith.mulf %1781, %1764 : vector<1x128xf32>
    %1800 = arith.addf %1798, %1799 : vector<1x128xf32>
    %cst_536 = arith.constant -0.441505849 : f32
    %1801 = vector.broadcast %cst_536 : f32 to vector<1x128xf32>
    %1802 = arith.mulf %1801, %1731 : vector<1x128xf32>
    %1803 = arith.subf %1800, %1802 : vector<1x128xf32>
    %cst_537 = arith.constant 0.897258341 : f32
    %1804 = vector.broadcast %cst_537 : f32 to vector<1x128xf32>
    %1805 = arith.mulf %1804, %1719 : vector<1x128xf32>
    %1806 = arith.mulf %1783, %1739 : vector<1x128xf32>
    %1807 = arith.addf %1805, %1806 : vector<1x128xf32>
    %1808 = arith.mulf %1785, %1758 : vector<1x128xf32>
    %1809 = arith.addf %1807, %1808 : vector<1x128xf32>
    %cst_538 = arith.constant 0.000000e+00 : f32
    %1810 = vector.broadcast %cst_538 : f32 to vector<1x128xf32>
    %1811 = arith.subf %1810, %1809 : vector<1x128xf32>
    %cst_539 = arith.constant 0.897258341 : f32
    %1812 = vector.broadcast %cst_539 : f32 to vector<1x128xf32>
    %1813 = arith.mulf %1812, %1725 : vector<1x128xf32>
    %1814 = arith.mulf %1783, %1747 : vector<1x128xf32>
    %1815 = arith.addf %1813, %1814 : vector<1x128xf32>
    %1816 = arith.mulf %1785, %1761 : vector<1x128xf32>
    %1817 = arith.addf %1815, %1816 : vector<1x128xf32>
    %cst_540 = arith.constant 0.000000e+00 : f32
    %1818 = vector.broadcast %cst_540 : f32 to vector<1x128xf32>
    %1819 = arith.subf %1818, %1817 : vector<1x128xf32>
    %cst_541 = arith.constant 0.897258341 : f32
    %1820 = vector.broadcast %cst_541 : f32 to vector<1x128xf32>
    %1821 = arith.mulf %1820, %1731 : vector<1x128xf32>
    %1822 = arith.mulf %1783, %1755 : vector<1x128xf32>
    %1823 = arith.addf %1821, %1822 : vector<1x128xf32>
    %1824 = arith.mulf %1785, %1764 : vector<1x128xf32>
    %1825 = arith.addf %1823, %1824 : vector<1x128xf32>
    %cst_542 = arith.constant 0.000000e+00 : f32
    %1826 = vector.broadcast %cst_542 : f32 to vector<1x128xf32>
    %1827 = arith.subf %1826, %1825 : vector<1x128xf32>
    %1828 = arith.mulf %1775, %1758 : vector<1x128xf32>
    %1829 = arith.mulf %1777, %1739 : vector<1x128xf32>
    %1830 = arith.subf %1828, %1829 : vector<1x128xf32>
    %1831 = arith.mulf %1775, %1761 : vector<1x128xf32>
    %1832 = arith.mulf %1777, %1747 : vector<1x128xf32>
    %1833 = arith.subf %1831, %1832 : vector<1x128xf32>
    %1834 = arith.mulf %1775, %1764 : vector<1x128xf32>
    %1835 = arith.mulf %1777, %1755 : vector<1x128xf32>
    %1836 = arith.subf %1834, %1835 : vector<1x128xf32>
    %cst_543 = arith.constant 1.330000e+00 : f32
    %1837 = vector.broadcast %cst_543 : f32 to vector<1x128xf32>
    %1838 = arith.mulf %1837, %1791 : vector<1x128xf32>
    %1839 = arith.addf %1767, %1838 : vector<1x128xf32>
    %cst_544 = arith.constant 1.330000e+00 : f32
    %1840 = vector.broadcast %cst_544 : f32 to vector<1x128xf32>
    %1841 = arith.mulf %1840, %1797 : vector<1x128xf32>
    %1842 = arith.addf %1770, %1841 : vector<1x128xf32>
    %cst_545 = arith.constant 1.330000e+00 : f32
    %1843 = vector.broadcast %cst_545 : f32 to vector<1x128xf32>
    %1844 = arith.mulf %1843, %1803 : vector<1x128xf32>
    %1845 = arith.addf %1773, %1844 : vector<1x128xf32>
    %1846 = arith.select %1629, %1570, %6 : vector<1x128xi1>, vector<1x128xf32>
    %1847 = arith.index_cast %c6_i32 : i32 to index
    %c0_546 = arith.constant 0 : index
    %c0_547 = arith.constant 0 : index
    %c0_548 = arith.constant 0 : index
    %1848 = vector.load %arg3[%1847, %c0_546, %c0_547, %c0_548] : memref<8x9x1x128xf32, #tpu.memory_space<vmem>>, vector<1x1x1x128xf32>
    %1849 = vector.shape_cast %1848 : vector<1x1x1x128xf32> to vector<1x128xf32>
    %1850 = vector.shape_cast %1846 : vector<1x128xf32> to vector<1x1x1x128xf32>
    tpu.vector_store %arg3[%1847, %c0_546, %c0_547, %c0_548], %1850 {strides = array<i32>} : memref<8x9x1x128xf32, #tpu.memory_space<vmem>>, vector<1x1x1x128xf32>,
    %1851 = arith.select %1629, %1573, %6 : vector<1x128xi1>, vector<1x128xf32>
    %1852 = arith.index_cast %c6_i32 : i32 to index
    %c1_549 = arith.constant 1 : index
    %c0_550 = arith.constant 0 : index
    %c0_551 = arith.constant 0 : index
    %1853 = vector.load %arg3[%1852, %c1_549, %c0_550, %c0_551] : memref<8x9x1x128xf32, #tpu.memory_space<vmem>>, vector<1x1x1x128xf32>
    %1854 = vector.shape_cast %1853 : vector<1x1x1x128xf32> to vector<1x128xf32>
    %1855 = vector.shape_cast %1851 : vector<1x128xf32> to vector<1x1x1x128xf32>
    tpu.vector_store %arg3[%1852, %c1_549, %c0_550, %c0_551], %1855 {strides = array<i32>} : memref<8x9x1x128xf32, #tpu.memory_space<vmem>>, vector<1x1x1x128xf32>,
    %1856 = arith.select %1629, %1576, %6 : vector<1x128xi1>, vector<1x128xf32>
    %1857 = arith.index_cast %c6_i32 : i32 to index
    %c2_552 = arith.constant 2 : index
    %c0_553 = arith.constant 0 : index
    %c0_554 = arith.constant 0 : index
    %1858 = vector.load %arg3[%1857, %c2_552, %c0_553, %c0_554] : memref<8x9x1x128xf32, #tpu.memory_space<vmem>>, vector<1x1x1x128xf32>
    %1859 = vector.shape_cast %1858 : vector<1x1x1x128xf32> to vector<1x128xf32>
    %1860 = vector.shape_cast %1856 : vector<1x128xf32> to vector<1x1x1x128xf32>
    tpu.vector_store %arg3[%1857, %c2_552, %c0_553, %c0_554], %1860 {strides = array<i32>} : memref<8x9x1x128xf32, #tpu.memory_space<vmem>>, vector<1x1x1x128xf32>,
    %1861 = arith.select %1629, %1695, %6 : vector<1x128xi1>, vector<1x128xf32>
    %1862 = arith.index_cast %c6_i32 : i32 to index
    %c3_555 = arith.constant 3 : index
    %c0_556 = arith.constant 0 : index
    %c0_557 = arith.constant 0 : index
    %1863 = vector.load %arg3[%1862, %c3_555, %c0_556, %c0_557] : memref<8x9x1x128xf32, #tpu.memory_space<vmem>>, vector<1x1x1x128xf32>
    %1864 = vector.shape_cast %1863 : vector<1x1x1x128xf32> to vector<1x128xf32>
    %1865 = vector.shape_cast %1861 : vector<1x128xf32> to vector<1x1x1x128xf32>
    tpu.vector_store %arg3[%1862, %c3_555, %c0_556, %c0_557], %1865 {strides = array<i32>} : memref<8x9x1x128xf32, #tpu.memory_space<vmem>>, vector<1x1x1x128xf32>,
    %1866 = arith.select %1629, %1698, %6 : vector<1x128xi1>, vector<1x128xf32>
    %1867 = arith.index_cast %c6_i32 : i32 to index
    %c4_558 = arith.constant 4 : index
    %c0_559 = arith.constant 0 : index
    %c0_560 = arith.constant 0 : index
    %1868 = vector.load %arg3[%1867, %c4_558, %c0_559, %c0_560] : memref<8x9x1x128xf32, #tpu.memory_space<vmem>>, vector<1x1x1x128xf32>
    %1869 = vector.shape_cast %1868 : vector<1x1x1x128xf32> to vector<1x128xf32>
    %1870 = vector.shape_cast %1866 : vector<1x128xf32> to vector<1x1x1x128xf32>
    tpu.vector_store %arg3[%1867, %c4_558, %c0_559, %c0_560], %1870 {strides = array<i32>} : memref<8x9x1x128xf32, #tpu.memory_space<vmem>>, vector<1x1x1x128xf32>,
    %1871 = arith.select %1629, %1701, %6 : vector<1x128xi1>, vector<1x128xf32>
    %1872 = arith.index_cast %c6_i32 : i32 to index
    %c5_561 = arith.constant 5 : index
    %c0_562 = arith.constant 0 : index
    %c0_563 = arith.constant 0 : index
    %1873 = vector.load %arg3[%1872, %c5_561, %c0_562, %c0_563] : memref<8x9x1x128xf32, #tpu.memory_space<vmem>>, vector<1x1x1x128xf32>
    %1874 = vector.shape_cast %1873 : vector<1x1x1x128xf32> to vector<1x128xf32>
    %1875 = vector.shape_cast %1871 : vector<1x128xf32> to vector<1x1x1x128xf32>
    tpu.vector_store %arg3[%1872, %c5_561, %c0_562, %c0_563], %1875 {strides = array<i32>} : memref<8x9x1x128xf32, #tpu.memory_space<vmem>>, vector<1x1x1x128xf32>,
    %1876 = arith.select %1629, %1767, %6 : vector<1x128xi1>, vector<1x128xf32>
    %1877 = arith.index_cast %c6_i32 : i32 to index
    %c6_564 = arith.constant 6 : index
    %c0_565 = arith.constant 0 : index
    %c0_566 = arith.constant 0 : index
    %1878 = vector.load %arg3[%1877, %c6_564, %c0_565, %c0_566] : memref<8x9x1x128xf32, #tpu.memory_space<vmem>>, vector<1x1x1x128xf32>
    %1879 = vector.shape_cast %1878 : vector<1x1x1x128xf32> to vector<1x128xf32>
    %1880 = vector.shape_cast %1876 : vector<1x128xf32> to vector<1x1x1x128xf32>
    tpu.vector_store %arg3[%1877, %c6_564, %c0_565, %c0_566], %1880 {strides = array<i32>} : memref<8x9x1x128xf32, #tpu.memory_space<vmem>>, vector<1x1x1x128xf32>,
    %1881 = arith.select %1629, %1770, %6 : vector<1x128xi1>, vector<1x128xf32>
    %1882 = arith.index_cast %c6_i32 : i32 to index
    %c7_567 = arith.constant 7 : index
    %c0_568 = arith.constant 0 : index
    %c0_569 = arith.constant 0 : index
    %1883 = vector.load %arg3[%1882, %c7_567, %c0_568, %c0_569] : memref<8x9x1x128xf32, #tpu.memory_space<vmem>>, vector<1x1x1x128xf32>
    %1884 = vector.shape_cast %1883 : vector<1x1x1x128xf32> to vector<1x128xf32>
    %1885 = vector.shape_cast %1881 : vector<1x128xf32> to vector<1x1x1x128xf32>
    tpu.vector_store %arg3[%1882, %c7_567, %c0_568, %c0_569], %1885 {strides = array<i32>} : memref<8x9x1x128xf32, #tpu.memory_space<vmem>>, vector<1x1x1x128xf32>,
    %1886 = arith.select %1629, %1773, %6 : vector<1x128xi1>, vector<1x128xf32>
    %1887 = arith.index_cast %c6_i32 : i32 to index
    %c8_570 = arith.constant 8 : index
    %c0_571 = arith.constant 0 : index
    %c0_572 = arith.constant 0 : index
    %1888 = vector.load %arg3[%1887, %c8_570, %c0_571, %c0_572] : memref<8x9x1x128xf32, #tpu.memory_space<vmem>>, vector<1x1x1x128xf32>
    %1889 = vector.shape_cast %1888 : vector<1x1x1x128xf32> to vector<1x128xf32>
    %1890 = vector.shape_cast %1886 : vector<1x128xf32> to vector<1x1x1x128xf32>
    tpu.vector_store %arg3[%1887, %c8_570, %c0_571, %c0_572], %1890 {strides = array<i32>} : memref<8x9x1x128xf32, #tpu.memory_space<vmem>>, vector<1x1x1x128xf32>,
    %c7_i32 = arith.constant 7 : i32
    %1891 = arith.index_cast %c7_i32 : i32 to index
    %c0_573 = arith.constant 0 : index
    %c0_574 = arith.constant 0 : index
    %c0_575 = arith.constant 0 : index
    %1892 = vector.load %arg4[%1891, %c0_573, %c0_574, %c0_575] : memref<8x3x1x128xf32, #tpu.memory_space<vmem>>, vector<1x3x1x128xf32>
    %1893 = vector.shape_cast %1892 : vector<1x3x1x128xf32> to vector<3x1x128xf32>
    %1894 = arith.index_cast %c7_i32 : i32 to index
    %c0_576 = arith.constant 0 : index
    %c0_577 = arith.constant 0 : index
    %c0_578 = arith.constant 0 : index
    %1895 = vector.load %arg5[%1894, %c0_576, %c0_577, %c0_578] : memref<8x3x1x128xf32, #tpu.memory_space<vmem>>, vector<1x3x1x128xf32>
    %1896 = vector.shape_cast %1895 : vector<1x3x1x128xf32> to vector<3x1x128xf32>
    %1897 = vector.broadcast %c7_i32 : i32 to vector<1x128xi32>
    %1898 = arith.cmpi slt, %1897, %5 : vector<1x128xi32>
    %1899 = vector.extract_strided_slice %1893 {offsets = [0, 0, 0], sizes = [1, 1, 128], strides = [1, 1, 1]} : vector<3x1x128xf32> to vector<1x1x128xf32>
    %1900 = vector.shape_cast %1899 : vector<1x1x128xf32> to vector<1x128xf32>
    %1901 = vector.extract_strided_slice %1896 {offsets = [0, 0, 0], sizes = [1, 1, 128], strides = [1, 1, 1]} : vector<3x1x128xf32> to vector<1x1x128xf32>
    %1902 = vector.shape_cast %1901 : vector<1x1x128xf32> to vector<1x128xf32>
    %cst_579 = arith.constant 0.850811123 : f32
    %1903 = vector.broadcast %cst_579 : f32 to vector<1x128xf32>
    %1904 = arith.mulf %1903, %1900 : vector<1x128xf32>
    %cst_580 = arith.constant 0.850811123 : f32
    %1905 = vector.broadcast %cst_580 : f32 to vector<1x128xf32>
    %1906 = arith.mulf %1905, %1902 : vector<1x128xf32>
    %cst_581 = arith.constant -0.525471628 : f32
    %1907 = vector.broadcast %cst_581 : f32 to vector<1x128xf32>
    %1908 = arith.mulf %1907, %1900 : vector<1x128xf32>
    %cst_582 = arith.constant -0.525471628 : f32
    %1909 = vector.broadcast %cst_582 : f32 to vector<1x128xf32>
    %1910 = arith.mulf %1909, %1902 : vector<1x128xf32>
    %1911 = arith.mulf %1904, %1811 : vector<1x128xf32>
    %1912 = arith.mulf %1906, %1830 : vector<1x128xf32>
    %1913 = arith.addf %1911, %1912 : vector<1x128xf32>
    %cst_583 = arith.constant -0.525471628 : f32
    %1914 = vector.broadcast %cst_583 : f32 to vector<1x128xf32>
    %1915 = arith.mulf %1914, %1791 : vector<1x128xf32>
    %1916 = arith.subf %1913, %1915 : vector<1x128xf32>
    %1917 = arith.mulf %1904, %1819 : vector<1x128xf32>
    %1918 = arith.mulf %1906, %1833 : vector<1x128xf32>
    %1919 = arith.addf %1917, %1918 : vector<1x128xf32>
    %cst_584 = arith.constant -0.525471628 : f32
    %1920 = vector.broadcast %cst_584 : f32 to vector<1x128xf32>
    %1921 = arith.mulf %1920, %1797 : vector<1x128xf32>
    %1922 = arith.subf %1919, %1921 : vector<1x128xf32>
    %1923 = arith.mulf %1904, %1827 : vector<1x128xf32>
    %1924 = arith.mulf %1906, %1836 : vector<1x128xf32>
    %1925 = arith.addf %1923, %1924 : vector<1x128xf32>
    %cst_585 = arith.constant -0.525471628 : f32
    %1926 = vector.broadcast %cst_585 : f32 to vector<1x128xf32>
    %1927 = arith.mulf %1926, %1803 : vector<1x128xf32>
    %1928 = arith.subf %1925, %1927 : vector<1x128xf32>
    %cst_586 = arith.constant 0.850811123 : f32
    %1929 = vector.broadcast %cst_586 : f32 to vector<1x128xf32>
    %1930 = arith.mulf %1929, %1791 : vector<1x128xf32>
    %1931 = arith.mulf %1908, %1811 : vector<1x128xf32>
    %1932 = arith.addf %1930, %1931 : vector<1x128xf32>
    %1933 = arith.mulf %1910, %1830 : vector<1x128xf32>
    %1934 = arith.addf %1932, %1933 : vector<1x128xf32>
    %cst_587 = arith.constant 0.000000e+00 : f32
    %1935 = vector.broadcast %cst_587 : f32 to vector<1x128xf32>
    %1936 = arith.subf %1935, %1934 : vector<1x128xf32>
    %cst_588 = arith.constant 0.850811123 : f32
    %1937 = vector.broadcast %cst_588 : f32 to vector<1x128xf32>
    %1938 = arith.mulf %1937, %1797 : vector<1x128xf32>
    %1939 = arith.mulf %1908, %1819 : vector<1x128xf32>
    %1940 = arith.addf %1938, %1939 : vector<1x128xf32>
    %1941 = arith.mulf %1910, %1833 : vector<1x128xf32>
    %1942 = arith.addf %1940, %1941 : vector<1x128xf32>
    %cst_589 = arith.constant 0.000000e+00 : f32
    %1943 = vector.broadcast %cst_589 : f32 to vector<1x128xf32>
    %1944 = arith.subf %1943, %1942 : vector<1x128xf32>
    %cst_590 = arith.constant 0.850811123 : f32
    %1945 = vector.broadcast %cst_590 : f32 to vector<1x128xf32>
    %1946 = arith.mulf %1945, %1803 : vector<1x128xf32>
    %1947 = arith.mulf %1908, %1827 : vector<1x128xf32>
    %1948 = arith.addf %1946, %1947 : vector<1x128xf32>
    %1949 = arith.mulf %1910, %1836 : vector<1x128xf32>
    %1950 = arith.addf %1948, %1949 : vector<1x128xf32>
    %cst_591 = arith.constant 0.000000e+00 : f32
    %1951 = vector.broadcast %cst_591 : f32 to vector<1x128xf32>
    %1952 = arith.subf %1951, %1950 : vector<1x128xf32>
    %1953 = arith.mulf %1900, %1830 : vector<1x128xf32>
    %1954 = arith.mulf %1902, %1811 : vector<1x128xf32>
    %1955 = arith.subf %1953, %1954 : vector<1x128xf32>
    %1956 = arith.mulf %1900, %1833 : vector<1x128xf32>
    %1957 = arith.mulf %1902, %1819 : vector<1x128xf32>
    %1958 = arith.subf %1956, %1957 : vector<1x128xf32>
    %1959 = arith.mulf %1900, %1836 : vector<1x128xf32>
    %1960 = arith.mulf %1902, %1827 : vector<1x128xf32>
    %1961 = arith.subf %1959, %1960 : vector<1x128xf32>
    %cst_592 = arith.constant 1.460000e+00 : f32
    %1962 = vector.broadcast %cst_592 : f32 to vector<1x128xf32>
    %1963 = arith.mulf %1962, %1916 : vector<1x128xf32>
    %1964 = arith.addf %1839, %1963 : vector<1x128xf32>
    %cst_593 = arith.constant 1.460000e+00 : f32
    %1965 = vector.broadcast %cst_593 : f32 to vector<1x128xf32>
    %1966 = arith.mulf %1965, %1922 : vector<1x128xf32>
    %1967 = arith.addf %1842, %1966 : vector<1x128xf32>
    %cst_594 = arith.constant 1.460000e+00 : f32
    %1968 = vector.broadcast %cst_594 : f32 to vector<1x128xf32>
    %1969 = arith.mulf %1968, %1928 : vector<1x128xf32>
    %1970 = arith.addf %1845, %1969 : vector<1x128xf32>
    %1971 = vector.extract_strided_slice %1893 {offsets = [1, 0, 0], sizes = [1, 1, 128], strides = [1, 1, 1]} : vector<3x1x128xf32> to vector<1x1x128xf32>
    %1972 = vector.shape_cast %1971 : vector<1x1x128xf32> to vector<1x128xf32>
    %1973 = vector.extract_strided_slice %1896 {offsets = [1, 0, 0], sizes = [1, 1, 128], strides = [1, 1, 1]} : vector<3x1x128xf32> to vector<1x1x128xf32>
    %1974 = vector.shape_cast %1973 : vector<1x1x128xf32> to vector<1x128xf32>
    %cst_595 = arith.constant 0.932323813 : f32
    %1975 = vector.broadcast %cst_595 : f32 to vector<1x128xf32>
    %1976 = arith.mulf %1975, %1972 : vector<1x128xf32>
    %cst_596 = arith.constant 0.932323813 : f32
    %1977 = vector.broadcast %cst_596 : f32 to vector<1x128xf32>
    %1978 = arith.mulf %1977, %1974 : vector<1x128xf32>
    %cst_597 = arith.constant -0.361624569 : f32
    %1979 = vector.broadcast %cst_597 : f32 to vector<1x128xf32>
    %1980 = arith.mulf %1979, %1972 : vector<1x128xf32>
    %cst_598 = arith.constant -0.361624569 : f32
    %1981 = vector.broadcast %cst_598 : f32 to vector<1x128xf32>
    %1982 = arith.mulf %1981, %1974 : vector<1x128xf32>
    %1983 = arith.mulf %1976, %1936 : vector<1x128xf32>
    %1984 = arith.mulf %1978, %1955 : vector<1x128xf32>
    %1985 = arith.addf %1983, %1984 : vector<1x128xf32>
    %cst_599 = arith.constant -0.361624569 : f32
    %1986 = vector.broadcast %cst_599 : f32 to vector<1x128xf32>
    %1987 = arith.mulf %1986, %1916 : vector<1x128xf32>
    %1988 = arith.subf %1985, %1987 : vector<1x128xf32>
    %1989 = arith.mulf %1976, %1944 : vector<1x128xf32>
    %1990 = arith.mulf %1978, %1958 : vector<1x128xf32>
    %1991 = arith.addf %1989, %1990 : vector<1x128xf32>
    %cst_600 = arith.constant -0.361624569 : f32
    %1992 = vector.broadcast %cst_600 : f32 to vector<1x128xf32>
    %1993 = arith.mulf %1992, %1922 : vector<1x128xf32>
    %1994 = arith.subf %1991, %1993 : vector<1x128xf32>
    %1995 = arith.mulf %1976, %1952 : vector<1x128xf32>
    %1996 = arith.mulf %1978, %1961 : vector<1x128xf32>
    %1997 = arith.addf %1995, %1996 : vector<1x128xf32>
    %cst_601 = arith.constant -0.361624569 : f32
    %1998 = vector.broadcast %cst_601 : f32 to vector<1x128xf32>
    %1999 = arith.mulf %1998, %1928 : vector<1x128xf32>
    %2000 = arith.subf %1997, %1999 : vector<1x128xf32>
    %cst_602 = arith.constant 0.932323813 : f32
    %2001 = vector.broadcast %cst_602 : f32 to vector<1x128xf32>
    %2002 = arith.mulf %2001, %1916 : vector<1x128xf32>
    %2003 = arith.mulf %1980, %1936 : vector<1x128xf32>
    %2004 = arith.addf %2002, %2003 : vector<1x128xf32>
    %2005 = arith.mulf %1982, %1955 : vector<1x128xf32>
    %2006 = arith.addf %2004, %2005 : vector<1x128xf32>
    %cst_603 = arith.constant 0.000000e+00 : f32
    %2007 = vector.broadcast %cst_603 : f32 to vector<1x128xf32>
    %2008 = arith.subf %2007, %2006 : vector<1x128xf32>
    %cst_604 = arith.constant 0.932323813 : f32
    %2009 = vector.broadcast %cst_604 : f32 to vector<1x128xf32>
    %2010 = arith.mulf %2009, %1922 : vector<1x128xf32>
    %2011 = arith.mulf %1980, %1944 : vector<1x128xf32>
    %2012 = arith.addf %2010, %2011 : vector<1x128xf32>
    %2013 = arith.mulf %1982, %1958 : vector<1x128xf32>
    %2014 = arith.addf %2012, %2013 : vector<1x128xf32>
    %cst_605 = arith.constant 0.000000e+00 : f32
    %2015 = vector.broadcast %cst_605 : f32 to vector<1x128xf32>
    %2016 = arith.subf %2015, %2014 : vector<1x128xf32>
    %cst_606 = arith.constant 0.932323813 : f32
    %2017 = vector.broadcast %cst_606 : f32 to vector<1x128xf32>
    %2018 = arith.mulf %2017, %1928 : vector<1x128xf32>
    %2019 = arith.mulf %1980, %1952 : vector<1x128xf32>
    %2020 = arith.addf %2018, %2019 : vector<1x128xf32>
    %2021 = arith.mulf %1982, %1961 : vector<1x128xf32>
    %2022 = arith.addf %2020, %2021 : vector<1x128xf32>
    %cst_607 = arith.constant 0.000000e+00 : f32
    %2023 = vector.broadcast %cst_607 : f32 to vector<1x128xf32>
    %2024 = arith.subf %2023, %2022 : vector<1x128xf32>
    %2025 = arith.mulf %1972, %1955 : vector<1x128xf32>
    %2026 = arith.mulf %1974, %1936 : vector<1x128xf32>
    %2027 = arith.subf %2025, %2026 : vector<1x128xf32>
    %2028 = arith.mulf %1972, %1958 : vector<1x128xf32>
    %2029 = arith.mulf %1974, %1944 : vector<1x128xf32>
    %2030 = arith.subf %2028, %2029 : vector<1x128xf32>
    %2031 = arith.mulf %1972, %1961 : vector<1x128xf32>
    %2032 = arith.mulf %1974, %1952 : vector<1x128xf32>
    %2033 = arith.subf %2031, %2032 : vector<1x128xf32>
    %cst_608 = arith.constant 1.525000e+00 : f32
    %2034 = vector.broadcast %cst_608 : f32 to vector<1x128xf32>
    %2035 = arith.mulf %2034, %1988 : vector<1x128xf32>
    %2036 = arith.addf %1964, %2035 : vector<1x128xf32>
    %cst_609 = arith.constant 1.525000e+00 : f32
    %2037 = vector.broadcast %cst_609 : f32 to vector<1x128xf32>
    %2038 = arith.mulf %2037, %1994 : vector<1x128xf32>
    %2039 = arith.addf %1967, %2038 : vector<1x128xf32>
    %cst_610 = arith.constant 1.525000e+00 : f32
    %2040 = vector.broadcast %cst_610 : f32 to vector<1x128xf32>
    %2041 = arith.mulf %2040, %2000 : vector<1x128xf32>
    %2042 = arith.addf %1970, %2041 : vector<1x128xf32>
    %2043 = vector.extract_strided_slice %1893 {offsets = [2, 0, 0], sizes = [1, 1, 128], strides = [1, 1, 1]} : vector<3x1x128xf32> to vector<1x1x128xf32>
    %2044 = vector.shape_cast %2043 : vector<1x1x128xf32> to vector<1x128xf32>
    %2045 = vector.extract_strided_slice %1896 {offsets = [2, 0, 0], sizes = [1, 1, 128], strides = [1, 1, 1]} : vector<3x1x128xf32> to vector<1x1x128xf32>
    %2046 = vector.shape_cast %2045 : vector<1x1x128xf32> to vector<1x128xf32>
    %cst_611 = arith.constant 0.897258341 : f32
    %2047 = vector.broadcast %cst_611 : f32 to vector<1x128xf32>
    %2048 = arith.mulf %2047, %2044 : vector<1x128xf32>
    %cst_612 = arith.constant 0.897258341 : f32
    %2049 = vector.broadcast %cst_612 : f32 to vector<1x128xf32>
    %2050 = arith.mulf %2049, %2046 : vector<1x128xf32>
    %cst_613 = arith.constant -0.441505849 : f32
    %2051 = vector.broadcast %cst_613 : f32 to vector<1x128xf32>
    %2052 = arith.mulf %2051, %2044 : vector<1x128xf32>
    %cst_614 = arith.constant -0.441505849 : f32
    %2053 = vector.broadcast %cst_614 : f32 to vector<1x128xf32>
    %2054 = arith.mulf %2053, %2046 : vector<1x128xf32>
    %2055 = arith.mulf %2048, %2008 : vector<1x128xf32>
    %2056 = arith.mulf %2050, %2027 : vector<1x128xf32>
    %2057 = arith.addf %2055, %2056 : vector<1x128xf32>
    %cst_615 = arith.constant -0.441505849 : f32
    %2058 = vector.broadcast %cst_615 : f32 to vector<1x128xf32>
    %2059 = arith.mulf %2058, %1988 : vector<1x128xf32>
    %2060 = arith.subf %2057, %2059 : vector<1x128xf32>
    %2061 = arith.mulf %2048, %2016 : vector<1x128xf32>
    %2062 = arith.mulf %2050, %2030 : vector<1x128xf32>
    %2063 = arith.addf %2061, %2062 : vector<1x128xf32>
    %cst_616 = arith.constant -0.441505849 : f32
    %2064 = vector.broadcast %cst_616 : f32 to vector<1x128xf32>
    %2065 = arith.mulf %2064, %1994 : vector<1x128xf32>
    %2066 = arith.subf %2063, %2065 : vector<1x128xf32>
    %2067 = arith.mulf %2048, %2024 : vector<1x128xf32>
    %2068 = arith.mulf %2050, %2033 : vector<1x128xf32>
    %2069 = arith.addf %2067, %2068 : vector<1x128xf32>
    %cst_617 = arith.constant -0.441505849 : f32
    %2070 = vector.broadcast %cst_617 : f32 to vector<1x128xf32>
    %2071 = arith.mulf %2070, %2000 : vector<1x128xf32>
    %2072 = arith.subf %2069, %2071 : vector<1x128xf32>
    %cst_618 = arith.constant 0.897258341 : f32
    %2073 = vector.broadcast %cst_618 : f32 to vector<1x128xf32>
    %2074 = arith.mulf %2073, %1988 : vector<1x128xf32>
    %2075 = arith.mulf %2052, %2008 : vector<1x128xf32>
    %2076 = arith.addf %2074, %2075 : vector<1x128xf32>
    %2077 = arith.mulf %2054, %2027 : vector<1x128xf32>
    %2078 = arith.addf %2076, %2077 : vector<1x128xf32>
    %cst_619 = arith.constant 0.000000e+00 : f32
    %2079 = vector.broadcast %cst_619 : f32 to vector<1x128xf32>
    %2080 = arith.subf %2079, %2078 : vector<1x128xf32>
    %cst_620 = arith.constant 0.897258341 : f32
    %2081 = vector.broadcast %cst_620 : f32 to vector<1x128xf32>
    %2082 = arith.mulf %2081, %1994 : vector<1x128xf32>
    %2083 = arith.mulf %2052, %2016 : vector<1x128xf32>
    %2084 = arith.addf %2082, %2083 : vector<1x128xf32>
    %2085 = arith.mulf %2054, %2030 : vector<1x128xf32>
    %2086 = arith.addf %2084, %2085 : vector<1x128xf32>
    %cst_621 = arith.constant 0.000000e+00 : f32
    %2087 = vector.broadcast %cst_621 : f32 to vector<1x128xf32>
    %2088 = arith.subf %2087, %2086 : vector<1x128xf32>
    %cst_622 = arith.constant 0.897258341 : f32
    %2089 = vector.broadcast %cst_622 : f32 to vector<1x128xf32>
    %2090 = arith.mulf %2089, %2000 : vector<1x128xf32>
    %2091 = arith.mulf %2052, %2024 : vector<1x128xf32>
    %2092 = arith.addf %2090, %2091 : vector<1x128xf32>
    %2093 = arith.mulf %2054, %2033 : vector<1x128xf32>
    %2094 = arith.addf %2092, %2093 : vector<1x128xf32>
    %cst_623 = arith.constant 0.000000e+00 : f32
    %2095 = vector.broadcast %cst_623 : f32 to vector<1x128xf32>
    %2096 = arith.subf %2095, %2094 : vector<1x128xf32>
    %2097 = arith.mulf %2044, %2027 : vector<1x128xf32>
    %2098 = arith.mulf %2046, %2008 : vector<1x128xf32>
    %2099 = arith.subf %2097, %2098 : vector<1x128xf32>
    %2100 = arith.mulf %2044, %2030 : vector<1x128xf32>
    %2101 = arith.mulf %2046, %2016 : vector<1x128xf32>
    %2102 = arith.subf %2100, %2101 : vector<1x128xf32>
    %2103 = arith.mulf %2044, %2033 : vector<1x128xf32>
    %2104 = arith.mulf %2046, %2024 : vector<1x128xf32>
    %2105 = arith.subf %2103, %2104 : vector<1x128xf32>
    %cst_624 = arith.constant 1.330000e+00 : f32
    %2106 = vector.broadcast %cst_624 : f32 to vector<1x128xf32>
    %2107 = arith.mulf %2106, %2060 : vector<1x128xf32>
    %2108 = arith.addf %2036, %2107 : vector<1x128xf32>
    %cst_625 = arith.constant 1.330000e+00 : f32
    %2109 = vector.broadcast %cst_625 : f32 to vector<1x128xf32>
    %2110 = arith.mulf %2109, %2066 : vector<1x128xf32>
    %2111 = arith.addf %2039, %2110 : vector<1x128xf32>
    %cst_626 = arith.constant 1.330000e+00 : f32
    %2112 = vector.broadcast %cst_626 : f32 to vector<1x128xf32>
    %2113 = arith.mulf %2112, %2072 : vector<1x128xf32>
    %2114 = arith.addf %2042, %2113 : vector<1x128xf32>
    %2115 = arith.select %1898, %1839, %6 : vector<1x128xi1>, vector<1x128xf32>
    %2116 = arith.index_cast %c7_i32 : i32 to index
    %c0_627 = arith.constant 0 : index
    %c0_628 = arith.constant 0 : index
    %c0_629 = arith.constant 0 : index
    %2117 = vector.load %arg3[%2116, %c0_627, %c0_628, %c0_629] : memref<8x9x1x128xf32, #tpu.memory_space<vmem>>, vector<1x1x1x128xf32>
    %2118 = vector.shape_cast %2117 : vector<1x1x1x128xf32> to vector<1x128xf32>
    %2119 = vector.shape_cast %2115 : vector<1x128xf32> to vector<1x1x1x128xf32>
    tpu.vector_store %arg3[%2116, %c0_627, %c0_628, %c0_629], %2119 {strides = array<i32>} : memref<8x9x1x128xf32, #tpu.memory_space<vmem>>, vector<1x1x1x128xf32>,
    %2120 = arith.select %1898, %1842, %6 : vector<1x128xi1>, vector<1x128xf32>
    %2121 = arith.index_cast %c7_i32 : i32 to index
    %c1_630 = arith.constant 1 : index
    %c0_631 = arith.constant 0 : index
    %c0_632 = arith.constant 0 : index
    %2122 = vector.load %arg3[%2121, %c1_630, %c0_631, %c0_632] : memref<8x9x1x128xf32, #tpu.memory_space<vmem>>, vector<1x1x1x128xf32>
    %2123 = vector.shape_cast %2122 : vector<1x1x1x128xf32> to vector<1x128xf32>
    %2124 = vector.shape_cast %2120 : vector<1x128xf32> to vector<1x1x1x128xf32>
    tpu.vector_store %arg3[%2121, %c1_630, %c0_631, %c0_632], %2124 {strides = array<i32>} : memref<8x9x1x128xf32, #tpu.memory_space<vmem>>, vector<1x1x1x128xf32>,
    %2125 = arith.select %1898, %1845, %6 : vector<1x128xi1>, vector<1x128xf32>
    %2126 = arith.index_cast %c7_i32 : i32 to index
    %c2_633 = arith.constant 2 : index
    %c0_634 = arith.constant 0 : index
    %c0_635 = arith.constant 0 : index
    %2127 = vector.load %arg3[%2126, %c2_633, %c0_634, %c0_635] : memref<8x9x1x128xf32, #tpu.memory_space<vmem>>, vector<1x1x1x128xf32>
    %2128 = vector.shape_cast %2127 : vector<1x1x1x128xf32> to vector<1x128xf32>
    %2129 = vector.shape_cast %2125 : vector<1x128xf32> to vector<1x1x1x128xf32>
    tpu.vector_store %arg3[%2126, %c2_633, %c0_634, %c0_635], %2129 {strides = array<i32>} : memref<8x9x1x128xf32, #tpu.memory_space<vmem>>, vector<1x1x1x128xf32>,
    %2130 = arith.select %1898, %1964, %6 : vector<1x128xi1>, vector<1x128xf32>
    %2131 = arith.index_cast %c7_i32 : i32 to index
    %c3_636 = arith.constant 3 : index
    %c0_637 = arith.constant 0 : index
    %c0_638 = arith.constant 0 : index
    %2132 = vector.load %arg3[%2131, %c3_636, %c0_637, %c0_638] : memref<8x9x1x128xf32, #tpu.memory_space<vmem>>, vector<1x1x1x128xf32>
    %2133 = vector.shape_cast %2132 : vector<1x1x1x128xf32> to vector<1x128xf32>
    %2134 = vector.shape_cast %2130 : vector<1x128xf32> to vector<1x1x1x128xf32>
    tpu.vector_store %arg3[%2131, %c3_636, %c0_637, %c0_638], %2134 {strides = array<i32>} : memref<8x9x1x128xf32, #tpu.memory_space<vmem>>, vector<1x1x1x128xf32>,
    %2135 = arith.select %1898, %1967, %6 : vector<1x128xi1>, vector<1x128xf32>
    %2136 = arith.index_cast %c7_i32 : i32 to index
    %c4_639 = arith.constant 4 : index
    %c0_640 = arith.constant 0 : index
    %c0_641 = arith.constant 0 : index
    %2137 = vector.load %arg3[%2136, %c4_639, %c0_640, %c0_641] : memref<8x9x1x128xf32, #tpu.memory_space<vmem>>, vector<1x1x1x128xf32>
    %2138 = vector.shape_cast %2137 : vector<1x1x1x128xf32> to vector<1x128xf32>
    %2139 = vector.shape_cast %2135 : vector<1x128xf32> to vector<1x1x1x128xf32>
    tpu.vector_store %arg3[%2136, %c4_639, %c0_640, %c0_641], %2139 {strides = array<i32>} : memref<8x9x1x128xf32, #tpu.memory_space<vmem>>, vector<1x1x1x128xf32>,
    %2140 = arith.select %1898, %1970, %6 : vector<1x128xi1>, vector<1x128xf32>
    %2141 = arith.index_cast %c7_i32 : i32 to index
    %c5_642 = arith.constant 5 : index
    %c0_643 = arith.constant 0 : index
    %c0_644 = arith.constant 0 : index
    %2142 = vector.load %arg3[%2141, %c5_642, %c0_643, %c0_644] : memref<8x9x1x128xf32, #tpu.memory_space<vmem>>, vector<1x1x1x128xf32>
    %2143 = vector.shape_cast %2142 : vector<1x1x1x128xf32> to vector<1x128xf32>
    %2144 = vector.shape_cast %2140 : vector<1x128xf32> to vector<1x1x1x128xf32>
    tpu.vector_store %arg3[%2141, %c5_642, %c0_643, %c0_644], %2144 {strides = array<i32>} : memref<8x9x1x128xf32, #tpu.memory_space<vmem>>, vector<1x1x1x128xf32>,
    %2145 = arith.select %1898, %2036, %6 : vector<1x128xi1>, vector<1x128xf32>
    %2146 = arith.index_cast %c7_i32 : i32 to index
    %c6_645 = arith.constant 6 : index
    %c0_646 = arith.constant 0 : index
    %c0_647 = arith.constant 0 : index
    %2147 = vector.load %arg3[%2146, %c6_645, %c0_646, %c0_647] : memref<8x9x1x128xf32, #tpu.memory_space<vmem>>, vector<1x1x1x128xf32>
    %2148 = vector.shape_cast %2147 : vector<1x1x1x128xf32> to vector<1x128xf32>
    %2149 = vector.shape_cast %2145 : vector<1x128xf32> to vector<1x1x1x128xf32>
    tpu.vector_store %arg3[%2146, %c6_645, %c0_646, %c0_647], %2149 {strides = array<i32>} : memref<8x9x1x128xf32, #tpu.memory_space<vmem>>, vector<1x1x1x128xf32>,
    %2150 = arith.select %1898, %2039, %6 : vector<1x128xi1>, vector<1x128xf32>
    %2151 = arith.index_cast %c7_i32 : i32 to index
    %c7_648 = arith.constant 7 : index
    %c0_649 = arith.constant 0 : index
    %c0_650 = arith.constant 0 : index
    %2152 = vector.load %arg3[%2151, %c7_648, %c0_649, %c0_650] : memref<8x9x1x128xf32, #tpu.memory_space<vmem>>, vector<1x1x1x128xf32>
    %2153 = vector.shape_cast %2152 : vector<1x1x1x128xf32> to vector<1x128xf32>
    %2154 = vector.shape_cast %2150 : vector<1x128xf32> to vector<1x1x1x128xf32>
    tpu.vector_store %arg3[%2151, %c7_648, %c0_649, %c0_650], %2154 {strides = array<i32>} : memref<8x9x1x128xf32, #tpu.memory_space<vmem>>, vector<1x1x1x128xf32>,
    %2155 = arith.select %1898, %2042, %6 : vector<1x128xi1>, vector<1x128xf32>
    %2156 = arith.index_cast %c7_i32 : i32 to index
    %c8_651 = arith.constant 8 : index
    %c0_652 = arith.constant 0 : index
    %c0_653 = arith.constant 0 : index
    %2157 = vector.load %arg3[%2156, %c8_651, %c0_652, %c0_653] : memref<8x9x1x128xf32, #tpu.memory_space<vmem>>, vector<1x1x1x128xf32>
    %2158 = vector.shape_cast %2157 : vector<1x1x1x128xf32> to vector<1x128xf32>
    %2159 = vector.shape_cast %2155 : vector<1x128xf32> to vector<1x1x1x128xf32>
    tpu.vector_store %arg3[%2156, %c8_651, %c0_652, %c0_653], %2159 {strides = array<i32>} : memref<8x9x1x128xf32, #tpu.memory_space<vmem>>, vector<1x1x1x128xf32>,
    %c8_i32 = arith.constant 8 : i32
    return
  }
  func.func @transform_0(%arg0: i32) -> (i32, i32, i32, i32) {
    %c0_i32 = arith.constant 0 : i32
    %c0_i32_0 = arith.constant 0 : i32
    %c0_i32_1 = arith.constant 0 : i32
    %c0_i32_2 = arith.constant 0 : i32
    return %c0_i32, %c0_i32_0, %c0_i32_1, %arg0 : i32, i32, i32, i32
  }
  func.func @transform_1(%arg0: i32) -> (i32, i32) {
    %c0_i32 = arith.constant 0 : i32
    %c0_i32_0 = arith.constant 0 : i32
    return %c0_i32, %arg0 : i32, i32
  }
  func.func @transform_2(%arg0: i32) -> (i32, i32, i32, i32) {
    %c0_i32 = arith.constant 0 : i32
    %c0_i32_0 = arith.constant 0 : i32
    %c0_i32_1 = arith.constant 0 : i32
    %c0_i32_2 = arith.constant 0 : i32
    return %c0_i32, %c0_i32_0, %c0_i32_1, %arg0 : i32, i32, i32, i32
  }
}

</mosaic_0001>

<bundles_post_ra>
// kernel: tpu_custom_call.1
= control target key start
LH: loop header
LB: loop body
LE: loop exit
PB: predicated region body
PF: predicated region fallthrough
CT: control target
= control target key end

     0   :  { %7 = vsyncpa [#allocation5], 0  ;;  %s11261_s0 = inlined_call_operand.hbm [shape: f32[8,3,1,128], index: 0, kind: input, shape index: {}]   ;;  %s11262_s1 = inlined_call_operand.vmem [shape: s32[1,128], index: 1, kind: input, shape index: {}]   ;;  %s11263_s2 = inlined_call_operand.hbm [shape: f32[8,9,1,128], index: 2, kind: output, shape index: {}]  }
   0x1   :  { %8 = vsyncpa [#allocation6], 0  ;;  %s6960_s9 = smov [#allocation4]   ;;  %s6912_s13 = scalar_lea.hbm %s11261_s0, 384 }
   0x2   :  { %s14_s10 = sshll.u32 %s6960_s9, 4  ;;  %p6913_p0 = scmp.ne.s32.totalorder %s11261_s0, %s6912_s13  ;;  %s15_s10 = int_to_ptr.vmem [resolvable:$true] %s14_s10 }
   0x3   :  { %p6916_p1 = scmp.lt.u32.totalorder %s6912_s13, %s11261_s0 }
   0x5   :  { %p6918_p2 = pnand %p6916_p1, %p6913_p0 }
   0x7   :  { %6921 = shalt.err (!%p6918_p2)
}
   0x8   :  { %s6922_s18 = scalar_lea.vmem %s15_s10, 384  ;;  %p6927_p4 = scmp.lt.s32.totalorder %s15_s10, %s15_s10 }
   0x9   :  { %p6923_p3 = scmp.ne.s32.totalorder %s15_s10, %s6922_s18  ;;  %p6928_p5 = scmp.lt.s32.totalorder %s6922_s18, %s6922_s18 }
   0xb   :  { %p6929_p6 = por %p6928_p5, %p6927_p4 }
   0xd   :  { %p6930_p7 = pnand %p6929_p6, %p6923_p3 }
   0xf   :  { %6933 = shalt.err (!%p6930_p7)
}
  0x10   :  { %s6961_s19 = smov 16   ;;  %s6962_s20 = smov 1  }
  0x11   :  { %20 = dma.hbm_to_vmem [thread:$0]  %s11261_s0, 384, %s15_s10, [#allocation5], %s6961_s19, %s6961_s19, %s6962_s20  }
  0x12   :  { %6956 = dma.done.wait [#allocation5], 384  }
  0x13   :  { %6957 = vsyncadd [#allocation5], 4294966912  ;;  %v7001_v0 = vld [vmem:[#allocation4] sm:$0x1]  ;;  %v7003_v1 = vld [vmem:[#allocation4 + $0x1] sm:$0x1] }
  0x14   :  { %v50_v2 = vand.u32 2147483647, %v7001_v0  ;;  %v53_v3 = vand.u32 2139095040, %v7001_v0  ;;  %v7007_v4 = vld [vmem:[#allocation4 + $0x2] sm:$0x1]  ;;  %v156_v6 = vand.u32 2139095040, %v7003_v1 }
  0x15   :  { %v153_v5 = vand.u32 2147483647, %v7003_v1  ;;  %v259_v11 = vand.u32 2139095040, %v7007_v4  ;;  %v256_v24 = vand.u32 2147483647, %v7007_v4  ;;  %vm52_vm13 = vcmp.lt.s32.totalorder %v7001_v0, 0 }
  0x16   :  { %v54_v7 = vshrl.u32 %v53_v3, 23  ;;  %v57_v8 = vand.u32 8388607, %v50_v2  ;;  %v157_v9 = vshrl.u32 %v156_v6, 23  ;;  %v11272_v30 = vmov 683565275  }
  0x17   :  { %v160_v10 = vand.u32 8388607, %v153_v5  ;;  %v260_v14 = vshrl.u32 %v259_v11, 23  ;;  %v11270_v32 = vmov 2475754826  }
  0x18   :  { %v6513_v12 = vadd.s32 4294967169, %v54_v7  ;;  %v6517_v13 = vadd.s32 4294967169, %v157_v9  ;;  %v58_v16 = vor.u32 8388608, %v57_v8  ;;  %v11264_v34 = vmov 2131351028  }
  0x19   :  { %v161_v17 = vor.u32 8388608, %v160_v10  ;;  %v6521_v19 = vadd.s32 4294967169, %v260_v14  ;;  %v11268_v36 = vmov 2102212464   ;;  %v11275_v38 = vmov 920167782  }
  0x1a   :  { %v60_v15 = vadd.s32 1, %v6513_v12  ;;  %v163_v18 = vadd.s32 1, %v6517_v13  ;;  %v7017_v25 = vshll.u32 %v58_v16, 8  ;;  %v11266_v46 = vmov 1326507024  }
  0x1b   :  { %v7019_v27 = vshll.u32 %v161_v17, 8  ;;  %v7021_v28 = vadd.s32 1, %v6521_v19 }
  0x1c   :  { %vm61_vm0 = vcmp.gt.s32.totalorder %v60_v15, 0  ;;  %vm164_vm1 = vcmp.gt.s32.totalorder %v163_v18, 0 }
  0x1d   :  { %v62_v20 = vsel %vm61_vm0, %v60_v15, 0  ;;  %v165_v23 = vsel %vm164_vm1, %v163_v18, 0  ;;  %vm267_vm6 = vcmp.gt.s32.totalorder %v7021_v28, 0  ;;  %vm7125_vm0 = vcmp.le.f32.partialorder %v50_v2, 0.7853982 }
  0x1e   :  { %v63_v21 = vshrl.u32 %v62_v20, 5  ;;  %v64_v22 = vand.u32 31, %v62_v20  ;;  %v167_v26 = vand.u32 31, %v165_v23  ;;  %v7028_v40 = vshrl.u32 %v165_v23, 5 }
  0x20   :  { %v65_v29 = vsub.s32 32, %v64_v22  ;;  %v67_v31 = vshll.u32 %v11272_v30, %v64_v22  ;;  %v70_v33 = vshll.u32 %v11270_v32, %v64_v22  ;;  %v73_v35 = vshll.u32 %v11264_v34, %v64_v22 }
  0x21   :  { %v76_v37 = vshll.u32 %v11268_v36, %v64_v22  ;;  %v79_v39 = vshll.u32 %v11275_v38, %v64_v22  ;;  %vm82_vm2 = vcmp.lt.s32.totalorder %v63_v21, 1  ;;  %vm83_vm3 = vcmp.lt.s32.totalorder %v63_v21, 2 }
  0x22   :  { %v66_v41 = vshrl.u32 %v11272_v30, %v65_v29  ;;  %v68_v42 = vshrl.u32 %v11270_v32, %v65_v29  ;;  %v71_v43 = vshrl.u32 %v11264_v34, %v65_v29  ;;  %v74_v44 = vshrl.u32 %v11268_v36, %v65_v29 }
  0x23   :  { %v77_v45 = vshrl.u32 %v11275_v38, %v65_v29  ;;  %v80_v47 = vshrl.u32 %v11266_v46, %v65_v29  ;;  %vm85_vm4 = vcmp.lt.s32.totalorder %v63_v21, 4  ;;  %v168_v51 = vsub.s32 32, %v167_v26 }
  0x24   :  { %v69_v48 = vor.u32 %v68_v42, %v67_v31  ;;  %v72_v49 = vor.u32 %v71_v43, %v70_v33  ;;  %v75_v50 = vor.u32 %v74_v44, %v73_v35  ;;  %vm84_vm5 = vcmp.lt.s32.totalorder %v63_v21, 3 }
  0x25   :  { %v78_v52 = vor.u32 %v77_v45, %v76_v37  ;;  %v81_v53 = vor.u32 %v80_v47, %v79_v39  ;;  %v170_v54 = vshll.u32 %v11272_v30, %v167_v26  ;;  %v173_v62 = vshll.u32 %v11270_v32, %v167_v26 }
  0x26   :  { %v86_v55 = vsel %vm82_vm2, %v66_v41, %v69_v48  ;;  %v87_v56 = vsel %vm85_vm4, %v75_v50, 2102212464  ;;  %v90_v57 = vsel %vm82_vm2, %v69_v48, %v72_v49  ;;  %v94_v58 = vsel %vm82_vm2, %v72_v49, %v75_v50 }
  0x27   :  { %v88_v59 = vsel %vm84_vm5, %v72_v49, %v87_v56  ;;  %v91_v60 = vsel %vm85_vm4, %v78_v52, 920167782  ;;  %v95_v61 = vsel %vm85_vm4, %v81_v53, 1326507024  ;;  %v169_v6 = vshrl.u32 %v11272_v30, %v168_v51 }
  0x28   :  { %v92_v63 = vsel %vm84_vm5, %v75_v50, %v91_v60  ;;  %v96_v3 = vsel %vm84_vm5, %v78_v52, %v95_v61  ;;  %v171_v7 = vshrl.u32 %v11270_v32, %v168_v51  ;;  %v89_v8 = vsel %vm83_vm3, %v86_v55, %v88_v59 }
  0x29   :  { %v93_v9 = vsel %vm83_vm3, %v90_v57, %v92_v63  ;;  %v97_v10 = vsel %vm83_vm3, %v94_v58, %v96_v3  ;;  %v174_v11 = vshrl.u32 %v11264_v34, %v168_v51  ;;  %v176_v18 = vshll.u32 %v11264_v34, %v167_v26  ;;  %v7099_v63 = vld [vmem:[#allocation4 + $0x3] sm:$0x1] }
  0x2a   :  { %v7049_v12 = vmul.u32.u64.low %v7017_v25, %v97_v10  ;;  %v7050_v13 = vmul.u32.u64.high %v7017_v25, %v97_v10, %v7049_v12  ;;  %v7053_v14 = vmul.u32.u64.low %v7017_v25, %v93_v9  ;;  %v7054_v15 = vmul.u32.u64.high %v7017_v25, %v93_v9, %v7053_v14 }
  0x2b   :  { %v172_v16 = vor.u32 %v171_v7, %v170_v54  ;;  %v175_v17 = vor.u32 %v174_v11, %v173_v62  ;;  %v177_v19 = vshrl.u32 %v11268_v36, %v168_v51  ;;  %v179_v20 = vshll.u32 %v11268_v36, %v167_v26 }
  0x2c   :  { %v180_v21 = vshrl.u32 %v11275_v38, %v168_v51  ;;  %v182_v22 = vshll.u32 %v11275_v38, %v167_v26  ;;  %v183_v23 = vshrl.u32 %v11266_v46, %v168_v51  ;;  %v105_v29 = vmul.u32 %v7017_v25, %v89_v8 }
  0x2d   :  { %v178_v31 = vor.u32 %v177_v19, %v176_v18  ;;  %vm185_vm7 = vcmp.lt.s32.totalorder %v7028_v40, 1  ;;  %vm186_vm8 = vcmp.lt.s32.totalorder %v7028_v40, 2  ;;  %vm107_vm9 = vc.u32 %v7050_v13, %v7053_v14 }
  0x2e   :  { %v108_v33 = vadd.s32 1, %v7054_v15  ;;  %v181_v35 = vor.u32 %v180_v21, %v179_v20  ;;  %vm187_vm10 = vcmp.lt.s32.totalorder %v7028_v40, 3  ;;  %v184_v37 = vor.u32 %v183_v23, %v182_v22 }
  0x2f   :  { %vm188_vm11 = vcmp.lt.s32.totalorder %v7028_v40, 4  ;;  %v189_v26 = vsel %vm185_vm7, %v169_v6, %v172_v16  ;;  %v193_v39 = vsel %vm185_vm7, %v172_v16, %v175_v17  ;;  %v197_v43 = vsel %vm185_vm7, %v175_v17, %v178_v31 }
  0x30   :  { %v109_v25 = vsel %vm107_vm9, %v108_v33, %v7054_v15  ;;  %v190_v41 = vsel %vm188_vm11, %v178_v31, 2102212464  ;;  %v194_v42 = vsel %vm188_vm11, %v181_v35, 920167782  ;;  %v198_v48 = vsel %vm188_vm11, %v184_v37, 1326507024 }
  0x31   :  { %v110_v44 = vadd.s32 %v109_v25, %v105_v29  ;;  %v191_v45 = vsel %vm187_vm10, %v175_v17, %v190_v41  ;;  %v195_v47 = vsel %vm187_vm10, %v178_v31, %v194_v42  ;;  %v199_v51 = vsel %vm187_vm10, %v181_v35, %v198_v48 }
  0x32   :  { %v192_v49 = vsel %vm186_vm8, %v189_v26, %v191_v45  ;;  %v196_v50 = vsel %vm186_vm8, %v193_v39, %v195_v47  ;;  %v268_v52 = vsel %vm267_vm6, %v7021_v28, 0  ;;  %v200_v54 = vsel %vm186_vm8, %v197_v43, %v199_v51 }
  0x33   :  { %v111_v53 = vadd.s32 536870912, %v110_v44  ;;  %v7082_v55 = vmul.u32.u64.low %v7019_v27, %v196_v50  ;;  %v7083_v56 = vmul.u32.u64.high %v7019_v27, %v196_v50, %v7082_v55  ;;  %v270_v60 = vand.u32 31, %v268_v52 }
  0x34   :  { %v7087_v57 = vmul.u32.u64.low %v7019_v27, %v200_v54  ;;  %v7088_v58 = vmul.u32.u64.high %v7019_v27, %v200_v54, %v7087_v57  ;;  %v208_v61 = vmul.u32 %v7019_v27, %v192_v49  ;;  %v263_v40 = vand.u32 8388607, %v256_v24 }
  0x35   :  { %v7090_v59 = vshrl.u32 %v111_v53, 30  ;;  %v211_v62 = vadd.s32 1, %v7083_v56  ;;  %v271_v7 = vsub.s32 32, %v270_v60  ;;  %v362_v27 = vand.u32 2139095040, %v7099_v63 }
  0x36   :  { %vm210_vm12 = vc.u32 %v7088_v58, %v7082_v55  ;;  %v264_v10 = vor.u32 8388608, %v263_v40  ;;  %v7103_v12 = vshrl.u32 %v268_v52, 5  ;;  %v273_v15 = vshll.u32 %v11272_v30, %v270_v60 }
  0x37   :  { %v113_v28 = vshll.u32 %v7090_v59, 30  ;;  %v212_v6 = vsel %vm210_vm12, %v211_v62, %v7083_v56  ;;  %v274_v17 = vshrl.u32 %v11270_v32, %v271_v7  ;;  %v276_v18 = vshll.u32 %v11270_v32, %v270_v60 }
  0x38   :  { %v213_v8 = vadd.s32 %v212_v6, %v208_v61  ;;  %v277_v19 = vshrl.u32 %v11264_v34, %v271_v7  ;;  %v279_v21 = vshll.u32 %v11264_v34, %v270_v60  ;;  %v280_v22 = vshrl.u32 %v11268_v36, %v271_v7 }
  0x39   :  { %v114_v3 = vsub.s32 %v110_v44, %v113_v28  ;;  %v282_v23 = vshll.u32 %v11268_v36, %v270_v60  ;;  %v283_v31 = vshrl.u32 %v11275_v38, %v271_v7  ;;  %v7116_v33 = vshll.u32 %v264_v10, 8 }
  0x3a   :  { %v214_v11 = vadd.s32 536870912, %v213_v8  ;;  %v363_v35 = vshrl.u32 %v362_v27, 23  ;;  %v106_v37 = vadd.s32 %v7053_v14, %v7050_v13  ;;  %vm288_vm14 = vcmp.lt.s32.totalorder %v7103_v12, 1 }
  0x3b   :  { %v116_v9 = vsub.s32 0, %v114_v3  ;;  %vm291_vm15 = vcmp.lt.s32.totalorder %v7103_v12, 4  ;;  %v275_v41 = vor.u32 %v274_v17, %v273_v15  ;;  %v278_v42 = vor.u32 %v277_v19, %v276_v18 }
  0x3c   :  { %v7110_v20 = vshrl.u32 %v214_v11, 30  ;;  %v284_v43 = vor.u32 %v283_v31, %v282_v23  ;;  %v281_v45 = vor.u32 %v280_v22, %v279_v21  ;;  %v285_v13 = vshll.u32 %v11275_v38, %v270_v60 }
  0x3d   :  { %v6514_v16 = vmin.u32 %v116_v9, %v114_v3  ;;  %v286_v14 = vshrl.u32 %v11266_v46, %v271_v7  ;;  %v136_v47 = vsub.s32 4, %v7090_v59  ;;  %vm290_vm2 = vcmp.lt.s32.totalorder %v7103_v12, 3 }
  0x3e   :  { %v216_v26 = vshll.u32 %v7110_v20, 30  ;;  %v297_v2 = vsel %vm291_vm15, %v284_v43, 920167782  ;;  %v272_v50 = vshrl.u32 %v11272_v30, %v271_v7  ;;  %vm289_vm3 = vcmp.lt.s32.totalorder %v7103_v12, 2 }
  0x3f   :  { %v118_v29 = vclz %v6514_v16  ;;  %v293_v54 = vsel %vm291_vm15, %v281_v45, 2102212464  ;;  %vm155_vm4 = vcmp.lt.s32.totalorder %v7003_v1, 0  ;;  %v287_v57 = vor.u32 %v286_v14, %v285_v13 }
  0x40   :  { %v7129_v44 = vsub.s32 %v213_v8, %v216_v26  ;;  %v296_v60 = vsel %vm288_vm14, %v275_v41, %v278_v42  ;;  %v298_v61 = vsel %vm290_vm2, %v281_v45, %v297_v2  ;;  %v137_v40 = vsel %vm52_vm13, %v136_v47, %v7090_v59 }
  0x41   :  { %v6515_v25 = vadd.s32 4294967294, %v118_v29  ;;  %v209_v6 = vadd.s32 %v7082_v55, %v7088_v58  ;;  %v292_v8 = vsel %vm288_vm14, %v272_v50, %v275_v41  ;;  %v294_v9 = vsel %vm290_vm2, %v278_v42, %v293_v54 }
  0x42   :  { %v219_v49 = vsub.s32 0, %v7129_v44  ;;  %vm7159_vm5 = vcmp.le.f32.partialorder %v153_v5, 0.7853982  ;;  %v299_v59 = vsel %vm289_vm3, %v296_v60, %v298_v61  ;;  %v300_v55 = vsel %vm288_vm14, %v278_v42, %v281_v45 }
  0x43   :  { %vm6516_vm1 = vcmp.lt.s32.totalorder %v6515_v25, 0  ;;  %v139_v58 = vsel %vm7125_vm0, 0, %v137_v40  ;;  %v239_v16 = vsub.s32 4, %v7110_v20  ;;  %v301_v17 = vsel %vm291_vm15, %v287_v57, 1326507024 }
  0x44   :  { %v121_v48 = vsel %vm6516_vm1, 0, %v6515_v25  ;;  %v6518_v56 = vmin.u32 %v219_v49, %v7129_v44  ;;  %v295_v19 = vsel %vm289_vm3, %v292_v8, %v294_v9  ;;  %v302_v21 = vsel %vm290_vm2, %v284_v43, %v301_v17 }
  0x45   :  { %v122_v51 = vsub.s32 32, %v121_v48  ;;  %v123_v52 = vshll.u32 %v114_v3, %v121_v48  ;;  %v126_v53 = vsub.s32 4294967266, %v121_v48  ;;  %v6525_v3 = vadd.s32 4294967169, %v363_v35 }
  0x46   :  { %v221_v7 = vclz %v6518_v56  ;;  %v303_v22 = vsel %vm289_vm3, %v300_v55, %v302_v21  ;;  %v7179_v23 = vmul.u32.u64.low %v7116_v33, %v299_v59  ;;  %v7180_v29 = vmul.u32.u64.high %v7116_v33, %v299_v59, %v7179_v23 }
  0x47   :  { %v124_v28 = vshrl.u32 %v106_v37, %v122_v51  ;;  %v127_v62 = vadd.s32 127, %v126_v53  ;;  %v7184_v37 = vmul.u32.u64.low %v7116_v33, %v303_v22  ;;  %v7185_v26 = vmul.u32.u64.high %v7116_v33, %v303_v22, %v7184_v37 }
  0x48   :  { %v6519_v15 = vadd.s32 4294967294, %v221_v7  ;;  %v369_v43 = vadd.s32 1, %v6525_v3  ;;  %v2639_v13 = vadd.s32 3, %v139_v58  ;;  %v240_v12 = vsel %vm155_vm4, %v239_v16, %v7110_v20 }
  0x49   :  { %v125_v10 = vor.u32 %v124_v28, %v123_v52  ;;  %v128_v27 = vshll.u32 %v127_v62, 23  ;;  %v311_v14 = vmul.u32 %v7116_v33, %v295_v19  ;;  %v314_v48 = vadd.s32 1, %v7180_v29 }
  0x4a   :  { %vm6520_vm6 = vcmp.lt.s32.totalorder %v6519_v15, 0  ;;  %vm370_vm7 = vcmp.gt.s32.totalorder %v369_v43, 0  ;;  %vm313_vm8 = vc.u32 %v7185_v26, %v7179_v23  ;;  %v242_v53 = vsel %vm7159_vm5, 0, %v240_v12 }
  0x4b   :  { %v129_v18 = vor.u32 4788187, %v128_v27  ;;  %v132_v5 = vcvt.s32.f32 %v125_v10  ;;  %v224_v35 = vsel %vm6520_vm6, 0, %v6519_v15  ;;  %v371_v50 = vsel %vm370_vm7, %v369_v43, 0 }
  0x4c   :  { %v225_v25 = vsub.s32 32, %v224_v35  ;;  %v226_v41 = vshll.u32 %v7129_v44, %v224_v35  ;;  %v229_v42 = vsub.s32 4294967266, %v224_v35  ;;  %v359_v44 = vand.u32 2147483647, %v7099_v63 }
  0x4d   :  { %v130_v31 = vand.u32 2147483647, %v129_v18  ;;  %v315_v20 = vsel %vm313_vm8, %v314_v48, %v7180_v29  ;;  %v7201_v54 = vand.u32 3, %v139_v58  ;;  %v373_v57 = vand.u32 31, %v371_v50 }
  0x4e   :  { %v227_v47 = vshrl.u32 %v209_v6, %v225_v25  ;;  %v230_v2 = vadd.s32 127, %v229_v42  ;;  %v316_v56 = vadd.s32 %v315_v20, %v311_v14  ;;  %v7206_v61 = vand.u32 3, %v2639_v13 }
  0x4f   :  { %v133_v45 = vmul.f32 %v132_v5, %v130_v31  ;;  %v2743_v40 = vadd.s32 3, %v242_v53  ;;  %v366_v6 = vand.u32 8388607, %v359_v44  ;;  %v7212_v9 = vsub.s32 32, %v373_v57 }
  0x50   :  { %v228_v51 = vor.u32 %v227_v47, %v226_v41  ;;  %v231_v52 = vshll.u32 %v230_v2, 23  ;;  %v317_v3 = vadd.s32 536870912, %v316_v56  ;;  %vm145_vm9 = vcmp.eq.s32.totalorder %v7201_v54, 0 }
  0x51   :  { %v134_v49 = vxor.u32 2147483648, %v133_v45  ;;  %vm148_vm10 = vcmp.eq.s32.totalorder %v7201_v54, 2  ;;  %vm2642_vm11 = vcmp.eq.s32.totalorder %v7206_v61, 0  ;;  %vm2645_vm12 = vcmp.eq.s32.totalorder %v7206_v61, 2 }
  0x52   :  { %v232_v28 = vor.u32 4788187, %v231_v52  ;;  %v235_v62 = vcvt.s32.f32 %v228_v51  ;;  %v7210_v8 = vshrl.u32 %v317_v3, 30  ;;  %vm2641_vm14 = vcmp.lt.s32.totalorder %v7206_v61, 2 }
  0x53   :  { %v135_v33 = vsel %vm52_vm13, %v134_v49, %v133_v45  ;;  %vm144_vm13 = vcmp.lt.s32.totalorder %v7201_v54, 2  ;;  %v7220_v10 = vand.u32 3, %v2743_v40  ;;  %v7222_v27 = vand.u32 3, %v242_v53 }
  0x54   :  { %v138_v60 = vsel %vm7125_vm0, %v7001_v0, %v135_v33  ;;  %v233_v7 = vand.u32 2147483647, %v232_v28  ;;  %v319_v59 = vshll.u32 %v7210_v8, 30  ;;  %v367_v55 = vor.u32 8388608, %v366_v6 }
  0x55   :  { %6813 = vcosq.f32 %v138_v60  ;;  %vm142_vm15 = vweird.f32 %v7001_v0  ;;  %v7226_v15 = vshrl.u32 %v371_v50, 5  ;;  %v376_v16 = vshll.u32 %v11272_v30, %v373_v57 }
  0x56   :  { %6815 = vsinq.f32 %v138_v60  ;;  %v236_v39 = vmul.f32 %v235_v62, %v233_v7  ;;  %v379_v17 = vshll.u32 %v11270_v32, %v373_v57  ;;  %v7230_v18 = vsub.s32 %v316_v56, %v319_v59 }
  0x57   :  { %v377_v5 = vshrl.u32 %v11270_v32, %v7212_v9  ;;  %v380_v19 = vshrl.u32 %v11264_v34, %v7212_v9  ;;  %v382_v21 = vshll.u32 %v11264_v34, %v373_v57  ;;  %v383_v29 = vshrl.u32 %v11268_v36, %v7212_v9 }
  0x58   :  { %v237_v58 = vxor.u32 2147483648, %v236_v39  ;;  %v385_v31 = vshll.u32 %v11268_v36, %v373_v57  ;;  %v386_v35 = vshrl.u32 %v11275_v38, %v7212_v9  ;;  %vm258_vm0 = vcmp.lt.s32.totalorder %v7007_v4, 0 }
  0x59   :  { %v312_v25 = vadd.s32 %v7179_v23, %v7185_v26  ;;  %v322_v41 = vsub.s32 0, %v7230_v18  ;;  %v7251_v42 = vshll.u32 %v367_v55, 8  ;;  %v388_v43 = vshll.u32 %v11275_v38, %v373_v57 }
  0x5a   :  { %v238_v22 = vsel %vm155_vm4, %v237_v58, %v236_v39  ;;  %v389_v45 = vshrl.u32 %v11266_v46, %v7212_v9  ;;  %vm391_vm1 = vcmp.lt.s32.totalorder %v7226_v15, 1  ;;  %v7258_v12 = vor.u32 %v377_v5, %v376_v16 }
  0x5b   :  { %v241_v37 = vsel %vm7159_vm5, %v7003_v1, %v238_v22  ;;  %v6522_v11 = vmin.u32 %v322_v41, %v7230_v18  ;;  %v7260_v14 = vor.u32 %v380_v19, %v379_v17  ;;  %v342_v47 = vsub.s32 4, %v7210_v8 }
  0x5c   :  { %6817 = vcosq.f32 %v241_v37  ;;  %v384_v2 = vor.u32 %v383_v29, %v382_v21  ;;  %v387_v48 = vor.u32 %v386_v35, %v385_v31  ;;  %vm7269_vm6 = vcmp.le.f32.partialorder %v256_v24, 0.7853982 }
  0x5d   :  { %6819 = vsinq.f32 %v241_v37  ;;  %v324_v51 = vclz %v6522_v11  ;;  %vm392_vm7 = vcmp.lt.s32.totalorder %v7226_v15, 2  ;;  %vm394_vm8 = vcmp.lt.s32.totalorder %v7226_v15, 4 }
  0x5e   :  { %vm2745_vm4 = vcmp.lt.s32.totalorder %v7220_v10, 2  ;;  %vm247_vm5 = vcmp.lt.s32.totalorder %v7222_v27, 2  ;;  %v390_v20 = vor.u32 %v389_v45, %v388_v43  ;;  %vm393_vm3 = vcmp.lt.s32.totalorder %v7226_v15, 3 }
  0x5f   :  { %v6814_v13 = vpop.eup %6813  ;;  %vm245_vm2 = vweird.f32 %v7003_v1  ;;  %v6523_v56 = vadd.s32 4294967294, %v324_v51  ;;  %v399_v57 = vsel %vm391_vm1, %v7258_v12, %v7260_v14  ;;  %v400_v62 = vsel %vm394_vm8, %v387_v48, 920167782 }
  0x60   :  { %v6816_v23 = vpop.eup %6815  ;;  %v149_v26 = vxor.u32 2147483648, %v6814_v13  ;;  %v403_v40 = vsel %vm391_vm1, %v7260_v14, %v384_v2  ;;  %v401_v54 = vsel %vm393_vm3, %v384_v2, %v400_v62  ;;  %v343_v7 = vsel %vm258_vm0, %v342_v47, %v7210_v8 }
  0x61   :  { %v146_v49 = vxor.u32 2147483648, %v6816_v23  ;;  %v402_v39 = vsel %vm392_vm7, %v399_v57, %v401_v54  ;;  %v404_v59 = vsel %vm394_vm8, %v390_v20, 1326507024  ;;  %v375_v5 = vshrl.u32 %v11272_v30, %v7212_v9  ;;  %v7371_v54 = vld [vmem:[#allocation4 + $0x4] sm:$0x1] }
  0x62   :  { %v150_v52 = vsel %vm148_vm10, %v149_v26, %v6816_v23  ;;  %v2647_v53 = vsel %vm2645_vm12, %v149_v26, %v6816_v23  ;;  %v405_v16 = vsel %vm393_vm3, %v387_v48, %v404_v59  ;;  %v396_v35 = vsel %vm394_vm8, %v384_v2, 2102212464 }
  0x63   :  { %v147_v24 = vsel %vm145_vm9, %v6814_v13, %v146_v49  ;;  %v2644_v33 = vsel %vm2642_vm11, %v6814_v13, %v146_v49  ;;  %vm6524_vm9 = vcmp.lt.s32.totalorder %v6523_v56, 0  ;;  %v406_v8 = vsel %vm392_vm7, %v403_v40, %v405_v16 }
  0x64   :  { %v151_v60 = vsel %vm144_vm13, %v147_v24, %v150_v52  ;;  %v2648_v28 = vsel %vm2641_vm14, %v2644_v33, %v2647_v53  ;;  %v327_v61 = vsel %vm6524_vm9, 0, %v6523_v56  ;;  %v345_v41 = vsel %vm7269_vm6, 0, %v343_v7 }
  0x65   :  { %v152_v3 = vsel %vm142_vm15, nan, %v151_v60  ;;  %v2649_v6 = vsel %vm142_vm15, nan, %v2648_v28  ;;  %v328_v55 = vsub.s32 32, %v327_v61  ;;  %v329_v0 = vshll.u32 %v7230_v18, %v327_v61  ;;  %v7366_v60 = vld [vmem:[%s11262_s1] sm:$0x1] }
  0x66   :  { %2522 = vst [vmem:[#allocation2] sm:$0x1] %v152_v3  ;;  %5042 = vst [vmem:[#allocation3] sm:$0x1] %v2649_v6  ;;  %v332_v58 = vsub.s32 4294967266, %v327_v61  ;;  %v6818_v17 = vpop.eup %6817  ;;  %v7321_v19 = vmul.u32.u64.low %v7251_v42, %v402_v39  ;;  %v7322_v21 = vmul.u32.u64.high %v7251_v42, %v402_v39, %v7321_v19  ;;  %vm11296_vm10 = vcmp.eq.s32.totalorder %v7220_v10, 2 }
  0x67   :  { %v6820_v22 = vpop.eup %6819  ;;  %v252_v29 = vxor.u32 2147483648, %v6818_v17  ;;  %v330_v31 = vshrl.u32 %v312_v25, %v328_v55  ;;  %v7330_v9 = vmul.u32.u64.low %v7251_v42, %v406_v8  ;;  %v7331_v43 = vmul.u32.u64.high %v7251_v42, %v406_v8, %v7330_v9 }
  0x68   :  { %v333_v18 = vadd.s32 127, %v332_v58  ;;  %v249_v37 = vxor.u32 2147483648, %v6820_v22  ;;  %vm11297_vm11 = vcmp.eq.s32.totalorder %v7222_v27, 2  ;;  %vm11298_vm12 = vcmp.eq.s32.totalorder %v7220_v10, 0 }
  0x69   :  { %v2751_v45 = vsel %vm11296_vm10, %v252_v29, %v6820_v22  ;;  %v253_v13 = vsel %vm11297_vm11, %v252_v29, %v6820_v22  ;;  %v331_v11 = vor.u32 %v330_v31, %v329_v0  ;;  %vm11299_vm13 = vcmp.eq.s32.totalorder %v7222_v27, 0 }
  0x6a   :  { %v334_v25 = vshll.u32 %v333_v18, 23  ;;  %v2748_v23 = vsel %vm11298_vm12, %v6818_v17, %v249_v37  ;;  %v250_v26 = vsel %vm11299_vm13, %v6818_v17, %v249_v37  ;;  %v395_v47 = vsel %vm391_vm1, %v375_v5, %v7258_v12 }
  0x6b   :  { %v397_v2 = vsel %vm393_vm3, %v7260_v14, %v396_v35  ;;  %v2752_v48 = vsel %vm2745_vm4, %v2748_v23, %v2751_v45  ;;  %v254_v49 = vsel %vm247_vm5, %v250_v26, %v253_v13  ;;  %v338_v52 = vcvt.s32.f32 %v331_v11 }
  0x6c   :  { %v335_v51 = vor.u32 4788187, %v334_v25  ;;  %v2753_v24 = vsel %vm245_vm2, nan, %v2752_v48  ;;  %v255_v12 = vsel %vm245_vm2, nan, %v254_v49  ;;  %v2847_v57 = vadd.s32 3, %v345_v41 }
  0x6d   :  { %v7351_v53 = vld [vmem:[#allocation2] sm:$0x1]  ;;  %v7353_v20 = vld [vmem:[#allocation3] sm:$0x1]  ;;  %5043 = vst [vmem:[#allocation3 + $0x1] sm:$0x1] %v2753_v24  ;;  %v398_v1 = vsel %vm392_vm7, %v395_v47, %v397_v2  ;;  %vm416_vm14 = vc.u32 %v7331_v43, %v7321_v19  ;;  %vm348_vm5 = vweird.f32 %v7007_v4 }
  0x6e   :  { %v5074_v14 = vmul.f32 0.8508111, %v7351_v53  ;;  %v5075_v10 = vmul.f32 0.8508111, %v7353_v20  ;;  %2523 = vst [vmem:[#allocation2 + $0x1] sm:$0x1] %v255_v12  ;;  %v414_v58 = vmul.u32 %v7251_v42, %v398_v1  ;;  %v7446_v1 = vadd.s32 %v7321_v19, %v7331_v43 }
  0x6f   :  { %v336_v27 = vand.u32 2147483647, %v335_v51  ;;  %v5076_v33 = vmul.f32 -0.5254716, %v7351_v53  ;;  %v5077_v56 = vmul.f32 -0.5254716, %v7353_v20 }
  0x70   :  { %v5079_v28 = vmul.f32 0.0, %v5075_v10  ;;  %v417_v6 = vadd.s32 1, %v7322_v21  ;;  %v5078_v7 = vmul.f32 0.0, %v5074_v14  ;;  %v7377_v59 = vand.u32 3, %v345_v41 }
  0x71   :  { %v339_v62 = vmul.f32 %v338_v52, %v336_v27  ;;  %v5086_v40 = vmul.f32 0.0, %v5076_v33  ;;  %v5088_v3 = vmul.f32 0.0, %v5077_v56  ;;  %vm5073_vm15 = vcmp.gt.s32.totalorder %v7366_v60, 0 }
  0x72   :  { %v7373_v61 = vadd.f32 %v5079_v28, %v5074_v14  ;;  %v7380_v55 = vand.u32 3, %v2847_v57  ;;  %v465_v16 = vand.u32 2139095040, %v7371_v54  ;;  %v5097_v8 = vmul.f32 0.0, %v7351_v53 }
  0x73   :  { %v340_v39 = vxor.u32 2147483648, %v339_v62  ;;  %v5092_v15 = vadd.f32 %v5088_v3, %v5076_v33  ;;  %v5087_v5 = vadd.f32 0.8508111, %v5086_v40  ;;  %v418_v22 = vsel %vm416_vm14, %v417_v6, %v7322_v21 }
  0x74   :  { %v7383_v0 = vmul.f32 1.46, %v7373_v61  ;;  %v5098_v18 = vmul.f32 0.0, %v7353_v20  ;;  %v7400_v35 = vadd.f32 %v5078_v7, %v5075_v10  ;;  %v5095_v41 = vadd.f32 %v5086_v40, %v5077_v56  ;;  %v7408_v11 = vld [vmem:[#allocation3 + $0x1] sm:$0x1] }
  0x75   :  { %v341_v17 = vsel %vm258_vm0, %v340_v39, %v339_v62  ;;  %v7394_v31 = vld [vmem:[#allocation2 + $0x1] sm:$0x1]  ;;  %v7402_v37 = vsub.f32 0.0, %v5092_v15  ;;  %v419_v50 = vadd.s32 %v418_v22, %v414_v58  ;;  %v5080_v9 = vadd.f32 %v5079_v28, %v5078_v7 }
  0x76   :  { %v344_v29 = vsel %vm7269_vm6, %v7007_v4, %v341_v17  ;;  %v5220_v42 = vsel %vm5073_vm15, %v7383_v0, 0.0  ;;  %v5110_v21 = vmul.f32 -0.36162457, %v7394_v31  ;;  %v5089_v45 = vadd.f32 %v5088_v3, %v5087_v5 }
  0x77   :  { %6821 = vcosq.f32 %v344_v29  ;;  %5222 = vst [vmem:[#allocation7 + $0x4] sm:$0x1] %v5220_v42  ;;  %v462_v13 = vand.u32 2147483647, %v7371_v54  ;;  %vm351_vm0 = vcmp.eq.s32.totalorder %v7377_v59, 0  ;;  %vm354_vm1 = vcmp.eq.s32.totalorder %v7377_v59, 2 }
  0x78   :  { %6823 = vsinq.f32 %v344_v29  ;;  %v7411_v25 = vmul.f32 1.46, %v7400_v35  ;;  %v466_v23 = vshrl.u32 %v465_v16, 23  ;;  %vm2849_vm2 = vcmp.lt.s32.totalorder %v7380_v55, 2 }
  0x79   :  { %vm2850_vm3 = vcmp.eq.s32.totalorder %v7380_v55, 0  ;;  %vm350_vm4 = vcmp.lt.s32.totalorder %v7377_v59, 2  ;;  %v7416_v26 = vsub.f32 0.0, %v5095_v41  ;;  %v7418_v47 = vsub.f32 %v5097_v8, %v5098_v18 }
  0x7a   :  { %v5134_v2 = vmul.f32 %v5110_v21, %v7402_v37  ;;  %v7423_v48 = vsub.f32 %v5097_v8, %v7353_v20  ;;  %v5223_v49 = vsel %vm5073_vm15, %v7411_v25, 0.0  ;;  %v420_v51 = vadd.s32 536870912, %v419_v50 }
  0x7b   :  { %v7428_v52 = vadd.f32 0.5254716, %v5080_v9  ;;  %vm2853_vm6 = vcmp.eq.s32.totalorder %v7380_v55, 2  ;;  %v7431_v24 = vsub.f32 0.0, %v5089_v45  ;;  %v5111_v12 = vmul.f32 -0.36162457, %v7408_v11 }
  0x7c   :  { %v5133_v14 = vmul.f32 0.9323238, %v7373_v61  ;;  %5225 = vst [vmem:[#allocation7 + $0x5] sm:$0x1] %v5223_v49  ;;  %v421_v10 = vshrl.u32 %v420_v51, 30  ;;  %v6529_v27 = vadd.s32 4294967169, %v466_v23  ;;  %v7441_v56 = vsub.f32 %v7351_v53, %v5098_v18 }
  0x7d   :  { %v7436_v20 = vmul.f32 1.46, %v7428_v52  ;;  %v469_v33 = vand.u32 8388607, %v462_v13  ;;  %v5140_v28 = vmul.f32 %v5110_v21, %v7416_v26  ;;  %v5145_v62 = vmul.f32 %v7418_v47, %v7394_v31 }
  0x7e   :  { %v5135_v57 = vadd.f32 %v5134_v2, %v5133_v14  ;;  %v5148_v40 = vmul.f32 %v7423_v48, %v7394_v31  ;;  %vm361_vm7 = vcmp.lt.s32.totalorder %v7099_v63, 0  ;;  %v422_v3 = vshll.u32 %v421_v10, 30 }
  0x7f   :  { %v5217_v53 = vsel %vm5073_vm15, %v7436_v20, 0.0  ;;  %v5136_v7 = vmul.f32 %v5111_v12, %v7423_v48  ;;  %v5146_v19 = vmul.f32 %v7431_v24, %v7408_v11  ;;  %v5149_v43 = vmul.f32 %v7402_v37, %v7408_v11 }
  0x80   :  { %v5139_v39 = vmul.f32 0.9323238, %v7400_v35  ;;  %5219 = vst [vmem:[#allocation7 + $0x3] sm:$0x1] %v5217_v53  ;;  %v5152_v16 = vmul.f32 %v7416_v26, %v7408_v11  ;;  %v7464_v17 = vsub.s32 %v419_v50, %v422_v3  ;;  %v472_v5 = vadd.s32 1, %v6529_v27 }
  0x81   :  { %v6822_v6 = vpop.eup %6821  ;;  %v5137_v22 = vadd.f32 %v5136_v7, %v5135_v57  ;;  %v5142_v18 = vmul.f32 %v5111_v12, %v7441_v56  ;;  %vm7469_vm8 = vcmp.le.f32.partialorder %v359_v44, 0.7853982  ;;  %v5128_v45 = vmul.f32 %v5110_v21, %v7431_v24 }
  0x82   :  { %v6824_v15 = vpop.eup %6823  ;;  %v355_v58 = vxor.u32 2147483648, %v6822_v6  ;;  %v5141_v29 = vadd.f32 %v5140_v28, %v5139_v39  ;;  %v425_v50 = vsub.s32 0, %v7464_v17  ;;  %v445_v44 = vsub.s32 4, %v421_v10 }
  0x83   :  { %v352_v8 = vxor.u32 2147483648, %v6824_v15  ;;  %v5127_v49 = vmul.f32 0.9323238, %v7428_v52  ;;  %vm473_vm9 = vcmp.gt.s32.totalorder %v472_v5, 0  ;;  %v470_v3 = vor.u32 8388608, %v469_v33 }
  0x84   :  { %v2855_v41 = vsel %vm2853_vm6, %v355_v58, %v6824_v15  ;;  %v356_v9 = vsel %vm354_vm1, %v355_v58, %v6824_v15  ;;  %v6526_v27 = vmin.u32 %v425_v50, %v7464_v17  ;;  %v5143_v28 = vadd.f32 %v5142_v18, %v5141_v29 }
  0x85   :  { %v2852_v23 = vsel %vm2850_vm3, %v6822_v6, %v352_v8  ;;  %v353_v2 = vsel %vm351_vm0, %v6822_v6, %v352_v8  ;;  %v7493_v53 = vsub.f32 %v5148_v40, %v5149_v43  ;;  %v5151_v55 = vmul.f32 %v7441_v56, %v7394_v31 }
  0x86   :  { %v2856_v51 = vsel %vm2849_vm2, %v2852_v23, %v2855_v41  ;;  %v357_v14 = vsel %vm350_vm4, %v353_v2, %v356_v9  ;;  %v427_v59 = vclz %v6526_v27  ;;  %v5129_v6 = vadd.f32 %v5128_v45, %v5127_v49 }
  0x87   :  { %v2857_v21 = vsel %vm348_vm5, nan, %v2856_v51  ;;  %v358_v57 = vsel %vm348_vm5, nan, %v357_v14  ;;  %v446_v7 = vsel %vm361_vm7, %v445_v44, %v421_v10  ;;  %v474_v39 = vsel %vm473_vm9, %v472_v5, 0 }
  0x88   :  { %5044 = vst [vmem:[#allocation3 + $0x2] sm:$0x1] %v2857_v21  ;;  %2524 = vst [vmem:[#allocation2 + $0x2] sm:$0x1] %v358_v57  ;;  %v7500_v15 = vmul.f32 0.9323238, %v7394_v31  ;;  %v7505_v33 = vsub.f32 %v5145_v62, %v5146_v19  ;;  %v5130_v40 = vmul.f32 %v5111_v12, %v7418_v47  ;;  %v7510_v29 = vsub.f32 %v5151_v55, %v5152_v16 }
  0x89   :  { %v7503_v4 = vmul.f32 0.9323238, %v7408_v11  ;;  %v6527_v58 = vadd.s32 4294967294, %v427_v59  ;;  %v476_v43 = vand.u32 31, %v474_v39  ;;  %v7508_v8 = vsub.f32 0.0, %v5137_v22 }
  0x8a   :  { %v7512_v18 = vsub.f32 0.0, %v5143_v28  ;;  %v7514_v10 = vshll.u32 %v470_v3, 8  ;;  %v448_v31 = vsel %vm7469_vm8, 0, %v446_v7  ;;  %v7518_v11 = vadd.f32 %v5130_v40, %v5129_v6 }
  0x8b   :  { %vm6528_vm10 = vcmp.lt.s32.totalorder %v6527_v58, 0  ;;  %v477_v62 = vsub.s32 32, %v476_v43  ;;  %v479_v5 = vshll.u32 %v11272_v30, %v476_v43  ;;  %v5117_v12 = vmul.f32 %v7500_v15, %v7402_v37 }
  0x8c   :  { %v430_v19 = vsel %vm6528_vm10, 0, %v6527_v58  ;;  %v5118_v16 = vmul.f32 %v7503_v4, %v7423_v48  ;;  %v482_v9 = vshll.u32 %v11270_v32, %v476_v43  ;;  %v485_v50 = vshll.u32 %v11264_v34, %v476_v43 }
  0x8d   :  { %v431_v22 = vsub.s32 32, %v430_v19  ;;  %v435_v41 = vsub.s32 4294967266, %v430_v19  ;;  %v432_v45 = vshll.u32 %v7464_v17, %v430_v19  ;;  %v480_v23 = vshrl.u32 %v11270_v32, %v477_v62 }
  0x8e   :  { %v483_v2 = vshrl.u32 %v11264_v34, %v477_v62  ;;  %v486_v44 = vshrl.u32 %v11268_v36, %v477_v62  ;;  %v2951_v49 = vadd.s32 3, %v448_v31  ;;  %v475_v51 = vshrl.u32 %v474_v39, 5 }
  0x8f   :  { %v488_v37 = vshll.u32 %v11268_v36, %v476_v43  ;;  %v489_v48 = vshrl.u32 %v11275_v38, %v477_v62  ;;  %v433_v14 = vshrl.u32 %v7446_v1, %v431_v22  ;;  %v436_v27 = vadd.s32 127, %v435_v41 }
  0x90   :  { %v5119_v21 = vadd.f32 %v5118_v16, %v5117_v12  ;;  %v5120_v57 = vmul.f32 -0.36162457, %v7373_v61  ;;  %v478_v17 = vshrl.u32 %v11272_v30, %v477_v62  ;;  %v481_v28 = vor.u32 %v480_v23, %v479_v5 }
  0x91   :  { %v484_v3 = vor.u32 %v483_v2, %v482_v9  ;;  %v491_v55 = vshll.u32 %v11275_v38, %v476_v43  ;;  %v434_v59 = vor.u32 %v433_v14, %v432_v45  ;;  %v437_v6 = vshll.u32 %v436_v27, 23 }
  0x92   :  { %v487_v7 = vor.u32 %v486_v44, %v485_v50  ;;  %v5122_v39 = vmul.f32 %v7500_v15, %v7416_v26  ;;  %v490_v58 = vor.u32 %v489_v48, %v488_v37  ;;  %v492_v40 = vshrl.u32 %v11266_v46, %v477_v62  ;;  %v7549_v48 = vld [vmem:[#allocation2 + $0x2] sm:$0x1] }
  0x93   :  { %vm494_vm11 = vcmp.lt.s32.totalorder %v475_v51, 1  ;;  %vm495_vm12 = vcmp.lt.s32.totalorder %v475_v51, 2  ;;  %v438_v1 = vor.u32 4788187, %v437_v6  ;;  %v441_v19 = vcvt.s32.f32 %v434_v59 }
  0x94   :  { %vm496_vm13 = vcmp.lt.s32.totalorder %v475_v51, 3  ;;  %vm497_vm14 = vcmp.lt.s32.totalorder %v475_v51, 4  ;;  %v493_v61 = vor.u32 %v492_v40, %v491_v55  ;;  %v498_v5 = vsel %vm494_vm11, %v478_v17, %v481_v28 }
  0x95   :  { %v499_v12 = vsel %vm497_vm14, %v487_v7, 2102212464  ;;  %v502_v16 = vsel %vm494_vm11, %v481_v28, %v484_v3  ;;  %v439_v43 = vand.u32 2147483647, %v438_v1  ;;  %v503_v41 = vsel %vm497_vm14, %v490_v58, 920167782 }
  0x96   :  { %v500_v22 = vsel %vm496_vm13, %v484_v3, %v499_v12  ;;  %v506_v9 = vsel %vm494_vm11, %v484_v3, %v487_v7  ;;  %v504_v26 = vsel %vm496_vm13, %v487_v7, %v503_v41  ;;  %v507_v50 = vsel %vm497_vm14, %v493_v61, 1326507024  ;;  %v7587_v61 = vld [vmem:[#allocation3 + $0x2] sm:$0x1] }
  0x97   :  { %v7542_v45 = vsub.f32 %v5119_v21, %v5120_v57  ;;  %v5123_v62 = vmul.f32 %v7503_v4, %v7441_v56  ;;  %v442_v23 = vmul.f32 %v441_v19, %v439_v43  ;;  %v501_v2 = vsel %vm495_vm12, %v498_v5, %v500_v22  ;;  %v7599_v22 = vld [vmem:[#allocation4 + $0x5] sm:$0x1] }
  0x98   :  { %v505_v44 = vsel %vm495_vm12, %v502_v16, %v504_v26  ;;  %v508_v37 = vsel %vm496_vm13, %v490_v58, %v507_v50  ;;  %v5162_v3 = vmul.f32 -0.44150585, %v7549_v48  ;;  %v7563_v55 = vand.u32 3, %v2951_v49 }
  0x99   :  { %v509_v14 = vsel %vm495_vm12, %v506_v9, %v508_v37  ;;  %v7553_v27 = vmul.u32.u64.low %v7514_v10, %v505_v44  ;;  %v7554_v17 = vmul.u32.u64.high %v7514_v10, %v505_v44, %v7553_v27  ;;  %v5156_v21 = vmul.f32 1.525, %v7542_v45 }
  0x9a   :  { %v443_v57 = vxor.u32 2147483648, %v442_v23  ;;  %v7559_v56 = vmul.u32.u64.low %v7514_v10, %v509_v14  ;;  %v7560_v28 = vmul.u32.u64.high %v7514_v10, %v509_v14, %v7559_v56  ;;  %v7565_v59 = vand.u32 3, %v448_v31 }
  0x9b   :  { %v7568_v51 = vadd.f32 %v5156_v21, %v7383_v0  ;;  %v5124_v6 = vadd.f32 %v5123_v62, %v5122_v39  ;;  %v517_v58 = vmul.u32 %v7514_v10, %v501_v2  ;;  %v5185_v40 = vmul.f32 0.89725834, %v7542_v45 }
  0x9c   :  { %v444_v7 = vsel %vm361_vm7, %v443_v57, %v442_v23  ;;  %v5186_v1 = vmul.f32 %v5162_v3, %v7508_v8  ;;  %v520_v31 = vadd.s32 1, %v7554_v17  ;;  %v5125_v39 = vmul.f32 -0.36162457, %v7400_v35 }
  0x9d   :  { %v447_v49 = vsel %vm7469_vm8, %v7099_v63, %v444_v7  ;;  %v5229_v0 = vsel %vm5073_vm15, %v7568_v51, 0.0  ;;  %vm519_vm0 = vc.u32 %v7560_v28, %v7553_v27  ;;  %v5112_v19 = vmul.f32 %v7500_v15, %v7431_v24 }
  0x9e   :  { %6825 = vcosq.f32 %v447_v49  ;;  %v5187_v10 = vadd.f32 %v5186_v1, %v5185_v40  ;;  %5231 = vst [vmem:[#allocation7 + $0x7] sm:$0x1] %v5229_v0  ;;  %v521_v42 = vsel %vm519_vm0, %v520_v31, %v7554_v17  ;;  %v7590_v5 = vsub.f32 %v5124_v6, %v5125_v39 }
  0x9f   :  { %6827 = vsinq.f32 %v447_v49  ;;  %v5192_v12 = vmul.f32 %v5162_v3, %v7512_v18  ;;  %vm2957_vm1 = vcmp.eq.s32.totalorder %v7563_v55, 2  ;;  %v7595_v35 = vsub.f32 0.0, %v7518_v11 }
  0xa0   :  { %v522_v16 = vadd.s32 %v521_v42, %v517_v58  ;;  %v5113_v43 = vmul.f32 %v7503_v4, %v7418_v47  ;;  %v7603_v24 = vmul.f32 %v7493_v53, %v7549_v48  ;;  %vm2954_vm2 = vcmp.eq.s32.totalorder %v7563_v55, 0 }
  0xa1   :  { %vm454_vm3 = vcmp.eq.s32.totalorder %v7565_v59, 0  ;;  %vm457_vm4 = vcmp.eq.s32.totalorder %v7565_v59, 2  ;;  %vm464_vm5 = vcmp.lt.s32.totalorder %v7371_v54, 0  ;;  %v5158_v15 = vmul.f32 1.525, %v7590_v5 }
  0xa2   :  { %v5191_v11 = vmul.f32 0.89725834, %v7590_v5  ;;  %vm2953_vm6 = vcmp.lt.s32.totalorder %v7563_v55, 2  ;;  %vm453_vm7 = vcmp.lt.s32.totalorder %v7565_v59, 2  ;;  %v523_v47 = vadd.s32 536870912, %v522_v16 }
  0xa3   :  { %v5163_v4 = vmul.f32 -0.44150585, %v7587_v61  ;;  %v5114_v41 = vadd.f32 %v5113_v43, %v5112_v19  ;;  %v5115_v9 = vmul.f32 -0.36162457, %v7428_v52  ;;  %vm451_vm8 = vweird.f32 %v7099_v63 }
  0xa4   :  { %v7617_v26 = vadd.f32 %v5158_v15, %v7411_v25  ;;  %v5193_v50 = vadd.f32 %v5192_v12, %v5191_v11  ;;  %v565_v62 = vand.u32 2147483647, %v7599_v22  ;;  %v568_v23 = vand.u32 2139095040, %v7599_v22 }
  0xa5   :  { %v5201_v2 = vmul.f32 %v7508_v8, %v7587_v61  ;;  %vm7625_vm9 = vcmp.le.f32.partialorder %v462_v13, 0.7853982  ;;  %v524_v52 = vshrl.u32 %v523_v47, 30  ;;  %v7629_v37 = vsub.f32 %v5114_v41, %v5115_v9 }
  0xa6   :  { %v5180_v25 = vmul.f32 %v5162_v3, %v7595_v35  ;;  %v5203_v14 = vmul.f32 %v7510_v29, %v7549_v48  ;;  %v5204_v17 = vmul.f32 %v7512_v18, %v7587_v61  ;;  %v5232_v21 = vsel %vm5073_vm15, %v7617_v26, 0.0 }
  0xa7   :  { %v569_v57 = vshrl.u32 %v568_v23, 23  ;;  %v525_v13 = vshll.u32 %v524_v52, 30  ;;  %v548_v56 = vsub.s32 4, %v524_v52  ;;  %5234 = vst [vmem:[#allocation7 + $0x8] sm:$0x1] %v5232_v21  ;;  %v7643_v3 = vmul.f32 %v7505_v33, %v7549_v48 }
  0xa8   :  { %v5154_v6 = vmul.f32 1.525, %v7629_v37  ;;  %v5179_v7 = vmul.f32 0.89725834, %v7629_v37  ;;  %v5188_v58 = vmul.f32 %v5163_v4, %v7493_v53  ;;  %v5194_v40 = vmul.f32 %v5163_v4, %v7510_v29  ;;  %v6826_v49 = vpop.eup %6825 }
  0xa9   :  { %v572_v1 = vand.u32 8388607, %v565_v62  ;;  %v7649_v31 = vsub.s32 %v522_v16, %v525_v13  ;;  %v6533_v19 = vadd.s32 4294967169, %v569_v57  ;;  %v6828_v42 = vpop.eup %6827  ;;  %v458_v12 = vxor.u32 2147483648, %v6826_v49 }
  0xaa   :  { %v7652_v0 = vadd.f32 %v5154_v6, %v7436_v20  ;;  %v5181_v39 = vadd.f32 %v5180_v25, %v5179_v7  ;;  %v7656_v43 = vmul.f32 %v7595_v35, %v7587_v61  ;;  %v5189_v15 = vadd.f32 %v5188_v58, %v5187_v10 }
  0xab   :  { %v5182_v11 = vmul.f32 %v5163_v4, %v7505_v33  ;;  %v455_v47 = vxor.u32 2147483648, %v6828_v42  ;;  %v528_v41 = vsub.s32 0, %v7649_v31  ;;  %v549_v16 = vsel %vm464_vm5, %v548_v56, %v524_v52 }
  0xac   :  { %v5195_v9 = vadd.f32 %v5194_v40, %v5193_v50  ;;  %v2959_v20 = vsel %vm2957_vm1, %v458_v12, %v6828_v42  ;;  %v459_v23 = vsel %vm457_vm4, %v458_v12, %v6828_v42  ;;  %v5226_v25 = vsel %vm5073_vm15, %v7652_v0, 0.0 }
  0xad   :  { %v573_v10 = vor.u32 8388608, %v572_v1  ;;  %v2956_v4 = vsel %vm2954_vm2, %v6826_v49, %v455_v47  ;;  %v456_v21 = vsel %vm454_vm3, %v6826_v49, %v455_v47  ;;  %v6530_v52 = vmin.u32 %v528_v41, %v7649_v31  ;;  %5228 = vst [vmem:[#allocation7 + $0x6] sm:$0x1] %v5226_v25 }
  0xae   :  { %v575_v50 = vadd.s32 1, %v6533_v19  ;;  %v2960_v57 = vsel %vm2953_vm6, %v2956_v4, %v2959_v20  ;;  %v460_v13 = vsel %vm453_vm7, %v456_v21, %v459_v23  ;;  %v551_v56 = vsel %vm7625_vm9, 0, %v549_v16 }
  0xaf   :  { %v7681_v6 = vmul.f32 0.89725834, %v7549_v48  ;;  %v2961_v7 = vsel %vm451_vm8, nan, %v2960_v57  ;;  %v461_v58 = vsel %vm451_vm8, nan, %v460_v13  ;;  %v530_v40 = vclz %v6530_v52 }
  0xb0   :  { %v5183_v1 = vadd.f32 %v5182_v11, %v5181_v39  ;;  %v7688_v55 = vsub.f32 %v7603_v24, %v5201_v2  ;;  %v7690_v49 = vsub.f32 %v5203_v14, %v5204_v17  ;;  %5045 = vst [vmem:[#allocation3 + $0x3] sm:$0x1] %v2961_v7  ;;  %2525 = vst [vmem:[#allocation2 + $0x3] sm:$0x1] %v461_v58  ;;  %v7694_v48 = vsub.f32 0.0, %v5189_v15 }
  0xb1   :  { %v518_v59 = vadd.s32 %v7553_v27, %v7560_v28  ;;  %v6531_v19 = vadd.s32 4294967294, %v530_v40  ;;  %v7696_v42 = vsub.f32 0.0, %v5195_v9  ;;  %vm576_vm15 = vcmp.gt.s32.totalorder %v575_v50, 0 }
  0xb2   :  { %v7698_v63 = vshll.u32 %v573_v10, 8  ;;  %v7700_v12 = vadd.s32 3, %v551_v56  ;;  %v7702_v39 = vand.u32 3, %v551_v56  ;;  %v577_v24 = vsel %vm576_vm15, %v575_v50, 0 }
  0xb3   :  { %v7705_v2 = vmul.f32 0.89725834, %v7587_v61  ;;  %vm6532_vm10 = vcmp.lt.s32.totalorder %v6531_v19, 0  ;;  %v7707_v14 = vsub.f32 0.0, %v5183_v1  ;;  %v579_v27 = vand.u32 31, %v577_v24 }
  0xb4   :  { %v5169_v28 = vmul.f32 %v7681_v6, %v7508_v8  ;;  %v533_v17 = vsel %vm6532_vm10, 0, %v6531_v19  ;;  %v578_v15 = vshrl.u32 %v577_v24, 5  ;;  %v5172_v11 = vmul.f32 -0.44150585, %v7542_v45 }
  0xb5   :  { %v5174_v47 = vmul.f32 %v7681_v6, %v7512_v18  ;;  %v534_v41 = vsub.s32 32, %v533_v17  ;;  %v535_v16 = vshll.u32 %v7649_v31, %v533_v17  ;;  %v538_v9 = vsub.s32 4294967266, %v533_v17 }
  0xb6   :  { %v580_v61 = vsub.s32 32, %v579_v27  ;;  %v582_v20 = vshll.u32 %v11272_v30, %v579_v27  ;;  %v585_v23 = vshll.u32 %v11270_v32, %v579_v27  ;;  %v5170_v25 = vmul.f32 %v7705_v2, %v7493_v53 }
  0xb7   :  { %v5175_v8 = vmul.f32 %v7705_v2, %v7510_v29  ;;  %v536_v10 = vshrl.u32 %v518_v59, %v534_v41  ;;  %v539_v45 = vadd.s32 127, %v538_v9  ;;  %v588_v18 = vshll.u32 %v11264_v34, %v579_v27 }
  0xb8   :  { %v583_v4 = vshrl.u32 %v11270_v32, %v580_v61  ;;  %v581_v31 = vshrl.u32 %v11272_v30, %v580_v61  ;;  %v586_v21 = vshrl.u32 %v11264_v34, %v580_v61  ;;  %v591_v52 = vshll.u32 %v11268_v36, %v579_v27 }
  0xb9   :  { %v5177_v50 = vmul.f32 -0.44150585, %v7590_v5  ;;  %v537_v57 = vor.u32 %v536_v10, %v535_v16  ;;  %v540_v13 = vshll.u32 %v539_v45, 23  ;;  %v589_v56 = vshrl.u32 %v11268_v36, %v580_v61 }
  0xba   :  { %v584_v53 = vor.u32 %v583_v4, %v582_v20  ;;  %v587_v29 = vor.u32 %v586_v21, %v585_v23  ;;  %v592_v7 = vshrl.u32 %v11275_v38, %v580_v61  ;;  %v594_v58 = vshll.u32 %v11275_v38, %v579_v27 }
  0xbb   :  { %v595_v40 = vshrl.u32 %v11266_v46, %v580_v61  ;;  %v541_v1 = vor.u32 4788187, %v540_v13  ;;  %v544_v59 = vcvt.s32.f32 %v537_v57  ;;  %v590_v19 = vor.u32 %v589_v56, %v588_v18  ;;  %v7732_v18 = vld [vmem:[#allocation3 + $0x3] sm:$0x1] }
  0xbc   :  { %vm597_vm11 = vcmp.lt.s32.totalorder %v578_v15, 1  ;;  %v593_v24 = vor.u32 %v592_v7, %v591_v52  ;;  %vm598_vm12 = vcmp.lt.s32.totalorder %v578_v15, 2  ;;  %vm599_vm13 = vcmp.lt.s32.totalorder %v578_v15, 3  ;;  %v7741_v7 = vld [vmem:[#allocation2 + $0x3] sm:$0x1] }
  0xbd   :  { %v596_v17 = vor.u32 %v595_v40, %v594_v58  ;;  %v542_v5 = vand.u32 2147483647, %v541_v1  ;;  %vm600_vm14 = vcmp.lt.s32.totalorder %v578_v15, 4  ;;  %v601_v41 = vsel %vm597_vm11, %v581_v31, %v584_v53 }
  0xbe   :  { %v605_v16 = vsel %vm597_vm11, %v584_v53, %v587_v29  ;;  %vm5243_vm0 = vcmp.gt.s32.totalorder %v7366_v60, 1  ;;  %v602_v9 = vsel %vm600_vm14, %v590_v19, 2102212464  ;;  %v606_v20 = vsel %vm600_vm14, %v593_v24, 920167782 }
  0xbf   :  { %v609_v23 = vsel %vm597_vm11, %v587_v29, %v590_v19  ;;  %v610_v27 = vsel %vm600_vm14, %v596_v17, 1326507024  ;;  %v545_v10 = vmul.f32 %v544_v59, %v542_v5  ;;  %v603_v61 = vsel %vm599_vm13, %v587_v29, %v602_v9 }
  0xc0   :  { %v607_v45 = vsel %vm599_vm13, %v590_v19, %v606_v20  ;;  %v611_v4 = vsel %vm599_vm13, %v593_v24, %v610_v27  ;;  %v604_v21 = vsel %vm598_vm12, %v601_v41, %v603_v61  ;;  %v5171_v31 = vadd.f32 %v5170_v25, %v5169_v28 }
  0xc1   :  { %v608_v52 = vsel %vm598_vm12, %v605_v16, %v607_v45  ;;  %v612_v57 = vsel %vm598_vm12, %v609_v23, %v611_v4  ;;  %v546_v13 = vxor.u32 2147483648, %v545_v10  ;;  %v5164_v29 = vmul.f32 %v7681_v6, %v7595_v35  ;;  %v7794_v45 = vld [vmem:[#allocation4 + $0x6] sm:$0x1] }
  0xc2   :  { %v7738_v53 = vmul.u32.u64.low %v7698_v63, %v612_v57  ;;  %v7739_v56 = vmul.u32.u64.high %v7698_v63, %v612_v57, %v7738_v53  ;;  %v7746_v58 = vmul.u32.u64.low %v7698_v63, %v608_v52  ;;  %v7747_v40 = vmul.u32.u64.high %v7698_v63, %v608_v52, %v7746_v58 }
  0xc3   :  { %v7750_v1 = vsub.f32 %v5171_v31, %v5172_v11  ;;  %v5246_v15 = vmul.f32 -0.5254716, %v7741_v7  ;;  %v547_v28 = vsel %vm464_vm5, %v546_v13, %v545_v10  ;;  %v620_v25 = vmul.u32 %v7698_v63, %v604_v21 }
  0xc4   :  { %v5247_v59 = vmul.f32 -0.5254716, %v7732_v18  ;;  %v5176_v19 = vadd.f32 %v5175_v8, %v5174_v47  ;;  %v550_v35 = vsel %vm7625_vm9, %v7371_v54, %v547_v28  ;;  %vm622_vm1 = vc.u32 %v7739_v56, %v7746_v58 }
  0xc5   :  { %v5208_v6 = vmul.f32 1.33, %v7750_v1  ;;  %v5269_v24 = vmul.f32 0.8508111, %v7750_v1  ;;  %v5270_v11 = vmul.f32 %v5246_v15, %v7694_v48  ;;  %6829 = vcosq.f32 %v550_v35 }
  0xc6   :  { %v5272_v17 = vmul.f32 %v5247_v59, %v7688_v55  ;;  %v5165_v63 = vmul.f32 %v7705_v2, %v7505_v33  ;;  %6831 = vsinq.f32 %v550_v35  ;;  %v623_v47 = vadd.s32 1, %v7747_v40 }
  0xc7   :  { %v7770_v44 = vadd.f32 %v5208_v6, %v7568_v51  ;;  %v5271_v8 = vadd.f32 %v5270_v11, %v5269_v24  ;;  %v3056_v5 = vand.u32 3, %v7700_v12  ;;  %v7773_v41 = vsub.f32 %v5176_v19, %v5177_v50 }
  0xc8   :  { %v5276_v16 = vmul.f32 %v5246_v15, %v7696_v42  ;;  %v5166_v9 = vadd.f32 %v5165_v63, %v5164_v29  ;;  %v624_v20 = vsel %vm622_vm1, %v623_v47, %v7747_v40  ;;  %v5167_v2 = vmul.f32 -0.44150585, %v7629_v37 }
  0xc9   :  { %v7777_v23 = vadd.f32 %v5272_v17, %v5271_v8  ;;  %v5403_v33 = vsel %vm5243_vm0, %v7770_v44, 0.0  ;;  %v625_v51 = vadd.s32 %v624_v20, %v620_v25  ;;  %v5210_v27 = vmul.f32 1.33, %v7773_v41 }
  0xca   :  { %5405 = vst [vmem:[#allocation7 + $0xa] sm:$0x1] %v5403_v33  ;;  %v5275_v12 = vmul.f32 0.8508111, %v7773_v41  ;;  %v7787_v50 = vsub.f32 %v7643_v3, %v7656_v43  ;;  %vm554_vm2 = vweird.f32 %v7371_v54  ;;  %vm556_vm3 = vcmp.lt.s32.totalorder %v7702_v39, 2 }
  0xcb   :  { %v7791_v10 = vsub.f32 %v5166_v9, %v5167_v2  ;;  %v5264_v61 = vmul.f32 %v5246_v15, %v7707_v14  ;;  %v626_v37 = vadd.s32 536870912, %v625_v51  ;;  %v7797_v4 = vadd.f32 %v5210_v27, %v7617_v26 }
  0xcc   :  { %v5277_v21 = vadd.f32 %v5276_v16, %v5275_v12  ;;  %v5278_v52 = vmul.f32 %v5247_v59, %v7690_v49  ;;  %vm3061_vm4 = vcmp.eq.s32.totalorder %v3056_v5, 2  ;;  %vm557_vm5 = vcmp.eq.s32.totalorder %v7702_v39, 0 }
  0xcd   :  { %v5206_v3 = vmul.f32 1.33, %v7791_v10  ;;  %v5263_v43 = vmul.f32 0.8508111, %v7791_v10  ;;  %v627_v57 = vshrl.u32 %v626_v37, 30  ;;  %v5406_v13 = vsel %vm5243_vm0, %v7797_v4, 0.0 }
  0xce   :  { %v5279_v31 = vadd.f32 %v5278_v52, %v5277_v21  ;;  %v671_v53 = vand.u32 2139095040, %v7794_v45  ;;  %5408 = vst [vmem:[#allocation7 + $0xb] sm:$0x1] %v5406_v13  ;;  %v5266_v40 = vmul.f32 %v5247_v59, %v7787_v50  ;;  %v668_v15 = vand.u32 2147483647, %v7794_v45 }
  0xcf   :  { %v7808_v26 = vadd.f32 %v5206_v3, %v7652_v0  ;;  %v5265_v29 = vadd.f32 %v5264_v61, %v5263_v43  ;;  %v6830_v28 = vpop.eup %6829  ;;  %vm560_vm6 = vcmp.eq.s32.totalorder %v7702_v39, 2  ;;  %v628_v25 = vshll.u32 %v627_v57, 30 }
  0xd0   :  { %v651_v19 = vsub.s32 4, %v627_v57  ;;  %v672_v35 = vshrl.u32 %v671_v53, 23  ;;  %v6832_v6 = vpop.eup %6831  ;;  %v561_v24 = vxor.u32 2147483648, %v6830_v28  ;;  %vm3058_vm7 = vcmp.eq.s32.totalorder %v3056_v5, 0 }
  0xd1   :  { %v7813_v11 = vadd.f32 %v5266_v40, %v5265_v29  ;;  %v5400_v0 = vsel %vm5243_vm0, %v7808_v26, 0.0  ;;  %v558_v17 = vxor.u32 2147483648, %v6832_v6  ;;  %vm3057_vm8 = vcmp.lt.s32.totalorder %v3056_v5, 2 }
  0xd2   :  { %v7818_v59 = vsub.s32 %v625_v51, %v628_v25  ;;  %5402 = vst [vmem:[#allocation7 + $0x9] sm:$0x1] %v5400_v0  ;;  %v6537_v63 = vadd.s32 4294967169, %v672_v35  ;;  %v3063_v47 = vsel %vm3061_vm4, %v561_v24, %v6832_v6  ;;  %v562_v8 = vsel %vm560_vm6, %v561_v24, %v6832_v6 }
  0xd3   :  { %vm567_vm9 = vcmp.lt.s32.totalorder %v7599_v22, 0  ;;  %v675_v16 = vand.u32 8388607, %v668_v15  ;;  %v3060_v9 = vsel %vm3058_vm7, %v6830_v28, %v558_v17  ;;  %v559_v20 = vsel %vm557_vm5, %v6830_v28, %v558_v17 }
  0xd4   :  { %v631_v33 = vsub.s32 0, %v7818_v59  ;;  %v652_v2 = vsel %vm567_vm9, %v651_v19, %v627_v57  ;;  %v3064_v51 = vsel %vm3057_vm8, %v3060_v9, %v3063_v47  ;;  %v563_v5 = vsel %vm556_vm3, %v559_v20, %v562_v8 }
  0xd5   :  { %v678_v27 = vadd.s32 1, %v6537_v63  ;;  %v3065_v12 = vsel %vm554_vm2, nan, %v3064_v51  ;;  %v564_v61 = vsel %vm554_vm2, nan, %v563_v5  ;;  %vm7837_vm15 = vcmp.le.f32.partialorder %v565_v62, 0.7853982 }
  0xd6   :  { %v6534_v21 = vmin.u32 %v631_v33, %v7818_v59  ;;  %5046 = vst [vmem:[#allocation3 + $0x4] sm:$0x1] %v3065_v12  ;;  %2526 = vst [vmem:[#allocation2 + $0x4] sm:$0x1] %v564_v61  ;;  %v7844_v39 = vsel %vm7837_vm15, 0, %v652_v2  ;;  %v676_v52 = vor.u32 8388608, %v675_v16  ;;  %v7851_v54 = vmul.f32 %v7732_v18, %v7694_v48 }
  0xd7   :  { %vm679_vm10 = vcmp.gt.s32.totalorder %v678_v27, 0  ;;  %v7847_v3 = vmul.f32 0.8508111, %v7741_v7  ;;  %v7855_v62 = vmul.f32 %v7732_v18, %v7696_v42  ;;  %v7859_v43 = vmul.f32 %v7732_v18, %v7707_v14 }
  0xd8   :  { %v633_v57 = vclz %v6534_v21  ;;  %v621_v13 = vadd.s32 %v7746_v58, %v7739_v56  ;;  %v7864_v53 = vsub.f32 0.0, %v7777_v23  ;;  %v680_v29 = vsel %vm679_vm10, %v678_v27, 0 }
  0xd9   :  { %v7867_v40 = vmul.f32 0.8508111, %v7732_v18  ;;  %v7870_v25 = vadd.s32 3, %v7844_v39  ;;  %v7872_v19 = vsub.f32 0.0, %v5279_v31  ;;  %v682_v35 = vand.u32 31, %v680_v29 }
  0xda   :  { %v6535_v28 = vadd.s32 4294967294, %v633_v57  ;;  %v681_v6 = vshrl.u32 %v680_v29, 5  ;;  %v7874_v24 = vshll.u32 %v676_v52, 8  ;;  %v5253_v56 = vmul.f32 %v7847_v3, %v7694_v48 }
  0xdb   :  { %v5256_v58 = vmul.f32 -0.5254716, %v7750_v1  ;;  %v683_v23 = vsub.s32 32, %v682_v35  ;;  %v5254_v18 = vmul.f32 %v7867_v40, %v7688_v55  ;;  %v5284_v0 = vmul.f32 %v7741_v7, %v7688_v55 }
  0xdc   :  { %vm6536_vm11 = vcmp.lt.s32.totalorder %v6535_v28, 0  ;;  %v685_v31 = vshll.u32 %v11272_v30, %v682_v35  ;;  %v688_v63 = vshll.u32 %v11270_v32, %v682_v35  ;;  %v5258_v47 = vmul.f32 %v7847_v3, %v7696_v42 }
  0xdd   :  { %v636_v17 = vsel %vm6536_vm11, 0, %v6535_v28  ;;  %v691_v16 = vshll.u32 %v11264_v34, %v682_v35  ;;  %v684_v9 = vshrl.u32 %v11272_v30, %v683_v23  ;;  %v686_v20 = vshrl.u32 %v11270_v32, %v683_v23 }
  0xde   :  { %v637_v8 = vsub.s32 32, %v636_v17  ;;  %v638_v48 = vshll.u32 %v7818_v59, %v636_v17  ;;  %v641_v1 = vsub.s32 4294967266, %v636_v17  ;;  %v694_v55 = vshll.u32 %v11268_v36, %v682_v35 }
  0xdf   :  { %v697_v33 = vshll.u32 %v11275_v38, %v682_v35  ;;  %v689_v5 = vshrl.u32 %v11264_v34, %v683_v23  ;;  %v692_v42 = vshrl.u32 %v11268_v36, %v683_v23  ;;  %v687_v27 = vor.u32 %v686_v20, %v685_v31 }
  0xe0   :  { %v639_v2 = vshrl.u32 %v621_v13, %v637_v8  ;;  %v642_v51 = vadd.s32 127, %v641_v1  ;;  %v695_v59 = vshrl.u32 %v11275_v38, %v683_v23  ;;  %v698_v12 = vshrl.u32 %v11266_v46, %v683_v23 }
  0xe1   :  { %vm700_vm12 = vcmp.lt.s32.totalorder %v681_v6, 1  ;;  %v690_v52 = vor.u32 %v689_v5, %v688_v63  ;;  %v693_v57 = vor.u32 %v692_v42, %v691_v16  ;;  %vm701_vm13 = vcmp.lt.s32.totalorder %v681_v6, 2 }
  0xe2   :  { %v640_v61 = vor.u32 %v639_v2, %v638_v48  ;;  %v643_v21 = vshll.u32 %v642_v51, 23  ;;  %v696_v29 = vor.u32 %v695_v59, %v694_v55  ;;  %v699_v28 = vor.u32 %v698_v12, %v697_v33  ;;  %v7902_v55 = vld [vmem:[#allocation3 + $0x4] sm:$0x1] }
  0xe3   :  { %vm702_vm14 = vcmp.lt.s32.totalorder %v681_v6, 3  ;;  %vm703_vm1 = vcmp.lt.s32.totalorder %v681_v6, 4  ;;  %v704_v17 = vsel %vm700_vm12, %v684_v9, %v687_v27  ;;  %v708_v31 = vsel %vm700_vm12, %v687_v27, %v690_v52 }
  0xe4   :  { %v644_v13 = vor.u32 4788187, %v643_v21  ;;  %v647_v35 = vcvt.s32.f32 %v640_v61  ;;  %v705_v8 = vsel %vm703_vm1, %v693_v57, 2102212464  ;;  %v709_v1 = vsel %vm703_vm1, %v696_v29, 920167782 }
  0xe5   :  { %v712_v23 = vsel %vm700_vm12, %v690_v52, %v693_v57  ;;  %v706_v48 = vsel %vm702_vm14, %v690_v52, %v705_v8  ;;  %v710_v63 = vsel %vm702_vm14, %v693_v57, %v709_v1  ;;  %v713_v16 = vsel %vm703_vm1, %v699_v28, 1326507024  ;;  %v7917_v21 = vld [vmem:[#allocation2 + $0x4] sm:$0x1] }
  0xe6   :  { %v645_v20 = vand.u32 2147483647, %v644_v13  ;;  %v707_v33 = vsel %vm701_vm13, %v704_v17, %v706_v48  ;;  %v711_v2 = vsel %vm701_vm13, %v708_v31, %v710_v63  ;;  %v714_v9 = vsel %vm702_vm14, %v696_v29, %v713_v16 }
  0xe7   :  { %v5255_v51 = vadd.f32 %v5254_v18, %v5253_v56  ;;  %v715_v42 = vsel %vm701_vm13, %v712_v23, %v714_v9  ;;  %v7909_v27 = vmul.u32.u64.low %v7874_v24, %v711_v2  ;;  %v7910_v59 = vmul.u32.u64.high %v7874_v24, %v711_v2, %v7909_v27 }
  0xe8   :  { %v648_v5 = vmul.f32 %v647_v35, %v645_v20  ;;  %v7914_v12 = vmul.u32.u64.low %v7874_v24, %v715_v42  ;;  %v7915_v61 = vmul.u32.u64.high %v7874_v24, %v715_v42, %v7914_v12  ;;  %v5259_v57 = vmul.f32 %v7867_v40, %v7690_v49 }
  0xe9   :  { %v7919_v52 = vsub.f32 %v5255_v51, %v5256_v58  ;;  %v7924_v6 = vsub.f32 %v5284_v0, %v7851_v54  ;;  %v5298_v18 = vmul.f32 -0.36162457, %v7917_v21  ;;  %v7928_v29 = vmul.f32 -0.36162457, %v7902_v55 }
  0xea   :  { %v649_v56 = vxor.u32 2147483648, %v648_v5  ;;  %v723_v28 = vmul.u32 %v7874_v24, %v707_v33  ;;  %v5260_v58 = vadd.f32 %v5259_v57, %v5258_v47  ;;  %v726_v8 = vadd.s32 1, %v7910_v59 }
  0xeb   :  { %v5292_v13 = vmul.f32 1.46, %v7919_v52  ;;  %v5321_v35 = vmul.f32 0.9323238, %v7919_v52  ;;  %v5322_v54 = vmul.f32 %v5298_v18, %v7864_v53  ;;  %v5261_v0 = vmul.f32 -0.5254716, %v7773_v41 }
  0xec   :  { %v650_v17 = vsel %vm567_vm9, %v649_v56, %v648_v5  ;;  %vm725_vm2 = vc.u32 %v7915_v61, %v7909_v27  ;;  %v5324_v47 = vmul.f32 %v7928_v29, %v7924_v6  ;;  %v5287_v48 = vmul.f32 %v7741_v7, %v7690_v49 }
  0xed   :  { %v653_v31 = vsel %vm7837_vm15, %v7599_v22, %v650_v17  ;;  %v7944_v24 = vadd.f32 %v5292_v13, %v7770_v44  ;;  %v727_v1 = vsel %vm725_vm2, %v726_v8, %v7910_v59  ;;  %v5323_v23 = vadd.f32 %v5322_v54, %v5321_v35 }
  0xee   :  { %6833 = vcosq.f32 %v653_v31  ;;  %v7949_v20 = vsub.f32 %v5260_v58, %v5261_v0  ;;  %v728_v41 = vadd.s32 %v727_v1, %v723_v28  ;;  %vm670_vm3 = vcmp.lt.s32.totalorder %v7794_v45, 0 }
  0xef   :  { %6835 = vsinq.f32 %v653_v31  ;;  %v5412_v37 = vsel %vm5243_vm0, %v7944_v24, 0.0  ;;  %v7957_v44 = vadd.f32 %v5324_v47, %v5323_v23  ;;  %v5328_v33 = vmul.f32 %v5298_v18, %v7872_v19 }
  0xf0   :  { %5414 = vst [vmem:[#allocation7 + $0xd] sm:$0x1] %v5412_v37  ;;  %v5294_v63 = vmul.f32 1.46, %v7949_v20  ;;  %v5327_v16 = vmul.f32 0.9323238, %v7949_v20  ;;  %v7963_v9 = vsub.f32 %v5287_v48, %v7855_v62  ;;  %v5248_v51 = vmul.f32 %v7847_v3, %v7707_v14 }
  0xf1   :  { %v729_v2 = vadd.s32 536870912, %v728_v41  ;;  %v5249_v49 = vmul.f32 %v7867_v40, %v7787_v50  ;;  %v658_v5 = vand.u32 3, %v7844_v39  ;;  %v7971_v42 = vsub.f32 0.0, %v7813_v11  ;;  %v7980_v3 = vld [vmem:[#allocation4 + $0x7] sm:$0x1] }
  0xf2   :  { %v7974_v59 = vadd.f32 %v5294_v63, %v7797_v4  ;;  %v5329_v12 = vadd.f32 %v5328_v33, %v5327_v16  ;;  %vm657_vm4 = vweird.f32 %v7599_v22  ;;  %v5330_v62 = vmul.f32 %v7928_v29, %v7963_v9 }
  0xf3   :  { %v730_v57 = vshrl.u32 %v729_v2, 30  ;;  %v5250_v56 = vadd.f32 %v5249_v49, %v5248_v51  ;;  %v5251_v14 = vmul.f32 -0.5254716, %v7791_v10  ;;  %v3160_v39 = vand.u32 3, %v7870_v25 }
  0xf4   :  { %vm7985_vm5 = vcmp.le.f32.partialorder %v668_v15, 0.7853982  ;;  %v5415_v4 = vsel %vm5243_vm0, %v7974_v59, 0.0  ;;  %v5281_v40 = vmul.f32 %v7741_v7, %v7787_v50  ;;  %v5331_v10 = vadd.f32 %v5330_v62, %v5329_v12 }
  0xf5   :  { %v731_v28 = vshll.u32 %v730_v57, 30  ;;  %v754_v13 = vsub.s32 4, %v730_v57  ;;  %5417 = vst [vmem:[#allocation7 + $0xe] sm:$0x1] %v5415_v4  ;;  %v7994_v35 = vsub.f32 %v5250_v56, %v5251_v14  ;;  %vm659_vm6 = vcmp.lt.s32.totalorder %v658_v5, 2 }
  0xf6   :  { %v7997_v25 = vsub.f32 %v5281_v40, %v7859_v43  ;;  %v5316_v15 = vmul.f32 %v5298_v18, %v7971_v42  ;;  %v774_v58 = vand.u32 2139095040, %v7980_v3  ;;  %vm660_vm7 = vcmp.eq.s32.totalorder %v658_v5, 0 }
  0xf7   :  { %v8001_v17 = vsub.s32 %v728_v41, %v731_v28  ;;  %v5290_v8 = vmul.f32 1.46, %v7994_v35  ;;  %v771_v7 = vand.u32 2147483647, %v7980_v3  ;;  %vm3165_vm8 = vcmp.eq.s32.totalorder %v3160_v39, 2 }
  0xf8   :  { %v6834_v50 = vpop.eup %6833  ;;  %vm663_vm9 = vcmp.eq.s32.totalorder %v658_v5, 2  ;;  %v5315_v54 = vmul.f32 0.9323238, %v7994_v35  ;;  %v775_v0 = vshrl.u32 %v774_v58, 23  ;;  %vm3162_vm15 = vcmp.eq.s32.totalorder %v3160_v39, 0 }
  0xf9   :  { %v6836_v31 = vpop.eup %6835  ;;  %v664_v43 = vxor.u32 2147483648, %v6834_v50  ;;  %v734_v18 = vsub.s32 0, %v8001_v17  ;;  %v755_v47 = vsel %vm670_vm3, %v754_v13, %v730_v57  ;;  %vm3161_vm10 = vcmp.lt.s32.totalorder %v3160_v39, 2 }
  0xfa   :  { %v661_v1 = vxor.u32 2147483648, %v6836_v31  ;;  %v8010_v23 = vadd.f32 %v5290_v8, %v7808_v26  ;;  %v5317_v41 = vadd.f32 %v5316_v15, %v5315_v54  ;;  %v778_v16 = vand.u32 8388607, %v771_v7 }
  0xfb   :  { %v3167_v37 = vsel %vm3165_vm8, %v664_v43, %v6836_v31  ;;  %v665_v48 = vsel %vm663_vm9, %v664_v43, %v6836_v31  ;;  %v6538_v63 = vmin.u32 %v734_v18, %v8001_v17  ;;  %v757_v51 = vsel %vm7985_vm5, 0, %v755_v47 }
  0xfc   :  { %v3164_v33 = vsel %vm3162_vm15, %v6834_v50, %v661_v1  ;;  %v662_v2 = vsel %vm660_vm7, %v6834_v50, %v661_v1  ;;  %v6541_v49 = vadd.s32 4294967169, %v775_v0  ;;  %v5318_v62 = vmul.f32 %v7928_v29, %v7997_v25 }
  0xfd   :  { %v3168_v12 = vsel %vm3161_vm10, %v3164_v33, %v3167_v37  ;;  %v666_v57 = vsel %vm659_vm6, %v662_v2, %v665_v48  ;;  %v736_v26 = vclz %v6538_v63  ;;  %v8025_v14 = vmul.f32 %v7864_v53, %v7902_v55 }
  0xfe   :  { %v3169_v56 = vsel %vm657_vm4, nan, %v3168_v12  ;;  %v8029_v39 = vmul.f32 %v7872_v19, %v7902_v55  ;;  %v667_v4 = vsel %vm657_vm4, nan, %v666_v57  ;;  %v8035_v5 = vmul.f32 %v7971_v42, %v7902_v55 }
  0xff   :  { %5047 = vst [vmem:[#allocation3 + $0x5] sm:$0x1] %v3169_v56  ;;  %2527 = vst [vmem:[#allocation2 + $0x5] sm:$0x1] %v667_v4  ;;  %v6539_v29 = vadd.s32 4294967294, %v736_v26  ;;  %v8037_v40 = vadd.f32 %v5318_v62, %v5317_v41  ;;  %v5409_v28 = vsel %vm5243_vm0, %v8010_v23, 0.0  ;;  %v724_v13 = vadd.s32 %v7909_v27, %v7915_v61 }
 0x100   :  { %v3263_v15 = vadd.s32 3, %v757_v51  ;;  %5411 = vst [vmem:[#allocation7 + $0xc] sm:$0x1] %v5409_v28  ;;  %v779_v22 = vor.u32 8388608, %v778_v16  ;;  %v781_v58 = vadd.s32 1, %v6541_v49  ;;  %v8045_v8 = vsub.f32 0.0, %v7957_v44 }
 0x101   :  { %vm6540_vm11 = vcmp.lt.s32.totalorder %v6539_v29, 0  ;;  %v8047_v50 = vsub.f32 0.0, %v5331_v10  ;;  %v8050_v54 = vmul.f32 0.9323238, %v7917_v21  ;;  %v8052_v31 = vand.u32 3, %v757_v51 }
 0x102   :  { %v739_v0 = vsel %vm6540_vm11, 0, %v6539_v29  ;;  %vm782_vm12 = vcmp.gt.s32.totalorder %v781_v58, 0  ;;  %v8055_v43 = vmul.f32 0.9323238, %v7902_v55  ;;  %v8058_v1 = vand.u32 3, %v3263_v15 }
 0x103   :  { %v740_v27 = vsub.s32 32, %v739_v0  ;;  %v741_v61 = vshll.u32 %v8001_v17, %v739_v0  ;;  %v744_v18 = vsub.s32 4294967266, %v739_v0  ;;  %v783_v47 = vsel %vm782_vm12, %v781_v58, 0 }
 0x104   :  { %v785_v44 = vand.u32 31, %v783_v47  ;;  %v8060_v10 = vshll.u32 %v779_v22, 8  ;;  %v5308_v41 = vmul.f32 -0.36162457, %v7919_v52  ;;  %v784_v63 = vshrl.u32 %v783_v47, 5 }
 0x105   :  { %v742_v37 = vshrl.u32 %v724_v13, %v740_v27  ;;  %v745_v48 = vadd.s32 127, %v744_v18  ;;  %v5305_v16 = vmul.f32 %v8050_v54, %v7864_v53  ;;  %v5306_v2 = vmul.f32 %v8055_v43, %v7924_v6 }
 0x106   :  { %v786_v55 = vsub.s32 32, %v785_v44  ;;  %v788_v33 = vshll.u32 %v11272_v30, %v785_v44  ;;  %v791_v17 = vshll.u32 %v11270_v32, %v785_v44  ;;  %v794_v12 = vshll.u32 %v11264_v34, %v785_v44 }
 0x107   :  { %v743_v51 = vor.u32 %v742_v37, %v741_v61  ;;  %v746_v49 = vshll.u32 %v745_v48, 23  ;;  %v5336_v52 = vmul.f32 %v7924_v6, %v7917_v21  ;;  %v5310_v62 = vmul.f32 %v8050_v54, %v7872_v19 }
 0x108   :  { %v787_v57 = vshrl.u32 %v11272_v30, %v786_v55  ;;  %v789_v26 = vshrl.u32 %v11270_v32, %v786_v55  ;;  %v792_v53 = vshrl.u32 %v11264_v34, %v786_v55  ;;  %v795_v29 = vshrl.u32 %v11268_v36, %v786_v55 }
 0x109   :  { %v747_v56 = vor.u32 4788187, %v746_v49  ;;  %v750_v4 = vcvt.s32.f32 %v743_v51  ;;  %v797_v28 = vshll.u32 %v11268_v36, %v785_v44  ;;  %v798_v22 = vshrl.u32 %v11275_v38, %v786_v55 }
 0x10a   :  { %v790_v13 = vor.u32 %v789_v26, %v788_v33  ;;  %v793_v15 = vor.u32 %v792_v53, %v791_v17  ;;  %v800_v6 = vshll.u32 %v11275_v38, %v785_v44  ;;  %v796_v0 = vor.u32 %v795_v29, %v794_v12  ;;  %v8086_v26 = vld [vmem:[#allocation3 + $0x5] sm:$0x1] }
 0x10b   :  { %v748_v58 = vand.u32 2147483647, %v747_v56  ;;  %v801_v27 = vshrl.u32 %v11266_v46, %v786_v55  ;;  %vm803_vm13 = vcmp.lt.s32.totalorder %v784_v63, 1  ;;  %v799_v61 = vor.u32 %v798_v22, %v797_v28 }
 0x10c   :  { %vm804_vm14 = vcmp.lt.s32.totalorder %v784_v63, 2  ;;  %vm805_vm1 = vcmp.lt.s32.totalorder %v784_v63, 3  ;;  %vm806_vm2 = vcmp.lt.s32.totalorder %v784_v63, 4  ;;  %v807_v47 = vsel %vm803_vm13, %v787_v57, %v790_v13 }
 0x10d   :  { %v751_v19 = vmul.f32 %v750_v4, %v748_v58  ;;  %v802_v18 = vor.u32 %v801_v27, %v800_v6  ;;  %v808_v37 = vsel %vm806_vm2, %v796_v0, 2102212464  ;;  %v811_v33 = vsel %vm803_vm13, %v790_v13, %v793_v15 }
 0x10e   :  { %v809_v48 = vsel %vm805_vm1, %v793_v15, %v808_v37  ;;  %v812_v17 = vsel %vm806_vm2, %v799_v61, 920167782  ;;  %v815_v51 = vsel %vm803_vm13, %v793_v15, %v796_v0  ;;  %v5311_v55 = vmul.f32 %v8055_v43, %v7963_v9 }
 0x10f   :  { %v752_v49 = vxor.u32 2147483648, %v751_v19  ;;  %v813_v44 = vsel %vm805_vm1, %v796_v0, %v812_v17  ;;  %v816_v12 = vsel %vm806_vm2, %v802_v18, 1326507024  ;;  %v810_v53 = vsel %vm804_vm14, %v807_v47, %v809_v48  ;;  %v8106_v0 = vld [vmem:[#allocation2 + $0x5] sm:$0x1] }
 0x110   :  { %v814_v56 = vsel %vm804_vm14, %v811_v33, %v813_v44  ;;  %v817_v57 = vsel %vm805_vm1, %v799_v61, %v816_v12  ;;  %v5307_v4 = vadd.f32 %v5306_v2, %v5305_v16  ;;  %v8111_v63 = vsub.f32 %v5336_v52, %v8025_v14 }
 0x111   :  { %v753_v29 = vsel %vm670_vm3, %v752_v49, %v751_v19  ;;  %v818_v28 = vsel %vm804_vm14, %v815_v51, %v817_v57  ;;  %v8095_v13 = vmul.u32.u64.low %v8060_v10, %v814_v56  ;;  %v8096_v15 = vmul.u32.u64.high %v8060_v10, %v814_v56, %v8095_v13 }
 0x112   :  { %v756_v22 = vsel %vm7985_vm5, %v7794_v45, %v753_v29  ;;  %v8103_v6 = vmul.u32.u64.low %v8060_v10, %v818_v28  ;;  %v8104_v58 = vmul.u32.u64.high %v8060_v10, %v818_v28, %v8103_v6  ;;  %v8108_v16 = vsub.f32 %v5307_v4, %v5308_v41 }
 0x113   :  { %6837 = vcosq.f32 %v756_v22  ;;  %v5350_v2 = vmul.f32 -0.44150585, %v8106_v0  ;;  %v8115_v27 = vmul.f32 -0.44150585, %v8086_v26  ;;  %v826_v11 = vmul.u32 %v8060_v10, %v810_v53 }
 0x114   :  { %6839 = vsinq.f32 %v756_v22  ;;  %v5344_v61 = vmul.f32 1.525, %v8108_v16  ;;  %v5312_v19 = vadd.f32 %v5311_v55, %v5310_v62  ;;  %v829_v18 = vadd.s32 1, %v8096_v15 }
 0x115   :  { %v5373_v41 = vmul.f32 0.89725834, %v8108_v16  ;;  %v5374_v47 = vmul.f32 %v5350_v2, %v8045_v8  ;;  %v5313_v14 = vmul.f32 -0.36162457, %v7949_v20  ;;  %vm828_vm3 = vc.u32 %v8104_v58, %v8095_v13 }
 0x116   :  { %v8126_v52 = vadd.f32 %v5344_v61, %v7944_v24  ;;  %v5376_v10 = vmul.f32 %v8115_v27, %v8111_v63  ;;  %v5339_v62 = vmul.f32 %v7963_v9, %v7917_v21  ;;  %vm762_vm4 = vcmp.lt.s32.totalorder %v8052_v31, 2 }
 0x117   :  { %v830_v37 = vsel %vm828_vm3, %v829_v18, %v8096_v15  ;;  %v5375_v48 = vadd.f32 %v5374_v47, %v5373_v41  ;;  %v8134_v33 = vsub.f32 %v5312_v19, %v5313_v14  ;;  %v5380_v20 = vmul.f32 %v5350_v2, %v8047_v50 }
 0x118   :  { %vm760_vm5 = vweird.f32 %v7794_v45  ;;  %vm773_vm6 = vcmp.lt.s32.totalorder %v7980_v3, 0  ;;  %v831_v24 = vadd.s32 %v830_v37, %v826_v11  ;;  %v5421_v17 = vsel %vm5243_vm0, %v8126_v52, 0.0 }
 0x119   :  { %v8143_v9 = vsub.f32 %v5339_v62, %v8029_v39  ;;  %v5300_v51 = vmul.f32 %v8050_v54, %v7971_v42  ;;  %v8147_v49 = vadd.f32 %v5376_v10, %v5375_v48  ;;  %5423 = vst [vmem:[#allocation7 + $0x10] sm:$0x1] %v5421_v17  ;;  %v5346_v44 = vmul.f32 1.525, %v8134_v33  ;;  %v8197_v48 = vld [vmem:[#allocation4 + $0x8] sm:$0x1] }
 0x11a   :  { %v5379_v12 = vmul.f32 0.89725834, %v8134_v33  ;;  %v5301_v55 = vmul.f32 %v8055_v43, %v7997_v25  ;;  %v8154_v53 = vsub.f32 0.0, %v8037_v40  ;;  %v832_v56 = vadd.s32 536870912, %v831_v24 }
 0x11b   :  { %v5382_v39 = vmul.f32 %v8115_v27, %v8143_v9  ;;  %v5333_v42 = vmul.f32 %v7997_v25, %v7917_v21  ;;  %vm8162_vm7 = vcmp.le.f32.partialorder %v771_v7, 0.7853982  ;;  %v8167_v57 = vadd.f32 %v5346_v44, %v7974_v59 }
 0x11c   :  { %v5381_v43 = vadd.f32 %v5380_v20, %v5379_v12  ;;  %v5302_v4 = vadd.f32 %v5301_v55, %v5300_v51  ;;  %v5303_v40 = vmul.f32 -0.36162457, %v7994_v35  ;;  %vm3269_vm8 = vcmp.eq.s32.totalorder %v8058_v1, 2 }
 0x11d   :  { %vm763_vm9 = vcmp.eq.s32.totalorder %v8052_v31, 0  ;;  %v833_v29 = vshrl.u32 %v832_v56, 30  ;;  %v8173_v21 = vsub.f32 %v5333_v42, %v8035_v5  ;;  %v6838_v25 = vpop.eup %6837  ;;  %vm766_vm15 = vcmp.eq.s32.totalorder %v8052_v31, 2 }
 0x11e   :  { %v5383_v7 = vadd.f32 %v5382_v39, %v5381_v43  ;;  %v5424_v59 = vsel %vm5243_vm0, %v8167_v57, 0.0  ;;  %v8179_v28 = vsub.f32 %v5302_v4, %v5303_v40  ;;  %v6840_v15 = vpop.eup %6839  ;;  %v767_v35 = vxor.u32 2147483648, %v6838_v25 }
 0x11f   :  { %vm3266_vm10 = vcmp.eq.s32.totalorder %v8058_v1, 0  ;;  %v834_v22 = vshll.u32 %v833_v29, 30  ;;  %v857_v6 = vsub.s32 4, %v833_v29  ;;  %5426 = vst [vmem:[#allocation7 + $0x11] sm:$0x1] %v5424_v59  ;;  %v764_v11 = vxor.u32 2147483648, %v6840_v15 }
 0x120   :  { %vm3265_vm11 = vcmp.lt.s32.totalorder %v8058_v1, 2  ;;  %v5342_v5 = vmul.f32 1.525, %v8179_v28  ;;  %v5368_v61 = vmul.f32 %v5350_v2, %v8154_v53  ;;  %v3271_v19 = vsel %vm3269_vm8, %v767_v35, %v6840_v15 }
 0x121   :  { %v768_v18 = vsel %vm766_vm15, %v767_v35, %v6840_v15  ;;  %v8187_v41 = vsub.s32 %v831_v24, %v834_v22  ;;  %v5367_v47 = vmul.f32 0.89725834, %v8179_v28  ;;  %v3268_v14 = vsel %vm3266_vm10, %v6838_v25, %v764_v11 }
 0x122   :  { %v765_v10 = vsel %vm763_vm9, %v6838_v25, %v764_v11  ;;  %v858_v62 = vsel %vm773_vm6, %v857_v6, %v833_v29  ;;  %v8195_v37 = vadd.f32 %v5342_v5, %v8010_v23  ;;  %v3272_v2 = vsel %vm3265_vm11, %v3268_v14, %v3271_v19 }
 0x123   :  { %v769_v1 = vsel %vm762_vm4, %v765_v10, %v768_v18  ;;  %v837_v20 = vsub.s32 0, %v8187_v41  ;;  %v874_v24 = vand.u32 2147483647, %v8197_v48  ;;  %v3273_v17 = vsel %vm760_vm5, nan, %v3272_v2 }
 0x124   :  { %v770_v51 = vsel %vm760_vm5, nan, %v769_v1  ;;  %v5369_v44 = vadd.f32 %v5368_v61, %v5367_v47  ;;  %v5370_v23 = vmul.f32 %v8115_v27, %v8173_v21  ;;  %5048 = vst [vmem:[#allocation3 + $0x6] sm:$0x1] %v3273_v17  ;;  %v860_v31 = vsel %vm8162_vm7, 0, %v858_v62 }
 0x125   :  { %2528 = vst [vmem:[#allocation2 + $0x6] sm:$0x1] %v770_v51  ;;  %v6542_v12 = vmin.u32 %v837_v20, %v8187_v41  ;;  %v5418_v55 = vsel %vm5243_vm0, %v8195_v37, 0.0  ;;  %v5389_v45 = vmul.f32 %v8045_v8, %v8086_v26  ;;  %v8221_v27 = vmul.f32 %v8047_v50, %v8086_v26 }
 0x126   :  { %v8215_v56 = vadd.f32 %v5370_v23, %v5369_v44  ;;  %5420 = vst [vmem:[#allocation7 + $0xf] sm:$0x1] %v5418_v55  ;;  %v8225_v42 = vmul.f32 %v8154_v53, %v8086_v26  ;;  %v3367_v43 = vadd.s32 3, %v860_v31  ;;  %v877_v4 = vand.u32 2139095040, %v8197_v48 }
 0x127   :  { %v839_v39 = vclz %v6542_v12  ;;  %v881_v60 = vand.u32 8388607, %v874_v24  ;;  %v8231_v29 = vmul.f32 0.89725834, %v8106_v0  ;;  %v8234_v25 = vmul.f32 0.89725834, %v8086_v26 }
 0x128   :  { %v5388_v59 = vmul.f32 %v8111_v63, %v8106_v0  ;;  %v827_v15 = vadd.s32 %v8095_v13, %v8104_v58  ;;  %v8241_v35 = vsub.f32 0.0, %v8147_v49  ;;  %v878_v22 = vshrl.u32 %v877_v4, 23 }
 0x129   :  { %v6543_v40 = vadd.s32 4294967294, %v839_v39  ;;  %v882_v6 = vor.u32 8388608, %v881_v60  ;;  %v8243_v11 = vsub.f32 0.0, %v5383_v7  ;;  %v5357_v5 = vmul.f32 %v8231_v29, %v8045_v8 }
 0x12a   :  { %v8247_v61 = vsub.f32 %v5388_v59, %v5389_v45  ;;  %v8249_v19 = vand.u32 3, %v860_v31  ;;  %v6545_v18 = vadd.s32 4294967169, %v878_v22  ;;  %v5358_v13 = vmul.f32 %v8234_v25, %v8111_v63 }
 0x12b   :  { %vm6544_vm0 = vcmp.lt.s32.totalorder %v6543_v40, 0  ;;  %v8254_v14 = vand.u32 3, %v3367_v43  ;;  %v8256_v7 = vld [vmem:[#allocation3 + $0x6] sm:$0x1]  ;;  %v8258_v62 = vshll.u32 %v882_v6, 8  ;;  %v5363_v23 = vmul.f32 %v8234_v25, %v8143_v9 }
 0x12c   :  { %v842_v26 = vsel %vm6544_vm0, 0, %v6543_v40  ;;  %v884_v10 = vadd.s32 1, %v6545_v18  ;;  %v5359_v8 = vadd.f32 %v5358_v13, %v5357_v5  ;;  %v5360_v2 = vmul.f32 -0.44150585, %v8108_v16  ;;  %v8261_v1 = vld [vmem:[#allocation2 + $0x6] sm:$0x1] }
 0x12d   :  { %v843_v58 = vsub.s32 32, %v842_v26  ;;  %v844_v49 = vshll.u32 %v8187_v41, %v842_v26  ;;  %v847_v47 = vsub.s32 4294967266, %v842_v26  ;;  %v8264_v63 = vmul.f32 -0.5254716, %v8261_v1  ;;  %v8288_v13 = vld [vmem:[%s11262_s1] sm:$0x1] }
 0x12e   :  { %v5362_v41 = vmul.f32 %v8231_v29, %v8047_v50  ;;  %vm885_vm12 = vcmp.gt.s32.totalorder %v884_v10, 0  ;;  %v8268_v51 = vsub.f32 %v5359_v8, %v5360_v2  ;;  %v8271_v44 = vmul.f32 -0.5254716, %v8256_v7 }
 0x12f   :  { %v845_v20 = vshrl.u32 %v827_v15, %v843_v58  ;;  %v848_v17 = vadd.s32 127, %v847_v47  ;;  %v886_v31 = vsel %vm885_vm12, %v884_v10, 0  ;;  %v5365_v55 = vmul.f32 -0.44150585, %v8134_v33 }
 0x130   :  { %v887_v45 = vshrl.u32 %v886_v31, 5  ;;  %v888_v39 = vand.u32 31, %v886_v31  ;;  %v5396_v43 = vmul.f32 1.33, %v8268_v51  ;;  %v5462_v50 = vmul.f32 %v8264_v63, %v8241_v35 }
 0x131   :  { %v846_v16 = vor.u32 %v845_v20, %v844_v49  ;;  %v849_v12 = vshll.u32 %v848_v17, 23  ;;  %v5461_v40 = vmul.f32 0.8508111, %v8268_v51  ;;  %v5364_v59 = vadd.f32 %v5363_v23, %v5362_v41 }
 0x132   :  { %v889_v15 = vsub.s32 32, %v888_v39  ;;  %v891_v22 = vshll.u32 %v11272_v30, %v888_v39  ;;  %v894_v6 = vshll.u32 %v11270_v32, %v888_v39  ;;  %v897_v5 = vshll.u32 %v11264_v34, %v888_v39 }
 0x133   :  { %v850_v4 = vor.u32 4788187, %v849_v12  ;;  %v853_v60 = vcvt.s32.f32 %v846_v16  ;;  %v900_v26 = vshll.u32 %v11268_v36, %v888_v39  ;;  %v903_v18 = vshll.u32 %v11275_v38, %v888_v39 }
 0x134   :  { %vm906_vm13 = vcmp.lt.s32.totalorder %v887_v45, 1  ;;  %vm5435_vm14 = vcmp.gt.s32.totalorder %v8288_v13, 2  ;;  %v890_v58 = vshrl.u32 %v11272_v30, %v889_v15  ;;  %v892_v49 = vshrl.u32 %v11270_v32, %v889_v15 }
 0x135   :  { %v851_v33 = vand.u32 2147483647, %v850_v4  ;;  %v895_v47 = vshrl.u32 %v11264_v34, %v889_v15  ;;  %v898_v10 = vshrl.u32 %v11268_v36, %v889_v15  ;;  %v901_v2 = vshrl.u32 %v11275_v38, %v889_v15 }
 0x136   :  { %v904_v20 = vshrl.u32 %v11266_v46, %v889_v15  ;;  %vm907_vm1 = vcmp.lt.s32.totalorder %v887_v45, 2  ;;  %v893_v17 = vor.u32 %v892_v49, %v891_v22  ;;  %vm908_vm2 = vcmp.lt.s32.totalorder %v887_v45, 3 }
 0x137   :  { %v854_v8 = vmul.f32 %v853_v60, %v851_v33  ;;  %v896_v41 = vor.u32 %v895_v47, %v894_v6  ;;  %v899_v23 = vor.u32 %v898_v10, %v897_v5  ;;  %v902_v12 = vor.u32 %v901_v2, %v900_v26 }
 0x138   :  { %v905_v31 = vor.u32 %v904_v20, %v903_v18  ;;  %vm909_vm3 = vcmp.lt.s32.totalorder %v887_v45, 4  ;;  %v910_v39 = vsel %vm906_vm13, %v890_v58, %v893_v17  ;;  %v5464_v18 = vmul.f32 %v8271_v44, %v8247_v61 }
 0x139   :  { %v855_v16 = vxor.u32 2147483648, %v854_v8  ;;  %v911_v4 = vsel %vm909_vm3, %v899_v23, 2102212464  ;;  %v914_v34 = vsel %vm906_vm13, %v893_v17, %v896_v41  ;;  %v918_v60 = vsel %vm906_vm13, %v896_v41, %v899_v23 }
 0x13a   :  { %v912_v15 = vsel %vm908_vm2, %v896_v41, %v911_v4  ;;  %v915_v46 = vsel %vm909_vm3, %v902_v12, 920167782  ;;  %v919_v22 = vsel %vm909_vm3, %v905_v31, 1326507024  ;;  %v8315_v54 = vadd.f32 %v5396_v43, %v8126_v52 }
 0x13b   :  { %v856_v33 = vsel %vm773_vm6, %v855_v16, %v854_v8  ;;  %v916_v5 = vsel %vm908_vm2, %v899_v23, %v915_v46  ;;  %v920_v26 = vsel %vm908_vm2, %v902_v12, %v919_v22  ;;  %v913_v58 = vsel %vm907_vm1, %v910_v39, %v912_v15  ;;  %v8360_v39 = vld [vmem:[#allocation4 + $0x9] sm:$0x1] }
 0x13c   :  { %v859_v6 = vsel %vm8162_vm7, %v7980_v3, %v856_v33  ;;  %v917_v49 = vsel %vm907_vm1, %v914_v34, %v916_v5  ;;  %v921_v47 = vsel %vm907_vm1, %v918_v60, %v920_v26  ;;  %v5463_v20 = vadd.f32 %v5462_v50, %v5461_v40 }
 0x13d   :  { %6841 = vcosq.f32 %v859_v6  ;;  %v8311_v10 = vmul.u32.u64.low %v8258_v62, %v921_v47  ;;  %v8312_v8 = vmul.u32.u64.high %v8258_v62, %v921_v47, %v8311_v10  ;;  %v8322_v17 = vsub.f32 %v5364_v59, %v5365_v55 }
 0x13e   :  { %6843 = vsinq.f32 %v859_v6  ;;  %v8318_v46 = vmul.u32.u64.low %v8258_v62, %v917_v49  ;;  %v8319_v2 = vmul.u32.u64.high %v8258_v62, %v917_v49, %v8318_v46  ;;  %v5595_v34 = vsel %vm5435_vm14, %v8315_v54, 0.0 }
 0x13f   :  { %v5391_v45 = vmul.f32 %v8143_v9, %v8106_v0  ;;  %v5468_v41 = vmul.f32 %v8264_v63, %v8243_v11  ;;  %v5352_v52 = vmul.f32 %v8231_v29, %v8154_v53  ;;  %vm865_vm4 = vcmp.lt.s32.totalorder %v8249_v19, 2  ;;  %5597 = vst [vmem:[#allocation7 + $0x13] sm:$0x1] %v5595_v34 }
 0x140   :  { %vm866_vm5 = vcmp.eq.s32.totalorder %v8249_v19, 0  ;;  %v8335_v43 = vadd.f32 %v5464_v18, %v5463_v20  ;;  %v5398_v55 = vmul.f32 1.33, %v8322_v17  ;;  %v5467_v50 = vmul.f32 0.8508111, %v8322_v17 }
 0x141   :  { %vm863_vm6 = vweird.f32 %v7980_v3  ;;  %v929_v9 = vmul.u32 %v8258_v62, %v913_v58  ;;  %vm931_vm7 = vc.u32 %v8312_v8, %v8318_v46  ;;  %v8344_v53 = vsub.f32 %v5391_v45, %v8221_v27 }
 0x142   :  { %v5353_v29 = vmul.f32 %v8234_v25, %v8173_v21  ;;  %v8349_v40 = vsub.f32 0.0, %v8215_v56  ;;  %v932_v59 = vadd.s32 1, %v8319_v2  ;;  %v8353_v23 = vadd.f32 %v5398_v55, %v8167_v57 }
 0x143   :  { %v5469_v16 = vadd.f32 %v5468_v41, %v5467_v50  ;;  %v5470_v62 = vmul.f32 %v8271_v44, %v8344_v53  ;;  %v5355_v31 = vmul.f32 -0.44150585, %v8179_v28  ;;  %v5385_v27 = vmul.f32 %v8173_v21, %v8106_v0 }
 0x144   :  { %v5354_v12 = vadd.f32 %v5353_v29, %v5352_v52  ;;  %vm3369_vm8 = vcmp.lt.s32.totalorder %v8254_v14, 2  ;;  %vm869_vm9 = vcmp.eq.s32.totalorder %v8249_v19, 2  ;;  %v933_v56 = vsel %vm931_vm7, %v932_v59, %v8319_v2 }
 0x145   :  { %v5598_v57 = vsel %vm5435_vm14, %v8353_v23, 0.0  ;;  %v934_v25 = vadd.s32 %v933_v56, %v929_v9  ;;  %v5471_v4 = vadd.f32 %v5470_v62, %v5469_v16  ;;  %v8371_v28 = vsub.f32 %v5385_v27, %v8225_v42 }
 0x146   :  { %5600 = vst [vmem:[#allocation7 + $0x14] sm:$0x1] %v5598_v57  ;;  %v8368_v60 = vsub.f32 %v5354_v12, %v5355_v31  ;;  %vm3370_vm15 = vcmp.eq.s32.totalorder %v8254_v14, 0  ;;  %vm3373_vm10 = vcmp.eq.s32.totalorder %v8254_v14, 2  ;;  %v5456_v21 = vmul.f32 %v8264_v63, %v8349_v40 }
 0x147   :  { %v6842_v0 = vpop.eup %6841  ;;  %v980_v33 = vand.u32 2139095040, %v8360_v39  ;;  %v935_v6 = vadd.s32 536870912, %v934_v25  ;;  %v977_v26 = vand.u32 2147483647, %v8360_v39  ;;  %v5458_v58 = vmul.f32 %v8271_v44, %v8371_v28 }
 0x148   :  { %v6844_v15 = vpop.eup %6843  ;;  %v870_v22 = vxor.u32 2147483648, %v6842_v0  ;;  %v5394_v5 = vmul.f32 1.33, %v8368_v60  ;;  %v5455_v42 = vmul.f32 0.8508111, %v8368_v60  ;;  %vm876_vm11 = vcmp.lt.s32.totalorder %v8197_v48, 0 }
 0x149   :  { %v867_v18 = vxor.u32 2147483648, %v6844_v15  ;;  %v981_v49 = vshrl.u32 %v980_v33, 23  ;;  %v936_v10 = vshrl.u32 %v935_v6, 30  ;;  %v984_v19 = vand.u32 8388607, %v977_v26 }
 0x14a   :  { %v3375_v47 = vsel %vm3373_vm10, %v870_v22, %v6844_v15  ;;  %v871_v63 = vsel %vm869_vm9, %v870_v22, %v6844_v15  ;;  %v8386_v2 = vadd.f32 %v5394_v5, %v8195_v37  ;;  %v5457_v45 = vadd.f32 %v5456_v21, %v5455_v42 }
 0x14b   :  { %v3372_v20 = vsel %vm3370_vm15, %v6842_v0, %v867_v18  ;;  %v868_v34 = vsel %vm866_vm5, %v6842_v0, %v867_v18  ;;  %v6549_v41 = vadd.s32 4294967169, %v981_v49  ;;  %v937_v55 = vshll.u32 %v936_v10, 30 }
 0x14c   :  { %v3376_v44 = vsel %vm3369_vm8, %v3372_v20, %v3375_v47  ;;  %v872_v52 = vsel %vm865_vm4, %v868_v34, %v871_v63  ;;  %v8400_v9 = vadd.f32 %v5458_v58, %v5457_v45  ;;  %v5592_v29 = vsel %vm5435_vm14, %v8386_v2, 0.0 }
 0x14d   :  { %v3377_v50 = vsel %vm863_vm6, nan, %v3376_v44  ;;  %v873_v37 = vsel %vm863_vm6, nan, %v872_v52  ;;  %v8405_v14 = vsub.s32 %v934_v25, %v937_v55  ;;  %5594 = vst [vmem:[#allocation7 + $0x12] sm:$0x1] %v5592_v29  ;;  %v987_v59 = vadd.s32 1, %v6549_v41 }
 0x14e   :  { %5049 = vst [vmem:[#allocation3 + $0x7] sm:$0x1] %v3377_v50  ;;  %2529 = vst [vmem:[#allocation2 + $0x7] sm:$0x1] %v873_v37  ;;  %v960_v16 = vsub.s32 4, %v936_v10  ;;  %v8429_v25 = vmul.f32 %v8256_v7, %v8241_v35  ;;  %v8433_v0 = vmul.f32 %v8256_v7, %v8243_v11  ;;  %v985_v21 = vor.u32 8388608, %v984_v19 }
 0x14f   :  { %v8410_v62 = vmul.f32 0.8508111, %v8261_v1  ;;  %v8413_v3 = vmul.f32 0.8508111, %v8256_v7  ;;  %v940_v12 = vsub.s32 0, %v8405_v14  ;;  %vm988_vm0 = vcmp.gt.s32.totalorder %v987_v59, 0 }
 0x150   :  { %vm8419_vm12 = vcmp.le.f32.partialorder %v874_v24, 0.7853982  ;;  %v989_v27 = vsel %vm988_vm0, %v987_v59, 0  ;;  %v8438_v33 = vmul.f32 %v8256_v7, %v8349_v40  ;;  %v961_v15 = vsel %vm876_vm11, %v960_v16, %v936_v10 }
 0x151   :  { %v5445_v56 = vmul.f32 %v8410_v62, %v8241_v35  ;;  %v5446_v57 = vmul.f32 %v8413_v3, %v8247_v61  ;;  %v6546_v24 = vmin.u32 %v940_v12, %v8405_v14  ;;  %v991_v22 = vand.u32 31, %v989_v27 }
 0x152   :  { %v930_v35 = vadd.s32 %v8318_v46, %v8312_v8  ;;  %v8447_v18 = vsub.f32 0.0, %v8335_v43  ;;  %v8449_v42 = vsub.f32 0.0, %v5471_v4  ;;  %v11312_v47 = vmov 2131351028  }
 0x153   :  { %v8442_v6 = vadd.f32 %v5446_v57, %v5445_v56  ;;  %v942_v5 = vclz %v6546_v24  ;;  %v992_v58 = vsub.s32 32, %v991_v22  ;;  %v994_v49 = vshll.u32 %v11272_v30, %v991_v22 }
 0x154   :  { %v997_v7 = vshll.u32 %v11270_v32, %v991_v22  ;;  %v1000_v63 = vshll.u32 %v11312_v47, %v991_v22  ;;  %v8456_v20 = vsel %vm8419_vm12, 0, %v961_v15  ;;  %v990_v34 = vshrl.u32 %v989_v27, 5 }
 0x155   :  { %v6547_v10 = vadd.s32 4294967294, %v942_v5  ;;  %v8458_v8 = vshll.u32 %v985_v21, 8  ;;  %v993_v46 = vshrl.u32 %v11272_v30, %v992_v58  ;;  %v995_v43 = vshrl.u32 %v11270_v32, %v992_v58 }
 0x156   :  { %v998_v4 = vshrl.u32 %v11312_v47, %v992_v58  ;;  %v1001_v45 = vshrl.u32 %v11268_v36, %v992_v58  ;;  %v1003_v41 = vshll.u32 %v11268_v36, %v991_v22  ;;  %v1004_v44 = vshrl.u32 %v11275_v38, %v992_v58 }
 0x157   :  { %vm6548_vm13 = vcmp.lt.s32.totalorder %v6547_v10, 0  ;;  %v1006_v52 = vshll.u32 %v11275_v38, %v991_v22  ;;  %v996_v50 = vor.u32 %v995_v43, %v994_v49  ;;  %v11313_v27 = vmov 1326507024  }
 0x158   :  { %v945_v55 = vsel %vm6548_vm13, 0, %v6547_v10  ;;  %v999_v37 = vor.u32 %v998_v4, %v997_v7  ;;  %v1002_v29 = vor.u32 %v1001_v45, %v1000_v63  ;;  %v1005_v12 = vor.u32 %v1004_v44, %v1003_v41  ;;  %v8476_v41 = vld [vmem:[#allocation3 + $0x7] sm:$0x1] }
 0x159   :  { %v946_v19 = vsub.s32 32, %v945_v55  ;;  %v947_v59 = vshll.u32 %v8405_v14, %v945_v55  ;;  %v950_v16 = vsub.s32 4294967266, %v945_v55  ;;  %v1007_v56 = vshrl.u32 %v11313_v27, %v992_v58 }
 0x15a   :  { %vm1009_vm1 = vcmp.lt.s32.totalorder %v990_v34, 1  ;;  %vm1010_vm2 = vcmp.lt.s32.totalorder %v990_v34, 2  ;;  %vm1011_vm3 = vcmp.lt.s32.totalorder %v990_v34, 3  ;;  %vm1012_vm4 = vcmp.lt.s32.totalorder %v990_v34, 4 }
 0x15b   :  { %v948_v57 = vshrl.u32 %v930_v35, %v946_v19  ;;  %v951_v24 = vadd.s32 127, %v950_v16  ;;  %v1013_v21 = vsel %vm1009_vm1, %v993_v46, %v996_v50  ;;  %v1008_v15 = vor.u32 %v1007_v56, %v1006_v52  ;;  %v8491_v56 = vld [vmem:[#allocation2 + $0x7] sm:$0x1] }
 0x15c   :  { %v1014_v22 = vsel %vm1012_vm4, %v1002_v29, 2102212464  ;;  %v1017_v5 = vsel %vm1009_vm1, %v996_v50, %v999_v37  ;;  %v1018_v49 = vsel %vm1012_vm4, %v1005_v12, 920167782  ;;  %v3471_v58 = vadd.s32 3, %v8456_v20 }
 0x15d   :  { %v949_v7 = vor.u32 %v948_v57, %v947_v59  ;;  %v952_v63 = vshll.u32 %v951_v24, 23  ;;  %v1015_v14 = vsel %vm1011_vm3, %v999_v37, %v1014_v22  ;;  %v1019_v10 = vsel %vm1011_vm3, %v1002_v29, %v1018_v49 }
 0x15e   :  { %v1020_v43 = vsel %vm1010_vm2, %v1017_v5, %v1019_v10  ;;  %v1021_v35 = vsel %vm1009_vm1, %v999_v37, %v1002_v29  ;;  %v1022_v4 = vsel %vm1012_vm4, %v1008_v15, 1326507024  ;;  %v1016_v44 = vsel %vm1010_vm2, %v1013_v21, %v1015_v14 }
 0x15f   :  { %v953_v45 = vor.u32 4788187, %v952_v63  ;;  %v956_v46 = vcvt.s32.f32 %v949_v7  ;;  %v1023_v52 = vsel %vm1011_vm3, %v1005_v12, %v1022_v4  ;;  %v5448_v59 = vmul.f32 -0.5254716, %v8268_v51 }
 0x160   :  { %v1024_v55 = vsel %vm1010_vm2, %v1021_v35, %v1023_v52  ;;  %v8482_v50 = vmul.u32.u64.low %v8458_v8, %v1020_v43  ;;  %v8483_v19 = vmul.u32.u64.high %v8458_v8, %v1020_v43, %v8482_v50  ;;  %v5476_v57 = vmul.f32 %v8261_v1, %v8247_v61 }
 0x161   :  { %v954_v16 = vand.u32 2147483647, %v953_v45  ;;  %v8488_v37 = vmul.u32.u64.low %v8458_v8, %v1024_v55  ;;  %v8489_v29 = vmul.u32.u64.high %v8458_v8, %v1024_v55, %v8488_v37  ;;  %v8496_v34 = vsub.f32 %v8442_v6, %v5448_v59 }
 0x162   :  { %v8499_v12 = vmul.f32 -0.36162457, %v8491_v56  ;;  %v8502_v24 = vmul.f32 -0.36162457, %v8476_v41  ;;  %v5450_v51 = vmul.f32 %v8410_v62, %v8243_v11  ;;  %v1032_v15 = vmul.u32 %v8458_v8, %v1016_v44 }
 0x163   :  { %v957_v21 = vmul.f32 %v956_v46, %v954_v16  ;;  %v8508_v22 = vsub.f32 %v5476_v57, %v8429_v25  ;;  %v5451_v61 = vmul.f32 %v8413_v3, %v8344_v53  ;;  %v1035_v6 = vadd.s32 1, %v8483_v19 }
 0x164   :  { %v5484_v5 = vmul.f32 1.46, %v8496_v34  ;;  %v5513_v49 = vmul.f32 0.9323238, %v8496_v34  ;;  %v5514_v7 = vmul.f32 %v8499_v12, %v8447_v18  ;;  %vm1034_vm5 = vc.u32 %v8489_v29, %v8482_v50 }
 0x165   :  { %v958_v63 = vxor.u32 2147483648, %v957_v21  ;;  %v5516_v11 = vmul.f32 %v8502_v24, %v8508_v22  ;;  %v5453_v25 = vmul.f32 -0.5254716, %v8322_v17  ;;  %v1036_v8 = vsel %vm1034_vm5, %v1035_v6, %v8483_v19 }
 0x166   :  { %v8524_v14 = vadd.f32 %v5484_v5, %v8315_v54  ;;  %v5515_v10 = vadd.f32 %v5514_v7, %v5513_v49  ;;  %v5452_v43 = vadd.f32 %v5451_v61, %v5450_v51  ;;  %v1037_v4 = vadd.s32 %v1036_v8, %v1032_v15 }
 0x167   :  { %v959_v35 = vsel %vm876_vm11, %v958_v63, %v957_v21  ;;  %v5479_v45 = vmul.f32 %v8261_v1, %v8344_v53  ;;  %v5520_v46 = vmul.f32 %v8499_v12, %v8449_v42  ;;  %vm979_vm6 = vcmp.lt.s32.totalorder %v8360_v39, 0 }
 0x168   :  { %v962_v17 = vsel %vm8419_vm12, %v8197_v48, %v959_v35  ;;  %v8535_v44 = vadd.f32 %v5516_v11, %v5515_v10  ;;  %v5604_v54 = vsel %vm5435_vm14, %v8524_v14, 0.0  ;;  %v8540_v52 = vsub.f32 %v5452_v43, %v5453_v25 }
 0x169   :  { %6845 = vcosq.f32 %v962_v17  ;;  %v1038_v55 = vadd.s32 536870912, %v1037_v4  ;;  %5606 = vst [vmem:[#allocation7 + $0x16] sm:$0x1] %v5604_v54  ;;  %v8544_v53 = vsub.f32 %v5479_v45, %v8433_v0  ;;  %v5440_v31 = vmul.f32 %v8410_v62, %v8349_v40  ;;  %v8563_v62 = vld [vmem:[#allocation4 + $0xa] sm:$0x1] }
 0x16a   :  { %6847 = vsinq.f32 %v962_v17  ;;  %v8549_v19 = vsub.f32 0.0, %v8400_v9  ;;  %v5486_v59 = vmul.f32 1.46, %v8540_v52  ;;  %v5519_v16 = vmul.f32 0.9323238, %v8540_v52 }
 0x16b   :  { %v3472_v37 = vand.u32 3, %v3471_v58  ;;  %v967_v57 = vand.u32 3, %v8456_v20  ;;  %v1039_v51 = vshrl.u32 %v1038_v55, 30  ;;  %v5441_v21 = vmul.f32 %v8413_v3, %v8371_v28 }
 0x16c   :  { %v8557_v0 = vadd.f32 %v5486_v59, %v8353_v23  ;;  %v5521_v15 = vadd.f32 %v5520_v46, %v5519_v16  ;;  %v5522_v40 = vmul.f32 %v8502_v24, %v8544_v53  ;;  %v5473_v9 = vmul.f32 %v8261_v1, %v8371_v28 }
 0x16d   :  { %vm8567_vm7 = vcmp.le.f32.partialorder %v977_v26, 0.7853982  ;;  %v1040_v58 = vshll.u32 %v1039_v51, 30  ;;  %v5442_v3 = vadd.f32 %v5441_v21, %v5440_v31  ;;  %v5443_v23 = vmul.f32 -0.5254716, %v8368_v60 }
 0x16e   :  { %vm966_vm8 = vweird.f32 %v8197_v48  ;;  %v1063_v61 = vsub.s32 4, %v1039_v51  ;;  %v5523_v6 = vadd.f32 %v5522_v40, %v5521_v15  ;;  %v5607_v1 = vsel %vm5435_vm14, %v8557_v0, 0.0 }
 0x16f   :  { %v8577_v28 = vsub.f32 %v5473_v9, %v8438_v33  ;;  %vm968_vm9 = vcmp.lt.s32.totalorder %v967_v57, 2  ;;  %vm969_vm15 = vcmp.eq.s32.totalorder %v967_v57, 0  ;;  %v8579_v26 = vsub.s32 %v1037_v4, %v1040_v58  ;;  %5609 = vst [vmem:[#allocation7 + $0x17] sm:$0x1] %v5607_v1 }
 0x170   :  { %v8581_v5 = vsub.f32 %v5442_v3, %v5443_v23  ;;  %vm3473_vm10 = vcmp.lt.s32.totalorder %v3472_v37, 2  ;;  %vm972_vm11 = vcmp.eq.s32.totalorder %v967_v57, 2  ;;  %v5508_v60 = vmul.f32 %v8499_v12, %v8549_v19 }
 0x171   :  { %v1083_v49 = vand.u32 2139095040, %v8563_v62  ;;  %vm3474_vm0 = vcmp.eq.s32.totalorder %v3472_v37, 0  ;;  %vm3477_vm12 = vcmp.eq.s32.totalorder %v3472_v37, 2  ;;  %v1043_v7 = vsub.s32 0, %v8579_v26 }
 0x172   :  { %v5482_v33 = vmul.f32 1.46, %v8581_v5  ;;  %v5529_v63 = vmul.f32 %v8447_v18, %v8476_v41  ;;  %v1064_v11 = vsel %vm979_vm6, %v1063_v61, %v1039_v51  ;;  %v5507_v25 = vmul.f32 0.9323238, %v8581_v5 }
 0x173   :  { %v1080_v8 = vand.u32 2147483647, %v8563_v62  ;;  %v6846_v10 = vpop.eup %6845  ;;  %v8596_v12 = vmul.f32 %v8449_v42, %v8476_v41  ;;  %v8600_v43 = vmul.f32 %v8549_v19, %v8476_v41  ;;  %v6550_v35 = vmin.u32 %v1043_v7, %v8579_v26 }
 0x174   :  { %v5510_v4 = vmul.f32 %v8502_v24, %v8577_v28  ;;  %v6848_v45 = vpop.eup %6847  ;;  %v973_v46 = vxor.u32 2147483648, %v6846_v10  ;;  %v8606_v17 = vadd.f32 %v5482_v33, %v8386_v2  ;;  %v5509_v54 = vadd.f32 %v5508_v60, %v5507_v25 }
 0x175   :  { %v1084_v55 = vshrl.u32 %v1083_v49, 23  ;;  %v970_v31 = vxor.u32 2147483648, %v6848_v45  ;;  %v1033_v59 = vadd.s32 %v8482_v50, %v8489_v29  ;;  %v1045_v16 = vclz %v6550_v35 }
 0x176   :  { %v1066_v51 = vsel %vm8567_vm7, 0, %v1064_v11  ;;  %v3479_v21 = vsel %vm3477_vm12, %v973_v46, %v6848_v45  ;;  %v974_v15 = vsel %vm972_vm11, %v973_v46, %v6848_v45  ;;  %v8614_v24 = vadd.f32 %v5510_v4, %v5509_v54 }
 0x177   :  { %v1087_v2 = vand.u32 8388607, %v1080_v8  ;;  %v3476_v40 = vsel %vm3474_vm0, %v6846_v10, %v970_v31  ;;  %v971_v9 = vsel %vm969_vm15, %v6846_v10, %v970_v31  ;;  %v6551_v58 = vadd.s32 4294967294, %v1045_v16 }
 0x178   :  { %v5601_v50 = vsel %vm5435_vm14, %v8606_v17, 0.0  ;;  %v3480_v29 = vsel %vm3473_vm10, %v3476_v40, %v3479_v21  ;;  %v975_v3 = vsel %vm968_vm9, %v971_v9, %v974_v15  ;;  %v8626_v23 = vsub.f32 0.0, %v8535_v44 }
 0x179   :  { %5603 = vst [vmem:[#allocation7 + $0x15] sm:$0x1] %v5601_v50  ;;  %v6553_v61 = vadd.s32 4294967169, %v1084_v55  ;;  %v3481_v1 = vsel %vm966_vm8, nan, %v3480_v29  ;;  %v976_v60 = vsel %vm966_vm8, nan, %v975_v3  ;;  %vm6552_vm13 = vcmp.lt.s32.totalorder %v6551_v58, 0 }
 0x17a   :  { %v3575_v49 = vadd.s32 3, %v1066_v51  ;;  %5050 = vst [vmem:[#allocation3 + $0x8] sm:$0x1] %v3481_v1  ;;  %2530 = vst [vmem:[#allocation2 + $0x8] sm:$0x1] %v976_v60  ;;  %v1048_v7 = vsel %vm6552_vm13, 0, %v6551_v58  ;;  %vm1069_vm10 = vweird.f32 %v8360_v39 }
 0x17b   :  { %v1090_v37 = vadd.s32 1, %v6553_v61  ;;  %v8633_v57 = vmul.f32 0.9323238, %v8491_v56  ;;  %v8636_v44 = vmul.f32 0.9323238, %v8476_v41  ;;  %v1049_v33 = vsub.s32 32, %v1048_v7 }
 0x17c   :  { %v1050_v11 = vshll.u32 %v8579_v26, %v1048_v7  ;;  %v1053_v25 = vsub.s32 4294967266, %v1048_v7  ;;  %v1088_v10 = vor.u32 8388608, %v1087_v2  ;;  %v8639_v35 = vsub.f32 0.0, %v5523_v6 }
 0x17d   :  { %vm1091_vm1 = vcmp.gt.s32.totalorder %v1090_v37, 0  ;;  %v5497_v48 = vmul.f32 %v8633_v57, %v8447_v18  ;;  %v5498_v4 = vmul.f32 %v8636_v44, %v8508_v22  ;;  %v1051_v45 = vshrl.u32 %v1033_v59, %v1049_v33 }
 0x17e   :  { %v1054_v46 = vadd.s32 127, %v1053_v25  ;;  %v1092_v54 = vsel %vm1091_vm1, %v1090_v37, 0  ;;  %v5528_v41 = vmul.f32 %v8508_v22, %v8491_v56  ;;  %v8647_v55 = vand.u32 3, %v3575_v49 }
 0x17f   :  { %v8649_v26 = vand.u32 3, %v1066_v51  ;;  %v1094_v31 = vand.u32 31, %v1092_v54  ;;  %v5499_v6 = vadd.f32 %v5498_v4, %v5497_v48  ;;  %v1052_v16 = vor.u32 %v1051_v45, %v1050_v11 }
 0x180   :  { %v1055_v21 = vshll.u32 %v1054_v46, 23  ;;  %v8651_v15 = vshll.u32 %v1088_v10, 8  ;;  %v8653_v18 = vsub.f32 %v5528_v41, %v5529_v63  ;;  %v1093_v2 = vshrl.u32 %v1092_v54, 5 }
 0x181   :  { %v1095_v40 = vsub.s32 32, %v1094_v31  ;;  %v1097_v59 = vshll.u32 %v11272_v30, %v1094_v31  ;;  %v5500_v9 = vmul.f32 -0.36162457, %v8496_v34  ;;  %v1059_v22 = vcvt.s32.f32 %v1052_v16 }
 0x182   :  { %v1056_v58 = vor.u32 4788187, %v1055_v21  ;;  %v1100_v50 = vshll.u32 %v11270_v32, %v1094_v31  ;;  %v1103_v51 = vshll.u32 %v11312_v47, %v1094_v31  ;;  %v1106_v3 = vshll.u32 %v11268_v36, %v1094_v31 }
 0x183   :  { %v1096_v29 = vshrl.u32 %v11272_v30, %v1095_v40  ;;  %v1109_v61 = vshll.u32 %v11275_v38, %v1094_v31  ;;  %v5502_v63 = vmul.f32 %v8633_v57, %v8449_v42  ;;  %v1098_v60 = vshrl.u32 %v11270_v32, %v1095_v40 }
 0x184   :  { %v1057_v1 = vand.u32 2147483647, %v1056_v58  ;;  %v1101_v34 = vshrl.u32 %v11312_v47, %v1095_v40  ;;  %v1104_v49 = vshrl.u32 %v11268_v36, %v1095_v40  ;;  %v1107_v7 = vshrl.u32 %v11275_v38, %v1095_v40 }
 0x185   :  { %v1110_v37 = vshrl.u32 %v11313_v27, %v1095_v40  ;;  %vm1112_vm2 = vcmp.lt.s32.totalorder %v1093_v2, 1  ;;  %vm1113_vm3 = vcmp.lt.s32.totalorder %v1093_v2, 2  ;;  %v1099_v11 = vor.u32 %v1098_v60, %v1097_v59 }
 0x186   :  { %v1060_v33 = vmul.f32 %v1059_v22, %v1057_v1  ;;  %v1102_v25 = vor.u32 %v1101_v34, %v1100_v50  ;;  %v1105_v10 = vor.u32 %v1104_v49, %v1103_v51  ;;  %v1108_v48 = vor.u32 %v1107_v7, %v1106_v3  ;;  %v8679_v51 = vld [vmem:[#allocation3 + $0x8] sm:$0x1]  ;;  %v8688_v34 = vld [vmem:[#allocation2 + $0x8] sm:$0x1] }
 0x187   :  { %v1111_v4 = vor.u32 %v1110_v37, %v1109_v61  ;;  %vm1114_vm4 = vcmp.lt.s32.totalorder %v1093_v2, 3  ;;  %vm1115_vm5 = vcmp.lt.s32.totalorder %v1093_v2, 4  ;;  %v1116_v45 = vsel %vm1112_vm2, %v1096_v29, %v1099_v11 }
 0x188   :  { %v1061_v42 = vxor.u32 2147483648, %v1060_v33  ;;  %v1117_v46 = vsel %vm1115_vm5, %v1105_v10, 2102212464  ;;  %v1120_v54 = vsel %vm1112_vm2, %v1099_v11, %v1102_v25  ;;  %v1121_v31 = vsel %vm1115_vm5, %v1108_v48, 920167782 }
 0x189   :  { %v1118_v41 = vsel %vm1114_vm4, %v1102_v25, %v1117_v46  ;;  %v1124_v16 = vsel %vm1112_vm2, %v1102_v25, %v1105_v10  ;;  %v1125_v21 = vsel %vm1115_vm5, %v1111_v4, 1326507024  ;;  %v1122_v59 = vsel %vm1114_vm4, %v1105_v10, %v1121_v31 }
 0x18a   :  { %v1062_v40 = vsel %vm979_vm6, %v1061_v42, %v1060_v33  ;;  %v1126_v58 = vsel %vm1114_vm4, %v1108_v48, %v1125_v21  ;;  %v5503_v22 = vmul.f32 %v8636_v44, %v8544_v53  ;;  %v1119_v29 = vsel %vm1113_vm3, %v1116_v45, %v1118_v41 }
 0x18b   :  { %v1065_v50 = vsel %vm8567_vm7, %v8360_v39, %v1062_v40  ;;  %v1123_v3 = vsel %vm1113_vm3, %v1120_v54, %v1122_v59  ;;  %v1127_v61 = vsel %vm1113_vm3, %v1124_v16, %v1126_v58  ;;  %v8690_v49 = vsub.f32 %v5499_v6, %v5500_v9 }
 0x18c   :  { %6849 = vcosq.f32 %v1065_v50  ;;  %v8685_v1 = vmul.u32.u64.low %v8651_v15, %v1127_v61  ;;  %v8686_v60 = vmul.u32.u64.high %v8651_v15, %v1127_v61, %v8685_v1  ;;  %v5542_v37 = vmul.f32 -0.44150585, %v8688_v34 }
 0x18d   :  { %6851 = vsinq.f32 %v1065_v50  ;;  %v8693_v20 = vmul.u32.u64.low %v8651_v15, %v1123_v3  ;;  %v8694_v7 = vmul.u32.u64.high %v8651_v15, %v1123_v3, %v8693_v20  ;;  %vm1075_vm6 = vcmp.eq.s32.totalorder %v8649_v26, 2  ;;  %v8757_v1 = vld [vmem:[#allocation4 + $0xb] sm:$0x1] }
 0x18e   :  { %v1135_v2 = vmul.u32 %v8651_v15, %v1119_v29  ;;  %v5536_v33 = vmul.f32 1.525, %v8690_v49  ;;  %v5543_v11 = vmul.f32 -0.44150585, %v8679_v51  ;;  %v5504_v25 = vadd.f32 %v5503_v22, %v5502_v63 }
 0x18f   :  { %vm1072_vm7 = vcmp.eq.s32.totalorder %v8649_v26, 0  ;;  %v5565_v6 = vmul.f32 0.89725834, %v8690_v49  ;;  %v5566_v9 = vmul.f32 %v5542_v37, %v8626_v23  ;;  %v5505_v10 = vmul.f32 -0.36162457, %v8540_v52 }
 0x190   :  { %v5531_v48 = vmul.f32 %v8544_v53, %v8491_v56  ;;  %vm3577_vm8 = vcmp.lt.s32.totalorder %v8647_v55, 2  ;;  %vm1071_vm9 = vcmp.lt.s32.totalorder %v8649_v26, 2  ;;  %vm1137_vm15 = vc.u32 %v8686_v60, %v8693_v20 }
 0x191   :  { %v8713_v15 = vadd.f32 %v5536_v33, %v8524_v14  ;;  %v5568_v63 = vmul.f32 %v5543_v11, %v8653_v18  ;;  %v5572_v4 = vmul.f32 %v5542_v37, %v8639_v35  ;;  %v1138_v52 = vadd.s32 1, %v8694_v7 }
 0x192   :  { %v5567_v42 = vadd.f32 %v5566_v9, %v5565_v6  ;;  %v8719_v53 = vsub.f32 %v5504_v25, %v5505_v10  ;;  %v8722_v45 = vsub.f32 %v5531_v48, %v8596_v12  ;;  %v8725_v46 = vsub.f32 0.0, %v8614_v24 }
 0x193   :  { %v5613_v14 = vsel %vm5435_vm14, %v8713_v15, 0.0  ;;  %v5492_v54 = vmul.f32 %v8633_v57, %v8549_v19  ;;  %v5493_v41 = vmul.f32 %v8636_v44, %v8577_v28  ;;  %v1139_v31 = vsel %vm1137_vm15, %v1138_v52, %v8694_v7 }
 0x194   :  { %v8735_v16 = vadd.f32 %v5568_v63, %v5567_v42  ;;  %5615 = vst [vmem:[#allocation7 + $0x19] sm:$0x1] %v5613_v14  ;;  %v5538_v12 = vmul.f32 1.525, %v8719_v53  ;;  %v5571_v24 = vmul.f32 0.89725834, %v8719_v53  ;;  %v1140_v21 = vadd.s32 %v1139_v31, %v1135_v2 }
 0x195   :  { %v5494_v40 = vadd.f32 %v5493_v41, %v5492_v54  ;;  %v5495_v59 = vmul.f32 -0.36162457, %v8581_v5  ;;  %v5525_v58 = vmul.f32 %v8577_v28, %v8491_v56  ;;  %vm3578_vm11 = vcmp.eq.s32.totalorder %v8647_v55, 0 }
 0x196   :  { %v8744_v19 = vadd.f32 %v5538_v12, %v8557_v0  ;;  %v5573_v57 = vadd.f32 %v5572_v4, %v5571_v24  ;;  %v5574_v44 = vmul.f32 %v5543_v11, %v8722_v45  ;;  %v6850_v22 = vpop.eup %6849  ;;  %vm3581_vm0 = vcmp.eq.s32.totalorder %v8647_v55, 2 }
 0x197   :  { %v1141_v50 = vadd.s32 536870912, %v1140_v21  ;;  %v8748_v29 = vsub.f32 %v5494_v40, %v5495_v59  ;;  %v8751_v3 = vsub.f32 %v5525_v58, %v8600_v43  ;;  %v6852_v5 = vpop.eup %6851  ;;  %v1076_v61 = vxor.u32 2147483648, %v6850_v22 }
 0x198   :  { %v5575_v56 = vadd.f32 %v5574_v44, %v5573_v57  ;;  %v5616_v0 = vsel %vm5435_vm14, %v8744_v19, 0.0  ;;  %v5560_v28 = vmul.f32 %v5542_v37, %v8725_v46  ;;  %v1073_v7 = vxor.u32 2147483648, %v6852_v5 }
 0x199   :  { %v1142_v2 = vshrl.u32 %v1141_v50, 30  ;;  %5618 = vst [vmem:[#allocation7 + $0x1a] sm:$0x1] %v5616_v0  ;;  %v5534_v33 = vmul.f32 1.525, %v8748_v29  ;;  %v3583_v43 = vsel %vm3581_vm0, %v1076_v61, %v6852_v5  ;;  %v1077_v6 = vsel %vm1075_vm6, %v1076_v61, %v6852_v5 }
 0x19a   :  { %v11274_v25 = vand.u32 2147483647, %v8757_v1  ;;  %v5559_v9 = vmul.f32 0.89725834, %v8748_v29  ;;  %v5562_v10 = vmul.f32 %v5543_v11, %v8751_v3  ;;  %v3580_v37 = vsel %vm3578_vm11, %v6850_v22, %v1073_v7 }
 0x19b   :  { %v1074_v48 = vsel %vm1072_vm7, %v6850_v22, %v1073_v7  ;;  %v1143_v63 = vshll.u32 %v1142_v2, 30  ;;  %v1166_v4 = vsub.s32 4, %v1142_v2  ;;  %v3584_v52 = vsel %vm3577_vm8, %v3580_v37, %v3583_v43 }
 0x19c   :  { %v1078_v42 = vsel %vm1071_vm9, %v1074_v48, %v1077_v6  ;;  %v8774_v14 = vadd.f32 %v5534_v33, %v8606_v17  ;;  %v5561_v54 = vadd.f32 %v5560_v28, %v5559_v9  ;;  %v3585_v11 = vsel %vm1069_vm10, nan, %v3584_v52 }
 0x19d   :  { %v1079_v41 = vsel %vm1069_vm10, nan, %v1078_v42  ;;  %v1144_v31 = vsub.s32 %v1140_v21, %v1143_v63  ;;  %5051 = vst [vmem:[#allocation3 + $0x9] sm:$0x1] %v3585_v11  ;;  %vm1082_vm12 = vcmp.lt.s32.totalorder %v8563_v62, 0  ;;  %v1186_v24 = vand.u32 2139095040, %v8757_v1 }
 0x19e   :  { %2531 = vst [vmem:[#allocation2 + $0x9] sm:$0x1] %v1079_v41  ;;  %v8781_v55 = vadd.f32 %v5562_v10, %v5561_v54  ;;  %v5610_v26 = vsel %vm5435_vm14, %v8774_v14, 0.0  ;;  %v1167_v12 = vsel %vm1082_vm12, %v1166_v4, %v1142_v2  ;;  %v1190_v39 = vand.u32 8388607, %v11274_v25 }
 0x19f   :  { %v1146_v17 = vsub.s32 0, %v1144_v31  ;;  %5612 = vst [vmem:[#allocation7 + $0x18] sm:$0x1] %v5610_v26  ;;  %v8792_v21 = vmul.f32 0.89725834, %v8688_v34  ;;  %v1187_v57 = vshrl.u32 %v1186_v24, 23  ;;  %v5581_v50 = vmul.f32 %v8626_v23, %v8679_v51 }
 0x1a0   :  { %vm8796_vm13 = vcmp.le.f32.partialorder %v1080_v8, 0.7853982  ;;  %v1191_v44 = vor.u32 8388608, %v1190_v39  ;;  %v8805_v22 = vmul.f32 0.89725834, %v8679_v51  ;;  %v8811_v5 = vmul.f32 %v8639_v35, %v8679_v51 }
 0x1a1   :  { %v6554_v59 = vmin.u32 %v1146_v17, %v1144_v31  ;;  %v8802_v58 = vsel %vm8796_vm13, 0, %v1167_v12  ;;  %v8815_v8 = vmul.f32 %v8725_v46, %v8679_v51  ;;  %v8818_v0 = vsub.f32 0.0, %v8735_v16 }
 0x1a2   :  { %v8820_v28 = vsub.f32 0.0, %v5575_v56  ;;  %v6557_v7 = vadd.s32 4294967169, %v1187_v57  ;;  %v5549_v2 = vmul.f32 %v8792_v21, %v8626_v23  ;;  %v8825_v43 = vadd.s32 3, %v8802_v58 }
 0x1a3   :  { %v1148_v61 = vclz %v6554_v59  ;;  %v5550_v51 = vmul.f32 %v8805_v22, %v8653_v18  ;;  %v5580_v9 = vmul.f32 %v8653_v18, %v8688_v34  ;;  %v1136_v16 = vadd.s32 %v8693_v20, %v8686_v60 }
 0x1a4   :  { %v8827_v6 = vld [vmem:[#allocation3 + $0x9] sm:$0x1]  ;;  %v1193_v56 = vadd.s32 1, %v6557_v7  ;;  %v8835_v10 = vshll.u32 %v1191_v44, 8  ;;  %v5552_v23 = vmul.f32 -0.44150585, %v8690_v49  ;;  %v8850_v60 = vmul.f32 %v8792_v21, %v8639_v35 }
 0x1a5   :  { %v6555_v33 = vadd.s32 4294967294, %v1148_v61  ;;  %v8838_v37 = vld [vmem:[#allocation2 + $0x9] sm:$0x1]  ;;  %v5551_v48 = vadd.f32 %v5550_v51, %v5549_v2  ;;  %v8840_v63 = vsub.f32 %v5580_v9, %v5581_v50  ;;  %v8846_v18 = vmul.f32 -0.5254716, %v8827_v6 }
 0x1a6   :  { %v8843_v4 = vmul.f32 -0.5254716, %v8838_v37  ;;  %vm1194_vm1 = vcmp.gt.s32.totalorder %v1193_v56, 0  ;;  %v5555_v35 = vmul.f32 %v8805_v22, %v8722_v45  ;;  %vm5627_vm2 = vcmp.gt.s32.totalorder %v8288_v13, 3 }
 0x1a7   :  { %vm6556_vm14 = vcmp.lt.s32.totalorder %v6555_v33, 0  ;;  %v1195_v54 = vsel %vm1194_vm1, %v1193_v56, 0  ;;  %v8852_v26 = vsub.f32 %v5551_v48, %v5552_v23  ;;  %v8860_v39 = vmul.f32 %v8846_v18, %v8840_v63 }
 0x1a8   :  { %v1151_v52 = vsel %vm6556_vm14, 0, %v6555_v33  ;;  %v1196_v11 = vshrl.u32 %v1195_v54, 5  ;;  %v1197_v41 = vand.u32 31, %v1195_v54  ;;  %v8856_v17 = vmul.f32 %v8843_v4, %v8818_v0 }
 0x1a9   :  { %v1152_v20 = vsub.s32 32, %v1151_v52  ;;  %v1153_v49 = vshll.u32 %v1144_v31, %v1151_v52  ;;  %v1156_v42 = vsub.s32 4294967266, %v1151_v52  ;;  %vm1185_vm8 = vcmp.lt.s32.totalorder %v8757_v1, 0 }
 0x1aa   :  { %v1198_v31 = vsub.s32 32, %v1197_v41  ;;  %v1200_v59 = vshll.u32 %v11272_v30, %v1197_v41  ;;  %v1203_v57 = vshll.u32 %v11270_v32, %v1197_v41  ;;  %v1206_v44 = vshll.u32 %v11312_v47, %v1197_v41 }
 0x1ab   :  { %v1154_v12 = vshrl.u32 %v1136_v16, %v1152_v20  ;;  %v1157_v24 = vadd.s32 127, %v1156_v42  ;;  %v1209_v7 = vshll.u32 %v11268_v36, %v1197_v41  ;;  %v1212_v2 = vshll.u32 %v11275_v38, %v1197_v41 }
 0x1ac   :  { %v1199_v33 = vshrl.u32 %v11272_v30, %v1198_v31  ;;  %v1201_v51 = vshrl.u32 %v11270_v32, %v1198_v31  ;;  %v1204_v9 = vshrl.u32 %v11312_v47, %v1198_v31  ;;  %v1207_v16 = vshrl.u32 %v11268_v36, %v1198_v31 }
 0x1ad   :  { %v1155_v50 = vor.u32 %v1154_v12, %v1153_v49  ;;  %v1158_v61 = vshll.u32 %v1157_v24, 23  ;;  %v1210_v48 = vshrl.u32 %v11275_v38, %v1198_v31  ;;  %v1213_v52 = vshrl.u32 %v11313_v27, %v1198_v31 }
 0x1ae   :  { %v1202_v20 = vor.u32 %v1201_v51, %v1200_v59  ;;  %v1205_v49 = vor.u32 %v1204_v9, %v1203_v57  ;;  %v1208_v42 = vor.u32 %v1207_v16, %v1206_v44  ;;  %vm1215_vm3 = vcmp.lt.s32.totalorder %v1196_v11, 1 }
 0x1af   :  { %v1159_v56 = vor.u32 4788187, %v1158_v61  ;;  %v1162_v23 = vcvt.s32.f32 %v1155_v50  ;;  %v1211_v41 = vor.u32 %v1210_v48, %v1209_v7  ;;  %v1214_v12 = vor.u32 %v1213_v52, %v1212_v2 }
 0x1b0   :  { %vm1216_vm4 = vcmp.lt.s32.totalorder %v1196_v11, 2  ;;  %vm1217_vm5 = vcmp.lt.s32.totalorder %v1196_v11, 3  ;;  %vm1218_vm6 = vcmp.lt.s32.totalorder %v1196_v11, 4  ;;  %v1219_v24 = vsel %vm1215_vm3, %v1199_v33, %v1202_v20 }
 0x1b1   :  { %v1160_v54 = vand.u32 2147483647, %v1159_v56  ;;  %v1223_v36 = vsel %vm1215_vm3, %v1202_v20, %v1205_v49  ;;  %v1220_v30 = vsel %vm1218_vm6, %v1208_v42, 2102212464  ;;  %v1224_v61 = vsel %vm1218_vm6, %v1211_v41, 920167782 }
 0x1b2   :  { %v1227_v50 = vsel %vm1215_vm3, %v1205_v49, %v1208_v42  ;;  %v1221_v25 = vsel %vm1217_vm5, %v1205_v49, %v1220_v30  ;;  %v1225_v38 = vsel %vm1217_vm5, %v1208_v42, %v1224_v61  ;;  %v1228_v47 = vsel %vm1218_vm6, %v1214_v12, 1326507024 }
 0x1b3   :  { %v1163_v32 = vmul.f32 %v1162_v23, %v1160_v54  ;;  %v5588_v31 = vmul.f32 1.33, %v8852_v26  ;;  %v1222_v57 = vsel %vm1216_vm4, %v1219_v24, %v1221_v25  ;;  %v1226_v44 = vsel %vm1216_vm4, %v1223_v36, %v1225_v38 }
 0x1b4   :  { %v1229_v7 = vsel %vm1217_vm5, %v1211_v41, %v1228_v47  ;;  %v8881_v33 = vmul.u32.u64.low %v8835_v10, %v1226_v44  ;;  %v8882_v51 = vmul.u32.u64.high %v8835_v10, %v1226_v44, %v8881_v33  ;;  %v1238_v9 = vmul.u32 %v8835_v10, %v1222_v57 }
 0x1b5   :  { %v1164_v59 = vxor.u32 2147483648, %v1163_v32  ;;  %v1230_v2 = vsel %vm1216_vm4, %v1227_v50, %v1229_v7  ;;  %v8893_v25 = vadd.f32 %v5588_v31, %v8713_v15  ;;  %v5653_v38 = vmul.f32 0.8508111, %v8852_v26 }
 0x1b6   :  { %v8889_v16 = vmul.u32.u64.low %v8835_v10, %v1230_v2  ;;  %v8890_v56 = vmul.u32.u64.high %v8835_v10, %v1230_v2, %v8889_v16  ;;  %v5556_v47 = vadd.f32 %v5555_v35, %v8850_v60  ;;  %v5557_v11 = vmul.f32 -0.44150585, %v8719_v53 }
 0x1b7   :  { %v1165_v30 = vsel %vm1082_vm12, %v1164_v59, %v1163_v32  ;;  %v5787_v32 = vsel %vm5627_vm2, %v8893_v25, 0.0  ;;  %v5583_v10 = vmul.f32 %v8722_v45, %v8688_v34  ;;  %v5660_v15 = vmul.f32 %v8843_v4, %v8820_v28 }
 0x1b8   :  { %v1168_v36 = vsel %vm8796_vm13, %v8563_v62, %v1165_v30  ;;  %v1241_v40 = vadd.s32 1, %v8882_v51  ;;  %v5655_v23 = vadd.f32 %v8856_v17, %v5653_v38  ;;  %5789 = vst [vmem:[#allocation7 + $0x1c] sm:$0x1] %v5787_v32  ;;  %v8910_v60 = vsub.f32 %v5556_v47, %v5557_v11 }
 0x1b9   :  { %6853 = vcosq.f32 %v1168_v36  ;;  %v1173_v53 = vand.u32 3, %v8802_v58  ;;  %vm1240_vm7 = vc.u32 %v8890_v56, %v8881_v33  ;;  %v8916_v35 = vsub.f32 %v5583_v10, %v8811_v5 }
 0x1ba   :  { %6855 = vsinq.f32 %v1168_v36  ;;  %v5544_v45 = vmul.f32 %v8792_v21, %v8725_v46  ;;  %v1242_v48 = vsel %vm1240_vm7, %v1241_v40, %v8882_v51  ;;  %v8923_v17 = vadd.f32 %v8860_v39, %v5655_v23 }
 0x1bb   :  { %v5590_v52 = vmul.f32 1.33, %v8910_v60  ;;  %v5659_v58 = vmul.f32 0.8508111, %v8910_v60  ;;  %v3680_v20 = vand.u32 3, %v8825_v43  ;;  %v8929_v49 = vsub.f32 0.0, %v8781_v55 }
 0x1bc   :  { %v1243_v5 = vadd.s32 %v1242_v48, %v1238_v9  ;;  %v5545_v46 = vmul.f32 %v8805_v22, %v8751_v3  ;;  %vm1172_vm9 = vweird.f32 %v8563_v62  ;;  %v5662_v42 = vmul.f32 %v8846_v18, %v8916_v35 }
 0x1bd   :  { %v8935_v21 = vadd.f32 %v5590_v52, %v8744_v19  ;;  %v5661_v39 = vadd.f32 %v5660_v15, %v5659_v58  ;;  %v5577_v54 = vmul.f32 %v8751_v3, %v8688_v34  ;;  %v11318_v43 = vand.u32 2147483647, %v8757_v1  ;;  %v8954_v34 = vld [vmem:[#allocation4 + $0xc] sm:$0x1] }
 0x1be   :  { %v1244_v41 = vadd.s32 536870912, %v1243_v5  ;;  %v5546_v22 = vadd.f32 %v5545_v46, %v5544_v45  ;;  %v5547_v12 = vmul.f32 -0.44150585, %v8748_v29  ;;  %vm1174_vm10 = vcmp.lt.s32.totalorder %v1173_v53, 2 }
 0x1bf   :  { %vm8943_vm15 = vcmp.le.f32.partialorder %v11318_v43, 0.7853982  ;;  %v5663_v19 = vadd.f32 %v5662_v42, %v5661_v39  ;;  %v5790_v24 = vsel %vm5627_vm2, %v8935_v21, 0.0  ;;  %v8952_v61 = vsub.f32 %v5577_v54, %v8815_v8 }
 0x1c0   :  { %vm1175_vm11 = vcmp.eq.s32.totalorder %v1173_v53, 0  ;;  %vm1178_vm0 = vcmp.eq.s32.totalorder %v1173_v53, 2  ;;  %v1245_v3 = vshrl.u32 %v1244_v41, 30  ;;  %5792 = vst [vmem:[#allocation7 + $0x1d] sm:$0x1] %v5790_v24  ;;  %v8956_v50 = vsub.f32 %v5546_v22, %v5547_v12 }
 0x1c1   :  { %vm3681_vm12 = vcmp.lt.s32.totalorder %v3680_v20, 2  ;;  %vm3685_vm13 = vcmp.eq.s32.totalorder %v3680_v20, 2  ;;  %v5648_v29 = vmul.f32 %v8843_v4, %v8929_v49  ;;  %v1286_v31 = vand.u32 2147483647, %v8954_v34 }
 0x1c2   :  { %v1246_v57 = vshll.u32 %v1245_v3, 30  ;;  %v1269_v44 = vsub.s32 4, %v1245_v3  ;;  %v5586_v8 = vmul.f32 1.33, %v8956_v50  ;;  %v1289_v7 = vand.u32 2139095040, %v8954_v34 }
 0x1c3   :  { %v6854_v59 = vpop.eup %6853  ;;  %vm3682_vm14 = vcmp.eq.s32.totalorder %v3680_v20, 0  ;;  %v5647_v9 = vmul.f32 0.8508111, %v8956_v50  ;;  %v5650_v30 = vmul.f32 %v8846_v18, %v8952_v61  ;;  %v1293_v10 = vand.u32 8388607, %v1286_v31 }
 0x1c4   :  { %v6856_v2 = vpop.eup %6855  ;;  %v1179_v51 = vxor.u32 2147483648, %v6854_v59  ;;  %v8966_v36 = vsub.s32 %v1243_v5, %v1246_v57  ;;  %v1270_v4 = vsel %vm1185_vm8, %v1269_v44, %v1245_v3  ;;  %v8971_v38 = vadd.f32 %v5586_v8, %v8774_v14 }
 0x1c5   :  { %v1176_v16 = vxor.u32 2147483648, %v6856_v2  ;;  %v5649_v32 = vadd.f32 %v5648_v29, %v5647_v9  ;;  %v1290_v23 = vshrl.u32 %v1289_v7, 23  ;;  %v1272_v14 = vsel %vm8943_vm15, 0, %v1270_v4 }
 0x1c6   :  { %v3687_v47 = vsel %vm3685_vm13, %v1179_v51, %v6856_v2  ;;  %v1180_v11 = vsel %vm1178_vm0, %v1179_v51, %v6856_v2  ;;  %v1249_v40 = vsub.s32 0, %v8966_v36  ;;  %v8991_v39 = vmul.f32 0.8508111, %v8838_v37 }
 0x1c7   :  { %v3684_v15 = vsel %vm3682_vm14, %v6854_v59, %v1176_v16  ;;  %v1177_v18 = vsel %vm1175_vm11, %v6854_v59, %v1176_v16  ;;  %v8983_v52 = vadd.f32 %v5650_v30, %v5649_v32  ;;  %v5669_v53 = vmul.f32 %v8827_v6, %v8818_v0 }
 0x1c8   :  { %v3688_v45 = vsel %vm3681_vm12, %v3684_v15, %v3687_v47  ;;  %v1181_v48 = vsel %vm1174_vm10, %v1177_v18, %v1180_v11  ;;  %v6558_v46 = vmin.u32 %v1249_v40, %v8966_v36  ;;  %v8997_v20 = vmul.f32 %v8827_v6, %v8820_v28 }
 0x1c9   :  { %v3689_v58 = vsel %vm1172_vm9, nan, %v3688_v45  ;;  %v1182_v5 = vsel %vm1172_vm9, nan, %v1181_v48  ;;  %v9001_v42 = vmul.f32 %v8827_v6, %v8929_v49  ;;  %v1239_v62 = vadd.s32 %v8881_v33, %v8890_v56 }
 0x1ca   :  { %5052 = vst [vmem:[#allocation3 + $0xa] sm:$0x1] %v3689_v58  ;;  %2532 = vst [vmem:[#allocation2 + $0xa] sm:$0x1] %v1182_v5  ;;  %v1251_v54 = vclz %v6558_v46  ;;  %v3783_v43 = vadd.s32 3, %v1272_v14  ;;  %v9006_v41 = vsub.f32 0.0, %v8923_v17  ;;  %v5637_v33 = vmul.f32 %v8991_v39, %v8818_v0 }
 0x1cb   :  { %v9008_v22 = vsub.f32 0.0, %v5663_v19  ;;  %v5784_v12 = vsel %vm5627_vm2, %v8971_v38, 0.0  ;;  %v6561_v24 = vadd.s32 4294967169, %v1290_v23  ;;  %v1294_v3 = vor.u32 8388608, %v1293_v10 }
 0x1cc   :  { %v9014_v29 = vmul.f32 0.8508111, %v8827_v6  ;;  %v6559_v59 = vadd.s32 4294967294, %v1251_v54  ;;  %v9016_v57 = vand.u32 3, %v1272_v14  ;;  %5786 = vst [vmem:[#allocation7 + $0x1b] sm:$0x1] %v5784_v12  ;;  %v5668_v56 = vmul.f32 %v8838_v37, %v8840_v63 }
 0x1cd   :  { %v1296_v17 = vadd.s32 1, %v6561_v24  ;;  %v5642_v44 = vmul.f32 %v8991_v39, %v8820_v28  ;;  %v9028_v8 = vand.u32 3, %v3783_v43  ;;  %v5640_v7 = vmul.f32 -0.5254716, %v8852_v26 }
 0x1ce   :  { %v5638_v19 = vmul.f32 %v9014_v29, %v8840_v63  ;;  %v5643_v6 = vmul.f32 %v9014_v29, %v8916_v35  ;;  %vm6560_vm1 = vcmp.lt.s32.totalorder %v6559_v59, 0  ;;  %v9031_v2 = vsub.f32 %v5668_v56, %v5669_v53 }
 0x1cf   :  { %v1254_v0 = vsel %vm6560_vm1, 0, %v6559_v59  ;;  %vm1297_vm3 = vcmp.gt.s32.totalorder %v1296_v17, 0  ;;  %v9036_v47 = vshll.u32 %v1294_v3, 8  ;;  %v9039_v11 = vmul.f32 -0.5254716, %v8910_v60 }
 0x1d0   :  { %v5639_v51 = vadd.f32 %v5638_v19, %v5637_v33  ;;  %v9033_v9 = vadd.f32 %v5643_v6, %v5642_v44  ;;  %v1255_v30 = vsub.s32 32, %v1254_v0  ;;  %v1256_v63 = vshll.u32 %v8966_v36, %v1254_v0 }
 0x1d1   :  { %v1259_v16 = vsub.s32 4294967266, %v1254_v0  ;;  %v1298_v28 = vsel %vm1297_vm3, %v1296_v17, 0  ;;  %v9043_v26 = vmul.f32 %v8838_v37, %v8916_v35  ;;  %v11321_v45 = vmov 683565275   ;;  %v9054_v3 = vld [vmem:[#allocation3 + $0xa] sm:$0x1] }
 0x1d2   :  { %v1299_v4 = vshrl.u32 %v1298_v28, 5  ;;  %v1257_v32 = vshrl.u32 %v1239_v62, %v1255_v30  ;;  %v1300_v15 = vand.u32 31, %v1298_v28  ;;  %v9045_v18 = vsub.f32 %v5639_v51, %v5640_v7  ;;  %v9060_v19 = vld [vmem:[#allocation2 + $0xa] sm:$0x1] }
 0x1d3   :  { %v1260_v10 = vadd.s32 127, %v1259_v16  ;;  %v11322_v60 = vmov 2475754826   ;;  %v11323_v58 = vmov 2131351028   ;;  %v9109_v55 = vsub.f32 %v9033_v9, %v9039_v11 }
 0x1d4   :  { %vm1318_vm4 = vcmp.lt.s32.totalorder %v1299_v4, 1  ;;  %vm1319_vm5 = vcmp.lt.s32.totalorder %v1299_v4, 2  ;;  %vm1320_vm6 = vcmp.lt.s32.totalorder %v1299_v4, 3  ;;  %vm1321_vm7 = vcmp.lt.s32.totalorder %v1299_v4, 4 }
 0x1d5   :  { %v1258_v36 = vor.u32 %v1257_v32, %v1256_v63  ;;  %v1261_v40 = vshll.u32 %v1260_v10, 23  ;;  %v1301_v23 = vsub.s32 32, %v1300_v15  ;;  %v1303_v48 = vshll.u32 %v11321_v45, %v1300_v15 }
 0x1d6   :  { %v1306_v14 = vshll.u32 %v11322_v60, %v1300_v15  ;;  %v1309_v5 = vshll.u32 %v11323_v58, %v1300_v15  ;;  %v11324_v35 = vmov 2102212464   ;;  %v11325_v53 = vmov 920167782  }
 0x1d7   :  { %v1312_v46 = vshll.u32 %v11324_v35, %v1300_v15  ;;  %v1315_v62 = vshll.u32 %v11325_v53, %v1300_v15  ;;  %v1262_v54 = vor.u32 4788187, %v1261_v40  ;;  %v1265_v43 = vcvt.s32.f32 %v1258_v36 }
 0x1d8   :  { %v1302_v12 = vshrl.u32 %v11321_v45, %v1301_v23  ;;  %v1304_v24 = vshrl.u32 %v11322_v60, %v1301_v23  ;;  %v1307_v59 = vshrl.u32 %v11323_v58, %v1301_v23  ;;  %v1310_v33 = vshrl.u32 %v11324_v35, %v1301_v23 }
 0x1d9   :  { %v1313_v56 = vshrl.u32 %v11325_v53, %v1301_v23  ;;  %v1316_v17 = vshrl.u32 %v11313_v27, %v1301_v23  ;;  %v1263_v44 = vand.u32 2147483647, %v1262_v54  ;;  %v5676_v7 = vmul.f32 1.46, %v9045_v18 }
 0x1da   :  { %v1305_v6 = vor.u32 %v1304_v24, %v1303_v48  ;;  %v9064_v0 = vmul.f32 -0.36162457, %v9060_v19  ;;  %v1308_v51 = vor.u32 %v1307_v59, %v1306_v14  ;;  %v1311_v30 = vor.u32 %v1310_v33, %v1309_v5 }
 0x1db   :  { %v1314_v63 = vor.u32 %v1313_v56, %v1312_v46  ;;  %v1317_v16 = vor.u32 %v1316_v17, %v1315_v62  ;;  %v1266_v28 = vmul.f32 %v1265_v43, %v1263_v44  ;;  %v9068_v10 = vadd.f32 %v5676_v7, %v8893_v25 }
 0x1dc   :  { %v1322_v32 = vsel %vm1318_vm4, %v1302_v12, %v1305_v6  ;;  %v9071_v15 = vmul.f32 -0.36162457, %v9054_v3  ;;  %v1323_v36 = vsel %vm1321_vm7, %v1311_v30, 2102212464  ;;  %v1326_v40 = vsel %vm1318_vm4, %v1305_v6, %v1308_v51 }
 0x1dd   :  { %v1327_v23 = vsel %vm1321_vm7, %v1314_v63, 920167782  ;;  %v1330_v48 = vsel %vm1318_vm4, %v1308_v51, %v1311_v30  ;;  %v1267_v14 = vxor.u32 2147483648, %v1266_v28  ;;  %v1324_v5 = vsel %vm1320_vm6, %v1308_v51, %v1323_v36 }
 0x1de   :  { %v1328_v46 = vsel %vm1320_vm6, %v1311_v30, %v1327_v23  ;;  %v1331_v62 = vsel %vm1321_vm7, %v1317_v16, 1326507024  ;;  %v1325_v25 = vsel %vm1319_vm5, %v1322_v32, %v1324_v5  ;;  %v5705_v12 = vmul.f32 0.9323238, %v9045_v18 }
 0x1df   :  { %v1329_v54 = vsel %vm1319_vm5, %v1326_v40, %v1328_v46  ;;  %v1332_v43 = vsel %vm1320_vm6, %v1314_v63, %v1331_v62  ;;  %v1268_v24 = vsel %vm1185_vm8, %v1267_v14, %v1266_v28  ;;  %v1341_v7 = vmul.u32 %v9036_v47, %v1325_v25  ;;  %v9139_v14 = vld [vmem:[#allocation4 + $0xd] sm:$0x1] }
 0x1e0   :  { %v1333_v59 = vsel %vm1319_vm5, %v1330_v48, %v1332_v43  ;;  %v9088_v33 = vmul.u32.u64.low %v9036_v47, %v1329_v54  ;;  %v9089_v56 = vmul.u32.u64.high %v9036_v47, %v1329_v54, %v9088_v33  ;;  %v1271_v17 = vsel %vm8943_vm15, %v8757_v1, %v1268_v24 }
 0x1e1   :  { %v9096_v44 = vmul.u32.u64.low %v9036_v47, %v1333_v59  ;;  %v9097_v6 = vmul.u32.u64.high %v9036_v47, %v1333_v59, %v9096_v44  ;;  %6857 = vcosq.f32 %v1271_v17  ;;  %v5706_v4 = vmul.f32 %v9064_v0, %v9006_v41 }
 0x1e2   :  { %v5708_v51 = vmul.f32 %v9071_v15, %v9031_v2  ;;  %v5796_v30 = vsel %vm5627_vm2, %v9068_v10, 0.0  ;;  %6859 = vsinq.f32 %v1271_v17  ;;  %v9113_v47 = vsub.f32 %v9043_v26, %v8997_v20 }
 0x1e3   :  { %5798 = vst [vmem:[#allocation7 + $0x1f] sm:$0x1] %v5796_v30  ;;  %v5712_v63 = vmul.f32 %v9064_v0, %v9008_v22  ;;  %v1344_v16 = vadd.s32 1, %v9089_v56  ;;  %v5707_v28 = vadd.f32 %v5706_v4, %v5705_v12  ;;  %v5632_v32 = vmul.f32 %v8991_v39, %v8929_v49 }
 0x1e4   :  { %v5633_v36 = vmul.f32 %v9014_v29, %v8952_v61  ;;  %v9123_v40 = vsub.f32 0.0, %v8983_v52  ;;  %vm1343_vm8 = vc.u32 %v9097_v6, %v9088_v33  ;;  %v5678_v20 = vmul.f32 1.46, %v9109_v55 }
 0x1e5   :  { %v5711_v9 = vmul.f32 0.9323238, %v9109_v55  ;;  %v1345_v11 = vsel %vm1343_vm8, %v1344_v16, %v9089_v56  ;;  %v9130_v26 = vadd.f32 %v5708_v51, %v5707_v28  ;;  %v5714_v49 = vmul.f32 %v9071_v15, %v9113_v47 }
 0x1e6   :  { %v5634_v39 = vadd.f32 %v5633_v36, %v5632_v32  ;;  %vm1275_vm9 = vweird.f32 %v8757_v1  ;;  %v1346_v29 = vadd.s32 %v1345_v11, %v1341_v7  ;;  %v9136_v52 = vadd.f32 %v5678_v20, %v8935_v21 }
 0x1e7   :  { %v5713_v23 = vadd.f32 %v5712_v63, %v5711_v9  ;;  %v5635_v48 = vmul.f32 -0.5254716, %v8956_v50  ;;  %vm1277_vm15 = vcmp.lt.s32.totalorder %v9016_v57, 2  ;;  %vm1278_vm10 = vcmp.eq.s32.totalorder %v9016_v57, 0 }
 0x1e8   :  { %vm1288_vm11 = vcmp.lt.s32.totalorder %v8954_v34, 0  ;;  %v5665_v5 = vmul.f32 %v8838_v37, %v8952_v61  ;;  %v1347_v46 = vadd.s32 536870912, %v1346_v29  ;;  %v5799_v21 = vsel %vm5627_vm2, %v9136_v52, 0.0 }
 0x1e9   :  { %v5715_v62 = vadd.f32 %v5714_v49, %v5713_v23  ;;  %v9149_v25 = vsub.f32 %v5634_v39, %v5635_v48  ;;  %5801 = vst [vmem:[#allocation7 + $0x20] sm:$0x1] %v5799_v21  ;;  %v5700_v54 = vmul.f32 %v9064_v0, %v9123_v40  ;;  %v1389_v43 = vand.u32 2147483647, %v9139_v14 }
 0x1ea   :  { %v9152_v50 = vsub.f32 %v5665_v5, %v9001_v42  ;;  %v1392_v12 = vand.u32 2139095040, %v9139_v14  ;;  %vm3785_vm0 = vcmp.lt.s32.totalorder %v9028_v8, 2  ;;  %vm1281_vm12 = vcmp.eq.s32.totalorder %v9016_v57, 2 }
 0x1eb   :  { %v1348_v37 = vshrl.u32 %v1347_v46, 30  ;;  %v5674_v61 = vmul.f32 1.46, %v9149_v25  ;;  %v6858_v24 = vpop.eup %6857  ;;  %vm3786_vm13 = vcmp.eq.s32.totalorder %v9028_v8, 0  ;;  %vm3789_vm14 = vcmp.eq.s32.totalorder %v9028_v8, 2 }
 0x1ec   :  { %v5699_v42 = vmul.f32 0.9323238, %v9149_v25  ;;  %v1393_v59 = vshrl.u32 %v1392_v12, 23  ;;  %v6860_v0 = vpop.eup %6859  ;;  %v1282_v56 = vxor.u32 2147483648, %v6858_v24  ;;  %v5702_v30 = vmul.f32 %v9071_v15, %v9152_v50 }
 0x1ed   :  { %v1349_v17 = vshll.u32 %v1348_v37, 30  ;;  %v1372_v44 = vsub.s32 4, %v1348_v37  ;;  %v9165_v7 = vadd.f32 %v5674_v61, %v8971_v38  ;;  %v1279_v4 = vxor.u32 2147483648, %v6860_v0 }
 0x1ee   :  { %v5701_v51 = vadd.f32 %v5700_v54, %v5699_v42  ;;  %v1396_v63 = vand.u32 8388607, %v1389_v43  ;;  %v3791_v16 = vsel %vm3789_vm14, %v1282_v56, %v6860_v0  ;;  %v1283_v28 = vsel %vm1281_vm12, %v1282_v56, %v6860_v0 }
 0x1ef   :  { %v9173_v32 = vsub.s32 %v1346_v29, %v1349_v17  ;;  %v6565_v36 = vadd.s32 4294967169, %v1393_v59  ;;  %v3788_v20 = vsel %vm3786_vm13, %v6858_v24, %v1279_v4  ;;  %v1280_v38 = vsel %vm1278_vm10, %v6858_v24, %v1279_v4 }
 0x1f0   :  { %v1373_v9 = vsel %vm1288_vm11, %v1372_v44, %v1348_v37  ;;  %v5703_v15 = vadd.f32 %v5702_v30, %v5701_v51  ;;  %v3792_v11 = vsel %vm3785_vm0, %v3788_v20, %v3791_v16  ;;  %v1284_v49 = vsel %vm1277_vm15, %v1280_v38, %v1283_v28 }
 0x1f1   :  { %v1352_v39 = vsub.s32 0, %v9173_v32  ;;  %v3793_v29 = vsel %vm1275_vm9, nan, %v3792_v11  ;;  %v1285_v23 = vsel %vm1275_vm9, nan, %v1284_v49  ;;  %vm9192_vm1 = vcmp.le.f32.partialorder %v1286_v31, 0.7853982 }
 0x1f2   :  { %5053 = vst [vmem:[#allocation3 + $0xb] sm:$0x1] %v3793_v29  ;;  %2533 = vst [vmem:[#allocation2 + $0xb] sm:$0x1] %v1285_v23  ;;  %v1375_v57 = vsel %vm9192_vm1, 0, %v1373_v9  ;;  %v5793_v5 = vsel %vm5627_vm2, %v9165_v7, 0.0  ;;  %v5721_v1 = vmul.f32 %v9006_v41, %v9054_v3  ;;  %v9206_v31 = vmul.f32 %v9008_v22, %v9054_v3 }
 0x1f3   :  { %v6562_v8 = vmin.u32 %v1352_v39, %v9173_v32  ;;  %v1399_v46 = vadd.s32 1, %v6565_v36  ;;  %v9210_v21 = vmul.f32 %v9123_v40, %v9054_v3  ;;  %5795 = vst [vmem:[#allocation7 + $0x1e] sm:$0x1] %v5793_v5  ;;  %v1397_v54 = vor.u32 8388608, %v1396_v63 }
 0x1f4   :  { %v1342_v12 = vadd.s32 %v9088_v33, %v9097_v6  ;;  %v9215_v61 = vsub.f32 0.0, %v9130_v26  ;;  %v9217_v24 = vsub.f32 0.0, %v5715_v62  ;;  %v9219_v42 = vadd.s32 3, %v1375_v57 }
 0x1f5   :  { %v1354_v37 = vclz %v6562_v8  ;;  %v9221_v59 = vand.u32 3, %v1375_v57  ;;  %vm1400_vm3 = vcmp.gt.s32.totalorder %v1399_v46, 0  ;;  %v9224_v0 = vmul.f32 0.9323238, %v9060_v19 }
 0x1f6   :  { %v9226_v17 = vsub.f32 0.0, %v5703_v15  ;;  %v1401_v44 = vsel %vm1400_vm3, %v1399_v46, 0  ;;  %v5720_v33 = vmul.f32 %v9031_v2, %v9060_v19  ;;  %v9230_v26 = vshll.u32 %v1397_v54, 8 }
 0x1f7   :  { %v6563_v56 = vadd.s32 4294967294, %v1354_v37  ;;  %v1403_v6 = vand.u32 31, %v1401_v44  ;;  %v9233_v62 = vmul.f32 0.9323238, %v9054_v3  ;;  %v5692_v4 = vmul.f32 -0.36162457, %v9045_v18 }
 0x1f8   :  { %v1402_v51 = vshrl.u32 %v1401_v44, 5  ;;  %v9236_v30 = vsub.f32 %v5720_v33, %v5721_v1  ;;  %v9239_v63 = vmul.f32 -0.36162457, %v9109_v55  ;;  %v5689_v20 = vmul.f32 %v9224_v0, %v9006_v41 }
 0x1f9   :  { %vm6564_vm4 = vcmp.lt.s32.totalorder %v6563_v56, 0  ;;  %v1404_v28 = vsub.s32 32, %v1403_v6  ;;  %v1406_v36 = vshll.u32 %v11321_v45, %v1403_v6  ;;  %v1409_v18 = vshll.u32 %v11322_v60, %v1403_v6 }
 0x1fa   :  { %v1357_v16 = vsel %vm6564_vm4, 0, %v6563_v56  ;;  %v5690_v55 = vmul.f32 %v9233_v62, %v9031_v2  ;;  %v5694_v49 = vmul.f32 %v9224_v0, %v9008_v22  ;;  %v1412_v23 = vshll.u32 %v11323_v58, %v1403_v6 }
 0x1fb   :  { %v1358_v38 = vsub.s32 32, %v1357_v16  ;;  %v1359_v3 = vshll.u32 %v9173_v32, %v1357_v16  ;;  %v1362_v9 = vsub.s32 4294967266, %v1357_v16  ;;  %v1405_v15 = vshrl.u32 %v11321_v45, %v1404_v28 }
 0x1fc   :  { %v1407_v11 = vshrl.u32 %v11322_v60, %v1404_v28  ;;  %v1410_v41 = vshrl.u32 %v11323_v58, %v1404_v28  ;;  %v1413_v8 = vshrl.u32 %v11324_v35, %v1404_v28  ;;  %v1415_v57 = vshll.u32 %v11324_v35, %v1403_v6 }
 0x1fd   :  { %v1360_v39 = vshrl.u32 %v1342_v12, %v1358_v38  ;;  %v1363_v29 = vadd.s32 127, %v1362_v9  ;;  %v1416_v5 = vshrl.u32 %v11325_v53, %v1404_v28  ;;  %v1418_v2 = vshll.u32 %v11325_v53, %v1403_v6 }
 0x1fe   :  { %v1408_v32 = vor.u32 %v1407_v11, %v1406_v36  ;;  %v1411_v54 = vor.u32 %v1410_v41, %v1409_v18  ;;  %v1414_v37 = vor.u32 %v1413_v8, %v1412_v23  ;;  %v1419_v12 = vshrl.u32 %v11313_v27, %v1404_v28  ;;  %v9261_v41 = vld [vmem:[#allocation3 + $0xb] sm:$0x1] }
 0x1ff   :  { %v1361_v46 = vor.u32 %v1360_v39, %v1359_v3  ;;  %v1364_v1 = vshll.u32 %v1363_v29, 23  ;;  %v1417_v22 = vor.u32 %v1416_v5, %v1415_v57  ;;  %vm1421_vm5 = vcmp.lt.s32.totalorder %v1402_v51, 1 }
 0x200   :  { %vm1422_vm6 = vcmp.lt.s32.totalorder %v1402_v51, 2  ;;  %vm1423_vm7 = vcmp.lt.s32.totalorder %v1402_v51, 3  ;;  %v1420_v33 = vor.u32 %v1419_v12, %v1418_v2  ;;  %vm1424_vm8 = vcmp.lt.s32.totalorder %v1402_v51, 4 }
 0x201   :  { %v1365_v56 = vor.u32 4788187, %v1364_v1  ;;  %v1368_v44 = vcvt.s32.f32 %v1361_v46  ;;  %v1425_v16 = vsel %vm1421_vm5, %v1405_v15, %v1408_v32  ;;  %v1429_v36 = vsel %vm1421_vm5, %v1408_v32, %v1411_v54 }
 0x202   :  { %v1426_v9 = vsel %vm1424_vm8, %v1414_v37, 2102212464  ;;  %v1430_v3 = vsel %vm1424_vm8, %v1417_v22, 920167782  ;;  %v1433_v11 = vsel %vm1421_vm5, %v1411_v54, %v1414_v37  ;;  %v1434_v39 = vsel %vm1424_vm8, %v1420_v33, 1326507024 }
 0x203   :  { %v1366_v38 = vand.u32 2147483647, %v1365_v56  ;;  %v1427_v18 = vsel %vm1423_vm7, %v1411_v54, %v1426_v9  ;;  %v1431_v6 = vsel %vm1423_vm7, %v1414_v37, %v1430_v3  ;;  %v5691_v29 = vadd.f32 %v5690_v55, %v5689_v20  ;;  %v9278_v54 = vld [vmem:[#allocation2 + $0xb] sm:$0x1] }
 0x204   :  { %v1428_v23 = vsel %vm1422_vm6, %v1425_v16, %v1427_v18  ;;  %v1432_v8 = vsel %vm1422_vm6, %v1429_v36, %v1431_v6  ;;  %v1435_v15 = vsel %vm1423_vm7, %v1417_v22, %v1434_v39  ;;  %v5695_v46 = vmul.f32 %v9233_v62, %v9113_v47 }
 0x205   :  { %v1369_v28 = vmul.f32 %v1368_v44, %v1366_v38  ;;  %v1436_v32 = vsel %vm1422_vm6, %v1433_v11, %v1435_v15  ;;  %v9268_v57 = vmul.u32.u64.low %v9230_v26, %v1432_v8  ;;  %v9269_v5 = vmul.u32.u64.high %v9230_v26, %v1432_v8, %v9268_v57 }
 0x206   :  { %v9275_v55 = vmul.u32.u64.low %v9230_v26, %v1436_v32  ;;  %v9276_v1 = vmul.u32.u64.high %v9230_v26, %v1436_v32, %v9275_v55  ;;  %v9280_v2 = vsub.f32 %v5691_v29, %v5692_v4  ;;  %v1444_v51 = vmul.u32 %v9230_v26, %v1428_v23 }
 0x207   :  { %v1370_v20 = vxor.u32 2147483648, %v1369_v28  ;;  %v5734_v37 = vmul.f32 -0.44150585, %v9278_v54  ;;  %v5735_v22 = vmul.f32 -0.44150585, %v9261_v41  ;;  %v5696_v12 = vadd.f32 %v5695_v46, %v5694_v49 }
 0x208   :  { %v5728_v44 = vmul.f32 1.525, %v9280_v2  ;;  %v5757_v33 = vmul.f32 0.89725834, %v9280_v2  ;;  %v5723_v16 = vmul.f32 %v9113_v47, %v9060_v19  ;;  %v1447_v26 = vadd.s32 1, %v9269_v5 }
 0x209   :  { %v1371_v56 = vsel %vm1288_vm11, %v1370_v20, %v1369_v28  ;;  %v5758_v36 = vmul.f32 %v5734_v37, %v9215_v61  ;;  %v5684_v49 = vmul.f32 %v9224_v0, %v9123_v40  ;;  %vm1446_vm9 = vc.u32 %v9276_v1, %v9268_v57  ;;  %v9348_v55 = vld [vmem:[#allocation4 + $0xe] sm:$0x1] }
 0x20a   :  { %v1374_v4 = vsel %vm9192_vm1, %v8954_v34, %v1371_v56  ;;  %v9301_v38 = vadd.f32 %v5728_v44, %v9068_v10  ;;  %v5760_v47 = vmul.f32 %v5735_v22, %v9236_v30  ;;  %v1448_v48 = vsel %vm1446_vm9, %v1447_v26, %v9269_v5 }
 0x20b   :  { %6861 = vcosq.f32 %v1374_v4  ;;  %v5759_v9 = vadd.f32 %v5758_v36, %v5757_v33  ;;  %v9306_v3 = vsub.f32 %v5696_v12, %v9239_v63  ;;  %v1449_v11 = vadd.s32 %v1448_v48, %v1444_v51 }
 0x20c   :  { %6863 = vsinq.f32 %v1374_v4  ;;  %v5805_v40 = vsel %vm5627_vm2, %v9301_v38, 0.0  ;;  %v9312_v0 = vsub.f32 %v5723_v16, %v9206_v31  ;;  %v5764_v10 = vmul.f32 %v5734_v37, %v9217_v24 }
 0x20d   :  { %v9315_v18 = vadd.f32 %v5760_v47, %v5759_v9  ;;  %5807 = vst [vmem:[#allocation7 + $0x22] sm:$0x1] %v5805_v40  ;;  %v5730_v6 = vmul.f32 1.525, %v9306_v3  ;;  %v5763_v39 = vmul.f32 0.89725834, %v9306_v3  ;;  %v5685_v63 = vmul.f32 %v9233_v62, %v9152_v50 }
 0x20e   :  { %v3888_v29 = vand.u32 3, %v9219_v42  ;;  %v1450_v28 = vadd.s32 536870912, %v1449_v11  ;;  %v5766_v23 = vmul.f32 %v5735_v22, %v9312_v0  ;;  %v5717_v31 = vmul.f32 %v9152_v50, %v9060_v19 }
 0x20f   :  { %vm1378_vm15 = vweird.f32 %v8954_v34  ;;  %v9327_v8 = vadd.f32 %v5730_v6, %v9136_v52  ;;  %v5765_v15 = vadd.f32 %v5764_v10, %v5763_v39  ;;  %v5686_v32 = vadd.f32 %v5685_v63, %v5684_v49 }
 0x210   :  { %v5687_v5 = vmul.f32 -0.36162457, %v9149_v25  ;;  %vm9332_vm10 = vcmp.le.f32.partialorder %v1389_v43, 0.7853982  ;;  %vm1391_vm11 = vcmp.lt.s32.totalorder %v9139_v14, 0  ;;  %v1451_v42 = vshrl.u32 %v1450_v28, 30 }
 0x211   :  { %v9338_v19 = vsub.f32 %v5717_v31, %v9210_v21  ;;  %v5767_v50 = vadd.f32 %v5766_v23, %v5765_v15  ;;  %v5808_v52 = vsel %vm5627_vm2, %v9327_v8, 0.0  ;;  %v5752_v25 = vmul.f32 %v5734_v37, %v9226_v17 }
 0x212   :  { %v9343_v46 = vsub.f32 %v5686_v32, %v5687_v5  ;;  %vm1380_vm0 = vcmp.lt.s32.totalorder %v9221_v59, 2  ;;  %vm1381_vm12 = vcmp.eq.s32.totalorder %v9221_v59, 0  ;;  %v1452_v43 = vshll.u32 %v1451_v42, 30  ;;  %5810 = vst [vmem:[#allocation7 + $0x23] sm:$0x1] %v5808_v52 }
 0x213   :  { %v1475_v20 = vsub.s32 4, %v1451_v42  ;;  %vm3889_vm13 = vcmp.lt.s32.totalorder %v3888_v29, 2  ;;  %vm1384_vm14 = vcmp.eq.s32.totalorder %v9221_v59, 2  ;;  %vm3890_vm1 = vcmp.eq.s32.totalorder %v3888_v29, 0 }
 0x214   :  { %v5726_v21 = vmul.f32 1.525, %v9343_v46  ;;  %v5751_v51 = vmul.f32 0.89725834, %v9343_v46  ;;  %vm3893_vm3 = vcmp.eq.s32.totalorder %v3888_v29, 2  ;;  %v9353_v37 = vsub.s32 %v1449_v11, %v1452_v43 }
 0x215   :  { %v6862_v12 = vpop.eup %6861  ;;  %v5754_v56 = vmul.f32 %v5735_v22, %v9338_v19  ;;  %v1476_v16 = vsel %vm1391_vm11, %v1475_v20, %v1451_v42  ;;  %v1492_v47 = vand.u32 2147483647, %v9348_v55  ;;  %v1495_v48 = vand.u32 2139095040, %v9348_v55 }
 0x216   :  { %v6864_v44 = vpop.eup %6863  ;;  %v1385_v33 = vxor.u32 2147483648, %v6862_v12  ;;  %v9359_v4 = vadd.f32 %v5726_v21, %v9165_v7  ;;  %v5753_v26 = vadd.f32 %v5752_v25, %v5751_v51  ;;  %v1455_v49 = vsub.s32 0, %v9353_v37 }
 0x217   :  { %v1382_v36 = vxor.u32 2147483648, %v6864_v44  ;;  %v1478_v39 = vsel %vm9332_vm10, 0, %v1476_v16  ;;  %v5773_v28 = vmul.f32 %v9215_v61, %v9261_v41  ;;  %v1499_v32 = vand.u32 8388607, %v1492_v47 }
 0x218   :  { %v3895_v9 = vsel %vm3893_vm3, %v1385_v33, %v6864_v44  ;;  %v1386_v22 = vsel %vm1384_vm14, %v1385_v33, %v6864_v44  ;;  %v5755_v11 = vadd.f32 %v5754_v56, %v5753_v26  ;;  %v5802_v40 = vsel %vm5627_vm2, %v9359_v4, 0.0 }
 0x219   :  { %v3892_v7 = vsel %vm3890_vm1, %v6862_v12, %v1382_v36  ;;  %v1383_v10 = vsel %vm1381_vm12, %v6862_v12, %v1382_v36  ;;  %v6566_v6 = vmin.u32 %v1455_v49, %v9353_v37  ;;  %5804 = vst [vmem:[#allocation7 + $0x21] sm:$0x1] %v5802_v40  ;;  %v9388_v29 = vmul.f32 %v9217_v24, %v9261_v41 }
 0x21a   :  { %v3896_v63 = vsel %vm3889_vm13, %v3892_v7, %v3895_v9  ;;  %v1387_v13 = vsel %vm1380_vm0, %v1383_v10, %v1386_v22  ;;  %v9392_v59 = vmul.f32 %v9226_v17, %v9261_v41  ;;  %v1445_v5 = vadd.s32 %v9268_v57, %v9276_v1 }
 0x21b   :  { %v3897_v23 = vsel %vm1378_vm15, nan, %v3896_v63  ;;  %v1388_v31 = vsel %vm1378_vm15, nan, %v1387_v13  ;;  %v1457_v15 = vclz %v6566_v6  ;;  %v3991_v42 = vadd.s32 3, %v1478_v39 }
 0x21c   :  { %5054 = vst [vmem:[#allocation3 + $0xc] sm:$0x1] %v3897_v23  ;;  %2534 = vst [vmem:[#allocation2 + $0xc] sm:$0x1] %v1388_v31  ;;  %v9397_v52 = vsub.f32 0.0, %v9315_v18  ;;  %v1496_v25 = vshrl.u32 %v1495_v48, 23  ;;  %v5772_v12 = vmul.f32 %v9236_v30, %v9278_v54 }
 0x21d   :  { %v6567_v34 = vadd.s32 4294967294, %v1457_v15  ;;  %v9400_v43 = vmul.f32 0.89725834, %v9278_v54  ;;  %v9402_v20 = vsub.f32 0.0, %v5767_v50  ;;  %v9404_v21 = vand.u32 3, %v1478_v39 }
 0x21e   :  { %v9407_v51 = vmul.f32 0.89725834, %v9261_v41  ;;  %v6569_v57 = vadd.s32 4294967169, %v1496_v25  ;;  %v1500_v1 = vor.u32 8388608, %v1499_v32  ;;  %v9413_v44 = vand.u32 3, %v3991_v42 }
 0x21f   :  { %vm6568_vm2 = vcmp.lt.s32.totalorder %v6567_v34, 0  ;;  %v5741_v18 = vmul.f32 %v9400_v43, %v9215_v61  ;;  %v9417_v33 = vsub.f32 %v5772_v12, %v5773_v28  ;;  %v9420_v49 = vsub.f32 0.0, %v5755_v11 }
 0x220   :  { %v1460_v56 = vsel %vm6568_vm2, 0, %v6567_v34  ;;  %v5742_v50 = vmul.f32 %v9407_v51, %v9236_v30  ;;  %v1502_v36 = vadd.s32 1, %v6569_v57  ;;  %v5744_v9 = vmul.f32 -0.44150585, %v9280_v2 }
 0x221   :  { %v1461_v16 = vsub.s32 32, %v1460_v56  ;;  %v1462_v41 = vshll.u32 %v9353_v37, %v1460_v56  ;;  %v1465_v26 = vsub.s32 4294967266, %v1460_v56  ;;  %v5746_v61 = vmul.f32 %v9400_v43, %v9217_v24 }
 0x222   :  { %v5743_v48 = vadd.f32 %v5742_v50, %v5741_v18  ;;  %vm1503_vm4 = vcmp.gt.s32.totalorder %v1502_v36, 0  ;;  %v9427_v30 = vshll.u32 %v1500_v1, 8  ;;  %v5747_v37 = vmul.f32 %v9407_v51, %v9312_v0 }
 0x223   :  { %v1463_v22 = vshrl.u32 %v1445_v5, %v1461_v16  ;;  %v1466_v40 = vadd.s32 127, %v1465_v26  ;;  %v9425_v7 = vld [vmem:[#allocation3 + $0xc] sm:$0x1]  ;;  %v1504_v10 = vsel %vm1503_vm4, %v1502_v36, 0  ;;  %v9432_v11 = vmul.f32 -0.44150585, %v9306_v3 }
 0x224   :  { %v9436_v2 = vmul.f32 %v9312_v0, %v9278_v54  ;;  %v1505_v39 = vshrl.u32 %v1504_v10, 5  ;;  %v1506_v63 = vand.u32 31, %v1504_v10  ;;  %v9438_v28 = vld [vmem:[#allocation2 + $0xc] sm:$0x1]  ;;  %v9440_v13 = vsub.f32 %v5743_v48, %v5744_v9  ;;  %v9462_v9 = vld [vmem:[%s11262_s1] sm:$0x1] }
 0x225   :  { %v1464_v6 = vor.u32 %v1463_v22, %v1462_v41  ;;  %v1467_v24 = vshll.u32 %v1466_v40, 23  ;;  %v9443_v23 = vmul.f32 -0.5254716, %v9438_v28  ;;  %v9446_v31 = vmul.f32 -0.5254716, %v9425_v7 }
 0x226   :  { %v5748_v3 = vadd.f32 %v5747_v37, %v5746_v61  ;;  %v1507_v5 = vsub.s32 32, %v1506_v63  ;;  %v1509_v0 = vshll.u32 %v11321_v45, %v1506_v63  ;;  %v1512_v42 = vshll.u32 %v11322_v60, %v1506_v63 }
 0x227   :  { %v1468_v15 = vor.u32 4788187, %v1467_v24  ;;  %v1471_v32 = vcvt.s32.f32 %v1464_v6  ;;  %v1515_v34 = vshll.u32 %v11323_v58, %v1506_v63  ;;  %v1518_v25 = vshll.u32 %v11324_v35, %v1506_v63 }
 0x228   :  { %v1521_v12 = vshll.u32 %v11325_v53, %v1506_v63  ;;  %v1508_v1 = vshrl.u32 %v11321_v45, %v1507_v5  ;;  %v1510_v18 = vshrl.u32 %v11322_v60, %v1507_v5  ;;  %v1513_v56 = vshrl.u32 %v11323_v58, %v1507_v5 }
 0x229   :  { %v1469_v57 = vand.u32 2147483647, %v1468_v15  ;;  %v1516_v50 = vshrl.u32 %v11324_v35, %v1507_v5  ;;  %v1519_v16 = vshrl.u32 %v11325_v53, %v1507_v5  ;;  %v1522_v41 = vshrl.u32 %v11313_v27, %v1507_v5 }
 0x22a   :  { %vm1524_vm5 = vcmp.lt.s32.totalorder %v1505_v39, 1  ;;  %v1511_v36 = vor.u32 %v1510_v18, %v1509_v0  ;;  %v1514_v48 = vor.u32 %v1513_v56, %v1512_v42  ;;  %vm1525_vm6 = vcmp.lt.s32.totalorder %v1505_v39, 2 }
 0x22b   :  { %v1472_v26 = vmul.f32 %v1471_v32, %v1469_v57  ;;  %vm5819_vm7 = vcmp.gt.s32.totalorder %v9462_v9, 4  ;;  %v1517_v61 = vor.u32 %v1516_v50, %v1515_v34  ;;  %v1520_v22 = vor.u32 %v1519_v16, %v1518_v25 }
 0x22c   :  { %v1523_v40 = vor.u32 %v1522_v41, %v1521_v12  ;;  %vm1526_vm8 = vcmp.lt.s32.totalorder %v1505_v39, 3  ;;  %vm1527_vm9 = vcmp.lt.s32.totalorder %v1505_v39, 4  ;;  %v1528_v37 = vsel %vm1524_vm5, %v1508_v1, %v1511_v36 }
 0x22d   :  { %v1473_v10 = vxor.u32 2147483648, %v1472_v26  ;;  %v1532_v6 = vsel %vm1524_vm5, %v1511_v36, %v1514_v48  ;;  %v1529_v24 = vsel %vm1527_vm9, %v1517_v61, 2102212464  ;;  %v1533_v63 = vsel %vm1527_vm9, %v1520_v22, 920167782 }
 0x22e   :  { %v1536_v15 = vsel %vm1524_vm5, %v1514_v48, %v1517_v61  ;;  %v1537_v32 = vsel %vm1527_vm9, %v1523_v40, 1326507024  ;;  %v1530_v0 = vsel %vm1526_vm8, %v1514_v48, %v1529_v24  ;;  %v1534_v42 = vsel %vm1526_vm8, %v1517_v61, %v1533_v63 }
 0x22f   :  { %v1474_v5 = vsel %vm1391_vm11, %v1473_v10, %v1472_v26  ;;  %v1538_v34 = vsel %vm1526_vm8, %v1520_v22, %v1537_v32  ;;  %v1531_v12 = vsel %vm1525_vm6, %v1528_v37, %v1530_v0  ;;  %v1535_v57 = vsel %vm1525_vm6, %v1532_v6, %v1534_v42  ;;  %v9530_v32 = vld [vmem:[#allocation4 + $0xf] sm:$0x1] }
 0x230   :  { %v1477_v25 = vsel %vm9332_vm10, %v9139_v14, %v1474_v5  ;;  %v1539_v1 = vsel %vm1525_vm6, %v1536_v15, %v1538_v34  ;;  %v5736_v50 = vmul.f32 %v9400_v43, %v9226_v17  ;;  %v5780_v62 = vmul.f32 1.33, %v9440_v13 }
 0x231   :  { %6865 = vcosq.f32 %v1477_v25  ;;  %v9477_v18 = vmul.u32.u64.low %v9427_v30, %v1539_v1  ;;  %v9478_v56 = vmul.u32.u64.high %v9427_v30, %v1539_v1, %v9477_v18  ;;  %v1547_v26 = vmul.u32 %v9427_v30, %v1531_v12 }
 0x232   :  { %6867 = vsinq.f32 %v1477_v25  ;;  %v9483_v16 = vmul.u32.u64.low %v9427_v30, %v1535_v57  ;;  %v9484_v41 = vmul.u32.u64.high %v9427_v30, %v1535_v57, %v9483_v16  ;;  %v5845_v39 = vmul.f32 0.8508111, %v9440_v13 }
 0x233   :  { %v5846_v36 = vmul.f32 %v9443_v23, %v9397_v52  ;;  %v9493_v48 = vsub.f32 %v5748_v3, %v9432_v11  ;;  %v9496_v17 = vadd.f32 %v5780_v62, %v9301_v38  ;;  %v5848_v43 = vmul.f32 %v9446_v31, %v9417_v33 }
 0x234   :  { %v9502_v61 = vsub.f32 %v9436_v2, %v9388_v29  ;;  %v5852_v30 = vmul.f32 %v9443_v23, %v9402_v20  ;;  %vm1483_vm15 = vcmp.lt.s32.totalorder %v9404_v21, 2  ;;  %vm1549_vm10 = vc.u32 %v9478_v56, %v9483_v16 }
 0x235   :  { %v5847_v11 = vadd.f32 %v5846_v36, %v5845_v39  ;;  %v5782_v3 = vmul.f32 1.33, %v9493_v48  ;;  %v5737_v38 = vmul.f32 %v9407_v51, %v9338_v19  ;;  %vm1481_vm11 = vweird.f32 %v9139_v14 }
 0x236   :  { %vm1484_vm0 = vcmp.eq.s32.totalorder %v9404_v21, 0  ;;  %v1550_v29 = vadd.s32 1, %v9484_v41  ;;  %v5979_v2 = vsel %vm5819_vm7, %v9496_v17, 0.0  ;;  %v5851_v22 = vmul.f32 0.8508111, %v9493_v48 }
 0x237   :  { %v9519_v40 = vadd.f32 %v5848_v43, %v5847_v11  ;;  %5981 = vst [vmem:[#allocation7 + $0x25] sm:$0x1] %v5979_v2  ;;  %v9522_v10 = vadd.f32 %v5782_v3, %v9327_v8  ;;  %v5738_v37 = vadd.f32 %v5737_v38, %v5736_v50  ;;  %v5739_v51 = vmul.f32 -0.44150585, %v9343_v46 }
 0x238   :  { %v1551_v6 = vsel %vm1549_vm10, %v1550_v29, %v9484_v41  ;;  %v5853_v24 = vadd.f32 %v5852_v30, %v5851_v22  ;;  %v5854_v63 = vmul.f32 %v9446_v31, %v9502_v61  ;;  %v5769_v15 = vmul.f32 %v9338_v19, %v9278_v54 }
 0x239   :  { %v1552_v5 = vadd.s32 %v1551_v6, %v1547_v26  ;;  %v5982_v8 = vsel %vm5819_vm7, %v9522_v10, 0.0  ;;  %v9535_v0 = vsub.f32 %v5738_v37, %v5739_v51  ;;  %v5840_v46 = vmul.f32 %v9443_v23, %v9420_v49 }
 0x23a   :  { %vm3997_vm12 = vcmp.eq.s32.totalorder %v9413_v44, 2  ;;  %vm1487_vm13 = vcmp.eq.s32.totalorder %v9404_v21, 2  ;;  %v5855_v42 = vadd.f32 %v5854_v63, %v5853_v24  ;;  %5984 = vst [vmem:[#allocation7 + $0x26] sm:$0x1] %v5982_v8  ;;  %v9542_v54 = vsub.f32 %v5769_v15, %v9392_v59 }
 0x23b   :  { %v6866_v19 = vpop.eup %6865  ;;  %v1553_v34 = vadd.s32 536870912, %v1552_v5  ;;  %v5778_v25 = vmul.f32 1.33, %v9535_v0  ;;  %v5839_v12 = vmul.f32 0.8508111, %v9535_v0  ;;  %v1598_v57 = vand.u32 2139095040, %v9530_v32 }
 0x23c   :  { %v6868_v1 = vpop.eup %6867  ;;  %v1488_v18 = vxor.u32 2147483648, %v6866_v19  ;;  %vm3993_vm14 = vcmp.lt.s32.totalorder %v9413_v44, 2  ;;  %vm3994_vm1 = vcmp.eq.s32.totalorder %v9413_v44, 0  ;;  %v1595_v23 = vand.u32 2147483647, %v9530_v32 }
 0x23d   :  { %v1485_v50 = vxor.u32 2147483648, %v6868_v1  ;;  %v1554_v41 = vshrl.u32 %v1553_v34, 30  ;;  %v9551_v59 = vadd.f32 %v5778_v25, %v9359_v4  ;;  %v5841_v62 = vadd.f32 %v5840_v46, %v5839_v12 }
 0x23e   :  { %v3999_v26 = vsel %vm3997_vm12, %v1488_v18, %v6868_v1  ;;  %v1489_v39 = vsel %vm1487_vm13, %v1488_v18, %v6868_v1  ;;  %v5842_v36 = vmul.f32 %v9446_v31, %v9542_v54  ;;  %v1599_v43 = vshrl.u32 %v1598_v57, 23 }
 0x23f   :  { %v3996_v30 = vsel %vm3994_vm1, %v6866_v19, %v1485_v50  ;;  %v1486_v11 = vsel %vm1484_vm0, %v6866_v19, %v1485_v50  ;;  %v1555_v3 = vshll.u32 %v1554_v41, 30  ;;  %v1578_v38 = vsub.s32 4, %v1554_v41 }
 0x240   :  { %v4000_v29 = vsel %vm3993_vm14, %v3996_v30, %v3999_v26  ;;  %v1490_v4 = vsel %vm1483_vm15, %v1486_v11, %v1489_v39  ;;  %v9563_v2 = vadd.f32 %v5842_v36, %v5841_v62  ;;  %v5976_v44 = vsel %vm5819_vm7, %v9551_v59, 0.0 }
 0x241   :  { %v4001_v31 = vsel %vm1481_vm11, nan, %v4000_v29  ;;  %v1491_v22 = vsel %vm1481_vm11, nan, %v1490_v4  ;;  %vm1494_vm3 = vcmp.lt.s32.totalorder %v9348_v55, 0  ;;  %v1556_v37 = vsub.s32 %v1552_v5, %v1555_v3  ;;  %5978 = vst [vmem:[#allocation7 + $0x24] sm:$0x1] %v5976_v44 }
 0x242   :  { %5055 = vst [vmem:[#allocation3 + $0xd] sm:$0x1] %v4001_v31  ;;  %2535 = vst [vmem:[#allocation2 + $0xd] sm:$0x1] %v1491_v22  ;;  %v1579_v21 = vsel %vm1494_vm3, %v1578_v38, %v1554_v41  ;;  %v6573_v51 = vadd.s32 4294967169, %v1599_v43  ;;  %v9591_v8 = vmul.f32 %v9425_v7, %v9397_v52  ;;  %v9595_v46 = vmul.f32 %v9425_v7, %v9402_v20 }
 0x243   :  { %v1602_v6 = vand.u32 8388607, %v1595_v23  ;;  %vm9579_vm2 = vcmp.le.f32.partialorder %v1492_v47, 0.7853982  ;;  %v1558_v14 = vsub.s32 0, %v1556_v37  ;;  %v9605_v57 = vmul.f32 %v9425_v7, %v9420_v49 }
 0x244   :  { %v1605_v63 = vadd.s32 1, %v6573_v51  ;;  %v9584_v15 = vmul.f32 0.8508111, %v9438_v28  ;;  %v9587_v5 = vmul.f32 0.8508111, %v9425_v7  ;;  %v1581_v19 = vsel %vm9579_vm2, 0, %v1579_v21 }
 0x245   :  { %v6570_v47 = vmin.u32 %v1558_v14, %v1556_v37  ;;  %v1603_v34 = vor.u32 8388608, %v1602_v6  ;;  %v1548_v1 = vadd.s32 %v9483_v16, %v9478_v56  ;;  %v9610_v50 = vsub.f32 0.0, %v9519_v40 }
 0x246   :  { %vm1606_vm4 = vcmp.gt.s32.totalorder %v1605_v63, 0  ;;  %v5829_v25 = vmul.f32 %v9584_v15, %v9397_v52  ;;  %v5830_v12 = vmul.f32 %v9587_v5, %v9417_v33  ;;  %v9612_v41 = vsub.f32 0.0, %v5855_v42 }
 0x247   :  { %v1560_v18 = vclz %v6570_v47  ;;  %v1607_v62 = vsel %vm1606_vm4, %v1605_v63, 0  ;;  %v5832_v52 = vmul.f32 -0.5254716, %v9440_v13  ;;  %v9615_v36 = vadd.s32 3, %v1581_v19 }
 0x248   :  { %v5831_v26 = vadd.f32 %v5830_v12, %v5829_v25  ;;  %v9617_v43 = vand.u32 3, %v1581_v19  ;;  %v1609_v7 = vand.u32 31, %v1607_v62  ;;  %v1608_v30 = vshrl.u32 %v1607_v62, 5 }
 0x249   :  { %v6571_v39 = vadd.s32 4294967294, %v1560_v18  ;;  %v9619_v11 = vshll.u32 %v1603_v34, 8  ;;  %v5860_v16 = vmul.f32 %v9438_v28, %v9417_v33  ;;  %vm1597_vm11 = vcmp.lt.s32.totalorder %v9530_v32, 0 }
 0x24a   :  { %v9621_v56 = vsub.f32 %v5831_v26, %v5832_v52  ;;  %v1610_v40 = vsub.s32 32, %v1609_v7  ;;  %v1612_v42 = vshll.u32 %v11321_v45, %v1609_v7  ;;  %v1615_v13 = vshll.u32 %v11322_v60, %v1609_v7 }
 0x24b   :  { %vm6572_vm5 = vcmp.lt.s32.totalorder %v6571_v39, 0  ;;  %v1618_v38 = vshll.u32 %v11323_v58, %v1609_v7  ;;  %v1621_v29 = vshll.u32 %v11324_v35, %v1609_v7  ;;  %v1624_v4 = vshll.u32 %v11325_v53, %v1609_v7 }
 0x24c   :  { %v1563_v3 = vsel %vm6572_vm5, 0, %v6571_v39  ;;  %v1611_v21 = vshrl.u32 %v11321_v45, %v1610_v40  ;;  %v1613_v33 = vshrl.u32 %v11322_v60, %v1610_v40  ;;  %v1616_v51 = vshrl.u32 %v11323_v58, %v1610_v40 }
 0x24d   :  { %v1564_v44 = vsub.s32 32, %v1563_v3  ;;  %v1565_v31 = vshll.u32 %v1556_v37, %v1563_v3  ;;  %v1568_v22 = vsub.s32 4294967266, %v1563_v3  ;;  %v1619_v6 = vshrl.u32 %v11324_v35, %v1610_v40 }
 0x24e   :  { %v1622_v14 = vshrl.u32 %v11325_v53, %v1610_v40  ;;  %v1625_v19 = vshrl.u32 %v11313_v27, %v1610_v40  ;;  %vm1627_vm6 = vcmp.lt.s32.totalorder %v1608_v30, 1  ;;  %v1614_v34 = vor.u32 %v1613_v33, %v1612_v42 }
 0x24f   :  { %v1566_v63 = vshrl.u32 %v1548_v1, %v1564_v44  ;;  %v1569_v47 = vadd.s32 127, %v1568_v22  ;;  %v1617_v25 = vor.u32 %v1616_v51, %v1615_v13  ;;  %v1620_v12 = vor.u32 %v1619_v6, %v1618_v38 }
 0x250   :  { %v1623_v37 = vor.u32 %v1622_v14, %v1621_v29  ;;  %v1626_v26 = vor.u32 %v1625_v19, %v1624_v4  ;;  %vm1628_vm8 = vcmp.lt.s32.totalorder %v1608_v30, 2  ;;  %vm1629_vm9 = vcmp.lt.s32.totalorder %v1608_v30, 3  ;;  %v9641_v4 = vld [vmem:[#allocation3 + $0xd] sm:$0x1] }
 0x251   :  { %v1567_v18 = vor.u32 %v1566_v63, %v1565_v31  ;;  %v1570_v62 = vshll.u32 %v1569_v47, 23  ;;  %vm1630_vm15 = vcmp.lt.s32.totalorder %v1608_v30, 4  ;;  %v1631_v52 = vsel %vm1627_vm6, %v1611_v21, %v1614_v34 }
 0x252   :  { %v1635_v39 = vsel %vm1627_vm6, %v1614_v34, %v1617_v25  ;;  %v1632_v3 = vsel %vm1630_vm15, %v1620_v12, 2102212464  ;;  %v1636_v44 = vsel %vm1630_vm15, %v1623_v37, 920167782  ;;  %v1639_v13 = vsel %vm1627_vm6, %v1617_v25, %v1620_v12  ;;  %v9658_v34 = vld [vmem:[#allocation2 + $0xd] sm:$0x1] }
 0x253   :  { %v1571_v7 = vor.u32 4788187, %v1570_v62  ;;  %v1574_v1 = vcvt.s32.f32 %v1567_v18  ;;  %v1633_v40 = vsel %vm1629_vm9, %v1617_v25, %v1632_v3  ;;  %v1637_v42 = vsel %vm1629_vm9, %v1620_v12, %v1636_v44 }
 0x254   :  { %v1640_v38 = vsel %vm1630_vm15, %v1626_v26, 1326507024  ;;  %v1634_v31 = vsel %vm1628_vm8, %v1631_v52, %v1633_v40  ;;  %v1638_v22 = vsel %vm1628_vm8, %v1635_v39, %v1637_v42  ;;  %v5834_v14 = vmul.f32 %v9584_v15, %v9402_v20 }
 0x255   :  { %v1572_v29 = vand.u32 2147483647, %v1571_v7  ;;  %v1641_v21 = vsel %vm1629_vm9, %v1623_v37, %v1640_v38  ;;  %v9648_v51 = vmul.u32.u64.low %v9619_v11, %v1638_v22  ;;  %v9649_v6 = vmul.u32.u64.high %v9619_v11, %v1638_v22, %v9648_v51 }
 0x256   :  { %v1642_v33 = vsel %vm1628_vm8, %v1639_v13, %v1641_v21  ;;  %v9661_v25 = vsub.f32 %v5860_v16, %v9591_v8  ;;  %v1650_v30 = vmul.u32 %v9619_v11, %v1634_v31  ;;  %v5868_v12 = vmul.f32 1.46, %v9621_v56 }
 0x257   :  { %v1575_v63 = vmul.f32 %v1574_v1, %v1572_v29  ;;  %v9655_v47 = vmul.u32.u64.low %v9619_v11, %v1642_v33  ;;  %v9656_v19 = vmul.u32.u64.high %v9619_v11, %v1642_v33, %v9655_v47  ;;  %v5874_v37 = vmul.f32 -0.36162457, %v9658_v34 }
 0x258   :  { %v9667_v18 = vmul.f32 -0.36162457, %v9641_v4  ;;  %v5897_v62 = vmul.f32 0.9323238, %v9621_v56  ;;  %v5835_v26 = vmul.f32 %v9587_v5, %v9502_v61  ;;  %v5837_v52 = vmul.f32 -0.5254716, %v9493_v48 }
 0x259   :  { %v1576_v20 = vxor.u32 2147483648, %v1575_v63  ;;  %v1653_v8 = vadd.s32 1, %v9649_v6  ;;  %v9675_v16 = vadd.f32 %v5868_v12, %v9496_v17  ;;  %v5898_v11 = vmul.f32 %v5874_v37, %v9610_v50 }
 0x25a   :  { %v5863_v39 = vmul.f32 %v9438_v28, %v9502_v61  ;;  %vm1652_vm10 = vc.u32 %v9656_v19, %v9648_v51  ;;  %v5900_v1 = vmul.f32 %v9667_v18, %v9661_v25  ;;  %v5836_v48 = vadd.f32 %v5835_v26, %v5834_v14 }
 0x25b   :  { %v1577_v7 = vsel %vm1494_vm3, %v1576_v20, %v1575_v63  ;;  %v1654_v3 = vsel %vm1652_vm10, %v1653_v8, %v9649_v6  ;;  %v5899_v44 = vadd.f32 %v5898_v11, %v5897_v62  ;;  %v5988_v61 = vsel %vm5819_vm7, %v9675_v16, 0.0 }
 0x25c   :  { %v1580_v17 = vsel %vm9579_vm2, %v9348_v55, %v1577_v7  ;;  %v1655_v40 = vadd.s32 %v1654_v3, %v1650_v30  ;;  %5990 = vst [vmem:[#allocation7 + $0x28] sm:$0x1] %v5988_v61  ;;  %v9693_v42 = vsub.f32 %v5836_v48, %v5837_v52  ;;  %v9696_v13 = vsub.f32 %v5863_v39, %v9595_v46  ;;  %v9719_v30 = vld [vmem:[#allocation4 + $0x10] sm:$0x1] }
 0x25d   :  { %6869 = vcosq.f32 %v1580_v17  ;;  %v9698_v38 = vadd.f32 %v5900_v1, %v5899_v44  ;;  %v5904_v24 = vmul.f32 %v5874_v37, %v9612_v41  ;;  %v5824_v29 = vmul.f32 %v9584_v15, %v9420_v49 }
 0x25e   :  { %6871 = vsinq.f32 %v1580_v17  ;;  %v1656_v31 = vadd.s32 536870912, %v1655_v40  ;;  %v5870_v22 = vmul.f32 1.46, %v9693_v42  ;;  %v5903_v21 = vmul.f32 0.9323238, %v9693_v42 }
 0x25f   :  { %v4096_v33 = vand.u32 3, %v9615_v36  ;;  %v9708_v46 = vsub.f32 0.0, %v9563_v2  ;;  %v5825_v6 = vmul.f32 %v9587_v5, %v9542_v54  ;;  %v5857_v14 = vmul.f32 %v9438_v28, %v9542_v54 }
 0x260   :  { %v1657_v63 = vshrl.u32 %v1656_v31, 30  ;;  %v9715_v49 = vadd.f32 %v5870_v22, %v9522_v10  ;;  %v5905_v15 = vadd.f32 %v5904_v24, %v5903_v21  ;;  %v5906_v47 = vmul.f32 %v9667_v18, %v9696_v13 }
 0x261   :  { %vm1584_vm0 = vweird.f32 %v9348_v55  ;;  %vm1586_vm12 = vcmp.lt.s32.totalorder %v9617_v43, 2  ;;  %vm9725_vm13 = vcmp.le.f32.partialorder %v1595_v23, 0.7853982  ;;  %v5826_v28 = vadd.f32 %v5825_v6, %v5824_v29 }
 0x262   :  { %v5827_v10 = vmul.f32 -0.5254716, %v9535_v0  ;;  %v9731_v54 = vsub.f32 %v5857_v14, %v9605_v57  ;;  %vm1587_vm14 = vcmp.eq.s32.totalorder %v9617_v43, 0  ;;  %v1658_v5 = vshll.u32 %v1657_v63, 30 }
 0x263   :  { %v5907_v36 = vadd.f32 %v5906_v47, %v5905_v15  ;;  %v5991_v12 = vsel %vm5819_vm7, %v9715_v49, 0.0  ;;  %v1681_v20 = vsub.s32 4, %v1657_v63  ;;  %v5892_v62 = vmul.f32 %v5874_v37, %v9708_v46 }
 0x264   :  { %5993 = vst [vmem:[#allocation7 + $0x29] sm:$0x1] %v5991_v12  ;;  %v9737_v23 = vsub.f32 %v5826_v28, %v5827_v10  ;;  %v1701_v26 = vand.u32 2139095040, %v9719_v30  ;;  %vm4097_vm1 = vcmp.lt.s32.totalorder %v4096_v33, 2  ;;  %vm1590_vm3 = vcmp.eq.s32.totalorder %v9617_v43, 2 }
 0x265   :  { %v9742_v0 = vsub.s32 %v1655_v40, %v1658_v5  ;;  %v11278_v57 = vand.u32 2147483647, %v9719_v30  ;;  %vm4098_vm2 = vcmp.eq.s32.totalorder %v4096_v33, 0  ;;  %vm4101_vm4 = vcmp.eq.s32.totalorder %v4096_v33, 2 }
 0x266   :  { %v5866_v52 = vmul.f32 1.46, %v9737_v23  ;;  %v5891_v8 = vmul.f32 0.9323238, %v9737_v23  ;;  %v1702_v11 = vshrl.u32 %v1701_v26, 23  ;;  %v5913_v37 = vmul.f32 %v9610_v50, %v9641_v4 }
 0x267   :  { %v6870_v39 = vpop.eup %6869  ;;  %v9751_v7 = vmul.f32 %v9612_v41, %v9641_v4  ;;  %v1661_v1 = vsub.s32 0, %v9742_v0  ;;  %v1682_v3 = vsel %vm1597_vm11, %v1681_v20, %v1657_v63  ;;  %v9761_v24 = vmul.f32 %v9708_v46, %v9641_v4 }
 0x268   :  { %v6872_v48 = vpop.eup %6871  ;;  %v1591_v17 = vxor.u32 2147483648, %v6870_v39  ;;  %v9757_v44 = vadd.f32 %v5866_v52, %v9551_v59  ;;  %v5893_v61 = vadd.f32 %v5892_v62, %v5891_v8  ;;  %v5894_v31 = vmul.f32 %v9667_v18, %v9731_v54 }
 0x269   :  { %v1588_v40 = vxor.u32 2147483648, %v6872_v48  ;;  %v6574_v29 = vmin.u32 %v1661_v1, %v9742_v0  ;;  %v6577_v6 = vadd.s32 4294967169, %v1702_v11  ;;  %v1705_v59 = vand.u32 8388607, %v11278_v57 }
 0x26a   :  { %v4103_v22 = vsel %vm4101_vm4, %v1591_v17, %v6872_v48  ;;  %v1592_v21 = vsel %vm1590_vm3, %v1591_v17, %v6872_v48  ;;  %v1684_v47 = vsel %vm9725_vm13, 0, %v1682_v3  ;;  %v1651_v10 = vadd.s32 %v9648_v51, %v9656_v19 }
 0x26b   :  { %v4100_v14 = vsel %vm4098_vm2, %v6870_v39, %v1588_v40  ;;  %v1589_v63 = vsel %vm1587_vm14, %v6870_v39, %v1588_v40  ;;  %v1663_v15 = vclz %v6574_v29  ;;  %v9781_v5 = vsub.f32 0.0, %v9698_v38 }
 0x26c   :  { %v4104_v28 = vsel %vm4097_vm1, %v4100_v14, %v4103_v22  ;;  %v1593_v18 = vsel %vm1586_vm12, %v1589_v63, %v1592_v21  ;;  %v5895_v26 = vadd.f32 %v5894_v31, %v5893_v61  ;;  %v4199_v33 = vadd.s32 3, %v1684_v47 }
 0x26d   :  { %v4105_v12 = vsel %vm1584_vm0, nan, %v4104_v28  ;;  %v1594_v20 = vsel %vm1584_vm0, nan, %v1593_v18  ;;  %v6575_v62 = vadd.s32 4294967294, %v1663_v15  ;;  %v5985_v43 = vsel %vm5819_vm7, %v9757_v44, 0.0 }
 0x26e   :  { %5056 = vst [vmem:[#allocation3 + $0xe] sm:$0x1] %v4105_v12  ;;  %2536 = vst [vmem:[#allocation2 + $0xe] sm:$0x1] %v1594_v20  ;;  %v1706_v52 = vor.u32 8388608, %v1705_v59  ;;  %v1708_v51 = vadd.s32 1, %v6577_v6  ;;  %v5912_v39 = vmul.f32 %v9661_v25, %v9658_v34 }
 0x26f   :  { %vm6576_vm5 = vcmp.lt.s32.totalorder %v6575_v62, 0  ;;  %v9790_v19 = vsub.f32 0.0, %v5907_v36  ;;  %v9792_v38 = vand.u32 3, %v1684_v47  ;;  %5987 = vst [vmem:[#allocation7 + $0x27] sm:$0x1] %v5985_v43  ;;  %v9803_v3 = vand.u32 3, %v4199_v33 }
 0x270   :  { %v9795_v55 = vmul.f32 0.9323238, %v9658_v34  ;;  %v1666_v8 = vsel %vm6576_vm5, 0, %v6575_v62  ;;  %vm1709_vm6 = vcmp.gt.s32.totalorder %v1708_v51, 0  ;;  %v9798_v11 = vmul.f32 0.9323238, %v9641_v4 }
 0x271   :  { %v1667_v1 = vsub.s32 32, %v1666_v8  ;;  %v1668_v48 = vshll.u32 %v9742_v0, %v1666_v8  ;;  %v1671_v17 = vsub.s32 4294967266, %v1666_v8  ;;  %v1710_v36 = vsel %vm1709_vm6, %v1708_v51, 0 }
 0x272   :  { %v9805_v61 = vsub.f32 0.0, %v5895_v26  ;;  %v1712_v40 = vand.u32 31, %v1710_v36  ;;  %v9807_v29 = vshll.u32 %v1706_v52, 8  ;;  %v5884_v4 = vmul.f32 -0.36162457, %v9621_v56 }
 0x273   :  { %v1669_v31 = vshrl.u32 %v1651_v10, %v1667_v1  ;;  %v1672_v22 = vadd.s32 127, %v1671_v17  ;;  %v9810_v21 = vsub.f32 %v5912_v39, %v5913_v37  ;;  %v1711_v6 = vshrl.u32 %v1710_v36, 5 }
 0x274   :  { %v1713_v59 = vsub.s32 32, %v1712_v40  ;;  %v5881_v0 = vmul.f32 %v9795_v55, %v9610_v50  ;;  %v5882_v14 = vmul.f32 %v9798_v11, %v9661_v25  ;;  %v1715_v47 = vshll.u32 %v11321_v45, %v1712_v40 }
 0x275   :  { %v1670_v63 = vor.u32 %v1669_v31, %v1668_v48  ;;  %v1673_v15 = vshll.u32 %v1672_v22, 23  ;;  %v1718_v28 = vshll.u32 %v11322_v60, %v1712_v40  ;;  %v1721_v56 = vshll.u32 %v11323_v58, %v1712_v40 }
 0x276   :  { %v1714_v18 = vshrl.u32 %v11321_v45, %v1713_v59  ;;  %v1724_v37 = vshll.u32 %v11324_v35, %v1712_v40  ;;  %v1727_v10 = vshll.u32 %v11325_v53, %v1712_v40  ;;  %v1716_v50 = vshrl.u32 %v11322_v60, %v1713_v59 }
 0x277   :  { %v1674_v12 = vor.u32 4788187, %v1673_v15  ;;  %v1677_v20 = vcvt.s32.f32 %v1670_v63  ;;  %v1719_v25 = vshrl.u32 %v11323_v58, %v1713_v59  ;;  %v1722_v62 = vshrl.u32 %v11324_v35, %v1713_v59 }
 0x278   :  { %v1725_v26 = vshrl.u32 %v11325_v53, %v1713_v59  ;;  %v1728_v33 = vshrl.u32 %v11313_v27, %v1713_v59  ;;  %vm1730_vm8 = vcmp.lt.s32.totalorder %v1711_v6, 1  ;;  %v1717_v52 = vor.u32 %v1716_v50, %v1715_v47 }
 0x279   :  { %v1675_v43 = vand.u32 2147483647, %v1674_v12  ;;  %v1720_v51 = vor.u32 %v1719_v25, %v1718_v28  ;;  %vm1731_vm9 = vcmp.lt.s32.totalorder %v1711_v6, 2  ;;  %v1723_v8 = vor.u32 %v1722_v62, %v1721_v56  ;;  %v9827_v12 = vld [vmem:[#allocation3 + $0xe] sm:$0x1] }
 0x27a   :  { %v1726_v39 = vor.u32 %v1725_v26, %v1724_v37  ;;  %v1729_v1 = vor.u32 %v1728_v33, %v1727_v10  ;;  %vm1732_vm15 = vcmp.lt.s32.totalorder %v1711_v6, 3  ;;  %vm1733_vm10 = vcmp.lt.s32.totalorder %v1711_v6, 4 }
 0x27b   :  { %v1678_v48 = vmul.f32 %v1677_v20, %v1675_v43  ;;  %v1734_v17 = vsel %vm1730_vm8, %v1714_v18, %v1717_v52  ;;  %v1738_v36 = vsel %vm1730_vm8, %v1717_v52, %v1720_v51  ;;  %v1735_v40 = vsel %vm1733_vm10, %v1723_v8, 2102212464 }
 0x27c   :  { %v1739_v31 = vsel %vm1733_vm10, %v1726_v39, 920167782  ;;  %v1742_v22 = vsel %vm1730_vm8, %v1720_v51, %v1723_v8  ;;  %v1743_v63 = vsel %vm1733_vm10, %v1729_v1, 1326507024  ;;  %v1736_v57 = vsel %vm1732_vm15, %v1720_v51, %v1735_v40 }
 0x27d   :  { %v1679_v15 = vxor.u32 2147483648, %v1678_v48  ;;  %v1740_v59 = vsel %vm1732_vm15, %v1723_v8, %v1739_v31  ;;  %v1744_v27 = vsel %vm1732_vm15, %v1726_v39, %v1743_v63  ;;  %v1737_v47 = vsel %vm1731_vm9, %v1734_v17, %v1736_v57 }
 0x27e   :  { %v1741_v28 = vsel %vm1731_vm9, %v1738_v36, %v1740_v59  ;;  %v1745_v56 = vsel %vm1731_vm9, %v1742_v22, %v1744_v27  ;;  %v5883_v37 = vadd.f32 %v5882_v14, %v5881_v0  ;;  %v5886_v50 = vmul.f32 %v9795_v55, %v9612_v41  ;;  %v9848_v27 = vld [vmem:[#allocation2 + $0xe] sm:$0x1] }
 0x27f   :  { %v1680_v18 = vsel %vm1597_vm11, %v1679_v15, %v1678_v48  ;;  %v9835_v10 = vmul.u32.u64.low %v9807_v29, %v1745_v56  ;;  %v9836_v20 = vmul.u32.u64.high %v9807_v29, %v1745_v56, %v9835_v10  ;;  %v1753_v0 = vmul.u32 %v9807_v29, %v1737_v47 }
 0x280   :  { %v1683_v25 = vsel %vm9725_vm13, %v9530_v32, %v1680_v18  ;;  %v9844_v57 = vmul.u32.u64.low %v9807_v29, %v1741_v28  ;;  %v9845_v62 = vmul.u32.u64.high %v9807_v29, %v1741_v28, %v9844_v57  ;;  %v9850_v6 = vsub.f32 %v5883_v37, %v5884_v4 }
 0x281   :  { %6873 = vcosq.f32 %v1683_v25  ;;  %v5926_v14 = vmul.f32 -0.44150585, %v9848_v27  ;;  %v5927_v41 = vmul.f32 -0.44150585, %v9827_v12  ;;  %v5887_v33 = vmul.f32 %v9798_v11, %v9696_v13 }
 0x282   :  { %6875 = vsinq.f32 %v1683_v25  ;;  %v5920_v2 = vmul.f32 1.525, %v9850_v6  ;;  %v5949_v26 = vmul.f32 0.89725834, %v9850_v6  ;;  %vm1755_vm11 = vc.u32 %v9836_v20, %v9844_v57 }
 0x283   :  { %v5950_v4 = vmul.f32 %v5926_v14, %v9781_v5  ;;  %v5952_v43 = vmul.f32 %v5927_v41, %v9810_v21  ;;  %v5889_v29 = vmul.f32 -0.36162457, %v9693_v42  ;;  %vm1690_vm0 = vcmp.eq.s32.totalorder %v9792_v38, 0 }
 0x284   :  { %v1756_v52 = vadd.s32 1, %v9845_v62  ;;  %v9867_v51 = vadd.f32 %v5920_v2, %v9675_v16  ;;  %v5888_v8 = vadd.f32 %v5887_v33, %v5886_v50  ;;  %v5915_v39 = vmul.f32 %v9696_v13, %v9658_v34 }
 0x285   :  { %vm1689_vm12 = vcmp.lt.s32.totalorder %v9792_v38, 2  ;;  %v5951_v1 = vadd.f32 %v5950_v4, %v5949_v26  ;;  %v5956_v48 = vmul.f32 %v5926_v14, %v9790_v19  ;;  %v5876_v17 = vmul.f32 %v9795_v55, %v9708_v46 }
 0x286   :  { %v5877_v42 = vmul.f32 %v9798_v11, %v9731_v54  ;;  %vm1687_vm13 = vweird.f32 %v9530_v32  ;;  %v1757_v16 = vsel %vm1755_vm11, %v1756_v52, %v9845_v62  ;;  %v5997_v36 = vsel %vm5819_vm7, %v9867_v51, 0.0 }
 0x287   :  { %v9882_v13 = vsub.f32 %v5888_v8, %v5889_v29  ;;  %v9885_v40 = vsub.f32 %v5915_v39, %v9751_v7  ;;  %v1758_v31 = vadd.s32 %v1757_v16, %v1753_v0  ;;  %v5953_v22 = vadd.f32 %v5952_v43, %v5951_v1  ;;  %5999 = vst [vmem:[#allocation7 + $0x2b] sm:$0x1] %v5997_v36  ;;  %v9924_v39 = vld [vmem:[#allocation4 + $0x11] sm:$0x1] }
 0x288   :  { %v5878_v46 = vadd.f32 %v5877_v42, %v5876_v17  ;;  %v5879_v55 = vmul.f32 -0.36162457, %v9737_v23  ;;  %vm1693_vm14 = vcmp.eq.s32.totalorder %v9792_v38, 2  ;;  %v5909_v15 = vmul.f32 %v9731_v54, %v9658_v34 }
 0x289   :  { %v5922_v11 = vmul.f32 1.525, %v9882_v13  ;;  %v5955_v63 = vmul.f32 0.89725834, %v9882_v13  ;;  %vm4201_vm1 = vcmp.lt.s32.totalorder %v9803_v3, 2  ;;  %v1759_v59 = vadd.s32 536870912, %v1758_v31 }
 0x28a   :  { %v5958_v7 = vmul.f32 %v5927_v41, %v9885_v40  ;;  %v9895_v47 = vsub.f32 %v5878_v46, %v5879_v55  ;;  %v9901_v56 = vsub.f32 %v5909_v15, %v9761_v24  ;;  %v5944_v37 = vmul.f32 %v5926_v14, %v9805_v61 }
 0x28b   :  { %v9898_v28 = vadd.f32 %v5922_v11, %v9715_v49  ;;  %v5957_v23 = vadd.f32 %v5956_v48, %v5955_v63  ;;  %v6874_v18 = vpop.eup %6873  ;;  %vm4202_vm3 = vcmp.eq.s32.totalorder %v9803_v3, 0  ;;  %vm4205_vm2 = vcmp.eq.s32.totalorder %v9803_v3, 2 }
 0x28c   :  { %v1760_v34 = vshrl.u32 %v1759_v59, 30  ;;  %v5918_v54 = vmul.f32 1.525, %v9895_v47  ;;  %v6876_v10 = vpop.eup %6875  ;;  %v1694_v50 = vxor.u32 2147483648, %v6874_v18  ;;  %v5943_v24 = vmul.f32 0.89725834, %v9895_v47 }
 0x28d   :  { %v5959_v25 = vadd.f32 %v5958_v7, %v5957_v23  ;;  %v6000_v49 = vsel %vm5819_vm7, %v9898_v28, 0.0  ;;  %v1691_v62 = vxor.u32 2147483648, %v6876_v10  ;;  %v5946_v43 = vmul.f32 %v5927_v41, %v9901_v56 }
 0x28e   :  { %v1761_v0 = vshll.u32 %v1760_v34, 30  ;;  %v1784_v14 = vsub.s32 4, %v1760_v34  ;;  %6002 = vst [vmem:[#allocation7 + $0x2c] sm:$0x1] %v6000_v49  ;;  %v9912_v2 = vadd.f32 %v5918_v54, %v9757_v44  ;;  %v4207_v26 = vsel %vm4205_vm2, %v1694_v50, %v6876_v10 }
 0x28f   :  { %v1695_v33 = vsel %vm1693_vm14, %v1694_v50, %v6876_v10  ;;  %v5945_v4 = vadd.f32 %v5944_v37, %v5943_v24  ;;  %v4204_v29 = vsel %vm4202_vm3, %v6874_v18, %v1691_v62  ;;  %v1692_v52 = vsel %vm1690_vm0, %v6874_v18, %v1691_v62 }
 0x290   :  { %vm1700_vm4 = vcmp.lt.s32.totalorder %v9719_v30, 0  ;;  %v9922_v8 = vsub.s32 %v1758_v31, %v1761_v0  ;;  %v4208_v44 = vsel %vm4201_vm1, %v4204_v29, %v4207_v26  ;;  %v1696_v1 = vsel %vm1689_vm12, %v1692_v52, %v1695_v33 }
 0x291   :  { %v5947_v48 = vadd.f32 %v5946_v43, %v5945_v4  ;;  %v11280_v41 = vand.u32 2147483647, %v9924_v39  ;;  %v4209_v17 = vsel %vm1687_vm13, nan, %v4208_v44  ;;  %v1697_v42 = vsel %vm1687_vm13, nan, %v1696_v1 }
 0x292   :  { %v1764_v16 = vsub.s32 0, %v9922_v8  ;;  %v1785_v36 = vsel %vm1700_vm4, %v1784_v14, %v1760_v34  ;;  %5057 = vst [vmem:[#allocation3 + $0xf] sm:$0x1] %v4209_v17  ;;  %2537 = vst [vmem:[#allocation2 + $0xf] sm:$0x1] %v1697_v42  ;;  %v5994_v38 = vsel %vm5819_vm7, %v9912_v2, 0.0  ;;  %v5965_v55 = vmul.f32 %v9781_v5, %v9827_v12 }
 0x293   :  { %v11334_v3 = vand.u32 2147483647, %v9719_v30  ;;  %5996 = vst [vmem:[#allocation7 + $0x2a] sm:$0x1] %v5994_v38  ;;  %v1804_v46 = vand.u32 2139095040, %v9924_v39  ;;  %v9953_v11 = vmul.f32 %v9790_v19, %v9827_v12  ;;  %v9959_v15 = vmul.f32 %v9805_v61, %v9827_v12 }
 0x294   :  { %v6578_v32 = vmin.u32 %v1764_v16, %v9922_v8  ;;  %v1754_v59 = vadd.s32 %v9844_v57, %v9836_v20  ;;  %v1808_v23 = vand.u32 8388607, %v11280_v41  ;;  %v9965_v37 = vsub.f32 0.0, %v5953_v22 }
 0x295   :  { %vm9943_vm5 = vcmp.le.f32.partialorder %v11334_v3, 0.7853982  ;;  %v1805_v18 = vshrl.u32 %v1804_v46, 23  ;;  %v9968_v34 = vmul.f32 0.89725834, %v9848_v27  ;;  %v9975_v49 = vsub.f32 0.0, %v5959_v25 }
 0x296   :  { %v1787_v63 = vsel %vm9943_vm5, 0, %v1785_v36  ;;  %v1766_v7 = vclz %v6578_v32  ;;  %v9971_v54 = vmul.f32 0.89725834, %v9827_v12  ;;  %v5964_v20 = vmul.f32 %v9810_v21, %v9848_v27 }
 0x297   :  { %v9973_v50 = vadd.s32 3, %v1787_v63  ;;  %v9979_v57 = vand.u32 3, %v1787_v63  ;;  %v9981_v24 = vsub.f32 0.0, %v5947_v48  ;;  %v6581_v22 = vadd.s32 4294967169, %v1805_v18 }
 0x298   :  { %v6579_v10 = vadd.s32 4294967294, %v1766_v7  ;;  %v5933_v62 = vmul.f32 %v9968_v34, %v9781_v5  ;;  %v1809_v12 = vor.u32 8388608, %v1808_v23  ;;  %v9987_v14 = vsub.f32 %v5964_v20, %v5965_v55 }
 0x299   :  { %v9985_v0 = vld [vmem:[#allocation3 + $0xf] sm:$0x1]  ;;  %v5938_v25 = vmul.f32 %v9968_v34, %v9790_v19  ;;  %v5934_v33 = vmul.f32 %v9971_v54, %v9810_v21  ;;  %v5936_v4 = vmul.f32 -0.44150585, %v9850_v6  ;;  %v5939_v43 = vmul.f32 %v9971_v54, %v9885_v40  ;;  %v9997_v1 = vld [vmem:[#allocation2 + $0xf] sm:$0x1] }
 0x29a   :  { %vm6580_vm7 = vcmp.lt.s32.totalorder %v6579_v10, 0  ;;  %v1811_v44 = vadd.s32 1, %v6581_v22  ;;  %v10000_v17 = vmul.f32 -0.5254716, %v9997_v1  ;;  %v10003_v19 = vmul.f32 -0.5254716, %v9985_v0 }
 0x29b   :  { %v1769_v26 = vsel %vm6580_vm7, 0, %v6579_v10  ;;  %v5935_v48 = vadd.f32 %v5934_v33, %v5933_v62  ;;  %v5940_v21 = vadd.f32 %v5939_v43, %v5938_v25  ;;  %v10005_v16 = vshll.u32 %v1809_v12, 8 }
 0x29c   :  { %v1770_v29 = vsub.s32 32, %v1769_v26  ;;  %v1771_v5 = vshll.u32 %v9922_v8, %v1769_v26  ;;  %v1774_v52 = vsub.s32 4294967266, %v1769_v26  ;;  %vm1812_vm6 = vcmp.gt.s32.totalorder %v1811_v44, 0 }
 0x29d   :  { %v1813_v36 = vsel %vm1812_vm6, %v1811_v44, 0  ;;  %v10007_v38 = vsub.f32 %v5935_v48, %v5936_v4  ;;  %v6038_v8 = vmul.f32 %v10000_v17, %v9965_v37  ;;  %v5941_v3 = vmul.f32 -0.44150585, %v9882_v13 }
 0x29e   :  { %v1772_v42 = vshrl.u32 %v1754_v59, %v1770_v29  ;;  %v1775_v6 = vadd.s32 127, %v1774_v52  ;;  %v1815_v55 = vand.u32 31, %v1813_v36  ;;  %v10014_v63 = vmul.f32 %v10003_v19, %v9987_v14 }
 0x29f   :  { %v1814_v59 = vshrl.u32 %v1813_v36, 5  ;;  %v5972_v7 = vmul.f32 1.33, %v10007_v38  ;;  %v6037_v23 = vmul.f32 0.8508111, %v10007_v38  ;;  %v10018_v18 = vsub.f32 %v5940_v21, %v5941_v3 }
 0x2a0   :  { %v1773_v32 = vor.u32 %v1772_v42, %v1771_v5  ;;  %v1776_v46 = vshll.u32 %v1775_v6, 23  ;;  %v1816_v22 = vsub.s32 32, %v1815_v55  ;;  %v1818_v62 = vshll.u32 %v11321_v45, %v1815_v55 }
 0x2a1   :  { %v1821_v13 = vshll.u32 %v11322_v60, %v1815_v55  ;;  %v1824_v12 = vshll.u32 %v11323_v58, %v1815_v55  ;;  %v1827_v25 = vshll.u32 %v11324_v35, %v1815_v55  ;;  %v1830_v26 = vshll.u32 %v11325_v53, %v1815_v55 }
 0x2a2   :  { %v1777_v10 = vor.u32 4788187, %v1776_v46  ;;  %v1780_v20 = vcvt.s32.f32 %v1773_v32  ;;  %v1817_v4 = vshrl.u32 %v11321_v45, %v1816_v22  ;;  %v1819_v43 = vshrl.u32 %v11322_v60, %v1816_v22 }
 0x2a3   :  { %v1822_v29 = vshrl.u32 %v11323_v58, %v1816_v22  ;;  %vm6011_vm8 = vcmp.gt.s32.totalorder %v9462_v9, 5  ;;  %v1825_v5 = vshrl.u32 %v11324_v35, %v1816_v22  ;;  %v1828_v52 = vshrl.u32 %v11325_v53, %v1816_v22 }
 0x2a4   :  { %v1778_v33 = vand.u32 2147483647, %v1777_v10  ;;  %v11337_v44 = vmov 1326507024   ;;  %vm1833_vm9 = vcmp.lt.s32.totalorder %v1814_v59, 1  ;;  %v1820_v42 = vor.u32 %v1819_v43, %v1818_v62 }
 0x2a5   :  { %v1831_v48 = vshrl.u32 %v11337_v44, %v1816_v22  ;;  %v1823_v6 = vor.u32 %v1822_v29, %v1821_v13  ;;  %vm1834_vm15 = vcmp.lt.s32.totalorder %v1814_v59, 2  ;;  %v1826_v36 = vor.u32 %v1825_v5, %v1824_v12 }
 0x2a6   :  { %v1781_v21 = vmul.f32 %v1780_v20, %v1778_v33  ;;  %v1829_v3 = vor.u32 %v1828_v52, %v1827_v25  ;;  %vm1835_vm10 = vcmp.lt.s32.totalorder %v1814_v59, 3  ;;  %vm1836_vm11 = vcmp.lt.s32.totalorder %v1814_v59, 4 }
 0x2a7   :  { %v1832_v32 = vor.u32 %v1831_v48, %v1830_v26  ;;  %v1837_v55 = vsel %vm1833_vm9, %v1817_v4, %v1820_v42  ;;  %v1841_v10 = vsel %vm1833_vm9, %v1820_v42, %v1823_v6  ;;  %v1838_v41 = vsel %vm1836_vm11, %v1826_v36, 2102212464 }
 0x2a8   :  { %v1782_v46 = vxor.u32 2147483648, %v1781_v21  ;;  %v1842_v58 = vsel %vm1836_vm11, %v1829_v3, 920167782  ;;  %v1845_v35 = vsel %vm1833_vm9, %v1823_v6, %v1826_v36  ;;  %v1839_v44 = vsel %vm1835_vm10, %v1823_v6, %v1838_v41 }
 0x2a9   :  { %v1846_v60 = vsel %vm1836_vm11, %v1832_v32, 1326507024  ;;  %v1843_v20 = vsel %vm1835_vm10, %v1826_v36, %v1842_v58  ;;  %v5967_v26 = vmul.f32 %v9885_v40, %v9848_v27  ;;  %v1840_v33 = vsel %vm1834_vm15, %v1837_v55, %v1839_v44 }
 0x2aa   :  { %v1783_v22 = vsel %vm1700_vm4, %v1782_v46, %v1781_v21  ;;  %v1847_v62 = vsel %vm1835_vm10, %v1829_v3, %v1846_v60  ;;  %v1844_v12 = vsel %vm1834_vm15, %v1841_v10, %v1843_v20  ;;  %v10052_v41 = vadd.f32 %v5972_v7, %v9867_v51 }
 0x2ab   :  { %v1786_v13 = vsel %vm9943_vm5, %v9719_v30, %v1783_v22  ;;  %v1848_v25 = vsel %vm1834_vm15, %v1845_v35, %v1847_v62  ;;  %v10047_v60 = vmul.u32.u64.low %v10005_v16, %v1844_v12  ;;  %v10048_v58 = vmul.u32.u64.high %v10005_v16, %v1844_v12, %v10047_v60 }
 0x2ac   :  { %6877 = vcosq.f32 %v1786_v13  ;;  %v10043_v4 = vmul.u32.u64.low %v10005_v16, %v1848_v25  ;;  %v10044_v43 = vmul.u32.u64.high %v10005_v16, %v1848_v25, %v10043_v4  ;;  %v6039_v35 = vadd.f32 %v6038_v8, %v6037_v23 }
 0x2ad   :  { %6879 = vsinq.f32 %v1786_v13  ;;  %v10055_v31 = vsub.f32 %v5967_v26, %v9953_v11  ;;  %v5974_v40 = vmul.f32 1.33, %v10018_v18  ;;  %v6043_v59 = vmul.f32 0.8508111, %v10018_v18 }
 0x2ae   :  { %v6171_v29 = vsel %vm6011_vm8, %v10052_v41, 0.0  ;;  %v6044_v5 = vmul.f32 %v10000_v17, %v9975_v49  ;;  %v5928_v52 = vmul.f32 %v9968_v34, %v9805_v61  ;;  %v5929_v51 = vmul.f32 %v9971_v54, %v9901_v56 }
 0x2af   :  { %v1856_v11 = vmul.u32 %v10005_v16, %v1840_v33  ;;  %vm1858_vm0 = vc.u32 %v10044_v43, %v10047_v60  ;;  %v10072_v8 = vadd.f32 %v10014_v63, %v6039_v35  ;;  %6173 = vst [vmem:[#allocation7 + $0x2e] sm:$0x1] %v6171_v29  ;;  %v10075_v7 = vadd.f32 %v5974_v40, %v9898_v28  ;;  %v10087_v28 = vld [vmem:[#allocation4 + $0x12] sm:$0x1] }
 0x2b0   :  { %v1859_v23 = vadd.s32 1, %v10048_v58  ;;  %v6045_v44 = vadd.f32 %v6044_v5, %v6043_v59  ;;  %v6046_v61 = vmul.f32 %v10003_v19, %v10055_v31  ;;  %v5930_v34 = vadd.f32 %v5929_v51, %v5928_v52 }
 0x2b1   :  { %v4304_v54 = vand.u32 3, %v9973_v50  ;;  %v6174_v16 = vsel %vm6011_vm8, %v10075_v7, 0.0  ;;  %v5931_v63 = vmul.f32 -0.44150585, %v9895_v47  ;;  %v5961_v48 = vmul.f32 %v9901_v56, %v9848_v27 }
 0x2b2   :  { %vm1790_vm12 = vweird.f32 %v9719_v30  ;;  %vm1792_vm13 = vcmp.lt.s32.totalorder %v9979_v57, 2  ;;  %v1860_v21 = vsel %vm1858_vm0, %v1859_v23, %v10048_v58  ;;  %v10092_v42 = vadd.f32 %v6046_v61, %v6045_v44  ;;  %6176 = vst [vmem:[#allocation7 + $0x2f] sm:$0x1] %v6174_v16 }
 0x2b3   :  { %v1861_v50 = vadd.s32 %v1860_v21, %v1856_v11  ;;  %v10094_v6 = vsub.f32 %v5930_v34, %v5931_v63  ;;  %v10097_v36 = vsub.f32 %v5961_v48, %v9959_v15  ;;  %v6032_v27 = vmul.f32 %v10000_v17, %v9981_v24 }
 0x2b4   :  { %vm1793_vm14 = vcmp.eq.s32.totalorder %v9979_v57, 0  ;;  %vm1796_vm1 = vcmp.eq.s32.totalorder %v9979_v57, 2  ;;  %v1904_v47 = vand.u32 2147483647, %v10087_v28  ;;  %v1907_v56 = vand.u32 2139095040, %v10087_v28 }
 0x2b5   :  { %vm4309_vm3 = vcmp.eq.s32.totalorder %v4304_v54, 2  ;;  %v1862_v32 = vadd.s32 536870912, %v1861_v50  ;;  %v5970_v46 = vmul.f32 1.33, %v10094_v6  ;;  %v6031_v55 = vmul.f32 0.8508111, %v10094_v6 }
 0x2b6   :  { %v6878_v3 = vpop.eup %6877  ;;  %vm4305_vm2 = vcmp.lt.s32.totalorder %v4304_v54, 2  ;;  %vm4306_vm4 = vcmp.eq.s32.totalorder %v4304_v54, 0  ;;  %v1908_v17 = vshrl.u32 %v1907_v56, 23  ;;  %v6034_v26 = vmul.f32 %v10003_v19, %v10097_v36 }
 0x2b7   :  { %v6880_v15 = vpop.eup %6879  ;;  %v1797_v10 = vxor.u32 2147483648, %v6878_v3  ;;  %v1863_v20 = vshrl.u32 %v1862_v32, 30  ;;  %v10108_v62 = vadd.f32 %v5970_v46, %v9912_v2  ;;  %v6033_v13 = vadd.f32 %v6032_v27, %v6031_v55 }
 0x2b8   :  { %v1794_v22 = vxor.u32 2147483648, %v6880_v15  ;;  %v6585_v33 = vadd.s32 4294967169, %v1908_v17  ;;  %v1911_v40 = vand.u32 8388607, %v1904_v47  ;;  %v6053_v57 = vmul.f32 %v9985_v0, %v9965_v37 }
 0x2b9   :  { %v4311_v12 = vsel %vm4309_vm3, %v1797_v10, %v6880_v15  ;;  %v1798_v25 = vsel %vm1796_vm1, %v1797_v10, %v6880_v15  ;;  %v1864_v35 = vshll.u32 %v1863_v20, 30  ;;  %v10120_v29 = vadd.f32 %v6034_v26, %v6033_v13 }
 0x2ba   :  { %v4308_v4 = vsel %vm4306_vm4, %v6878_v3, %v1794_v22  ;;  %v1795_v58 = vsel %vm1793_vm14, %v6878_v3, %v1794_v22  ;;  %v6168_v5 = vsel %vm6011_vm8, %v10108_v62, 0.0  ;;  %v1887_v11 = vsub.s32 4, %v1863_v20 }
 0x2bb   :  { %v4312_v59 = vsel %vm4305_vm2, %v4308_v4, %v4311_v12  ;;  %v1799_v2 = vsel %vm1792_vm13, %v1795_v58, %v1798_v25  ;;  %v10129_v51 = vsub.s32 %v1861_v50, %v1864_v35  ;;  %6170 = vst [vmem:[#allocation7 + $0x2d] sm:$0x1] %v6168_v5  ;;  %v1914_v23 = vadd.s32 1, %v6585_v33 }
 0x2bc   :  { %v4313_v19 = vsel %vm1790_vm12, nan, %v4312_v59  ;;  %v1800_v52 = vsel %vm1790_vm12, nan, %v1799_v2  ;;  %v10134_v44 = vmul.f32 0.8508111, %v9997_v1  ;;  %v10138_v34 = vmul.f32 0.8508111, %v9985_v0 }
 0x2bd   :  { %5058 = vst [vmem:[#allocation3 + $0x10] sm:$0x1] %v4313_v19  ;;  %2538 = vst [vmem:[#allocation2 + $0x10] sm:$0x1] %v1800_v52  ;;  %v1867_v61 = vsub.s32 0, %v10129_v51  ;;  %v1912_v30 = vor.u32 8388608, %v1911_v40  ;;  %v6052_v16 = vmul.f32 %v9997_v1, %v9987_v14  ;;  %v10146_v63 = vmul.f32 %v9985_v0, %v9975_v49 }
 0x2be   :  { %vm1915_vm5 = vcmp.gt.s32.totalorder %v1914_v23, 0  ;;  %v6021_v54 = vmul.f32 %v10134_v44, %v9965_v37  ;;  %v11338_v48 = vand.u32 2147483647, %v9924_v39  ;;  %vm1803_vm6 = vcmp.lt.s32.totalorder %v9924_v39, 0 }
 0x2bf   :  { %v6582_v50 = vmin.u32 %v1867_v61, %v10129_v51  ;;  %v1888_v37 = vsel %vm1803_vm6, %v1887_v11, %v1863_v20  ;;  %v1916_v27 = vsel %vm1915_vm5, %v1914_v23, 0  ;;  %v6022_v56 = vmul.f32 %v10138_v34, %v9987_v14 }
 0x2c0   :  { %vm10150_vm7 = vcmp.le.f32.partialorder %v11338_v48, 0.7853982  ;;  %v10160_v3 = vsub.f32 %v6052_v16, %v6053_v57  ;;  %v10164_v32 = vmul.f32 %v9985_v0, %v9981_v24  ;;  %v1857_v46 = vadd.s32 %v10047_v60, %v10044_v43 }
 0x2c1   :  { %v1869_v55 = vclz %v6582_v50  ;;  %v10169_v15 = vsub.f32 0.0, %v10072_v8  ;;  %v10172_v10 = vsub.f32 0.0, %v10092_v42  ;;  %v1918_v17 = vand.u32 31, %v1916_v27 }
 0x2c2   :  { %v10174_v22 = vshll.u32 %v1912_v30, 8  ;;  %v6023_v14 = vadd.f32 %v6022_v56, %v6021_v54  ;;  %v10178_v13 = vsel %vm10150_vm7, 0, %v1888_v37  ;;  %v1917_v0 = vshrl.u32 %v1916_v27, 5 }
 0x2c3   :  { %v6583_v20 = vadd.s32 4294967294, %v1869_v55  ;;  %v6024_v12 = vmul.f32 -0.5254716, %v10007_v38  ;;  %v1919_v43 = vsub.s32 32, %v1918_v17  ;;  %v6026_v60 = vmul.f32 %v10134_v44, %v9975_v49 }
 0x2c4   :  { %v6027_v8 = vmul.f32 %v10138_v34, %v10055_v31  ;;  %v6055_v42 = vmul.f32 %v9997_v1, %v10055_v31  ;;  %v1921_v25 = vshll.u32 %v11321_v45, %v1918_v17  ;;  %v11341_v26 = vmov 2475754826  }
 0x2c5   :  { %vm6584_vm9 = vcmp.lt.s32.totalorder %v6583_v20, 0  ;;  %v1924_v33 = vshll.u32 %v11341_v26, %v1918_v17  ;;  %v11342_v4 = vmov 2131351028   ;;  %v1920_v38 = vshrl.u32 %v11321_v45, %v1919_v43 }
 0x2c6   :  { %v1927_v58 = vshll.u32 %v11342_v4, %v1918_v17  ;;  %v1872_v35 = vsel %vm6584_vm9, 0, %v6583_v20  ;;  %v1922_v40 = vshrl.u32 %v11341_v26, %v1919_v43  ;;  %v1925_v49 = vshrl.u32 %v11342_v4, %v1919_v43 }
 0x2c7   :  { %v1873_v59 = vsub.s32 32, %v1872_v35  ;;  %v1874_v2 = vshll.u32 %v10129_v51, %v1872_v35  ;;  %v1877_v5 = vsub.s32 4294967266, %v1872_v35  ;;  %v11343_v19 = vmov 2102212464  }
 0x2c8   :  { %v1928_v31 = vshrl.u32 %v11343_v19, %v1919_v43  ;;  %v1923_v52 = vor.u32 %v1922_v40, %v1921_v25  ;;  %v1926_v57 = vor.u32 %v1925_v49, %v1924_v33  ;;  %v1930_v11 = vshll.u32 %v11343_v19, %v1918_v17 }
 0x2c9   :  { %v1931_v23 = vshrl.u32 %v11325_v53, %v1919_v43  ;;  %v1875_v61 = vshrl.u32 %v1857_v46, %v1873_v59  ;;  %v1878_v30 = vadd.s32 127, %v1877_v5  ;;  %v1933_v16 = vshll.u32 %v11325_v53, %v1918_v17 }
 0x2ca   :  { %v1929_v54 = vor.u32 %v1928_v31, %v1927_v58  ;;  %v11344_v50 = vmov 1326507024   ;;  %vm1936_vm15 = vcmp.lt.s32.totalorder %v1917_v0, 1  ;;  %vm1937_vm10 = vcmp.lt.s32.totalorder %v1917_v0, 2 }
 0x2cb   :  { %v1932_v48 = vor.u32 %v1931_v23, %v1930_v11  ;;  %v1934_v37 = vshrl.u32 %v11344_v50, %v1919_v43  ;;  %v1876_v51 = vor.u32 %v1875_v61, %v1874_v2  ;;  %v1879_v27 = vshll.u32 %v1878_v30, 23  ;;  %v10203_v2 = vld [vmem:[#allocation3 + $0x10] sm:$0x1] }
 0x2cc   :  { %vm1938_vm11 = vcmp.lt.s32.totalorder %v1917_v0, 3  ;;  %vm1939_vm0 = vcmp.lt.s32.totalorder %v1917_v0, 4  ;;  %v1940_v55 = vsel %vm1936_vm15, %v1920_v38, %v1923_v52  ;;  %v1944_v25 = vsel %vm1936_vm15, %v1923_v52, %v1926_v57 }
 0x2cd   :  { %v1935_v56 = vor.u32 %v1934_v37, %v1933_v16  ;;  %v1941_v20 = vsel %vm1939_vm0, %v1929_v54, 2102212464  ;;  %v1880_v33 = vor.u32 4788187, %v1879_v27  ;;  %v1883_v35 = vcvt.s32.f32 %v1876_v51 }
 0x2ce   :  { %v1942_v46 = vsel %vm1938_vm11, %v1926_v57, %v1941_v20  ;;  %v1945_v58 = vsel %vm1939_vm0, %v1932_v48, 920167782  ;;  %v1948_v40 = vsel %vm1936_vm15, %v1926_v57, %v1929_v54  ;;  %v6016_v43 = vmul.f32 %v10134_v44, %v9981_v24  ;;  %v10214_v57 = vld [vmem:[#allocation2 + $0x10] sm:$0x1] }
 0x2cf   :  { %v1946_v17 = vsel %vm1938_vm11, %v1929_v54, %v1945_v58  ;;  %v1949_v49 = vsel %vm1939_vm0, %v1935_v56, 1326507024  ;;  %v1881_v59 = vand.u32 2147483647, %v1880_v33  ;;  %v1943_v5 = vsel %vm1937_vm10, %v1940_v55, %v1942_v46 }
 0x2d0   :  { %v1947_v38 = vsel %vm1937_vm10, %v1944_v25, %v1946_v17  ;;  %v1950_v31 = vsel %vm1938_vm11, %v1932_v48, %v1949_v49  ;;  %v10216_v61 = vsub.f32 %v6023_v14, %v6024_v12  ;;  %v6066_v54 = vmul.f32 -0.36162457, %v10214_v57 }
 0x2d1   :  { %v1951_v52 = vsel %vm1937_vm10, %v1948_v40, %v1950_v31  ;;  %v10210_v11 = vmul.u32.u64.low %v10174_v22, %v1947_v38  ;;  %v10211_v23 = vmul.u32.u64.high %v10174_v22, %v1947_v38, %v10210_v11  ;;  %v1884_v24 = vmul.f32 %v1883_v35, %v1881_v59 }
 0x2d2   :  { %v10219_v44 = vmul.u32.u64.low %v10174_v22, %v1951_v52  ;;  %v10220_v30 = vmul.u32.u64.high %v10174_v22, %v1951_v52, %v10219_v44  ;;  %v1959_v16 = vmul.u32 %v10174_v22, %v1943_v5  ;;  %v6060_v0 = vmul.f32 1.46, %v10216_v61  ;;  %v10264_v5 = vld [vmem:[#allocation4 + $0x13] sm:$0x1] }
 0x2d3   :  { %v6067_v48 = vmul.f32 -0.36162457, %v10203_v2  ;;  %v6028_v37 = vadd.f32 %v6027_v8, %v6026_v60  ;;  %v1885_v51 = vxor.u32 2147483648, %v1884_v24  ;;  %v6089_v27 = vmul.f32 0.9323238, %v10216_v61 }
 0x2d4   :  { %v6090_v14 = vmul.f32 %v6066_v54, %v10169_v15  ;;  %v10229_v12 = vsub.f32 %v6055_v42, %v10146_v63  ;;  %v1962_v56 = vadd.s32 1, %v10211_v23  ;;  %v10233_v55 = vadd.f32 %v6060_v0, %v10052_v41 }
 0x2d5   :  { %v6092_v22 = vmul.f32 %v6067_v48, %v10160_v3  ;;  %v6029_v20 = vmul.f32 -0.5254716, %v10018_v18  ;;  %v1886_v60 = vsel %vm1803_vm6, %v1885_v51, %v1884_v24  ;;  %vm1961_vm12 = vc.u32 %v10220_v30, %v10210_v11 }
 0x2d6   :  { %v6091_v8 = vadd.f32 %v6090_v14, %v6089_v27  ;;  %v6096_v25 = vmul.f32 %v6066_v54, %v10172_v10  ;;  %v1889_v63 = vsel %vm10150_vm7, %v9924_v39, %v1886_v60  ;;  %v1963_v41 = vsel %vm1961_vm12, %v1962_v56, %v10211_v23 }
 0x2d7   :  { %v6180_v42 = vsel %vm6011_vm8, %v10233_v55, 0.0  ;;  %v10249_v18 = vsub.f32 %v6028_v37, %v6029_v20  ;;  %6881 = vcosq.f32 %v1889_v63  ;;  %v10252_v33 = vsub.f32 0.0, %v10120_v29 }
 0x2d8   :  { %v1964_v35 = vadd.s32 %v1963_v41, %v1959_v16  ;;  %v10254_v46 = vadd.f32 %v6092_v22, %v6091_v8  ;;  %6182 = vst [vmem:[#allocation7 + $0x31] sm:$0x1] %v6180_v42  ;;  %6883 = vsinq.f32 %v1889_v63  ;;  %v6017_v17 = vmul.f32 %v10138_v34, %v10097_v36 }
 0x2d9   :  { %v6062_v21 = vmul.f32 1.46, %v10249_v18  ;;  %v6095_v58 = vmul.f32 0.9323238, %v10249_v18  ;;  %v4407_v40 = vadd.s32 3, %v10178_v13  ;;  %v6098_v59 = vmul.f32 %v6067_v48, %v10229_v12 }
 0x2da   :  { %v1965_v49 = vadd.s32 536870912, %v1964_v35  ;;  %v6049_v29 = vmul.f32 %v9997_v1, %v10097_v36  ;;  %v6018_v52 = vadd.f32 %v6017_v17, %v6016_v43  ;;  %v6019_v23 = vmul.f32 -0.5254716, %v10094_v6 }
 0x2db   :  { %v10267_v38 = vadd.f32 %v6062_v21, %v10075_v7  ;;  %v6097_v31 = vadd.f32 %v6096_v25, %v6095_v58  ;;  %v1894_v24 = vand.u32 3, %v10178_v13  ;;  %v6084_v16 = vmul.f32 %v6066_v54, %v10252_v33 }
 0x2dc   :  { %v1966_v34 = vshrl.u32 %v1965_v49, 30  ;;  %v10272_v44 = vsub.f32 %v6049_v29, %v10164_v32  ;;  %v10278_v36 = vsub.f32 %v6018_v52, %v6019_v23  ;;  %v2010_v7 = vand.u32 2139095040, %v10264_v5 }
 0x2dd   :  { %v6099_v0 = vadd.f32 %v6098_v59, %v6097_v31  ;;  %v6183_v1 = vsel %vm6011_vm8, %v10267_v38, 0.0  ;;  %vm1893_vm13 = vweird.f32 %v9924_v39  ;;  %v4408_v6 = vand.u32 3, %v4407_v40 }
 0x2de   :  { %v1967_v43 = vshll.u32 %v1966_v34, 30  ;;  %6185 = vst [vmem:[#allocation7 + $0x32] sm:$0x1] %v6183_v1  ;;  %v2007_v13 = vand.u32 2147483647, %v10264_v5  ;;  %vm1906_vm14 = vcmp.lt.s32.totalorder %v10087_v28, 0  ;;  %v6086_v20 = vmul.f32 %v6067_v48, %v10272_v44 }
 0x2df   :  { %v6058_v32 = vmul.f32 1.46, %v10278_v36  ;;  %v6083_v54 = vmul.f32 0.9323238, %v10278_v36  ;;  %v2011_v37 = vshrl.u32 %v2010_v7, 23  ;;  %vm1895_vm1 = vcmp.lt.s32.totalorder %v1894_v24, 2 }
 0x2e0   :  { %vm1896_vm3 = vcmp.eq.s32.totalorder %v1894_v24, 0  ;;  %vm10288_vm2 = vcmp.le.f32.partialorder %v1904_v47, 0.7853982  ;;  %v10292_v27 = vsub.s32 %v1964_v35, %v1967_v43  ;;  %v1990_v14 = vsub.s32 4, %v1966_v34 }
 0x2e1   :  { %v10295_v56 = vadd.f32 %v6058_v32, %v10108_v62  ;;  %v6085_v22 = vadd.f32 %v6084_v16, %v6083_v54  ;;  %v6589_v60 = vadd.s32 4294967169, %v2011_v37  ;;  %v6882_v8 = vpop.eup %6881  ;;  %vm4413_vm4 = vcmp.eq.s32.totalorder %v4408_v6, 2 }
 0x2e2   :  { %vm1899_vm5 = vcmp.eq.s32.totalorder %v1894_v24, 2  ;;  %v1970_v25 = vsub.s32 0, %v10292_v27  ;;  %v2014_v47 = vand.u32 8388607, %v2007_v13  ;;  %v6884_v63 = vpop.eup %6883  ;;  %v1900_v41 = vxor.u32 2147483648, %v6882_v8 }
 0x2e3   :  { %vm4410_vm7 = vcmp.eq.s32.totalorder %v4408_v6, 0  ;;  %v10301_v42 = vadd.f32 %v6086_v20, %v6085_v22  ;;  %v6177_v62 = vsel %vm6011_vm8, %v10295_v56, 0.0  ;;  %v1897_v35 = vxor.u32 2147483648, %v6884_v63 }
 0x2e4   :  { %vm4409_vm6 = vcmp.lt.s32.totalorder %v4408_v6, 2  ;;  %v10308_v48 = vmul.f32 %v10169_v15, %v10203_v2  ;;  %v6586_v21 = vmin.u32 %v1970_v25, %v10292_v27  ;;  %6179 = vst [vmem:[#allocation7 + $0x30] sm:$0x1] %v6177_v62  ;;  %v4415_v58 = vsel %vm4413_vm4, %v1900_v41, %v6884_v63 }
 0x2e5   :  { %v1901_v17 = vsel %vm1899_vm5, %v1900_v41, %v6884_v63  ;;  %v1991_v40 = vsel %vm1906_vm14, %v1990_v14, %v1966_v34  ;;  %v2017_v49 = vadd.s32 1, %v6589_v60  ;;  %v4412_v59 = vsel %vm4410_vm7, %v6882_v8, %v1897_v35 }
 0x2e6   :  { %v1898_v29 = vsel %vm1896_vm3, %v6882_v8, %v1897_v35  ;;  %v1972_v31 = vclz %v6586_v21  ;;  %v2015_v52 = vor.u32 8388608, %v2014_v47  ;;  %v4416_v23 = vsel %vm4409_vm6, %v4412_v59, %v4415_v58 }
 0x2e7   :  { %v10316_v16 = vmul.f32 %v10172_v10, %v10203_v2  ;;  %v1902_v1 = vsel %vm1895_vm1, %v1898_v29, %v1901_v17  ;;  %v10321_v7 = vmul.f32 %v10252_v33, %v10203_v2  ;;  %v4417_v34 = vsel %vm1893_vm13, nan, %v4416_v23 }
 0x2e8   :  { %v1903_v6 = vsel %vm1893_vm13, nan, %v1902_v1  ;;  %v1960_v43 = vadd.s32 %v10210_v11, %v10220_v30  ;;  %v6587_v32 = vadd.s32 4294967294, %v1972_v31  ;;  %5059 = vst [vmem:[#allocation3 + $0x11] sm:$0x1] %v4417_v34  ;;  %v10331_v24 = vsel %vm10288_vm2, 0, %v1991_v40 }
 0x2e9   :  { %2539 = vst [vmem:[#allocation2 + $0x11] sm:$0x1] %v1903_v6  ;;  %v10334_v54 = vsub.f32 0.0, %v10254_v46  ;;  %v10336_v37 = vsub.f32 0.0, %v6099_v0  ;;  %vm2018_vm9 = vcmp.gt.s32.totalorder %v2017_v49, 0  ;;  %v10338_v39 = vshll.u32 %v2015_v52, 8 }
 0x2ea   :  { %vm6588_vm15 = vcmp.lt.s32.totalorder %v6587_v32, 0  ;;  %v2019_v14 = vsel %vm2018_vm9, %v2017_v49, 0  ;;  %v10341_v22 = vmul.f32 0.9323238, %v10214_v57  ;;  %v10344_v20 = vmul.f32 0.9323238, %v10203_v2 }
 0x2eb   :  { %v1975_v11 = vsel %vm6588_vm15, 0, %v6587_v32  ;;  %v2021_v30 = vand.u32 31, %v2019_v14  ;;  %v6076_v60 = vmul.f32 -0.36162457, %v10216_v61  ;;  %v2020_v25 = vshrl.u32 %v2019_v14, 5 }
 0x2ec   :  { %v1976_v8 = vsub.s32 32, %v1975_v11  ;;  %v1977_v46 = vshll.u32 %v10292_v27, %v1975_v11  ;;  %v1980_v0 = vsub.s32 4294967266, %v1975_v11  ;;  %v6073_v23 = vmul.f32 %v10341_v22, %v10169_v15 }
 0x2ed   :  { %v2022_v47 = vsub.s32 32, %v2021_v30  ;;  %v2024_v63 = vshll.u32 %v11321_v45, %v2021_v30  ;;  %v2027_v41 = vshll.u32 %v11341_v26, %v2021_v30  ;;  %v2030_v62 = vshll.u32 %v11342_v4, %v2021_v30 }
 0x2ee   :  { %v1978_v35 = vshrl.u32 %v1960_v43, %v1976_v8  ;;  %v1981_v21 = vadd.s32 127, %v1980_v0  ;;  %v2033_v58 = vshll.u32 %v11343_v19, %v2021_v30  ;;  %v2036_v2 = vshll.u32 %v11325_v53, %v2021_v30 }
 0x2ef   :  { %v2023_v61 = vshrl.u32 %v11321_v45, %v2022_v47  ;;  %v2025_v17 = vshrl.u32 %v11341_v26, %v2022_v47  ;;  %v2028_v27 = vshrl.u32 %v11342_v4, %v2022_v47  ;;  %v2031_v40 = vshrl.u32 %v11343_v19, %v2022_v47 }
 0x2f0   :  { %v1979_v49 = vor.u32 %v1978_v35, %v1977_v46  ;;  %v1982_v59 = vshll.u32 %v1981_v21, 23  ;;  %v2034_v29 = vshrl.u32 %v11325_v53, %v2022_v47  ;;  %v2037_v31 = vshrl.u32 %v11344_v50, %v2022_v47 }
 0x2f1   :  { %v2026_v52 = vor.u32 %v2025_v17, %v2024_v63  ;;  %v6074_v1 = vmul.f32 %v10344_v20, %v10160_v3  ;;  %v6104_v34 = vmul.f32 %v10160_v3, %v10214_v57  ;;  %v2029_v32 = vor.u32 %v2028_v27, %v2027_v41 }
 0x2f2   :  { %v1983_v6 = vor.u32 4788187, %v1982_v59  ;;  %v1986_v43 = vcvt.s32.f32 %v1979_v49  ;;  %v2032_v14 = vor.u32 %v2031_v40, %v2030_v62  ;;  %v2035_v11 = vor.u32 %v2034_v29, %v2033_v58  ;;  %v10365_v59 = vld [vmem:[#allocation3 + $0x11] sm:$0x1] }
 0x2f3   :  { %v2038_v30 = vor.u32 %v2037_v31, %v2036_v2  ;;  %vm2039_vm10 = vcmp.lt.s32.totalorder %v2020_v25, 1  ;;  %vm2040_vm11 = vcmp.lt.s32.totalorder %v2020_v25, 2  ;;  %vm2041_vm0 = vcmp.lt.s32.totalorder %v2020_v25, 3 }
 0x2f4   :  { %v1984_v8 = vand.u32 2147483647, %v1983_v6  ;;  %vm2042_vm12 = vcmp.lt.s32.totalorder %v2020_v25, 4  ;;  %v2043_v46 = vsel %vm2039_vm10, %v2023_v61, %v2026_v52  ;;  %v2047_v15 = vsel %vm2039_vm10, %v2026_v52, %v2029_v32  ;;  %v10380_v6 = vld [vmem:[#allocation2 + $0x11] sm:$0x1] }
 0x2f5   :  { %v2044_v0 = vsel %vm2042_vm12, %v2032_v14, 2102212464  ;;  %v2048_v47 = vsel %vm2042_vm12, %v2035_v11, 920167782  ;;  %v2051_v63 = vsel %vm2039_vm10, %v2029_v32, %v2032_v14  ;;  %v2052_v3 = vsel %vm2042_vm12, %v2038_v30, 1326507024 }
 0x2f6   :  { %v1987_v35 = vmul.f32 %v1986_v43, %v1984_v8  ;;  %v2045_v21 = vsel %vm2041_vm0, %v2029_v32, %v2044_v0  ;;  %v2049_v17 = vsel %vm2041_vm0, %v2032_v14, %v2048_v47  ;;  %v2053_v58 = vsel %vm2041_vm0, %v2035_v11, %v2052_v3 }
 0x2f7   :  { %v2046_v41 = vsel %vm2040_vm11, %v2043_v46, %v2045_v21  ;;  %v2050_v62 = vsel %vm2040_vm11, %v2047_v15, %v2049_v17  ;;  %v6075_v2 = vadd.f32 %v6074_v1, %v6073_v23  ;;  %v2054_v40 = vsel %vm2040_vm11, %v2051_v63, %v2053_v58 }
 0x2f8   :  { %v1988_v27 = vxor.u32 2147483648, %v1987_v35  ;;  %v10371_v61 = vmul.u32.u64.low %v10338_v39, %v2050_v62  ;;  %v10372_v49 = vmul.u32.u64.high %v10338_v39, %v2050_v62, %v10371_v61  ;;  %v4511_v29 = vadd.s32 3, %v10331_v24 }
 0x2f9   :  { %v10377_v31 = vmul.u32.u64.low %v10338_v39, %v2054_v40  ;;  %v10378_v52 = vmul.u32.u64.high %v10338_v39, %v2054_v40, %v10377_v31  ;;  %v10382_v43 = vsub.f32 %v6075_v2, %v6076_v60  ;;  %v10387_v25 = vsub.f32 %v6104_v34, %v10308_v48 }
 0x2fa   :  { %v1989_v23 = vsel %vm1906_vm14, %v1988_v27, %v1987_v35  ;;  %v10390_v1 = vmul.f32 -0.44150585, %v10380_v6  ;;  %v10393_v32 = vmul.f32 -0.44150585, %v10365_v59  ;;  %v2062_v11 = vmul.u32 %v10338_v39, %v2046_v41 }
 0x2fb   :  { %v1992_v14 = vsel %vm10288_vm2, %v10087_v28, %v1989_v23  ;;  %v6112_v60 = vmul.f32 1.525, %v10382_v43  ;;  %v6141_v30 = vmul.f32 0.89725834, %v10382_v43  ;;  %v2065_v48 = vadd.s32 1, %v10372_v49 }
 0x2fc   :  { %6885 = vcosq.f32 %v1992_v14  ;;  %v6142_v34 = vmul.f32 %v10390_v1, %v10334_v54  ;;  %v6078_v8 = vmul.f32 %v10341_v22, %v10172_v10  ;;  %v10407_v46 = vand.u32 3, %v10331_v24 }
 0x2fd   :  { %6887 = vsinq.f32 %v1992_v14  ;;  %vm2064_vm13 = vc.u32 %v10378_v52, %v10371_v61  ;;  %v10412_v51 = vadd.f32 %v6112_v60, %v10233_v55  ;;  %v6144_v15 = vmul.f32 %v10393_v32, %v10387_v25  ;;  %v10463_v60 = vld [vmem:[#allocation4 + $0x14] sm:$0x1] }
 0x2fe   :  { %v2066_v39 = vsel %vm2064_vm13, %v2065_v48, %v10372_v49  ;;  %v6143_v0 = vadd.f32 %v6142_v34, %v6141_v30  ;;  %v6079_v47 = vmul.f32 %v10344_v20, %v10229_v12  ;;  %v6081_v63 = vmul.f32 -0.36162457, %v10249_v18 }
 0x2ff   :  { %v2067_v10 = vadd.s32 %v2066_v39, %v2062_v11  ;;  %v6189_v24 = vsel %vm6011_vm8, %v10412_v51, 0.0  ;;  %v6107_v55 = vmul.f32 %v10229_v12, %v10214_v57  ;;  %v6068_v17 = vmul.f32 %v10341_v22, %v10252_v33 }
 0x300   :  { %v10425_v35 = vadd.f32 %v6144_v15, %v6143_v0  ;;  %6191 = vst [vmem:[#allocation7 + $0x34] sm:$0x1] %v6189_v24  ;;  %v6080_v21 = vadd.f32 %v6079_v47, %v6078_v8  ;;  %v6069_v3 = vmul.f32 %v10344_v20, %v10272_v44  ;;  %vm1996_vm14 = vweird.f32 %v10087_v28 }
 0x301   :  { %v4512_v41 = vand.u32 3, %v4511_v29  ;;  %v2068_v62 = vadd.s32 536870912, %v2067_v10  ;;  %v10433_v58 = vsub.f32 %v6107_v55, %v10316_v16  ;;  %v6101_v12 = vmul.f32 %v10272_v44, %v10214_v57 }
 0x302   :  { %v10437_v18 = vsub.f32 %v6080_v21, %v6081_v63  ;;  %v6148_v2 = vmul.f32 %v10390_v1, %v10336_v37  ;;  %v6070_v27 = vadd.f32 %v6069_v3, %v6068_v17  ;;  %v6071_v33 = vmul.f32 -0.36162457, %v10278_v36 }
 0x303   :  { %vm1998_vm1 = vcmp.lt.s32.totalorder %v10407_v46, 2  ;;  %vm2009_vm3 = vcmp.lt.s32.totalorder %v10264_v5, 0  ;;  %v2069_v22 = vshrl.u32 %v2068_v62, 30  ;;  %v10445_v20 = vsub.f32 %v6101_v12, %v10321_v7 }
 0x304   :  { %v10448_v16 = vsub.f32 0.0, %v10301_v42  ;;  %v6114_v57 = vmul.f32 1.525, %v10437_v18  ;;  %v6147_v44 = vmul.f32 0.89725834, %v10437_v18  ;;  %v10452_v40 = vsub.f32 %v6070_v27, %v6071_v33 }
 0x305   :  { %vm4513_vm2 = vcmp.lt.s32.totalorder %v4512_v41, 2  ;;  %vm1999_vm4 = vcmp.eq.s32.totalorder %v10407_v46, 0  ;;  %vm2002_vm5 = vcmp.eq.s32.totalorder %v10407_v46, 2  ;;  %v2070_v36 = vshll.u32 %v2069_v22, 30 }
 0x306   :  { %v6886_v49 = vpop.eup %6885  ;;  %vm4517_vm7 = vcmp.eq.s32.totalorder %v4512_v41, 2  ;;  %v10457_v7 = vadd.f32 %v6114_v57, %v10267_v38  ;;  %v6149_v29 = vadd.f32 %v6148_v2, %v6147_v44  ;;  %v6150_v42 = vmul.f32 %v10393_v32, %v10433_v58 }
 0x307   :  { %v6888_v31 = vpop.eup %6887  ;;  %v2003_v23 = vxor.u32 2147483648, %v6886_v49  ;;  %vm4514_vm6 = vcmp.eq.s32.totalorder %v4512_v41, 0  ;;  %v10461_v14 = vsub.s32 %v2067_v10, %v2070_v36  ;;  %v2093_v11 = vsub.s32 4, %v2069_v22 }
 0x308   :  { %v2000_v30 = vxor.u32 2147483648, %v6888_v31  ;;  %v6151_v48 = vadd.f32 %v6150_v42, %v6149_v29  ;;  %v6192_v34 = vsel %vm6011_vm8, %v10457_v7, 0.0  ;;  %v6136_v38 = vmul.f32 %v10390_v1, %v10448_v16 }
 0x309   :  { %v4519_v8 = vsel %vm4517_vm7, %v2003_v23, %v6888_v31  ;;  %v2004_v39 = vsel %vm2002_vm5, %v2003_v23, %v6888_v31  ;;  %v2073_v0 = vsub.s32 0, %v10461_v14  ;;  %6194 = vst [vmem:[#allocation7 + $0x35] sm:$0x1] %v6192_v34  ;;  %v11284_v15 = vand.u32 2147483647, %v10463_v60 }
 0x30a   :  { %v4516_v47 = vsel %vm4514_vm6, %v6886_v49, %v2000_v30  ;;  %v2001_v10 = vsel %vm1999_vm4, %v6886_v49, %v2000_v30  ;;  %v6110_v24 = vmul.f32 1.525, %v10452_v40  ;;  %v2113_v63 = vand.u32 2139095040, %v10463_v60 }
 0x30b   :  { %v4520_v55 = vsel %vm4513_vm2, %v4516_v47, %v4519_v8  ;;  %v2005_v1 = vsel %vm1998_vm1, %v2001_v10, %v2004_v39  ;;  %v6590_v21 = vmin.u32 %v2073_v0, %v10461_v14  ;;  %v2094_v17 = vsel %vm2009_vm3, %v2093_v11, %v2069_v22 }
 0x30c   :  { %v4521_v3 = vsel %vm1996_vm14, nan, %v4520_v55  ;;  %v2006_v62 = vsel %vm1996_vm14, nan, %v2005_v1  ;;  %vm10490_vm9 = vcmp.le.f32.partialorder %v2007_v13, 0.7853982  ;;  %v6135_v46 = vmul.f32 0.89725834, %v10452_v40 }
 0x30d   :  { %5060 = vst [vmem:[#allocation3 + $0x12] sm:$0x1] %v4521_v3  ;;  %v6157_v41 = vmul.f32 %v10334_v54, %v10365_v59  ;;  %v10499_v2 = vmul.f32 %v10336_v37, %v10365_v59  ;;  %2540 = vst [vmem:[#allocation2 + $0x12] sm:$0x1] %v2006_v62  ;;  %v2075_v27 = vclz %v6590_v21  ;;  %v6138_v28 = vmul.f32 %v10393_v32, %v10445_v20 }
 0x30e   :  { %v2096_v13 = vsel %vm10490_vm9, 0, %v2094_v17  ;;  %v10506_v33 = vadd.f32 %v6110_v24, %v10295_v56  ;;  %v6137_v22 = vadd.f32 %v6136_v38, %v6135_v46  ;;  %v2114_v57 = vshrl.u32 %v2113_v63, 23 }
 0x30f   :  { %v2063_v44 = vadd.s32 %v10371_v61, %v10378_v52  ;;  %v6591_v36 = vadd.s32 4294967294, %v2075_v27  ;;  %v2117_v49 = vand.u32 8388607, %v11284_v15  ;;  %v10513_v29 = vmul.f32 0.89725834, %v10380_v6 }
 0x310   :  { %v10515_v42 = vadd.f32 %v6138_v28, %v6137_v22  ;;  %v6186_v32 = vsel %vm6011_vm8, %v10506_v33, 0.0  ;;  %v6593_v56 = vadd.s32 4294967169, %v2114_v57  ;;  %v10521_v31 = vmul.f32 0.89725834, %v10365_v59 }
 0x311   :  { %vm6592_vm15 = vcmp.lt.s32.totalorder %v6591_v36, 0  ;;  %v4615_v23 = vadd.s32 3, %v2096_v13  ;;  %v10524_v61 = vsub.f32 0.0, %v10425_v35  ;;  %6188 = vst [vmem:[#allocation7 + $0x33] sm:$0x1] %v6186_v32  ;;  %v6125_v52 = vmul.f32 %v10513_v29, %v10334_v54 }
 0x312   :  { %v2078_v11 = vsel %vm6592_vm15, 0, %v6591_v36  ;;  %v2118_v30 = vor.u32 8388608, %v2117_v49  ;;  %v2120_v34 = vadd.s32 1, %v6593_v56  ;;  %v6126_v9 = vmul.f32 %v10521_v31, %v10387_v25 }
 0x313   :  { %v2079_v38 = vsub.s32 32, %v2078_v11  ;;  %v2080_v8 = vshll.u32 %v10461_v14, %v2078_v11  ;;  %v2083_v39 = vsub.s32 4294967266, %v2078_v11  ;;  %v10531_v0 = vsub.f32 0.0, %v6151_v48 }
 0x314   :  { %vm2121_vm8 = vcmp.gt.s32.totalorder %v2120_v34, 0  ;;  %v6127_v47 = vadd.f32 %v6126_v9, %v6125_v52  ;;  %v6128_v35 = vmul.f32 -0.44150585, %v10382_v43  ;;  %v6156_v10 = vmul.f32 %v10387_v25, %v10380_v6  ;;  %v10538_v55 = vld [vmem:[#allocation3 + $0x12] sm:$0x1] }
 0x315   :  { %v2081_v54 = vshrl.u32 %v2063_v44, %v2079_v38  ;;  %v2084_v24 = vadd.s32 127, %v2083_v39  ;;  %v10536_v63 = vand.u32 3, %v4615_v23  ;;  %v10540_v1 = vand.u32 3, %v2096_v13  ;;  %v10548_v25 = vld [vmem:[#allocation2 + $0x12] sm:$0x1] }
 0x316   :  { %v2122_v21 = vsel %vm2121_vm8, %v2120_v34, 0  ;;  %v10542_v14 = vshll.u32 %v2118_v30, 8  ;;  %v10544_v48 = vsub.f32 %v6127_v47, %v6128_v35  ;;  %v10546_v17 = vsub.f32 %v6156_v10, %v6157_v41  ;;  %v10572_v34 = vld [vmem:[%s11262_s1] sm:$0x1]  ;;  %s6970_s1 = smov [#allocation7]  }
 0x317   :  { %v2082_v3 = vor.u32 %v2081_v54, %v2080_v8  ;;  %v2085_v43 = vshll.u32 %v2084_v24, 23  ;;  %v2123_v62 = vshrl.u32 %v2122_v21, 5  ;;  %v2124_v46 = vand.u32 31, %v2122_v21  ;;  %s6501_s30 = sshll.u32 %s6970_s1, 4  ;;  %s6502_s30 = int_to_ptr.vmem [resolvable:$true] %s6501_s30 }
 0x318   :  { %v10552_v27 = vmul.f32 %v10448_v16, %v10365_v59  ;;  %v6164_v28 = vmul.f32 1.33, %v10544_v48  ;;  %v10556_v13 = vmul.f32 -0.5254716, %v10548_v25  ;;  %v10559_v22 = vmul.f32 -0.5254716, %v10538_v55  ;;  %p6939_p9 = scmp.lt.s32.totalorder %s6502_s30, %s6502_s30 }
 0x319   :  { %v2086_v41 = vor.u32 4788187, %v2085_v43  ;;  %v2089_v57 = vcvt.s32.f32 %v2082_v3  ;;  %v2125_v44 = vsub.s32 32, %v2124_v46  ;;  %v2127_v36 = vshll.u32 %v11321_v45, %v2124_v46  ;;  %s6934_s3 = scalar_lea.vmem %s6502_s30, 1152 }
 0x31a   :  { %v2130_v49 = vshll.u32 %v11341_v26, %v2124_v46  ;;  %v2133_v32 = vshll.u32 %v11342_v4, %v2124_v46  ;;  %v2136_v59 = vshll.u32 %v11343_v19, %v2124_v46  ;;  %v2139_v56 = vshll.u32 %v11325_v53, %v2124_v46  ;;  %p6935_p8 = scmp.ne.s32.totalorder %s6502_s30, %s6934_s3  ;;  %p6940_p10 = scmp.lt.s32.totalorder %s6934_s3, %s6934_s3 }
 0x31b   :  { %v2087_v23 = vand.u32 2147483647, %v2086_v41  ;;  %v2126_v52 = vshrl.u32 %v11321_v45, %v2125_v44  ;;  %v2128_v11 = vshrl.u32 %v11341_v26, %v2125_v44  ;;  %v2131_v30 = vshrl.u32 %v11342_v4, %v2125_v44 }
 0x31c   :  { %vm6203_vm10 = vcmp.gt.s32.totalorder %v10572_v34, 6  ;;  %v2134_v9 = vshrl.u32 %v11343_v19, %v2125_v44  ;;  %v2137_v38 = vshrl.u32 %v11325_v53, %v2125_v44  ;;  %v2140_v8 = vshrl.u32 %v11344_v50, %v2125_v44  ;;  %p6941_p11 = por %p6940_p10, %p6939_p9 }
 0x31d   :  { %vm2142_vm11 = vcmp.lt.s32.totalorder %v2123_v62, 1  ;;  %v2090_v39 = vmul.f32 %v2089_v57, %v2087_v23  ;;  %v2129_v47 = vor.u32 %v2128_v11, %v2127_v36  ;;  %v2132_v35 = vor.u32 %v2131_v30, %v2130_v49 }
 0x31e   :  { %vm2143_vm0 = vcmp.lt.s32.totalorder %v2123_v62, 2  ;;  %v2135_v10 = vor.u32 %v2134_v9, %v2133_v32  ;;  %v2138_v54 = vor.u32 %v2137_v38, %v2136_v59  ;;  %v2141_v24 = vor.u32 %v2140_v8, %v2139_v56  ;;  %p6942_p12 = pnand %p6941_p11, %p6935_p8 }
 0x31f   :  { %vm2144_vm12 = vcmp.lt.s32.totalorder %v2123_v62, 3  ;;  %v2091_v21 = vxor.u32 2147483648, %v2090_v39  ;;  %vm2145_vm13 = vcmp.lt.s32.totalorder %v2123_v62, 4  ;;  %v2146_v3 = vsel %vm2142_vm11, %v2126_v52, %v2129_v47 }
 0x320   :  { %v2150_v43 = vsel %vm2142_vm11, %v2129_v47, %v2132_v35  ;;  %v2147_v46 = vsel %vm2145_vm13, %v2135_v10, 2102212464  ;;  %v2151_v41 = vsel %vm2145_vm13, %v2138_v54, 920167782  ;;  %v2154_v15 = vsel %vm2142_vm11, %v2132_v35, %v2135_v10 }
 0x321   :  { %v2155_v19 = vsel %vm2145_vm13, %v2141_v24, 1326507024  ;;  %v2092_v44 = vsel %vm2009_vm3, %v2091_v21, %v2090_v39  ;;  %v2148_v50 = vsel %vm2144_vm12, %v2132_v35, %v2147_v46  ;;  %v2152_v57 = vsel %vm2144_vm12, %v2135_v10, %v2151_v41 }
 0x322   :  { %v2156_v36 = vsel %vm2144_vm12, %v2138_v54, %v2155_v19  ;;  %v2095_v49 = vsel %vm10490_vm9, %v10264_v5, %v2092_v44  ;;  %v2153_v32 = vsel %vm2143_vm0, %v2150_v43, %v2152_v57  ;;  %v6130_v56 = vmul.f32 %v10513_v29, %v10336_v37 }
 0x323   :  { %v2157_v59 = vsel %vm2143_vm0, %v2154_v15, %v2156_v36  ;;  %6889 = vcosq.f32 %v2095_v49  ;;  %v2149_v23 = vsel %vm2143_vm0, %v2146_v3, %v2148_v50  ;;  %v10598_v12 = vadd.f32 %v6164_v28, %v10412_v51 }
 0x324   :  { %v10589_v52 = vmul.u32.u64.low %v10542_v14, %v2157_v59  ;;  %v10590_v11 = vmul.u32.u64.high %v10542_v14, %v2157_v59, %v10589_v52  ;;  %6891 = vsinq.f32 %v2095_v49  ;;  %v10601_v15 = vsub.f32 0.0, %v10515_v42 }
 0x325   :  { %v10593_v19 = vmul.u32.u64.low %v10542_v14, %v2153_v32  ;;  %v10594_v30 = vmul.u32.u64.high %v10542_v14, %v2153_v32, %v10593_v19  ;;  %v6229_v37 = vmul.f32 0.8508111, %v10544_v48  ;;  %v6230_v50 = vmul.f32 %v10556_v13, %v10524_v61 }
 0x326   :  { %v6131_v62 = vmul.f32 %v10521_v31, %v10433_v58  ;;  %vm4618_vm14 = vcmp.eq.s32.totalorder %v10536_v63, 0  ;;  %vm2102_vm1 = vcmp.eq.s32.totalorder %v10540_v1, 0  ;;  %v2165_v9 = vmul.u32 %v10542_v14, %v2149_v23 }
 0x327   :  { %v6232_v51 = vmul.f32 %v10559_v22, %v10546_v17  ;;  %v6363_v42 = vsel %vm6203_vm10, %v10598_v12, 0.0  ;;  %v6159_v28 = vmul.f32 %v10433_v58, %v10380_v6  ;;  %vm4617_vm3 = vcmp.lt.s32.totalorder %v10536_v63, 2 }
 0x328   :  { %vm2101_vm2 = vcmp.lt.s32.totalorder %v10540_v1, 2  ;;  %vm2167_vm4 = vc.u32 %v10590_v11, %v10593_v19  ;;  %v6231_v38 = vadd.f32 %v6230_v50, %v6229_v37  ;;  %6365 = vst [vmem:[#allocation7 + $0x37] sm:$0x1] %v6363_v42  ;;  %v6132_v14 = vadd.f32 %v6131_v62, %v6130_v56 }
 0x329   :  { %v6133_v8 = vmul.f32 -0.44150585, %v10437_v18  ;;  %vm2099_vm5 = vweird.f32 %v10264_v5  ;;  %v2168_v39 = vadd.s32 1, %v10594_v30  ;;  %v10626_v47 = vsub.f32 %v6159_v28, %v10499_v2 }
 0x32a   :  { %v6120_v58 = vmul.f32 %v10513_v29, %v10448_v16  ;;  %v6121_v35 = vmul.f32 %v10521_v31, %v10445_v20  ;;  %vm4621_vm7 = vcmp.eq.s32.totalorder %v10536_v63, 2  ;;  %v10633_v10 = vadd.f32 %v6232_v51, %v6231_v38  ;;  %v10643_v29 = vld [vmem:[#allocation4 + $0x15] sm:$0x1] }
 0x32b   :  { %v10635_v54 = vsub.f32 %v6132_v14, %v6133_v8  ;;  %v6236_v18 = vmul.f32 %v10556_v13, %v10531_v0  ;;  %v2169_v24 = vsel %vm2167_vm4, %v2168_v39, %v10594_v30  ;;  %v6123_v2 = vmul.f32 -0.44150585, %v10452_v40 }
 0x32c   :  { %v6122_v21 = vadd.f32 %v6121_v35, %v6120_v58  ;;  %v6153_v16 = vmul.f32 %v10445_v20, %v10380_v6  ;;  %vm2105_vm6 = vcmp.eq.s32.totalorder %v10540_v1, 2  ;;  %v2170_v31 = vadd.s32 %v2169_v24, %v2165_v9 }
 0x32d   :  { %v6166_v3 = vmul.f32 1.33, %v10635_v54  ;;  %v6235_v43 = vmul.f32 0.8508111, %v10635_v54  ;;  %v6238_v46 = vmul.f32 %v10559_v22, %v10626_v47  ;;  %v6224_v6 = vmul.f32 %v10556_v13, %v10601_v15  ;;  %v6890_v20 = vpop.eup %6889 }
 0x32e   :  { %v10650_v41 = vsub.f32 %v6122_v21, %v6123_v2  ;;  %v10653_v44 = vsub.f32 %v6153_v16, %v10552_v27  ;;  %v2171_v40 = vadd.s32 536870912, %v2170_v31  ;;  %v2216_v49 = vand.u32 2139095040, %v10643_v29  ;;  %v6892_v32 = vpop.eup %6891 }
 0x32f   :  { %v10658_v57 = vadd.f32 %v6166_v3, %v10457_v7  ;;  %v6237_v36 = vadd.f32 %v6236_v18, %v6235_v43  ;;  %v2106_v59 = vxor.u32 2147483648, %v6890_v20  ;;  %v2103_v52 = vxor.u32 2147483648, %v6892_v32 }
 0x330   :  { %v6162_v56 = vmul.f32 1.33, %v10650_v41  ;;  %v6223_v23 = vmul.f32 0.8508111, %v10650_v41  ;;  %v6226_v27 = vmul.f32 %v10559_v22, %v10653_v44  ;;  %v2172_v30 = vshrl.u32 %v2171_v40, 30 }
 0x331   :  { %v6239_v13 = vadd.f32 %v6238_v46, %v6237_v36  ;;  %v6366_v7 = vsel %vm6203_vm10, %v10658_v57, 0.0  ;;  %v4623_v37 = vsel %vm4621_vm7, %v2106_v59, %v6892_v32  ;;  %v2107_v50 = vsel %vm2105_vm6, %v2106_v59, %v6892_v32 }
 0x332   :  { %6368 = vst [vmem:[#allocation7 + $0x38] sm:$0x1] %v6366_v7  ;;  %v10673_v62 = vadd.f32 %v6162_v56, %v10506_v33  ;;  %v6225_v9 = vadd.f32 %v6224_v6, %v6223_v23  ;;  %v4620_v22 = vsel %vm4618_vm14, %v6890_v20, %v2103_v52  ;;  %v2104_v51 = vsel %vm2102_vm1, %v6890_v20, %v2103_v52 }
 0x333   :  { %v2173_v42 = vshll.u32 %v2172_v30, 30  ;;  %v2196_v28 = vsub.s32 4, %v2172_v30  ;;  %v4624_v38 = vsel %vm4617_vm3, %v4620_v22, %v4623_v37  ;;  %v2108_v14 = vsel %vm2101_vm2, %v2104_v51, %v2107_v50 }
 0x334   :  { %v6227_v8 = vadd.f32 %v6226_v27, %v6225_v9  ;;  %v11287_v39 = vand.u32 2147483647, %v10643_v29  ;;  %v4625_v33 = vsel %vm2099_vm5, nan, %v4624_v38  ;;  %v2109_v58 = vsel %vm2099_vm5, nan, %v2108_v14 }
 0x335   :  { %vm2112_vm9 = vcmp.lt.s32.totalorder %v10463_v60, 0  ;;  %v10689_v35 = vsub.s32 %v2170_v31, %v2173_v42  ;;  %5061 = vst [vmem:[#allocation3 + $0x13] sm:$0x1] %v4625_v33  ;;  %2541 = vst [vmem:[#allocation2 + $0x13] sm:$0x1] %v2109_v58  ;;  %v6360_v1 = vsel %vm6203_vm10, %v10673_v62, 0.0  ;;  %v6245_v2 = vmul.f32 %v10538_v55, %v10524_v61 }
 0x336   :  { %v2197_v63 = vsel %vm2112_vm9, %v2196_v28, %v2172_v30  ;;  %v11349_v18 = vand.u32 2147483647, %v10463_v60  ;;  %6362 = vst [vmem:[#allocation7 + $0x36] sm:$0x1] %v6360_v1  ;;  %v2217_v21 = vshrl.u32 %v2216_v49, 23  ;;  %v10715_v43 = vmul.f32 %v10538_v55, %v10531_v0 }
 0x337   :  { %v2176_v5 = vsub.s32 0, %v10689_v35  ;;  %v2220_v16 = vand.u32 8388607, %v11287_v39  ;;  %v10708_v31 = vmul.f32 0.8508111, %v10548_v25  ;;  %v10719_v46 = vmul.f32 %v10538_v55, %v10601_v15 }
 0x338   :  { %vm10698_vm15 = vcmp.le.f32.partialorder %v11349_v18, 0.7853982  ;;  %v10711_v3 = vmul.f32 0.8508111, %v10538_v55  ;;  %v2166_v40 = vadd.s32 %v10593_v19, %v10590_v11  ;;  %v6597_v36 = vadd.s32 4294967169, %v2217_v21 }
 0x339   :  { %v6594_v6 = vmin.u32 %v2176_v5, %v10689_v35  ;;  %v10724_v20 = vsel %vm10698_vm15, 0, %v2197_v63  ;;  %v2221_v49 = vor.u32 8388608, %v2220_v16  ;;  %v6213_v32 = vmul.f32 %v10708_v31, %v10524_v61 }
 0x33a   :  { %v10731_v56 = vsub.f32 0.0, %v10633_v10  ;;  %v10733_v55 = vsub.f32 0.0, %v6239_v13  ;;  %v10735_v23 = vsub.f32 0.0, %v6227_v8  ;;  %v10738_v27 = vadd.s32 3, %v10724_v20 }
 0x33b   :  { %v2178_v59 = vclz %v6594_v6  ;;  %v2223_v52 = vadd.s32 1, %v6597_v36  ;;  %v10740_v30 = vshll.u32 %v2221_v49, 8  ;;  %v6214_v11 = vmul.f32 %v10711_v3, %v10546_v17 }
 0x33c   :  { %v10744_v7 = vld [vmem:[#allocation2 + $0x13] sm:$0x1]  ;;  %v10746_v61 = vld [vmem:[#allocation3 + $0x13] sm:$0x1]  ;;  %v6244_v10 = vmul.f32 %v10548_v25, %v10546_v17  ;;  %v6218_v13 = vmul.f32 %v10708_v31, %v10531_v0  ;;  %v6219_v37 = vmul.f32 %v10711_v3, %v10626_v47  ;;  %v6216_v9 = vmul.f32 -0.5254716, %v10544_v48 }
 0x33d   :  { %v6595_v19 = vadd.s32 4294967294, %v2178_v59  ;;  %vm2224_vm8 = vcmp.gt.s32.totalorder %v2223_v52, 0  ;;  %v6215_v50 = vadd.f32 %v6214_v11, %v6213_v32  ;;  %v10756_v22 = vmul.f32 -0.36162457, %v10744_v7 }
 0x33e   :  { %v2225_v51 = vsel %vm2224_vm8, %v2223_v52, 0  ;;  %v10758_v42 = vsub.f32 %v6244_v10, %v6245_v2  ;;  %v10760_v28 = vadd.f32 %v6219_v37, %v6218_v13  ;;  %v10765_v0 = vmul.f32 -0.36162457, %v10746_v61 }
 0x33f   :  { %vm6596_vm11 = vcmp.lt.s32.totalorder %v6595_v19, 0  ;;  %v2227_v38 = vand.u32 31, %v2225_v51  ;;  %v10762_v14 = vsub.f32 %v6215_v50, %v6216_v9  ;;  %v2226_v58 = vshrl.u32 %v2225_v51, 5 }
 0x340   :  { %v2181_v17 = vsel %vm6596_vm11, 0, %v6595_v19  ;;  %v11352_v16 = vmov 2102212464   ;;  %v11353_v10 = vmov 1326507024   ;;  %vm2202_vm3 = vweird.f32 %v10463_v60 }
 0x341   :  { %v2182_v8 = vsub.s32 32, %v2181_v17  ;;  %v2183_v33 = vshll.u32 %v10689_v35, %v2181_v17  ;;  %v2186_v48 = vsub.s32 4294967266, %v2181_v17  ;;  %v2228_v63 = vsub.s32 32, %v2227_v38 }
 0x342   :  { %v2230_v1 = vshll.u32 %v11321_v45, %v2227_v38  ;;  %v2233_v18 = vshll.u32 %v11341_v26, %v2227_v38  ;;  %v2236_v5 = vshll.u32 %v11342_v4, %v2227_v38  ;;  %v2239_v6 = vshll.u32 %v11352_v16, %v2227_v38 }
 0x343   :  { %v2184_v21 = vshrl.u32 %v2166_v40, %v2182_v8  ;;  %v2187_v2 = vadd.s32 127, %v2186_v48  ;;  %v2242_v36 = vshll.u32 %v11325_v53, %v2227_v38  ;;  %v2229_v49 = vshrl.u32 %v11321_v45, %v2228_v63 }
 0x344   :  { %v2231_v32 = vshrl.u32 %v11341_v26, %v2228_v63  ;;  %v2234_v35 = vshrl.u32 %v11342_v4, %v2228_v63  ;;  %v2237_v59 = vshrl.u32 %v11352_v16, %v2228_v63  ;;  %v2240_v19 = vshrl.u32 %v11325_v53, %v2228_v63 }
 0x345   :  { %v2185_v52 = vor.u32 %v2184_v21, %v2183_v33  ;;  %v2188_v11 = vshll.u32 %v2187_v2, 23  ;;  %v2243_v13 = vshrl.u32 %v11353_v10, %v2228_v63  ;;  %vm2245_vm0 = vcmp.lt.s32.totalorder %v2226_v58, 1 }
 0x346   :  { %v2232_v40 = vor.u32 %v2231_v32, %v2230_v1  ;;  %v2235_v37 = vor.u32 %v2234_v35, %v2233_v18  ;;  %v2238_v50 = vor.u32 %v2237_v59, %v2236_v5  ;;  %v2241_v17 = vor.u32 %v2240_v19, %v2239_v6 }
 0x347   :  { %v2189_v9 = vor.u32 4788187, %v2188_v11  ;;  %v2192_v51 = vcvt.s32.f32 %v2185_v52  ;;  %v2244_v38 = vor.u32 %v2243_v13, %v2242_v36  ;;  %vm2246_vm12 = vcmp.lt.s32.totalorder %v2226_v58, 2 }
 0x348   :  { %vm2247_vm13 = vcmp.lt.s32.totalorder %v2226_v58, 3  ;;  %vm2248_vm14 = vcmp.lt.s32.totalorder %v2226_v58, 4  ;;  %v2249_v8 = vsel %vm2245_vm0, %v2229_v49, %v2232_v40  ;;  %v2253_v33 = vsel %vm2245_vm0, %v2232_v40, %v2235_v37 }
 0x349   :  { %v2190_v48 = vand.u32 2147483647, %v2189_v9  ;;  %v2250_v39 = vsel %vm2248_vm14, %v2238_v50, 2102212464  ;;  %v2254_v21 = vsel %vm2248_vm14, %v2241_v17, 920167782  ;;  %v2257_v16 = vsel %vm2245_vm0, %v2235_v37, %v2238_v50 }
 0x34a   :  { %v2251_v2 = vsel %vm2247_vm13, %v2235_v37, %v2250_v39  ;;  %v2255_v53 = vsel %vm2247_vm13, %v2238_v50, %v2254_v21  ;;  %v2258_v63 = vsel %vm2248_vm14, %v2244_v38, 1326507024  ;;  %v6282_v49 = vmul.f32 %v10756_v22, %v10731_v56 }
 0x34b   :  { %v2193_v1 = vmul.f32 %v2192_v51, %v2190_v48  ;;  %v2252_v18 = vsel %vm2246_vm12, %v2249_v8, %v2251_v2  ;;  %v2256_v5 = vsel %vm2246_vm12, %v2253_v33, %v2255_v53  ;;  %v2259_v32 = vsel %vm2247_vm13, %v2241_v17, %v2258_v63 }
 0x34c   :  { %v2260_v6 = vsel %vm2246_vm12, %v2257_v16, %v2259_v32  ;;  %v10783_v36 = vmul.u32.u64.low %v10740_v30, %v2256_v5  ;;  %v10784_v35 = vmul.u32.u64.high %v10740_v30, %v2256_v5, %v10783_v36  ;;  %v6252_v11 = vmul.f32 1.46, %v10762_v14  ;;  %v10841_v5 = vld [vmem:[#allocation4 + $0x16] sm:$0x1] }
 0x34d   :  { %v2194_v39 = vxor.u32 2147483648, %v2193_v1  ;;  %v10790_v59 = vmul.u32.u64.low %v10740_v30, %v2260_v6  ;;  %v10791_v52 = vmul.u32.u64.high %v10740_v30, %v2260_v6, %v10790_v59  ;;  %v2268_v53 = vmul.u32 %v10740_v30, %v2252_v18 }
 0x34e   :  { %v6281_v58 = vmul.f32 0.9323238, %v10762_v14  ;;  %v6284_v16 = vmul.f32 %v10765_v0, %v10758_v42  ;;  %v6221_v19 = vmul.f32 -0.5254716, %v10635_v54  ;;  %v10802_v40 = vadd.f32 %v6252_v11, %v10598_v12 }
 0x34f   :  { %v2195_v13 = vsel %vm2112_vm9, %v2194_v39, %v2193_v1  ;;  %v6247_v37 = vmul.f32 %v10548_v25, %v10626_v47  ;;  %v6288_v50 = vmul.f32 %v10756_v22, %v10733_v55  ;;  %v2271_v9 = vadd.s32 1, %v10784_v35 }
 0x350   :  { %v2198_v30 = vsel %vm10698_vm15, %v10463_v60, %v2195_v13  ;;  %v6283_v51 = vadd.f32 %v6282_v49, %v6281_v58  ;;  %v10813_v54 = vsub.f32 %v10760_v28, %v6221_v19  ;;  %vm2270_vm1 = vc.u32 %v10791_v52, %v10783_v36 }
 0x351   :  { %6893 = vcosq.f32 %v2198_v30  ;;  %v6372_v12 = vsel %vm6203_vm10, %v10802_v40, 0.0  ;;  %v6208_v47 = vmul.f32 %v10708_v31, %v10601_v15  ;;  %v2272_v24 = vsel %vm2270_vm1, %v2271_v9, %v10784_v35 }
 0x352   :  { %6895 = vsinq.f32 %v2198_v30  ;;  %v10823_v17 = vadd.f32 %v6284_v16, %v6283_v51  ;;  %6374 = vst [vmem:[#allocation7 + $0x3a] sm:$0x1] %v6372_v12  ;;  %v10826_v28 = vsub.f32 %v6247_v37, %v10715_v43  ;;  %v2273_v38 = vadd.s32 %v2272_v24, %v2268_v53 }
 0x353   :  { %v6254_v8 = vmul.f32 1.46, %v10813_v54  ;;  %v6287_v48 = vmul.f32 0.9323238, %v10813_v54  ;;  %v6209_v33 = vmul.f32 %v10711_v3, %v10653_v44  ;;  %v2203_v21 = vand.u32 3, %v10724_v20 }
 0x354   :  { %v6290_v15 = vmul.f32 %v10765_v0, %v10826_v28  ;;  %v6211_v31 = vmul.f32 -0.5254716, %v10650_v41  ;;  %v6241_v2 = vmul.f32 %v10548_v25, %v10653_v44  ;;  %v2274_v43 = vadd.s32 536870912, %v2273_v38 }
 0x355   :  { %v10839_v63 = vadd.f32 %v6254_v8, %v10658_v57  ;;  %v6289_v1 = vadd.f32 %v6288_v50, %v6287_v48  ;;  %v6210_v18 = vadd.f32 %v6209_v33, %v6208_v47  ;;  %v4720_v3 = vand.u32 3, %v10738_v27 }
 0x356   :  { %v11354_v20 = vand.u32 2147483647, %v10643_v29  ;;  %vm2215_vm4 = vcmp.lt.s32.totalorder %v10643_v29, 0  ;;  %v10853_v25 = vsub.f32 %v6241_v2, %v10719_v46  ;;  %v2275_v41 = vshrl.u32 %v2274_v43, 30 }
 0x357   :  { %v6291_v44 = vadd.f32 %v6290_v15, %v6289_v1  ;;  %v6375_v57 = vsel %vm6203_vm10, %v10839_v63, 0.0  ;;  %v10858_v6 = vsub.f32 %v6210_v18, %v6211_v31  ;;  %vm2204_vm5 = vcmp.lt.s32.totalorder %v2203_v21, 2 }
 0x358   :  { %vm10847_vm2 = vcmp.le.f32.partialorder %v11354_v20, 0.7853982  ;;  %6377 = vst [vmem:[#allocation7 + $0x3b] sm:$0x1] %v6375_v57  ;;  %v6276_v27 = vmul.f32 %v10756_v22, %v10735_v23  ;;  %v2316_v35 = vand.u32 2147483647, %v10841_v5  ;;  %v6278_v30 = vmul.f32 %v10765_v0, %v10853_v25 }
 0x359   :  { %v2319_v49 = vand.u32 2139095040, %v10841_v5  ;;  %vm2205_vm7 = vcmp.eq.s32.totalorder %v2203_v21, 0  ;;  %v2276_v46 = vshll.u32 %v2275_v41, 30  ;;  %v2299_v39 = vsub.s32 4, %v2275_v41 }
 0x35a   :  { %v6250_v59 = vmul.f32 1.46, %v10858_v6  ;;  %vm4722_vm6 = vcmp.eq.s32.totalorder %v4720_v3, 0  ;;  %vm4725_vm9 = vcmp.eq.s32.totalorder %v4720_v3, 2  ;;  %vm2208_vm15 = vcmp.eq.s32.totalorder %v2203_v21, 2 }
 0x35b   :  { %v6275_v11 = vmul.f32 0.9323238, %v10858_v6  ;;  %v6894_v53 = vpop.eup %6893  ;;  %v10866_v58 = vsub.s32 %v2273_v38, %v2276_v46  ;;  %v2300_v22 = vsel %vm2215_vm4, %v2299_v39, %v2275_v41  ;;  %v2320_v19 = vshrl.u32 %v2319_v49, 23 }
 0x35c   :  { %v10871_v16 = vadd.f32 %v6250_v59, %v10673_v62  ;;  %v6896_v13 = vpop.eup %6895  ;;  %v2209_v37 = vxor.u32 2147483648, %v6894_v53  ;;  %v2323_v9 = vand.u32 8388607, %v2316_v35  ;;  %vm4721_vm8 = vcmp.lt.s32.totalorder %v4720_v3, 2 }
 0x35d   :  { %v6277_v50 = vadd.f32 %v6276_v27, %v6275_v11  ;;  %v2206_v51 = vxor.u32 2147483648, %v6896_v13  ;;  %v2279_v12 = vsub.s32 0, %v10866_v58  ;;  %v2302_v47 = vsel %vm10847_vm2, 0, %v2300_v22 }
 0x35e   :  { %v4727_v62 = vsel %vm4725_vm9, %v2209_v37, %v6896_v13  ;;  %v2210_v24 = vsel %vm2208_vm15, %v2209_v37, %v6896_v13  ;;  %v6369_v8 = vsel %vm6203_vm10, %v10871_v16, 0.0  ;;  %v6601_v15 = vadd.s32 4294967169, %v2320_v19 }
 0x35f   :  { %v6279_v38 = vadd.f32 %v6278_v30, %v6277_v50  ;;  %v4724_v0 = vsel %vm4722_vm6, %v6894_v53, %v2206_v51  ;;  %v2207_v48 = vsel %vm2205_vm7, %v6894_v53, %v2206_v51  ;;  %v6598_v33 = vmin.u32 %v2279_v12, %v10866_v58  ;;  %6371 = vst [vmem:[#allocation7 + $0x39] sm:$0x1] %v6369_v8 }
 0x360   :  { %v4728_v31 = vsel %vm4721_vm8, %v4724_v0, %v4727_v62  ;;  %v2211_v2 = vsel %vm2204_vm5, %v2207_v48, %v2210_v24  ;;  %v2324_v43 = vor.u32 8388608, %v2323_v9  ;;  %v6256_v1 = vmul.f32 0.9323238, %v10744_v7 }
 0x361   :  { %v4729_v18 = vsel %vm2202_vm3, nan, %v4728_v31  ;;  %v2212_v20 = vsel %vm2202_vm3, nan, %v2211_v2  ;;  %v2269_v3 = vadd.s32 %v10783_v36, %v10791_v52  ;;  %v2281_v41 = vclz %v6598_v33 }
 0x362   :  { %5062 = vst [vmem:[#allocation3 + $0x14] sm:$0x1] %v4729_v18  ;;  %2542 = vst [vmem:[#allocation2 + $0x14] sm:$0x1] %v2212_v20  ;;  %v10896_v57 = vadd.s32 3, %v2302_v47  ;;  %v10899_v21 = vsub.f32 0.0, %v10823_v17  ;;  %v6265_v36 = vmul.f32 %v6256_v1, %v10731_v56  ;;  %v6270_v53 = vmul.f32 %v6256_v1, %v10733_v55 }
 0x363   :  { %v10901_v27 = vsub.f32 0.0, %v6291_v44  ;;  %v10903_v49 = vand.u32 3, %v2302_v47  ;;  %v6599_v46 = vadd.s32 4294967294, %v2281_v41  ;;  %v10905_v39 = vsub.f32 0.0, %v6279_v38 }
 0x364   :  { %v2326_v60 = vadd.s32 1, %v6601_v15  ;;  %v6257_v59 = vmul.f32 0.9323238, %v10746_v61  ;;  %v10908_v11 = vshll.u32 %v2324_v43, 8  ;;  %v6268_v52 = vmul.f32 -0.36162457, %v10762_v14 }
 0x365   :  { %vm6600_vm11 = vcmp.lt.s32.totalorder %v6599_v46, 0  ;;  %v6260_v13 = vmul.f32 %v6256_v1, %v10735_v23  ;;  %v11357_v31 = vmov 2102212464   ;;  %v11358_v43 = vmov 920167782  }
 0x366   :  { %vm2327_vm0 = vcmp.gt.s32.totalorder %v2326_v60, 0  ;;  %v6266_v17 = vmul.f32 %v6257_v59, %v10758_v42  ;;  %v6271_v44 = vmul.f32 %v6257_v59, %v10826_v28  ;;  %v2284_v22 = vsel %vm6600_vm11, 0, %v6599_v46 }
 0x367   :  { %v2328_v19 = vsel %vm2327_vm0, %v2326_v60, 0  ;;  %v6261_v37 = vmul.f32 %v6257_v59, %v10853_v25  ;;  %v2285_v50 = vsub.s32 32, %v2284_v22  ;;  %v2286_v30 = vshll.u32 %v10866_v58, %v2284_v22 }
 0x368   :  { %v2289_v9 = vsub.s32 4294967266, %v2284_v22  ;;  %v2329_v51 = vshrl.u32 %v2328_v19, 5  ;;  %v2330_v14 = vand.u32 31, %v2328_v19  ;;  %v6267_v12 = vadd.f32 %v6266_v17, %v6265_v36 }
 0x369   :  { %v6272_v47 = vadd.f32 %v6271_v44, %v6270_v53  ;;  %v10918_v62 = vadd.f32 %v6261_v37, %v6260_v13  ;;  %v2287_v24 = vshrl.u32 %v2269_v3, %v2285_v50  ;;  %vm2311_vm7 = vcmp.eq.s32.totalorder %v10903_v49, 2 }
 0x36a   :  { %v2290_v38 = vadd.s32 127, %v2289_v9  ;;  %vm2348_vm12 = vcmp.lt.s32.totalorder %v2329_v51, 1  ;;  %vm2349_vm13 = vcmp.lt.s32.totalorder %v2329_v51, 2  ;;  %v2331_v8 = vsub.s32 32, %v2330_v14 }
 0x36b   :  { %v2333_v0 = vshll.u32 %v11321_v45, %v2330_v14  ;;  %v2336_v48 = vshll.u32 %v11341_v26, %v2330_v14  ;;  %v2339_v33 = vshll.u32 %v11342_v4, %v2330_v14  ;;  %v2288_v15 = vor.u32 %v2287_v24, %v2286_v30 }
 0x36c   :  { %v2291_v58 = vshll.u32 %v2290_v38, 23  ;;  %v2342_v2 = vshll.u32 %v11357_v31, %v2330_v14  ;;  %v2345_v1 = vshll.u32 %v11358_v43, %v2330_v14  ;;  %v2332_v18 = vshrl.u32 %v11321_v45, %v2331_v8 }
 0x36d   :  { %v2334_v20 = vshrl.u32 %v11341_v26, %v2331_v8  ;;  %v2337_v3 = vshrl.u32 %v11342_v4, %v2331_v8  ;;  %v2340_v41 = vshrl.u32 %v11357_v31, %v2331_v8  ;;  %v2295_v60 = vcvt.s32.f32 %v2288_v15 }
 0x36e   :  { %v2292_v46 = vor.u32 4788187, %v2291_v58  ;;  %v2343_v59 = vshrl.u32 %v11358_v43, %v2331_v8  ;;  %v2346_v36 = vshrl.u32 %v11353_v10, %v2331_v8  ;;  %vm2350_vm14 = vcmp.lt.s32.totalorder %v2329_v51, 3 }
 0x36f   :  { %v2335_v53 = vor.u32 %v2334_v20, %v2333_v0  ;;  %v2338_v17 = vor.u32 %v2337_v3, %v2336_v48  ;;  %v2341_v44 = vor.u32 %v2340_v41, %v2339_v33  ;;  %vm2351_vm1 = vcmp.lt.s32.totalorder %v2329_v51, 4 }
 0x370   :  { %v2293_v22 = vand.u32 2147483647, %v2292_v46  ;;  %v2344_v19 = vor.u32 %v2343_v59, %v2342_v2  ;;  %v2347_v13 = vor.u32 %v2346_v36, %v2345_v1  ;;  %v6269_v33 = vsub.f32 %v6267_v12, %v6268_v52 }
 0x371   :  { %v2352_v37 = vsel %vm2348_vm12, %v2332_v18, %v2335_v53  ;;  %v2353_v50 = vsel %vm2351_vm1, %v2341_v44, 2102212464  ;;  %v2356_v30 = vsel %vm2348_vm12, %v2335_v53, %v2338_v17  ;;  %v2360_v9 = vsel %vm2348_vm12, %v2338_v17, %v2341_v44 }
 0x372   :  { %v2296_v14 = vmul.f32 %v2295_v60, %v2293_v22  ;;  %v2354_v24 = vsel %vm2350_vm14, %v2338_v17, %v2353_v50  ;;  %v2357_v38 = vsel %vm2351_vm1, %v2344_v19, 920167782  ;;  %v2361_v15 = vsel %vm2351_vm1, %v2347_v13, 1326507024  ;;  %v10947_v60 = vld [vmem:[#allocation2 + $0x14] sm:$0x1] }
 0x373   :  { %v2355_v8 = vsel %vm2349_vm13, %v2352_v37, %v2354_v24  ;;  %v2358_v0 = vsel %vm2350_vm14, %v2341_v44, %v2357_v38  ;;  %v2362_v48 = vsel %vm2350_vm14, %v2344_v19, %v2361_v15  ;;  %v6273_v18 = vmul.f32 -0.36162457, %v10813_v54  ;;  %v10967_v19 = vld [vmem:[#allocation3 + $0x14] sm:$0x1] }
 0x374   :  { %v2297_v58 = vxor.u32 2147483648, %v2296_v14  ;;  %v2359_v2 = vsel %vm2349_vm13, %v2356_v30, %v2358_v0  ;;  %v2363_v1 = vsel %vm2349_vm13, %v2360_v9, %v2362_v48  ;;  %v2371_v12 = vmul.u32 %v10908_v11, %v2355_v8 }
 0x375   :  { %v10939_v20 = vmul.u32.u64.low %v10908_v11, %v2363_v1  ;;  %v10940_v3 = vmul.u32.u64.high %v10908_v11, %v2363_v1, %v10939_v20  ;;  %v10943_v41 = vmul.u32.u64.low %v10908_v11, %v2359_v2  ;;  %v10944_v46 = vmul.u32.u64.high %v10908_v11, %v2359_v2, %v10943_v41 }
 0x376   :  { %v2298_v52 = vsel %vm2215_vm4, %v2297_v58, %v2296_v14  ;;  %v6304_v51 = vmul.f32 1.525, %v6269_v33  ;;  %v6310_v59 = vmul.f32 -0.44150585, %v10947_v60  ;;  %v6333_v36 = vmul.f32 0.89725834, %v6269_v33 }
 0x377   :  { %v2301_v54 = vsel %vm10847_vm2, %v10643_v29, %v2298_v52  ;;  %v10956_v53 = vsub.f32 %v6272_v47, %v6273_v18  ;;  %v6263_v17 = vmul.f32 -0.36162457, %v10858_v6  ;;  %vm2373_vm3 = vc.u32 %v10940_v3, %v10943_v41 }
 0x378   :  { %6897 = vcosq.f32 %v2301_v54  ;;  %v10960_v44 = vadd.f32 %v6304_v51, %v10802_v40  ;;  %v6334_v22 = vmul.f32 %v6310_v59, %v10899_v21  ;;  %v6340_v11 = vmul.f32 %v6310_v59, %v10901_v27 }
 0x379   :  { %6899 = vsinq.f32 %v2301_v54  ;;  %v2374_v32 = vadd.s32 1, %v10944_v46  ;;  %v6296_v47 = vmul.f32 %v10758_v42, %v10744_v7  ;;  %v6306_v13 = vmul.f32 1.525, %v10956_v53 }
 0x37a   :  { %v10971_v6 = vadd.f32 %v6334_v22, %v6333_v36  ;;  %v6381_v40 = vsel %vm6203_vm10, %v10960_v44, 0.0  ;;  %v6339_v37 = vmul.f32 0.89725834, %v10956_v53  ;;  %v10980_v30 = vsub.f32 %v10918_v62, %v6263_v17 }
 0x37b   :  { %v2375_v50 = vsel %vm2373_vm3, %v2374_v32, %v10944_v46  ;;  %6383 = vst [vmem:[#allocation7 + $0x3d] sm:$0x1] %v6381_v40  ;;  %v6328_v9 = vmul.f32 %v6310_v59, %v10905_v39  ;;  %v6297_v42 = vmul.f32 %v10731_v56, %v10746_v61  ;;  %v10986_v24 = vadd.f32 %v6306_v13, %v10839_v63 }
 0x37c   :  { %v2376_v14 = vadd.s32 %v2375_v50, %v2371_v12  ;;  %v10988_v38 = vadd.f32 %v6340_v11, %v6339_v37  ;;  %v6308_v15 = vmul.f32 0.89725834, %v10947_v60  ;;  %v6302_v8 = vmul.f32 1.525, %v10980_v30 }
 0x37d   :  { %v6327_v0 = vmul.f32 0.89725834, %v10980_v30  ;;  %v10993_v48 = vsub.f32 %v6296_v47, %v6297_v42  ;;  %v10996_v62 = vmul.f32 0.89725834, %v10967_v19  ;;  %v4824_v58 = vand.u32 3, %v10896_v57 }
 0x37e   :  { %v2377_v56 = vadd.s32 536870912, %v2376_v14  ;;  %v6384_v63 = vsel %vm6203_vm10, %v10986_v24, 0.0  ;;  %v6317_v2 = vmul.f32 %v6308_v15, %v10899_v21  ;;  %v11004_v1 = vadd.f32 %v6302_v8, %v10871_v16 }
 0x37f   :  { %6386 = vst [vmem:[#allocation7 + $0x3e] sm:$0x1] %v6384_v63  ;;  %v11006_v18 = vadd.f32 %v6328_v9, %v6327_v0  ;;  %v6318_v20 = vmul.f32 %v10996_v62, %v10993_v48  ;;  %vm2305_vm2 = vweird.f32 %v10643_v29  ;;  %v6299_v57 = vmul.f32 %v10826_v28, %v10744_v7 }
 0x380   :  { %v2378_v46 = vshrl.u32 %v2377_v56, 30  ;;  %v6300_v52 = vmul.f32 %v10733_v55, %v10746_v61  ;;  %vm2318_vm4 = vcmp.lt.s32.totalorder %v10841_v5, 0  ;;  %v6378_v16 = vsel %vm6203_vm10, %v11004_v1, 0.0 }
 0x381   :  { %v6319_v12 = vadd.f32 %v6318_v20, %v6317_v2  ;;  %v6320_v51 = vmul.f32 -0.44150585, %v6269_v33  ;;  %vm4829_vm5 = vcmp.eq.s32.totalorder %v4824_v58, 2  ;;  %6380 = vst [vmem:[#allocation7 + $0x3c] sm:$0x1] %v6378_v16  ;;  %vm4826_vm6 = vcmp.eq.s32.totalorder %v4824_v58, 0 }
 0x382   :  { %v6898_v59 = vpop.eup %6897  ;;  %v2379_v54 = vshll.u32 %v2378_v46, 30  ;;  %v11020_v36 = vsub.f32 %v6299_v57, %v6300_v52  ;;  %vm2308_vm9 = vcmp.eq.s32.totalorder %v10903_v49, 0  ;;  %vm11025_vm15 = vcmp.le.f32.partialorder %v2316_v35, 0.7853982 }
 0x383   :  { %v6900_v28 = vpop.eup %6899  ;;  %v2312_v17 = vxor.u32 2147483648, %v6898_v59  ;;  %v6321_v33 = vsub.f32 %v6319_v12, %v6320_v51  ;;  %vm4825_vm10 = vcmp.lt.s32.totalorder %v4824_v58, 2  ;;  %vm2307_vm8 = vcmp.lt.s32.totalorder %v10903_v49, 2 }
 0x384   :  { %v2309_v22 = vxor.u32 2147483648, %v6900_v28  ;;  %v11030_v11 = vsub.s32 %v2376_v14, %v2379_v54  ;;  %v2402_v40 = vsub.s32 4, %v2378_v46  ;;  %v6322_v35 = vmul.f32 %v6308_v15, %v10901_v27 }
 0x385   :  { %v4831_v32 = vsel %vm4829_vm5, %v2312_v17, %v6900_v28  ;;  %v2313_v47 = vsel %vm2311_vm7, %v2312_v17, %v6900_v28  ;;  %v6356_v13 = vmul.f32 1.33, %v6321_v33  ;;  %v6294_v49 = vmul.f32 %v10735_v23, %v10746_v61 }
 0x386   :  { %v4828_v37 = vsel %vm4826_vm6, %v6898_v59, %v2309_v22  ;;  %v2310_v50 = vsel %vm2308_vm9, %v6898_v59, %v2309_v22  ;;  %v2382_v9 = vsub.s32 0, %v11030_v11  ;;  %vm6393_vm11 = vcmp.gt.s32.totalorder %v10572_v34, 7 }
 0x387   :  { %v4832_v42 = vsel %vm4825_vm10, %v4828_v37, %v4831_v32  ;;  %v2314_v8 = vsel %vm2307_vm8, %v2310_v50, %v2313_v47  ;;  %v11035_v0 = vadd.f32 %v6356_v13, %v10960_v44  ;;  %v2372_v63 = vadd.s32 %v10943_v41, %v10940_v3 }
 0x388   :  { %v4833_v14 = vsel %vm2305_vm2, nan, %v4832_v42  ;;  %v2315_v58 = vsel %vm2305_vm2, nan, %v2314_v8  ;;  %v6602_v56 = vmin.u32 %v2382_v9, %v11030_v11  ;;  %v2403_v44 = vsel %vm2318_vm4, %v2402_v40, %v2378_v46 }
 0x389   :  { %5063 = vst [vmem:[#allocation3 + $0x15] sm:$0x1] %v4833_v14  ;;  %2543 = vst [vmem:[#allocation2 + $0x15] sm:$0x1] %v2315_v58  ;;  %v6323_v23 = vmul.f32 %v10996_v62, %v11020_v36  ;;  %v6293_v61 = vmul.f32 %v10853_v25, %v10744_v7  ;;  %v6325_v2 = vmul.f32 -0.44150585, %v10956_v53  ;;  %v6312_v20 = vmul.f32 %v6308_v15, %v10905_v39 }
 0x38a   :  { %v2384_v29 = vclz %v6602_v56  ;;  %v6315_v57 = vmul.f32 -0.44150585, %v10980_v30  ;;  %v6472_v3 = vsel %vm6393_vm11, %v11035_v0, 0.0  ;;  %v6311_v46 = vmul.f32 -0.44150585, %v10967_v19 }
 0x38b   :  { %v6324_v41 = vadd.f32 %v6323_v23, %v6322_v35  ;;  %v6295_v52 = vsub.f32 %v6293_v61, %v6294_v49  ;;  %v11062_v12 = vsel %vm11025_vm15, 0, %v2403_v44  ;;  %6474 = vst [vmem:[#allocation7 + $0x40] sm:$0x1] %v6472_v3  ;;  %v6348_v7 = vmul.f32 %v10993_v48, %v10947_v60 }
 0x38c   :  { %v6603_v16 = vadd.s32 4294967294, %v2384_v29  ;;  %v6349_v25 = vmul.f32 %v10899_v21, %v10967_v19  ;;  %v11068_v53 = vmul.f32 0.8508111, %v6321_v33  ;;  %v6406_v51 = vmul.f32 -0.5254716, %v6321_v33 }
 0x38d   :  { %v6326_v30 = vsub.f32 %v6324_v41, %v6325_v2  ;;  %v6313_v15 = vmul.f32 %v10996_v62, %v6295_v52  ;;  %v6336_v59 = vmul.f32 %v6311_v46, %v10993_v48  ;;  %v6342_v28 = vmul.f32 %v6311_v46, %v11020_v36 }
 0x38e   :  { %vm6604_vm0 = vcmp.lt.s32.totalorder %v6603_v16, 0  ;;  %v11072_v54 = vsub.f32 %v6348_v7, %v6349_v25  ;;  %v6352_v47 = vmul.f32 %v10901_v27, %v10967_v19  ;;  %v6330_v29 = vmul.f32 %v6311_v46, %v6295_v52 }
 0x38f   :  { %v2387_v17 = vsel %vm6604_vm0, 0, %v6603_v16  ;;  %v6358_v22 = vmul.f32 1.33, %v6326_v30  ;;  %v6314_v32 = vadd.f32 %v6313_v15, %v6312_v20  ;;  %v6337_v62 = vadd.f32 %v6336_v59, %v10971_v6 }
 0x390   :  { %v2388_v21 = vsub.s32 32, %v2387_v17  ;;  %v2389_v40 = vshll.u32 %v11030_v11, %v2387_v17  ;;  %v2392_v13 = vsub.s32 4294967266, %v2387_v17  ;;  %v11079_v33 = vld [vmem:[#allocation2 + $0x15] sm:$0x1]  ;;  %v11081_v37 = vld [vmem:[#allocation3 + $0x15] sm:$0x1]  ;;  %v6343_v11 = vadd.f32 %v6342_v28, %v10988_v38 }
 0x391   :  { %v6359_v48 = vadd.f32 %v6358_v22, %v10986_v24  ;;  %v11084_v50 = vsub.f32 %v6314_v32, %v6315_v57  ;;  %v6394_v9 = vmul.f32 0.8508111, %v11079_v33  ;;  %v6395_v35 = vmul.f32 0.8508111, %v11081_v37 }
 0x392   :  { %v2390_v42 = vshrl.u32 %v2372_v63, %v2388_v21  ;;  %v2393_v27 = vadd.s32 127, %v2392_v13  ;;  %v6338_v8 = vsub.f32 0.0, %v6337_v62  ;;  %v6351_v24 = vmul.f32 %v11020_v36, %v10947_v60 }
 0x393   :  { %v6475_v6 = vsel %vm6393_vm11, %v6359_v48, 0.0  ;;  %v6354_v49 = vmul.f32 1.33, %v11084_v50  ;;  %v6404_v14 = vmul.f32 %v6395_v35, %v11072_v54  ;;  %v6344_v23 = vsub.f32 0.0, %v6343_v11 }
 0x394   :  { %v2391_v58 = vor.u32 %v2390_v42, %v2389_v40  ;;  %v2394_v56 = vshll.u32 %v2393_v27, 23  ;;  %6477 = vst [vmem:[#allocation7 + $0x41] sm:$0x1] %v6475_v6  ;;  %v6403_v44 = vmul.f32 %v6394_v9, %v6338_v8  ;;  %v6425_v63 = vmul.f32 0.8508111, %v6326_v30 }
 0x395   :  { %v11096_v61 = vadd.f32 %v6354_v49, %v11004_v1  ;;  %v6353_v38 = vsub.f32 %v6351_v24, %v6352_v47  ;;  %v6408_v3 = vmul.f32 %v6394_v9, %v6344_v23  ;;  %v6411_v16 = vmul.f32 -0.5254716, %v6326_v30 }
 0x396   :  { %v2395_v2 = vor.u32 4788187, %v2394_v56  ;;  %v2398_v20 = vcvt.s32.f32 %v2391_v58  ;;  %v6405_v57 = vadd.f32 %v6404_v14, %v6403_v44  ;;  %v6331_v7 = vadd.f32 %v6330_v29, %v11006_v18  ;;  %v11155_v29 = vld [vmem:[#allocation4 + $0x17] sm:$0x1] }
 0x397   :  { %v6469_v41 = vsel %vm6393_vm11, %v11096_v61, 0.0  ;;  %v6409_v36 = vmul.f32 %v6395_v35, %v6353_v38  ;;  %v6345_v1 = vmul.f32 %v6295_v52, %v10947_v60  ;;  %v6346_v46 = vmul.f32 %v10905_v39, %v10967_v19 }
 0x398   :  { %v2396_v25 = vand.u32 2147483647, %v2395_v2  ;;  %6471 = vst [vmem:[#allocation7 + $0x3f] sm:$0x1] %v6469_v41  ;;  %v11102_v15 = vsub.f32 %v6405_v57, %v6406_v51  ;;  %v6332_v28 = vsub.f32 0.0, %v6331_v7  ;;  %v11115_v60 = vmul.f32 %v11079_v33, %v11072_v54 }
 0x399   :  { %v6410_v59 = vadd.f32 %v6409_v36, %v6408_v3  ;;  %v6396_v17 = vmul.f32 -0.5254716, %v11079_v33  ;;  %v6397_v22 = vmul.f32 -0.5254716, %v11081_v37  ;;  %v6347_v47 = vsub.f32 %v6345_v1, %v6346_v46 }
 0x39a   :  { %v2399_v32 = vmul.f32 %v2398_v20, %v2396_v25  ;;  %v6442_v30 = vmul.f32 1.46, %v11102_v15  ;;  %v6401_v18 = vmul.f32 -0.5254716, %v11084_v50  ;;  %v6398_v51 = vmul.f32 %v6394_v9, %v6332_v28 }
 0x39b   :  { %v11111_v21 = vsub.f32 %v6410_v59, %v6411_v16  ;;  %v6420_v40 = vmul.f32 %v6396_v17, %v6338_v8  ;;  %v6399_v52 = vmul.f32 %v6395_v35, %v6347_v47  ;;  %v11121_v13 = vmul.f32 %v11081_v37, %v6338_v8 }
 0x39c   :  { %v2400_v39 = vxor.u32 2147483648, %v2399_v32  ;;  %v11118_v19 = vadd.f32 %v6442_v30, %v11035_v0  ;;  %v6422_v27 = vmul.f32 %v6397_v22, %v11072_v54  ;;  %v6426_v9 = vmul.f32 %v6396_v17, %v6344_v23 }
 0x39d   :  { %v6444_v62 = vmul.f32 1.46, %v11111_v21  ;;  %v6421_v42 = vadd.f32 %v6420_v40, %v11068_v53  ;;  %v6400_v0 = vadd.f32 %v6399_v52, %v6398_v51  ;;  %v6436_v35 = vsub.f32 %v11115_v60, %v11121_v13 }
 0x39e   :  { %v2401_v11 = vsel %vm2318_vm4, %v2400_v39, %v2399_v32  ;;  %v6481_v6 = vsel %vm6393_vm11, %v11118_v19, 0.0  ;;  %v6427_v49 = vadd.f32 %v6426_v9, %v6425_v63  ;;  %v6428_v24 = vmul.f32 %v6397_v22, %v6353_v38 }
 0x39f   :  { %v2404_v8 = vsel %vm11025_vm15, %v10841_v5, %v2401_v11  ;;  %6483 = vst [vmem:[#allocation7 + $0x43] sm:$0x1] %v6481_v6  ;;  %v11136_v53 = vadd.f32 %v6444_v62, %v6359_v48  ;;  %v11138_v54 = vadd.f32 %v6422_v27, %v6421_v42  ;;  %v11140_v14 = vsub.f32 %v6400_v0, %v6401_v18 }
 0x3a0   :  { %6901 = vcosq.f32 %v2404_v8  ;;  %v11146_v56 = vmul.f32 %v11079_v33, %v6353_v38  ;;  %v11149_v55 = vmul.f32 %v11081_v37, %v6344_v23  ;;  %v4927_v48 = vadd.s32 3, %v11062_v12 }
 0x3a1   :  { %6903 = vsinq.f32 %v2404_v8  ;;  %v6484_v58 = vsel %vm6393_vm11, %v11136_v53, 0.0  ;;  %v6440_v44 = vmul.f32 1.46, %v11140_v14  ;;  %v11153_v63 = vadd.f32 %v6428_v24, %v6427_v49 }
 0x3a2   :  { %6486 = vst [vmem:[#allocation7 + $0x44] sm:$0x1] %v6484_v58  ;;  %v6413_v2 = vmul.f32 0.8508111, %v11084_v50  ;;  %v6439_v20 = vsub.f32 %v11146_v56, %v11149_v55  ;;  %v6969_v57 = vmov 0.0   ;;  %v6414_v23 = vmul.f32 %v6396_v17, %v6332_v28 }
 0x3a3   :  { %5212 = vst [vmem:[#allocation7] sm:$0x1] %v6969_v57  ;;  %5214 = vst [vmem:[#allocation7 + $0x1] sm:$0x1] %v6969_v57  ;;  %v11161_v38 = vadd.f32 %v6440_v44, %v11096_v61  ;;  %v11164_v3 = vmul.f32 %v11079_v33, %v6347_v47  ;;  %v11167_v41 = vmul.f32 %v11081_v37, %v6332_v28  ;;  %v2422_v50 = vand.u32 2139095040, %v11155_v29 }
 0x3a4   :  { %5216 = vst [vmem:[#allocation7 + $0x2] sm:$0x1] %v6969_v57  ;;  %v6415_v36 = vadd.f32 %v6414_v23, %v6413_v2  ;;  %v6416_v16 = vmul.f32 %v6397_v22, %v6347_v47  ;;  %v4928_v7 = vand.u32 3, %v4927_v48  ;;  %v2409_v25 = vand.u32 3, %v11062_v12 }
 0x3a5   :  { %v6478_v1 = vsel %vm6393_vm11, %v11161_v38, 0.0  ;;  %v6433_v61 = vsub.f32 %v11164_v3, %v11167_v41  ;;  %v2423_v46 = vshrl.u32 %v2422_v50, 23  ;;  %v2419_v12 = vand.u32 2147483647, %v11155_v29 }
 0x3a6   :  { %6480 = vst [vmem:[#allocation7 + $0x42] sm:$0x1] %v6478_v1  ;;  %v11176_v33 = vadd.f32 %v6416_v16, %v6415_v36  ;;  %vm4933_vm12 = vcmp.eq.s32.totalorder %v4928_v7, 2  ;;  %vm2411_vm13 = vcmp.eq.s32.totalorder %v2409_v25, 0  ;;  %vm2414_vm14 = vcmp.eq.s32.totalorder %v2409_v25, 2 }
 0x3a7   :  { %v6605_v37 = vadd.s32 4294967169, %v2423_v46  ;;  %vm4930_vm1 = vcmp.eq.s32.totalorder %v4928_v7, 0  ;;  %vm4929_vm3 = vcmp.lt.s32.totalorder %v4928_v7, 2  ;;  %vm2410_vm2 = vcmp.lt.s32.totalorder %v2409_v25, 2 }
 0x3a8   :  { %vm2408_vm4 = vweird.f32 %v10841_v5  ;;  %v2426_v62 = vand.u32 8388607, %v2419_v12  ;;  %v11183_v11 = vmul.f32 -0.36162457, %v11102_v15  ;;  %v6424_v24 = vsub.f32 0.0, %v11138_v54 }
 0x3a9   :  { %v2429_v22 = vadd.s32 1, %v6605_v37  ;;  %v6461_v58 = vmul.f32 -0.36162457, %v11111_v21  ;;  %v6430_v36 = vsub.f32 0.0, %v11153_v63 }
 0x3aa   :  { %v6902_v59 = vpop.eup %6901  ;;  %v2427_v15 = vor.u32 8388608, %v2426_v62 }
 0x3ab   :  { %v6904_v28 = vpop.eup %6903  ;;  %v2415_v17 = vxor.u32 2147483648, %v6902_v59  ;;  %vm2430_vm5 = vcmp.gt.s32.totalorder %v2429_v22, 0 }
 0x3ac   :  { %v2412_v32 = vxor.u32 2147483648, %v6904_v28  ;;  %v2431_v40 = vsel %vm2430_vm5, %v2429_v22, 0 }
 0x3ad   :  { %v4935_v30 = vsel %vm4933_vm12, %v2415_v17, %v6904_v28  ;;  %v2416_v47 = vsel %vm2414_vm14, %v2415_v17, %v6904_v28  ;;  %v2433_v42 = vand.u32 31, %v2431_v40  ;;  %v2432_v6 = vshrl.u32 %v2431_v40, 5 }
 0x3ae   :  { %v4932_v18 = vsel %vm4930_vm1, %v6902_v59, %v2412_v32  ;;  %v2413_v51 = vsel %vm2411_vm13, %v6902_v59, %v2412_v32 }
 0x3af   :  { %v4936_v39 = vsel %vm4929_vm3, %v4932_v18, %v4935_v30  ;;  %v2417_v52 = vsel %vm2410_vm2, %v2413_v51, %v2416_v47  ;;  %v2434_v5 = vsub.s32 32, %v2433_v42  ;;  %v2436_v0 = vshll.u32 %v11321_v45, %v2433_v42 }
 0x3b0   :  { %v4937_v27 = vsel %vm2408_vm4, nan, %v4936_v39  ;;  %v2418_v9 = vsel %vm2408_vm4, nan, %v2417_v52  ;;  %v2439_v8 = vshll.u32 %v11341_v26, %v2433_v42  ;;  %v2442_v49 = vshll.u32 %v11342_v4, %v2433_v42 }
 0x3b1   :  { %5064 = vst [vmem:[#allocation3 + $0x16] sm:$0x1] %v4937_v27  ;;  %2544 = vst [vmem:[#allocation2 + $0x16] sm:$0x1] %v2418_v9  ;;  %v2445_v48 = vshll.u32 %v11357_v31, %v2433_v42  ;;  %v2448_v44 = vshll.u32 %v11358_v43, %v2433_v42  ;;  %v2437_v2 = vshrl.u32 %v11341_v26, %v2434_v5  ;;  %vm2451_vm7 = vcmp.lt.s32.totalorder %v2432_v6, 1 }
 0x3b2   :  { %v2440_v57 = vshrl.u32 %v11342_v4, %v2434_v5  ;;  %v2443_v23 = vshrl.u32 %v11357_v31, %v2434_v5  ;;  %v2446_v16 = vshrl.u32 %v11358_v43, %v2434_v5  ;;  %v2449_v50 = vshrl.u32 %v11353_v10, %v2434_v5 }
 0x3b3   :  { %v2438_v54 = vor.u32 %v2437_v2, %v2436_v0  ;;  %vm2454_vm6 = vcmp.lt.s32.totalorder %v2432_v6, 4  ;;  %v2435_v25 = vshrl.u32 %v11321_v45, %v2434_v5  ;;  %vm2453_vm9 = vcmp.lt.s32.totalorder %v2432_v6, 3 }
 0x3b4   :  { %v2441_v21 = vor.u32 %v2440_v57, %v2439_v8  ;;  %v2444_v7 = vor.u32 %v2443_v23, %v2442_v49  ;;  %v2447_v1 = vor.u32 %v2446_v16, %v2445_v48  ;;  %v2450_v46 = vor.u32 %v2449_v50, %v2448_v44 }
 0x3b5   :  { %v6418_v26 = vsub.f32 0.0, %v11176_v33  ;;  %vm2452_vm15 = vcmp.lt.s32.totalorder %v2432_v6, 2  ;;  %v2467_v31 = vshll.u32 %v2427_v15, 8  ;;  %v2455_v45 = vsel %vm2451_vm7, %v2435_v25, %v2438_v54 }
 0x3b6   :  { %v2456_v4 = vsel %vm2454_vm6, %v2444_v7, 2102212464  ;;  %v2460_v10 = vsel %vm2454_vm6, %v2447_v1, 920167782  ;;  %v2459_v28 = vsel %vm2451_vm7, %v2438_v54, %v2441_v21  ;;  %v2463_v33 = vsel %vm2451_vm7, %v2441_v21, %v2444_v7 }
 0x3b7   :  { %v2461_v17 = vsel %vm2453_vm9, %v2444_v7, %v2460_v10  ;;  %v2457_v22 = vsel %vm2453_vm9, %v2441_v21, %v2456_v4  ;;  %v2464_v32 = vsel %vm2454_vm6, %v2450_v46, 1326507024  ;;  %v6451_v9 = vmul.f32 -0.36162457, %v11140_v14 }
 0x3b8   :  { %v6389_v63 = vld [vmem:[#allocation2 + $0x16] sm:$0x1]  ;;  %v6392_v43 = vld [vmem:[#allocation3 + $0x16] sm:$0x1]  ;;  %v2462_v52 = vsel %vm2452_vm15, %v2459_v28, %v2461_v17  ;;  %v2465_v62 = vsel %vm2453_vm9, %v2447_v1, %v2464_v32 }
 0x3b9   :  { %v6446_v37 = vmul.f32 0.9323238, %v6389_v63  ;;  %v6447_v59 = vmul.f32 0.9323238, %v6392_v43  ;;  %v2466_v60 = vsel %vm2452_vm15, %v2463_v33, %v2465_v62 }
 0x3ba   :  { %v11222_v56 = vmul.u32.u64.low %v2467_v31, %v2466_v60  ;;  %v11223_v55 = vmul.u32.u64.high %v2467_v31, %v2466_v60, %v11222_v56 }
 0x3bb   :  { %v6453_v30 = vmul.f32 %v6446_v37, %v6424_v24  ;;  %v6454_v47 = vmul.f32 %v6447_v59, %v6436_v35  ;;  %v6458_v18 = vmul.f32 %v6446_v37, %v6430_v36  ;;  %v6459_v51 = vmul.f32 %v6447_v59, %v6439_v20 }
 0x3bc   :  { %v6448_v40 = vmul.f32 %v6446_v37, %v6418_v26  ;;  %v6449_v39 = vmul.f32 %v6447_v59, %v6433_v61  ;;  %v2458_v35 = vsel %vm2452_vm15, %v2455_v45, %v2457_v22 }
 0x3bd   :  { %v6455_v42 = vadd.f32 %v6454_v47, %v6453_v30  ;;  %v6460_v27 = vadd.f32 %v6459_v51, %v6458_v18  ;;  %v11226_v41 = vmul.u32.u64.low %v2467_v31, %v2462_v52  ;;  %v11227_v61 = vmul.u32.u64.high %v2467_v31, %v2462_v52, %v11226_v41 }
 0x3be   :  { %v6450_v13 = vadd.f32 %v6449_v39, %v6448_v40  ;;  %v2474_v24 = vmul.u32 %v2467_v31, %v2458_v35 }
 0x3bf   :  { %v6457_v20 = vsub.f32 %v6455_v42, %v11183_v11  ;;  %v6462_v3 = vsub.f32 %v6460_v27, %v6461_v58  ;;  %vm2476_vm10 = vc.u32 %v11223_v55, %v11226_v41  ;;  %v2477_v48 = vadd.s32 1, %v11227_v61 }
 0x3c0   :  { %v6452_v5 = vsub.f32 %v6450_v13, %v6451_v9 }
 0x3c1   :  { %v6465_v0 = vmul.f32 1.525, %v6457_v20  ;;  %v6467_v8 = vmul.f32 1.525, %v6462_v3  ;;  %v2478_v15 = vsel %vm2476_vm10, %v2477_v48, %v11227_v61 }
 0x3c2   :  { %v6463_v49 = vmul.f32 1.525, %v6452_v5  ;;  %v2479_v2 = vadd.s32 %v2478_v15, %v2474_v24 }
 0x3c3   :  { %v6466_v14 = vadd.f32 %v6465_v0, %v11118_v19  ;;  %v6468_v6 = vadd.f32 %v6467_v8, %v11136_v53 }
 0x3c4   :  { %v6464_v11 = vadd.f32 %v6463_v49, %v11161_v38  ;;  %v2480_v53 = vadd.s32 536870912, %v2479_v2 }
 0x3c5   :  { %v6490_v58 = vsel %vm6393_vm11, %v6466_v14, 0.0  ;;  %v6493_v44 = vsel %vm6393_vm11, %v6468_v6, 0.0 }
 0x3c6   :  { %6492 = vst [vmem:[#allocation7 + $0x46] sm:$0x1] %v6490_v58  ;;  %6495 = vst [vmem:[#allocation7 + $0x47] sm:$0x1] %v6493_v44  ;;  %v6487_v19 = vsel %vm6393_vm11, %v6464_v11, 0.0 }
 0x3c7   :  { %6489 = vst [vmem:[#allocation7 + $0x45] sm:$0x1] %v6487_v19 }
 0x3c8   :  { %6945 = shalt.err (!%p6942_p12)
}
 0x3c9   :  { %s6946_s6 = scalar_lea.hbm %s11263_s2, 1152 }
 0x3ca   :  { %p6947_p13 = scmp.ne.s32.totalorder %s11263_s2, %s6946_s6  ;;  %p6950_p0 = scmp.lt.u32.totalorder %s6946_s6, %s11263_s2 }
 0x3cc   :  { %p6952_p1 = pnand %p6950_p0, %p6947_p13 }
 0x3ce   :  { %6955 = shalt.err (!%p6952_p1)
}
 0x3cf   :  { %6507 = dma.vmem_to_hbm [thread:$0]  %s6502_s30, 1152, %s11263_s2, [#allocation6], %s6961_s19, %s6961_s19, %s6962_s20   ;;  %v2481_v34 = vshrl.u32 %v2480_v53, 30  ;;  %v2475_v54 = vadd.s32 %v11226_v41, %v11223_v55  ;;  %vm2421_vm11 = vcmp.lt.s32.totalorder %v11155_v29, 0  ;;  %vm2420_vm0 = vcmp.le.f32.partialorder %v2419_v12, 0.7853982 }
 0x3d1   :  { %v2482_v38 = vshll.u32 %v2481_v34, 30 }
 0x3d3   :  { %v2483_v57 = vsub.s32 %v2479_v2, %v2482_v38 }
 0x3d5   :  { %v2485_v23 = vsub.s32 0, %v2483_v57 }
 0x3d7   :  { %v6606_v36 = vmin.u32 %v2485_v23, %v2483_v57 }
 0x3d9   :  { %v2487_v16 = vclz %v6606_v36 }
 0x3db   :  { %v6607_v50 = vadd.s32 4294967294, %v2487_v16 }
 0x3dd   :  { %vm6608_vm8 = vcmp.lt.s32.totalorder %v6607_v50, 0 }
 0x3de   :  { %v2490_v21 = vsel %vm6608_vm8, 0, %v6607_v50 }
 0x3df   :  { %v2491_v7 = vsub.s32 32, %v2490_v21  ;;  %v2492_v25 = vshll.u32 %v2483_v57, %v2490_v21  ;;  %v2495_v1 = vsub.s32 4294967266, %v2490_v21 }
 0x3e1   :  { %v2493_v46 = vshrl.u32 %v2475_v54, %v2491_v7  ;;  %v2496_v26 = vadd.s32 127, %v2495_v1 }
 0x3e3   :  { %v2494_v4 = vor.u32 %v2493_v46, %v2492_v25  ;;  %v2497_v31 = vshll.u32 %v2496_v26, 23 }
 0x3e5   :  { %v2498_v63 = vor.u32 4788187, %v2497_v31  ;;  %v2501_v43 = vcvt.s32.f32 %v2494_v4 }
 0x3e7   :  { %v2499_v10 = vand.u32 2147483647, %v2498_v63 }
 0x3e9   :  { %v2502_v37 = vmul.f32 %v2501_v43, %v2499_v10 }
 0x3eb   :  { %v2503_v59 = vxor.u32 2147483648, %v2502_v37 }
 0x3ed   :  { %v2504_v28 = vsel %vm2421_vm11, %v2503_v59, %v2502_v37 }
 0x3ee   :  { %v2507_v17 = vsel %vm2420_vm0, %v11155_v29, %v2504_v28 }
 0x3ef   :  { %6905 = vcosq.f32 %v2507_v17 }
 0x3f0   :  { %6907 = vsinq.f32 %v2507_v17 }
 0x3f9   :  { %v6906_v45 = vpop.eup %6905 }
 0x3fa   :  { %v6908_v22 = vpop.eup %6907 }
 0x3fb   :  { %6958 = dma.done.wait [#allocation6], 1152  }
 0x3fc   :  { %6959 = vsyncadd [#allocation6], 4294966144 }
 0x3fd   :  { %6511 = vsyncpa [#allocation5], 1 }
 0x3fe   :  { %6512 = vsyncpa [#allocation6], 1 }

</bundles_post_ra>
